<compile_context>
chip_gen: v5e
topology: v5e:2x2
jax: 0.10.0
libtpu: 0.0.40
codegen_flags: <defaults>
</compile_context>

<pallas_src>
import functools

import jax
import jax.numpy as jnp
from jax.experimental import pallas as pl
from jax.experimental.pallas import tpu as pltpu


_MATMUL_DTYPE = jnp.bfloat16
_LANE = 128


def _round_up(n, m):
    return ((n + m - 1) // m) * m


# --------------------------------------------------------------------------
# Fused conv3x3(pad=1) + bias + ReLU + 2x2 max-pool kernel (one per stage)
# --------------------------------------------------------------------------
def _conv_pool_kernel(p_ref, w_ref, b_ref, o_ref, *, b_blk, mp):
    """One grid step = b_blk images.

    p_ref: (b_blk*4*mp, Kc)  im2col patches, rows ordered (image, tap, pixel)
    w_ref: (Kc, 128)         conv weights, Cout zero-padded to 128 lanes
    b_ref: (1, 128)          f32 bias, zero-padded
    o_ref: (b_blk*mp, 128)   pooled + ReLU'd output (lane-dense stores)
    """
    # Single MXU matmul covering all images and all 4 pooling taps.
    acc = jnp.dot(p_ref[...], w_ref[...], preferred_element_type=jnp.float32)
    bias = b_ref[...]                                  # hoisted (no re-loads)
    for b in range(b_blk):                             # small static unroll
        base = b * 4 * mp
        # 2x2 max-pool folded into the epilogue: max over the 4 taps, then
        # bias + ReLU (max/ReLU commute; bias is identical across taps).
        m = acc[base:base + mp, :]
        for t in range(1, 4):
            m = jnp.maximum(m, acc[base + t * mp: base + (t + 1) * mp, :])
        y = jnp.maximum(m + bias, 0.0)
        o_ref[pl.ds(b * mp, mp), :] = y.astype(o_ref.dtype)


def _pool_tap_patches(x_nhwc, mp_pad):
    """im2col patches arranged per pooling tap (plain-JAX glue).

    Returns (B*4*mp_pad, 9*Cin): rows ordered (image, tap, pooled pixel),
    columns ordered (dy, dx, cin) to match the prepped weight layout.
    """
    B, H, W, C = x_nhwc.shape
    Ho, Wo = H // 2, W // 2                 # MaxPool2d(2,2) floor semantics
    Mp = Ho * Wo
    xp = jnp.pad(x_nhwc, ((0, 0), (1, 1), (1, 1), (0, 0)))
    taps = []
    for r in range(2):
        for c in range(2):
            shifts = []
            for dy in range(3):
                for dx in range(3):
                    s = xp[:, r + dy: r + dy + 2 * Ho: 2,
                              c + dx: c + dx + 2 * Wo: 2, :]
                    shifts.append(s[:, :Ho, :Wo, :])
            t = jnp.stack(shifts, axis=3)               # (B, Ho, Wo, 9, C)
            taps.append(t.reshape(B, Mp, 9 * C))
    p = jnp.stack(taps, axis=1)                         # (B, 4, Mp, 9C)
    if mp_pad > Mp:
        p = jnp.pad(p, ((0, 0), (0, 0), (0, mp_pad - Mp), (0, 0)))
    return p.reshape(B * 4 * mp_pad, 9 * C)


def conv_relu_pool(x_nhwc, w2d, b2d, cout):
    """Conv2d(3x3, stride=1, pad=1) + ReLU + MaxPool2d(2,2), fused in Pallas."""
    B, H, W, Cin = x_nhwc.shape
    Ho, Wo = H // 2, W // 2
    Mp = Ho * Wo
    mp_pad = _round_up(Mp, 8)           # sublane-aligned rows per (image, tap)
    Kc = 9 * Cin
    cout_pad = w2d.shape[1]             # 128 (lane-dense)

    patches = _pool_tap_patches(x_nhwc.astype(_MATMUL_DTYPE), mp_pad)

    # Several images per grid step (amortizes per-step overhead, raises M),
    # while keeping >= 2 grid steps so both v7x TensorCores get work.
    b_blk = min(4, max(1, B // 2))
    Bp = _round_up(B, b_blk)
    if Bp > B:
        patches = jnp.pad(patches, ((0, (Bp - B) * 4 * mp_pad), (0, 0)))

    kernel = functools.partial(_conv_pool_kernel, b_blk=b_blk, mp=mp_pad)
    out = pl.pallas_call(
        kernel,
        out_shape=jax.ShapeDtypeStruct((Bp * mp_pad, cout_pad), _MATMUL_DTYPE),
        grid=(Bp // b_blk,),
        in_specs=[
            pl.BlockSpec((b_blk * 4 * mp_pad, Kc), lambda i: (i, 0)),
            pl.BlockSpec((Kc, cout_pad), lambda i: (0, 0)),
            pl.BlockSpec((1, cout_pad), lambda i: (0, 0)),
        ],
        out_specs=pl.BlockSpec((b_blk * mp_pad, cout_pad), lambda i: (i, 0)),
        compiler_params=pltpu.CompilerParams(
            dimension_semantics=("parallel",)),
    )(patches, w2d, b2d)

    out = out.reshape(Bp, mp_pad, cout_pad)[:B, :Mp, :cout]
    return out.reshape(B, Ho, Wo, cout)


# --------------------------------------------------------------------------
# Fused fc1 -> ReLU -> fc2 -> ReLU -> fc3 kernel (single launch)
# --------------------------------------------------------------------------
def _mlp_kernel(x_ref, w1_ref, b1_ref, w2_ref, b2_ref, w3_ref, b3_ref, o_ref):
    h = jnp.dot(x_ref[...], w1_ref[...], preferred_element_type=jnp.float32)
    h = jnp.maximum(h + b1_ref[...], 0.0).astype(w2_ref.dtype)
    h = jnp.dot(h, w2_ref[...], preferred_element_type=jnp.float32)
    h = jnp.maximum(h + b2_ref[...], 0.0).astype(w3_ref.dtype)
    h = jnp.dot(h, w3_ref[...], preferred_element_type=jnp.float32)
    o_ref[...] = (h + b3_ref[...]).astype(o_ref.dtype)


def mlp_head(x, params, n_out):
    """x: (B, 1152) -> (B, n_out) f32 logits (fc3 computed 128-wide, sliced)."""
    B, K1 = x.shape
    w1, b1 = params["wfc1"], params["bfc1"]
    w2, b2 = params["wfc2"], params["bfc2"]
    w3, b3 = params["wfc3"], params["bfc3"]
    H1, H2, NP = w1.shape[1], w2.shape[1], w3.shape[1]

    tm = min(128, _round_up(B, 8))            # tile only the batch (M) axis
    Bp = _round_up(B, tm)
    xp = jnp.pad(x, ((0, Bp - B), (0, 0))) if Bp > B else x

    out = pl.pallas_call(
        _mlp_kernel,
        out_shape=jax.ShapeDtypeStruct((Bp, NP), jnp.float32),
        grid=(Bp // tm,),
        in_specs=[
            pl.BlockSpec((tm, K1), lambda i: (i, 0)),
            pl.BlockSpec((K1, H1), lambda i: (0, 0)),
            pl.BlockSpec((1, H1), lambda i: (0, 0)),
            pl.BlockSpec((H1, H2), lambda i: (0, 0)),
            pl.BlockSpec((1, H2), lambda i: (0, 0)),
            pl.BlockSpec((H2, NP), lambda i: (0, 0)),
            pl.BlockSpec((1, NP), lambda i: (0, 0)),
        ],
        out_specs=pl.BlockSpec((tm, NP), lambda i: (i, 0)),
        compiler_params=pltpu.CompilerParams(
            dimension_semantics=("parallel",)),
    )(xp.astype(_MATMUL_DTYPE), w1, b1, w2, b2, w3, b3)
    return out[:B, :n_out]


# --------------------------------------------------------------------------
# Parameters (PyTorch layout -> kernel layout, done once at prep time)
# --------------------------------------------------------------------------
def init_torch_params(key, output_size=13):
    """Random params in PyTorch layout (conv OIHW, fc (out, in))."""
    ks = jax.random.split(key, 12)

    def wgt(k, shape, fan_in):
        return jax.random.normal(k, shape, jnp.float32) * (2.0 / fan_in) ** 0.5

    def bias(k, n):
        return jax.random.normal(k, (n,), jnp.float32) * 0.01

    tp = {}
    tp["conv1_w"], tp["conv1_b"] = wgt(ks[0], (32, 1, 3, 3), 9), bias(ks[1], 32)
    tp["conv2_w"], tp["conv2_b"] = wgt(ks[2], (64, 32, 3, 3), 9 * 32), bias(ks[3], 64)
    tp["conv3_w"], tp["conv3_b"] = wgt(ks[4], (128, 64, 3, 3), 9 * 64), bias(ks[5], 128)
    tp["fc1_w"], tp["fc1_b"] = wgt(ks[6], (1024, 1152), 1152), bias(ks[7], 1024)
    tp["fc2_w"], tp["fc2_b"] = wgt(ks[8], (512, 1024), 1024), bias(ks[9], 512)
    tp["fc3_w"], tp["fc3_b"] = wgt(ks[10], (output_size, 512), 512), bias(ks[11], output_size)
    return tp


def prepare_params(tp):
    """Convert PyTorch-layout params to the layouts the kernels expect."""
    p = {}
    for i in (1, 2, 3):
        w = tp[f"conv{i}_w"]                              # (Cout, Cin, 3, 3)
        cout, cin = w.shape[0], w.shape[1]
        w2 = jnp.transpose(w, (2, 3, 1, 0)).reshape(9 * cin, cout)  # (dy,dx,cin)
        b2 = tp[f"conv{i}_b"].reshape(1, cout)
        if cout < _LANE:       # zero-pad Cout -> 128: lane-dense output stores
            w2 = jnp.pad(w2, ((0, 0), (0, _LANE - cout)))
            b2 = jnp.pad(b2, ((0, 0), (0, _LANE - cout)))
        p[f"w{i}"] = w2.astype(_MATMUL_DTYPE)
        p[f"b{i}"] = b2.astype(jnp.float32)

    # fc1: fold PyTorch's channel-major flatten x.view(-1, 128*3*3) into the
    # weight by permuting its input rows from (c, h, w) to our (h, w, c)
    # ordering — removes the runtime NHWC->NCHW transpose entirely.
    w1 = tp["fc1_w"]                                      # (1024, 1152)
    n_hid1 = w1.shape[0]
    w1 = w1.reshape(n_hid1, 128, 3, 3)
    w1 = jnp.transpose(w1, (2, 3, 1, 0)).reshape(128 * 3 * 3, n_hid1)
    p["wfc1"] = w1.astype(_MATMUL_DTYPE)
    p["bfc1"] = tp["fc1_b"].astype(jnp.float32).reshape(1, -1)
    p["wfc2"] = jnp.transpose(tp["fc2_w"]).astype(_MATMUL_DTYPE)
    p["bfc2"] = tp["fc2_b"].astype(jnp.float32).reshape(1, -1)

    # fc3: zero-pad the 13 outputs to 128 lanes (unmasked final store); the
    # wrapper slices back to output_size.
    w3 = jnp.transpose(tp["fc3_w"])                       # (512, n_out)
    b3 = tp["fc3_b"].reshape(1, -1)
    n_out = w3.shape[1]
    pad = _round_up(n_out, _LANE) - n_out
    if pad:
        w3 = jnp.pad(w3, ((0, 0), (0, pad)))
        b3 = jnp.pad(b3, ((0, 0), (0, pad)))
    p["wfc3"] = w3.astype(_MATMUL_DTYPE)
    p["bfc3"] = b3.astype(jnp.float32)
    return p


# --------------------------------------------------------------------------
# Forward pass
# --------------------------------------------------------------------------
def cnn_middle_forward(x_nchw, params, output_size=13):
    # NCHW (PyTorch) -> NHWC once at entry.
    x = jnp.transpose(x_nchw, (0, 2, 3, 1))

    x = conv_relu_pool(x, params["w1"], params["b1"], cout=32)    # 28 -> 14
    x = conv_relu_pool(x, params["w2"], params["b2"], cout=64)    # 14 -> 7
    x = conv_relu_pool(x, params["w3"], params["b3"], cout=128)   # 7  -> 3

    B = x.shape[0]
    # (h, w, c)-ordered flatten; fc1 weight rows were pre-permuted to match
    # PyTorch's channel-major x.view(-1, 128*3*3).
    x = x.reshape(B, 3 * 3 * 128)
    return mlp_head(x, params, output_size)
    # NOTE: self.dp (Dropout) is never applied in the reference forward().


# --------------------------------------------------------------------------
if __name__ == "__main__":
    key = jax.random.PRNGKey(0)
    # Spatial size 28x28 is implied by fc1's 128*3*3 input (28 -> 14 -> 7 -> 3).
    x = jax.random.normal(key, (2, 1, 28, 28), dtype=jnp.float32)
    params = prepare_params(init_torch_params(jax.random.PRNGKey(1), output_size=13))

    fwd = jax.jit(cnn_middle_forward)
    out = jax.block_until_ready(fwd(x, params))

    assert out.shape == (2, 13), out.shape
    assert out.dtype == jnp.float32
    assert bool(jnp.all(jnp.isfinite(out)))
    print("KERNEL_OK")
</pallas_src>

<mosaic_0001>
module attributes {stable_mosaic.version = 11 : i64} {
  func.func @_conv_pool_kernel(%arg0: i32, %arg1: memref<800x9xbf16, #tpu.memory_space<vmem>>, %arg2: memref<9x128xbf16, #tpu.memory_space<vmem>>, %arg3: memref<1x128xf32, #tpu.memory_space<vmem>>, %arg4: memref<200x128xbf16, #tpu.memory_space<vmem>>) attributes {dimension_semantics = [#tpu.dimension_semantics<parallel>], iteration_bounds = array<i64: 2>, scalar_prefetch = 0 : i64, scratch_operands = 0 : i64, tpu.core_type = #tpu.core_type<tc>, window_params = [{transform_indices = @transform_0, window_bounds = array<i64: 800, 9>}, {pipeline_mode = #tpu.pipeline_mode<synchronous>, transform_indices = @transform_1, window_bounds = array<i64: 9, 128>}, {pipeline_mode = #tpu.pipeline_mode<synchronous>, transform_indices = @transform_2, window_bounds = array<i64: 1, 128>}, {transform_indices = @transform_3, window_bounds = array<i64: 200, 128>}]} {
    %c0 = arith.constant 0 : index
    %c0_0 = arith.constant 0 : index
    %0 = vector.load %arg1[%c0, %c0_0] : memref<800x9xbf16, #tpu.memory_space<vmem>>, vector<800x9xbf16>
    %c0_1 = arith.constant 0 : index
    %c0_2 = arith.constant 0 : index
    %1 = vector.load %arg2[%c0_1, %c0_2] : memref<9x128xbf16, #tpu.memory_space<vmem>>, vector<9x128xbf16>
    %cst = arith.constant dense<0.000000e+00> : vector<800x128xf32>
    %2 = tpu.matmul %0, %1, %cst {dimension_numbers = #tpu.dot_dimension_numbers<[1], [0], [0], [1], [0, 0, 1, 1], [], []>} : vector<800x9xbf16>, vector<9x128xbf16>, vector<800x128xf32> -> vector<800x128xf32>
    %c0_3 = arith.constant 0 : index
    %c0_4 = arith.constant 0 : index
    %3 = vector.load %arg3[%c0_3, %c0_4] : memref<1x128xf32, #tpu.memory_space<vmem>>, vector<1x128xf32>
    %4 = vector.extract_strided_slice %2 {offsets = [0, 0], sizes = [200, 128], strides = [1, 1]} : vector<800x128xf32> to vector<200x128xf32>
    %5 = vector.extract_strided_slice %2 {offsets = [200, 0], sizes = [200, 128], strides = [1, 1]} : vector<800x128xf32> to vector<200x128xf32>
    %6 = arith.maximumf %4, %5 : vector<200x128xf32>
    %7 = vector.extract_strided_slice %2 {offsets = [400, 0], sizes = [200, 128], strides = [1, 1]} : vector<800x128xf32> to vector<200x128xf32>
    %8 = arith.maximumf %6, %7 : vector<200x128xf32>
    %9 = vector.extract_strided_slice %2 {offsets = [600, 0], sizes = [200, 128], strides = [1, 1]} : vector<800x128xf32> to vector<200x128xf32>
    %10 = arith.maximumf %8, %9 : vector<200x128xf32>
    %11 = vector.broadcast %3 : vector<1x128xf32> to vector<200x128xf32>
    %12 = arith.addf %10, %11 : vector<200x128xf32>
    %cst_5 = arith.constant 0.000000e+00 : f32
    %13 = vector.broadcast %cst_5 : f32 to vector<200x128xf32>
    %14 = arith.maximumf %12, %13 : vector<200x128xf32>
    %15 = arith.truncf %14 : vector<200x128xf32> to vector<200x128xbf16>
    %c0_6 = arith.constant 0 : index
    %c0_7 = arith.constant 0 : index
    %16 = vector.load %arg4[%c0_6, %c0_7] : memref<200x128xbf16, #tpu.memory_space<vmem>>, vector<200x128xbf16>
    tpu.vector_store %arg4[%c0_6, %c0_7], %15 {strides = array<i32>} : memref<200x128xbf16, #tpu.memory_space<vmem>>, vector<200x128xbf16>,
    return
  }
  func.func @transform_0(%arg0: i32) -> (i32, i32) {
    %c0_i32 = arith.constant 0 : i32
    %c0_i32_0 = arith.constant 0 : i32
    return %arg0, %c0_i32 : i32, i32
  }
  func.func @transform_1(%arg0: i32) -> (i32, i32) {
    %c0_i32 = arith.constant 0 : i32
    %c0_i32_0 = arith.constant 0 : i32
    %c0_i32_1 = arith.constant 0 : i32
    return %c0_i32, %c0_i32_0 : i32, i32
  }
  func.func @transform_2(%arg0: i32) -> (i32, i32) {
    %c0_i32 = arith.constant 0 : i32
    %c0_i32_0 = arith.constant 0 : i32
    %c0_i32_1 = arith.constant 0 : i32
    return %c0_i32, %c0_i32_0 : i32, i32
  }
  func.func @transform_3(%arg0: i32) -> (i32, i32) {
    %c0_i32 = arith.constant 0 : i32
    %c0_i32_0 = arith.constant 0 : i32
    return %arg0, %c0_i32 : i32, i32
  }
}

module attributes {stable_mosaic.version = 11 : i64} {
  func.func @_conv_pool_kernel(%arg0: i32, %arg1: memref<224x288xbf16, #tpu.memory_space<vmem>>, %arg2: memref<288x128xbf16, #tpu.memory_space<vmem>>, %arg3: memref<1x128xf32, #tpu.memory_space<vmem>>, %arg4: memref<56x128xbf16, #tpu.memory_space<vmem>>) attributes {dimension_semantics = [#tpu.dimension_semantics<parallel>], iteration_bounds = array<i64: 2>, scalar_prefetch = 0 : i64, scratch_operands = 0 : i64, tpu.core_type = #tpu.core_type<tc>, window_params = [{transform_indices = @transform_0, window_bounds = array<i64: 224, 288>}, {pipeline_mode = #tpu.pipeline_mode<synchronous>, transform_indices = @transform_1, window_bounds = array<i64: 288, 128>}, {pipeline_mode = #tpu.pipeline_mode<synchronous>, transform_indices = @transform_2, window_bounds = array<i64: 1, 128>}, {transform_indices = @transform_3, window_bounds = array<i64: 56, 128>}]} {
    %c0 = arith.constant 0 : index
    %c0_0 = arith.constant 0 : index
    %0 = vector.load %arg1[%c0, %c0_0] : memref<224x288xbf16, #tpu.memory_space<vmem>>, vector<224x288xbf16>
    %c0_1 = arith.constant 0 : index
    %c0_2 = arith.constant 0 : index
    %1 = vector.load %arg2[%c0_1, %c0_2] : memref<288x128xbf16, #tpu.memory_space<vmem>>, vector<288x128xbf16>
    %cst = arith.constant dense<0.000000e+00> : vector<224x128xf32>
    %2 = tpu.matmul %0, %1, %cst {dimension_numbers = #tpu.dot_dimension_numbers<[1], [0], [0], [1], [0, 0, 1, 1], [], []>} : vector<224x288xbf16>, vector<288x128xbf16>, vector<224x128xf32> -> vector<224x128xf32>
    %c0_3 = arith.constant 0 : index
    %c0_4 = arith.constant 0 : index
    %3 = vector.load %arg3[%c0_3, %c0_4] : memref<1x128xf32, #tpu.memory_space<vmem>>, vector<1x128xf32>
    %4 = vector.extract_strided_slice %2 {offsets = [0, 0], sizes = [56, 128], strides = [1, 1]} : vector<224x128xf32> to vector<56x128xf32>
    %5 = vector.extract_strided_slice %2 {offsets = [56, 0], sizes = [56, 128], strides = [1, 1]} : vector<224x128xf32> to vector<56x128xf32>
    %6 = arith.maximumf %4, %5 : vector<56x128xf32>
    %7 = vector.extract_strided_slice %2 {offsets = [112, 0], sizes = [56, 128], strides = [1, 1]} : vector<224x128xf32> to vector<56x128xf32>
    %8 = arith.maximumf %6, %7 : vector<56x128xf32>
    %9 = vector.extract_strided_slice %2 {offsets = [168, 0], sizes = [56, 128], strides = [1, 1]} : vector<224x128xf32> to vector<56x128xf32>
    %10 = arith.maximumf %8, %9 : vector<56x128xf32>
    %11 = vector.broadcast %3 : vector<1x128xf32> to vector<56x128xf32>
    %12 = arith.addf %10, %11 : vector<56x128xf32>
    %cst_5 = arith.constant 0.000000e+00 : f32
    %13 = vector.broadcast %cst_5 : f32 to vector<56x128xf32>
    %14 = arith.maximumf %12, %13 : vector<56x128xf32>
    %15 = arith.truncf %14 : vector<56x128xf32> to vector<56x128xbf16>
    %c0_6 = arith.constant 0 : index
    %c0_7 = arith.constant 0 : index
    %16 = vector.load %arg4[%c0_6, %c0_7] : memref<56x128xbf16, #tpu.memory_space<vmem>>, vector<56x128xbf16>
    tpu.vector_store %arg4[%c0_6, %c0_7], %15 {strides = array<i32>} : memref<56x128xbf16, #tpu.memory_space<vmem>>, vector<56x128xbf16>,
    return
  }
  func.func @transform_0(%arg0: i32) -> (i32, i32) {
    %c0_i32 = arith.constant 0 : i32
    %c0_i32_0 = arith.constant 0 : i32
    return %arg0, %c0_i32 : i32, i32
  }
  func.func @transform_1(%arg0: i32) -> (i32, i32) {
    %c0_i32 = arith.constant 0 : i32
    %c0_i32_0 = arith.constant 0 : i32
    %c0_i32_1 = arith.constant 0 : i32
    return %c0_i32, %c0_i32_0 : i32, i32
  }
  func.func @transform_2(%arg0: i32) -> (i32, i32) {
    %c0_i32 = arith.constant 0 : i32
    %c0_i32_0 = arith.constant 0 : i32
    %c0_i32_1 = arith.constant 0 : i32
    return %c0_i32, %c0_i32_0 : i32, i32
  }
  func.func @transform_3(%arg0: i32) -> (i32, i32) {
    %c0_i32 = arith.constant 0 : i32
    %c0_i32_0 = arith.constant 0 : i32
    return %arg0, %c0_i32 : i32, i32
  }
}

module attributes {stable_mosaic.version = 11 : i64} {
  func.func @_conv_pool_kernel(%arg0: i32, %arg1: memref<64x576xbf16, #tpu.memory_space<vmem>>, %arg2: memref<576x128xbf16, #tpu.memory_space<vmem>>, %arg3: memref<1x128xf32, #tpu.memory_space<vmem>>, %arg4: memref<16x128xbf16, #tpu.memory_space<vmem>>) attributes {dimension_semantics = [#tpu.dimension_semantics<parallel>], iteration_bounds = array<i64: 2>, scalar_prefetch = 0 : i64, scratch_operands = 0 : i64, tpu.core_type = #tpu.core_type<tc>, window_params = [{transform_indices = @transform_0, window_bounds = array<i64: 64, 576>}, {pipeline_mode = #tpu.pipeline_mode<synchronous>, transform_indices = @transform_1, window_bounds = array<i64: 576, 128>}, {pipeline_mode = #tpu.pipeline_mode<synchronous>, transform_indices = @transform_2, window_bounds = array<i64: 1, 128>}, {transform_indices = @transform_3, window_bounds = array<i64: 16, 128>}]} {
    %c0 = arith.constant 0 : index
    %c0_0 = arith.constant 0 : index
    %0 = vector.load %arg1[%c0, %c0_0] : memref<64x576xbf16, #tpu.memory_space<vmem>>, vector<64x576xbf16>
    %c0_1 = arith.constant 0 : index
    %c0_2 = arith.constant 0 : index
    %1 = vector.load %arg2[%c0_1, %c0_2] : memref<576x128xbf16, #tpu.memory_space<vmem>>, vector<576x128xbf16>
    %cst = arith.constant dense<0.000000e+00> : vector<64x128xf32>
    %2 = tpu.matmul %0, %1, %cst {dimension_numbers = #tpu.dot_dimension_numbers<[1], [0], [0], [1], [0, 0, 1, 1], [], []>} : vector<64x576xbf16>, vector<576x128xbf16>, vector<64x128xf32> -> vector<64x128xf32>
    %c0_3 = arith.constant 0 : index
    %c0_4 = arith.constant 0 : index
    %3 = vector.load %arg3[%c0_3, %c0_4] : memref<1x128xf32, #tpu.memory_space<vmem>>, vector<1x128xf32>
    %4 = vector.extract_strided_slice %2 {offsets = [0, 0], sizes = [16, 128], strides = [1, 1]} : vector<64x128xf32> to vector<16x128xf32>
    %5 = vector.extract_strided_slice %2 {offsets = [16, 0], sizes = [16, 128], strides = [1, 1]} : vector<64x128xf32> to vector<16x128xf32>
    %6 = arith.maximumf %4, %5 : vector<16x128xf32>
    %7 = vector.extract_strided_slice %2 {offsets = [32, 0], sizes = [16, 128], strides = [1, 1]} : vector<64x128xf32> to vector<16x128xf32>
    %8 = arith.maximumf %6, %7 : vector<16x128xf32>
    %9 = vector.extract_strided_slice %2 {offsets = [48, 0], sizes = [16, 128], strides = [1, 1]} : vector<64x128xf32> to vector<16x128xf32>
    %10 = arith.maximumf %8, %9 : vector<16x128xf32>
    %11 = vector.broadcast %3 : vector<1x128xf32> to vector<16x128xf32>
    %12 = arith.addf %10, %11 : vector<16x128xf32>
    %cst_5 = arith.constant 0.000000e+00 : f32
    %13 = vector.broadcast %cst_5 : f32 to vector<16x128xf32>
    %14 = arith.maximumf %12, %13 : vector<16x128xf32>
    %15 = arith.truncf %14 : vector<16x128xf32> to vector<16x128xbf16>
    %c0_6 = arith.constant 0 : index
    %c0_7 = arith.constant 0 : index
    %16 = vector.load %arg4[%c0_6, %c0_7] : memref<16x128xbf16, #tpu.memory_space<vmem>>, vector<16x128xbf16>
    tpu.vector_store %arg4[%c0_6, %c0_7], %15 {strides = array<i32>} : memref<16x128xbf16, #tpu.memory_space<vmem>>, vector<16x128xbf16>,
    return
  }
  func.func @transform_0(%arg0: i32) -> (i32, i32) {
    %c0_i32 = arith.constant 0 : i32
    %c0_i32_0 = arith.constant 0 : i32
    return %arg0, %c0_i32 : i32, i32
  }
  func.func @transform_1(%arg0: i32) -> (i32, i32) {
    %c0_i32 = arith.constant 0 : i32
    %c0_i32_0 = arith.constant 0 : i32
    %c0_i32_1 = arith.constant 0 : i32
    return %c0_i32, %c0_i32_0 : i32, i32
  }
  func.func @transform_2(%arg0: i32) -> (i32, i32) {
    %c0_i32 = arith.constant 0 : i32
    %c0_i32_0 = arith.constant 0 : i32
    %c0_i32_1 = arith.constant 0 : i32
    return %c0_i32, %c0_i32_0 : i32, i32
  }
  func.func @transform_3(%arg0: i32) -> (i32, i32) {
    %c0_i32 = arith.constant 0 : i32
    %c0_i32_0 = arith.constant 0 : i32
    return %arg0, %c0_i32 : i32, i32
  }
}

module attributes {stable_mosaic.version = 11 : i64} {
  func.func @_mlp_kernel(%arg0: i32, %arg1: memref<8x1152xbf16, #tpu.memory_space<vmem>>, %arg2: memref<1152x1024xbf16, #tpu.memory_space<vmem>>, %arg3: memref<1x1024xf32, #tpu.memory_space<vmem>>, %arg4: memref<1024x512xbf16, #tpu.memory_space<vmem>>, %arg5: memref<1x512xf32, #tpu.memory_space<vmem>>, %arg6: memref<512x128xbf16, #tpu.memory_space<vmem>>, %arg7: memref<1x128xf32, #tpu.memory_space<vmem>>, %arg8: memref<8x128xf32, #tpu.memory_space<vmem>>) attributes {dimension_semantics = [#tpu.dimension_semantics<parallel>], iteration_bounds = array<i64: 1>, scalar_prefetch = 0 : i64, scratch_operands = 0 : i64, tpu.core_type = #tpu.core_type<tc>, window_params = [{transform_indices = @transform_0, window_bounds = array<i64: 8, 1152>}, {pipeline_mode = #tpu.pipeline_mode<synchronous>, transform_indices = @transform_1, window_bounds = array<i64: 1152, 1024>}, {pipeline_mode = #tpu.pipeline_mode<synchronous>, transform_indices = @transform_2, window_bounds = array<i64: 1, 1024>}, {pipeline_mode = #tpu.pipeline_mode<synchronous>, transform_indices = @transform_3, window_bounds = array<i64: 1024, 512>}, {pipeline_mode = #tpu.pipeline_mode<synchronous>, transform_indices = @transform_4, window_bounds = array<i64: 1, 512>}, {pipeline_mode = #tpu.pipeline_mode<synchronous>, transform_indices = @transform_5, window_bounds = array<i64: 512, 128>}, {pipeline_mode = #tpu.pipeline_mode<synchronous>, transform_indices = @transform_6, window_bounds = array<i64: 1, 128>}, {transform_indices = @transform_7, window_bounds = array<i64: 8, 128>}]} {
    %c0 = arith.constant 0 : index
    %c0_0 = arith.constant 0 : index
    %0 = vector.load %arg1[%c0, %c0_0] : memref<8x1152xbf16, #tpu.memory_space<vmem>>, vector<8x1152xbf16>
    %c0_1 = arith.constant 0 : index
    %c0_2 = arith.constant 0 : index
    %1 = vector.load %arg2[%c0_1, %c0_2] : memref<1152x1024xbf16, #tpu.memory_space<vmem>>, vector<1152x1024xbf16>
    %cst = arith.constant dense<0.000000e+00> : vector<8x1024xf32>
    %2 = tpu.matmul %0, %1, %cst {dimension_numbers = #tpu.dot_dimension_numbers<[1], [0], [0], [1], [0, 0, 1, 1], [], []>} : vector<8x1152xbf16>, vector<1152x1024xbf16>, vector<8x1024xf32> -> vector<8x1024xf32>
    %c0_3 = arith.constant 0 : index
    %c0_4 = arith.constant 0 : index
    %3 = vector.load %arg3[%c0_3, %c0_4] : memref<1x1024xf32, #tpu.memory_space<vmem>>, vector<1x1024xf32>
    %4 = vector.broadcast %3 : vector<1x1024xf32> to vector<8x1024xf32>
    %5 = arith.addf %2, %4 : vector<8x1024xf32>
    %cst_5 = arith.constant 0.000000e+00 : f32
    %6 = vector.broadcast %cst_5 : f32 to vector<8x1024xf32>
    %7 = arith.maximumf %5, %6 : vector<8x1024xf32>
    %8 = arith.truncf %7 : vector<8x1024xf32> to vector<8x1024xbf16>
    %c0_6 = arith.constant 0 : index
    %c0_7 = arith.constant 0 : index
    %9 = vector.load %arg4[%c0_6, %c0_7] : memref<1024x512xbf16, #tpu.memory_space<vmem>>, vector<1024x512xbf16>
    %cst_8 = arith.constant dense<0.000000e+00> : vector<8x512xf32>
    %10 = tpu.matmul %8, %9, %cst_8 {dimension_numbers = #tpu.dot_dimension_numbers<[1], [0], [0], [1], [0, 0, 1, 1], [], []>} : vector<8x1024xbf16>, vector<1024x512xbf16>, vector<8x512xf32> -> vector<8x512xf32>
    %c0_9 = arith.constant 0 : index
    %c0_10 = arith.constant 0 : index
    %11 = vector.load %arg5[%c0_9, %c0_10] : memref<1x512xf32, #tpu.memory_space<vmem>>, vector<1x512xf32>
    %12 = vector.broadcast %11 : vector<1x512xf32> to vector<8x512xf32>
    %13 = arith.addf %10, %12 : vector<8x512xf32>
    %cst_11 = arith.constant 0.000000e+00 : f32
    %14 = vector.broadcast %cst_11 : f32 to vector<8x512xf32>
    %15 = arith.maximumf %13, %14 : vector<8x512xf32>
    %16 = arith.truncf %15 : vector<8x512xf32> to vector<8x512xbf16>
    %c0_12 = arith.constant 0 : index
    %c0_13 = arith.constant 0 : index
    %17 = vector.load %arg6[%c0_12, %c0_13] : memref<512x128xbf16, #tpu.memory_space<vmem>>, vector<512x128xbf16>
    %cst_14 = arith.constant dense<0.000000e+00> : vector<8x128xf32>
    %18 = tpu.matmul %16, %17, %cst_14 {dimension_numbers = #tpu.dot_dimension_numbers<[1], [0], [0], [1], [0, 0, 1, 1], [], []>} : vector<8x512xbf16>, vector<512x128xbf16>, vector<8x128xf32> -> vector<8x128xf32>
    %c0_15 = arith.constant 0 : index
    %c0_16 = arith.constant 0 : index
    %19 = vector.load %arg7[%c0_15, %c0_16] : memref<1x128xf32, #tpu.memory_space<vmem>>, vector<1x128xf32>
    %20 = vector.broadcast %19 : vector<1x128xf32> to vector<8x128xf32>
    %21 = arith.addf %18, %20 : vector<8x128xf32>
    %c0_17 = arith.constant 0 : index
    %c0_18 = arith.constant 0 : index
    %22 = vector.load %arg8[%c0_17, %c0_18] : memref<8x128xf32, #tpu.memory_space<vmem>>, vector<8x128xf32>
    tpu.vector_store %arg8[%c0_17, %c0_18], %21 {strides = array<i32>} : memref<8x128xf32, #tpu.memory_space<vmem>>, vector<8x128xf32>,
    return
  }
  func.func @transform_0(%arg0: i32) -> (i32, i32) {
    %c0_i32 = arith.constant 0 : i32
    %c0_i32_0 = arith.constant 0 : i32
    return %arg0, %c0_i32 : i32, i32
  }
  func.func @transform_1(%arg0: i32) -> (i32, i32) {
    %c0_i32 = arith.constant 0 : i32
    %c0_i32_0 = arith.constant 0 : i32
    %c0_i32_1 = arith.constant 0 : i32
    return %c0_i32, %c0_i32_0 : i32, i32
  }
  func.func @transform_2(%arg0: i32) -> (i32, i32) {
    %c0_i32 = arith.constant 0 : i32
    %c0_i32_0 = arith.constant 0 : i32
    %c0_i32_1 = arith.constant 0 : i32
    return %c0_i32, %c0_i32_0 : i32, i32
  }
  func.func @transform_3(%arg0: i32) -> (i32, i32) {
    %c0_i32 = arith.constant 0 : i32
    %c0_i32_0 = arith.constant 0 : i32
    %c0_i32_1 = arith.constant 0 : i32
    return %c0_i32, %c0_i32_0 : i32, i32
  }
  func.func @transform_4(%arg0: i32) -> (i32, i32) {
    %c0_i32 = arith.constant 0 : i32
    %c0_i32_0 = arith.constant 0 : i32
    %c0_i32_1 = arith.constant 0 : i32
    return %c0_i32, %c0_i32_0 : i32, i32
  }
  func.func @transform_5(%arg0: i32) -> (i32, i32) {
    %c0_i32 = arith.constant 0 : i32
    %c0_i32_0 = arith.constant 0 : i32
    %c0_i32_1 = arith.constant 0 : i32
    return %c0_i32, %c0_i32_0 : i32, i32
  }
  func.func @transform_6(%arg0: i32) -> (i32, i32) {
    %c0_i32 = arith.constant 0 : i32
    %c0_i32_0 = arith.constant 0 : i32
    %c0_i32_1 = arith.constant 0 : i32
    return %c0_i32, %c0_i32_0 : i32, i32
  }
  func.func @transform_7(%arg0: i32) -> (i32, i32) {
    %c0_i32 = arith.constant 0 : i32
    %c0_i32_0 = arith.constant 0 : i32
    return %arg0, %c0_i32 : i32, i32
  }
}

</mosaic_0001>

<bundles_post_ra>
// kernel: cnn_middle_forward.4
= control target key start
LH: loop header
LB: loop body
LE: loop exit
PB: predicated region body
PF: predicated region fallthrough
CT: control target
= control target key end

     0   :  { %8 = vsyncpa [#allocation3], 0  ;;  %s1978_s0 = inlined_call_operand.vmem [shape: bf16[1600,9], index: 0, kind: input, shape index: {}]   ;;  %s1979_s1 = inlined_call_operand.hbm [shape: bf16[9,128], index: 1, kind: input, shape index: {}]   ;;  %s1980_s2 = inlined_call_operand.hbm [shape: f32[1,128], index: 2, kind: input, shape index: {}]   ;;  %s1981_s3 = inlined_call_operand.vmem [shape: bf16[400,128], index: 3, kind: output, shape index: {}]  }
   0x1   :  { %9 = vsyncpa [#allocation5], 0  ;;  %s1764_s12 = smov 0  }
   0x2 LB: > { %s125_s15 = sshll.u32 %s1979_s1, 4  ;;  %s1773_s16 = sadd.s32 4294967295, %s1737_s12   ;;  %s1737_s12 = sphi %s1764_s12, %s15_s12   ;;  %s126_s15 = int_to_ptr.hbm [resolvable:$true] %s125_s15 }
   0x3   : > { %p1240_p0 = scmp.ge.s32.totalorder %s1737_s12, 1  ;;  %p114_p1 = scmp.lt.s32.totalorder %s1737_s12, 3 }
   0x4   : > { %p1645_p2 = scmp.eq.s32.totalorder %s1773_s16, 0  ;;  %s1739_s18 = smov [#allocation2]  }
   0x5   : > { %p1778_p3 = pnand %p1240_p0, %p114_p1  ;;  %s127_s19 = sshll.u32 %s1739_s18, 4  ;;  %s128_s19 = int_to_ptr.vmem [resolvable:$true] %s127_s19 }
   0x6   : > { %s140_s22 = sshll.u32 %s1980_s2, 4  ;;  %s1740_s23 = smov [#allocation4]   ;;  %s141_s22 = int_to_ptr.hbm [resolvable:$true] %s140_s22 }
   0x7   : > { %p1638_p4 = pneg %p1778_p3  ;;  %s142_s24 = sshll.u32 %s1740_s23, 4  ;;  %s143_s24 = int_to_ptr.vmem [resolvable:$true] %s142_s24 }
   0x8   : > { %s1741_s25 = smov 64   ;;  %s1742_s26 = smov 4  }
   0x9   : > { %p1639_p5 = pnand %p1645_p2, %p1638_p4  ;;  %164 = sbr.rel (%p1778_p3) target bundleno = 368 (0x170), region = 32 }
   0xb   : > { %1641 = dma.hbm_to_vmem [thread:$0]  (!%p1639_p5), %s126_s15, 128, %s128_s19, [#allocation3], %s1741_s25, %s1741_s25, %s1742_s26  }
   0xc   : > { %1644 = dma.hbm_to_vmem [thread:$0]  (!%p1639_p5), %s141_s22, 16, %s143_s24, [#allocation5]  }
   0xe   : > { %1728 = dma.done.wait (%p1645_p2), [#allocation3], 128  }
   0xf   : > { %1730 = vsyncadd (%p1645_p2), [#allocation3], 4294967168 }
  0x10   : > { %1732 = dma.done.wait (%p1645_p2), [#allocation5], 16  }
  0x11   : > { %1734 = vsyncadd (%p1645_p2), [#allocation5], 4294967280  ;;  %vm715_vm0 = vcmask 1043456   ;;  %s194_s27 = smul.u32 100, %s1773_s16  ;;  %vm716_vm1 = vcmask 1044480   ;;  %v1743_v0 = vmov 65535  }
  0x12   : > { %v717_v1 = vsel %vm715_vm0, 4294967295, %v1743_v0  ;;  %v1451_v3 = vld [vmem:[#allocation2] sm:$0xf]  ;;  %v1555_v4 = vld [vmem:[#allocation2] sm:$0x10]  ;;  %vm564_vm2 = vcmask 72704  }
  0x13   : > { %p195_p6 = scmp.lt.s32.totalorder %s194_s27, 199  ;;  %v718_v2 = vsel %vm716_vm1, %v717_v1, 0  ;;  %v1452_v5 = vor.u32 %v1555_v4, %v1451_v3  ;;  %s200_s5 = smul.u32 25, %s1773_s16 }
  0x15   : > { %s1984_s27 = smov (!%p195_p6, %s194_s27), 199  ;;  %v720_v6 = vand.u32 %v1452_v5, %v718_v2  ;;  %p201_p7 = scmp.lt.s32.totalorder %s200_s5, 49 }
  0x16   : > { %s1247_s28 = sshll.u32 %s1984_s27, 2 }
  0x17   : > { %s1803_s4 = scalar_lea.vmem %s1978_s0, %s1247_s28  ;;  %729 = vmatpush.bf16.msra.mxu0 %v720_v6  ;;  %1627 = vmatpush.bf16.msra.mxu1 %v720_v6  ;;  %s1986_s5 = smov (!%p201_p7, %s200_s5), 49 }
  0x18   : > { %v1505_v7 = vld [vmem:[%s1803_s4] sm:$0xff]  ;;  %v1518_v8 = vld [vmem:[%s1803_s4 + $0x68] sm:$0xff]  ;;  %v1531_v9 = vld [vmem:[%s1803_s4 + $0xd0] sm:$0xff]  ;;  %1628 = vmatpush.bf16.msra.mxu2 %v720_v6  ;;  %1629 = vmatpush.bf16.msra.mxu3 %v720_v6  ;;  %s1248_s6 = sshll.u32 %s1986_s5, 2 }
  0x19   : > { %v1544_v10 = vld [vmem:[%s1803_s4 + $0x138] sm:$0xff]  ;;  %v1506_v11 = vld [vmem:[%s1803_s4 + $0x8] sm:$0xff]  ;;  %v1519_v12 = vld [vmem:[%s1803_s4 + $0x70] sm:$0xff]  ;;  %s1920_s9 = scalar_lea.vmem %s1981_s3, %s1248_s6 }
  0x1a   : > { %1453 = vmatmul.msk.bf16.vlgmr.msra.gmra.mxu0 %vm564_vm2, %v1505_v7  ;;  %1466 = vmatmul.msk.bf16.vlgmr.msra.gmra.mxu1 %vm564_vm2, %v1518_v8  ;;  %v1532_v13 = vld [vmem:[%s1803_s4 + $0xd8] sm:$0xff]  ;;  %v1545_v14 = vld [vmem:[%s1803_s4 + $0x140] sm:$0xff]  ;;  %v1507_v15 = vld [vmem:[%s1803_s4 + $0x10] sm:$0xff] }
  0x1b   : > { %1479 = vmatmul.msk.bf16.vlgmr.msra.gmra.mxu2 %vm564_vm2, %v1531_v9  ;;  %1492 = vmatmul.msk.bf16.vlgmr.msra.gmra.mxu3 %vm564_vm2, %v1544_v10  ;;  %v1520_v16 = vld [vmem:[%s1803_s4 + $0x78] sm:$0xff]  ;;  %v1533_v17 = vld [vmem:[%s1803_s4 + $0xe0] sm:$0xff]  ;;  %v1546_v18 = vld [vmem:[%s1803_s4 + $0x148] sm:$0xff] }
  0x1c   : > { %v1508_v19 = vld [vmem:[%s1803_s4 + $0x18] sm:$0xff]  ;;  %v1521_v20 = vld [vmem:[%s1803_s4 + $0x80] sm:$0xff]  ;;  %v1534_v21 = vld [vmem:[%s1803_s4 + $0xe8] sm:$0xff] }
  0x1d   : > { %v1547_v22 = vld [vmem:[%s1803_s4 + $0x150] sm:$0xff]  ;;  %v1509_v23 = vld [vmem:[%s1803_s4 + $0x20] sm:$0xff]  ;;  %v1522_v24 = vld [vmem:[%s1803_s4 + $0x88] sm:$0xff] }
  0x1e   : > { %v1535_v25 = vld [vmem:[%s1803_s4 + $0xf0] sm:$0xff]  ;;  %v1548_v26 = vld [vmem:[%s1803_s4 + $0x158] sm:$0xff]  ;;  %v1510_v27 = vld [vmem:[%s1803_s4 + $0x28] sm:$0xff] }
  0x1f   : > { %v1523_v28 = vld [vmem:[%s1803_s4 + $0x90] sm:$0xff]  ;;  %v1536_v29 = vld [vmem:[%s1803_s4 + $0xf8] sm:$0xff]  ;;  %v1549_v30 = vld [vmem:[%s1803_s4 + $0x160] sm:$0xff] }
  0x20   : > { %v1511_v31 = vld [vmem:[%s1803_s4 + $0x30] sm:$0xff]  ;;  %v1524_v32 = vld [vmem:[%s1803_s4 + $0x98] sm:$0xff]  ;;  %v1537_v33 = vld [vmem:[%s1803_s4 + $0x100] sm:$0xff] }
  0x21   : > { %v1550_v34 = vld [vmem:[%s1803_s4 + $0x168] sm:$0xff]  ;;  %v1512_v35 = vld [vmem:[%s1803_s4 + $0x38] sm:$0xff]  ;;  %v1525_v36 = vld [vmem:[%s1803_s4 + $0xa0] sm:$0xff] }
  0x22   : > { %v1538_v37 = vld [vmem:[%s1803_s4 + $0x108] sm:$0xff]  ;;  %v1551_v38 = vld [vmem:[%s1803_s4 + $0x170] sm:$0xff]  ;;  %v1513_v39 = vld [vmem:[%s1803_s4 + $0x40] sm:$0xff] }
  0x23   : > { %v1526_v40 = vld [vmem:[%s1803_s4 + $0xa8] sm:$0xff]  ;;  %v1539_v43 = vld [vmem:[%s1803_s4 + $0x110] sm:$0xff]  ;;  %v1552_v44 = vld [vmem:[%s1803_s4 + $0x178] sm:$0xff] }
  0x24   : > { %v1514_v51 = vld [vmem:[%s1803_s4 + $0x48] sm:$0xff]  ;;  %v1527_v52 = vld [vmem:[%s1803_s4 + $0xb0] sm:$0xff]  ;;  %v1540_v56 = vld [vmem:[%s1803_s4 + $0x118] sm:$0xff] }
  0x25   : > { %v1553_v57 = vld [vmem:[%s1803_s4 + $0x180] sm:$0xff]  ;;  %v1515_v4 = vld [vmem:[%s1803_s4 + $0x50] sm:$0xff]  ;;  %v1528_v5 = vld [vmem:[%s1803_s4 + $0xb8] sm:$0xff] }
  0x26   : > { %v1541_v9 = vld [vmem:[%s1803_s4 + $0x120] sm:$0xff]  ;;  %v1554_v10 = vld [vmem:[%s1803_s4 + $0x188] sm:$0xff] }
  0x2a   : > { %1454 = vmatmul.msk.bf16.gmra.mxu0 %vm564_vm2, %v1506_v11  ;;  %1467 = vmatmul.msk.bf16.gmra.mxu1 %vm564_vm2, %v1519_v12 }
  0x2b   : > { %1480 = vmatmul.msk.bf16.gmra.mxu2 %vm564_vm2, %v1532_v13  ;;  %1493 = vmatmul.msk.bf16.gmra.mxu3 %vm564_vm2, %v1545_v14 }
  0x3a   : > { %1455 = vmatmul.msk.bf16.gmra.mxu0 %vm564_vm2, %v1507_v15  ;;  %1468 = vmatmul.msk.bf16.gmra.mxu1 %vm564_vm2, %v1520_v16 }
  0x3b   : > { %1481 = vmatmul.msk.bf16.gmra.mxu2 %vm564_vm2, %v1533_v17  ;;  %1494 = vmatmul.msk.bf16.gmra.mxu3 %vm564_vm2, %v1546_v18 }
  0x4a   : > { %1456 = vmatmul.msk.bf16.gmra.mxu0 %vm564_vm2, %v1508_v19  ;;  %1469 = vmatmul.msk.bf16.gmra.mxu1 %vm564_vm2, %v1521_v20  ;;  %v1910_v19 = vld [vmem:[#allocation4] ss:$0 sm:$0xff] }
  0x4b   : > { %1482 = vmatmul.msk.bf16.gmra.mxu2 %vm564_vm2, %v1534_v21  ;;  %1495 = vmatmul.msk.bf16.gmra.mxu3 %vm564_vm2, %v1547_v22 }
  0x5a   : > { %1457 = vmatmul.msk.bf16.gmra.mxu0 %vm564_vm2, %v1509_v23  ;;  %1470 = vmatmul.msk.bf16.gmra.mxu1 %vm564_vm2, %v1522_v24 }
  0x5b   : > { %1483 = vmatmul.msk.bf16.gmra.mxu2 %vm564_vm2, %v1535_v25  ;;  %1496 = vmatmul.msk.bf16.gmra.mxu3 %vm564_vm2, %v1548_v26  ;;  %v1516_v25 = vld [vmem:[%s1803_s4 + $0x58] sm:$0xff]  ;;  %v1529_v26 = vld [vmem:[%s1803_s4 + $0xc0] sm:$0xff] }
  0x6a   : > { %1458 = vmatmul.msk.bf16.gmra.mxu0 %vm564_vm2, %v1510_v27  ;;  %1471 = vmatmul.msk.bf16.gmra.mxu1 %vm564_vm2, %v1523_v28 }
  0x6b   : > { %1484 = vmatmul.msk.bf16.gmra.mxu2 %vm564_vm2, %v1536_v29  ;;  %1497 = vmatmul.msk.bf16.gmra.mxu3 %vm564_vm2, %v1549_v30  ;;  %v1542_v30 = vld [vmem:[%s1803_s4 + $0x128] sm:$0xff] }
  0x7a   : > { %1459 = vmatmul.msk.bf16.gmra.mxu0 %vm564_vm2, %v1511_v31  ;;  %1472 = vmatmul.msk.bf16.gmra.mxu1 %vm564_vm2, %v1524_v32 }
  0x7b   : > { %1485 = vmatmul.msk.bf16.gmra.mxu2 %vm564_vm2, %v1537_v33  ;;  %1498 = vmatmul.msk.bf16.gmra.mxu3 %vm564_vm2, %v1550_v34 }
  0x8a   : > { %1460 = vmatmul.msk.bf16.gmra.mxu0 %vm564_vm2, %v1512_v35  ;;  %1473 = vmatmul.msk.bf16.gmra.mxu1 %vm564_vm2, %v1525_v36 }
  0x8b   : > { %1486 = vmatmul.msk.bf16.gmra.mxu2 %vm564_vm2, %v1538_v37  ;;  %1499 = vmatmul.msk.bf16.gmra.mxu3 %vm564_vm2, %v1551_v38 }
  0x97   : > { %v1871_v41 = vpop.f32.mrf.mxu0  ;;  %v1873_v42 = vpop.f32.mrf.mxu1 }
  0x9a   : > { %1461 = vmatmul.msk.bf16.gmra.mxu0 %vm564_vm2, %v1513_v39  ;;  %1474 = vmatmul.msk.bf16.gmra.mxu1 %vm564_vm2, %v1526_v40 }
  0x9b   : > { %1487 = vmatmul.msk.bf16.gmra.mxu2 %vm564_vm2, %v1539_v43  ;;  %1500 = vmatmul.msk.bf16.gmra.mxu3 %vm564_vm2, %v1552_v44 }
  0x9e   : > { %v861_v45 = vpop.f32.mrf.mxu2  ;;  %v1881_v46 = vpop.f32.mrf.mxu3 }
  0x9f   : > { %v1883_v47 = vpop.f32.mrf.mxu0  ;;  %v798_v48 = vpop.f32.mrf.mxu1 }
  0xa0   : > { %v983_v49 = vmax.f32 %v1883_v47, %v1873_v42 }
  0xa6   : > { %v863_v50 = vpop.f32.mrf.mxu2  ;;  %v928_v53 = vpop.f32.mrf.mxu3 }
  0xa7   : > { %v736_v54 = vpop.f32.mrf.mxu0  ;;  %v801_v55 = vpop.f32.mrf.mxu1 }
  0xa8   : > { %v984_v58 = vmax.f32 %v736_v54, %v798_v48 }
  0xaa   : > { %1462 = vmatmul.msk.bf16.gmra.mxu0 %vm564_vm2, %v1514_v51  ;;  %1475 = vmatmul.msk.bf16.gmra.mxu1 %vm564_vm2, %v1527_v52  ;;  %v1893_v59 = vmax.f32 %v984_v58, %v861_v45  ;;  %v1517_v52 = vld [vmem:[%s1803_s4 + $0x60] sm:$0xff] }
  0xab   : > { %1488 = vmatmul.msk.bf16.gmra.mxu2 %vm564_vm2, %v1540_v56  ;;  %1501 = vmatmul.msk.bf16.gmra.mxu3 %vm564_vm2, %v1553_v57  ;;  %v1543_v57 = vld [vmem:[%s1803_s4 + $0x130] sm:$0xff] }
  0xae   : > { %v866_v60 = vpop.f32.mrf.mxu2  ;;  %v931_v61 = vpop.f32.mrf.mxu3 }
  0xaf   : > { %v738_v62 = vpop.f32.mrf.mxu0  ;;  %v803_v63 = vpop.f32.mrf.mxu1 }
  0xb0   : > { %v985_v0 = vmax.f32 %v738_v62, %v801_v55 }
  0xb2   : > { %v1897_v1 = vmax.f32 %v985_v0, %v863_v50 }
  0xb4   : > { %v1035_v2 = vmax.f32 %v1897_v1, %v1881_v46 }
  0xb6   : > { %v868_v3 = vpop.f32.mrf.mxu2  ;;  %v933_v6 = vpop.f32.mrf.mxu3 }
  0xb7   : > { %v741_v7 = vpop.f32.mrf.mxu0  ;;  %v806_v8 = vpop.f32.mrf.mxu1 }
  0xb8   : > { %v986_v11 = vmax.f32 %v741_v7, %v803_v63 }
  0xba   : > { %1463 = vmatmul.msk.bf16.gmra.mxu0 %vm564_vm2, %v1515_v4  ;;  %1476 = vmatmul.msk.bf16.gmra.mxu1 %vm564_vm2, %v1528_v5  ;;  %v1011_v12 = vmax.f32 %v986_v11, %v866_v60 }
  0xbb   : > { %1489 = vmatmul.msk.bf16.gmra.mxu2 %vm564_vm2, %v1541_v9  ;;  %1502 = vmatmul.msk.bf16.gmra.mxu3 %vm564_vm2, %v1554_v10 }
  0xbc   : > { %v1036_v17 = vmax.f32 %v1011_v12, %v928_v53  ;;  %v1530_v53 = vld [vmem:[%s1803_s4 + $0xc8] sm:$0xff] }
  0xbe   : > { %v871_v13 = vpop.f32.mrf.mxu2  ;;  %v936_v14 = vpop.f32.mrf.mxu3  ;;  %v1064_v21 = vadd.f32 %v1910_v19, %v1036_v17 }
  0xbf   : > { %v743_v15 = vpop.f32.mrf.mxu0  ;;  %v808_v16 = vpop.f32.mrf.mxu1 }
  0xc0   : > { %v987_v18 = vmax.f32 %v743_v15, %v806_v8  ;;  %v1089_v31 = vmax.f32 %v1064_v21, 0.0 }
  0xc2   : > { %v1012_v20 = vmax.f32 %v987_v18, %v868_v3 }
  0xc4   : > { %v1037_v22 = vmax.f32 %v1012_v20, %v931_v61 }
  0xc6   : > { %v1065_v23 = vadd.f32 %v1910_v19, %v1037_v22  ;;  %v873_v24 = vpop.f32.mrf.mxu2  ;;  %v938_v27 = vpop.f32.mrf.mxu3 }
  0xc7   : > { %v746_v28 = vpop.f32.mrf.mxu0  ;;  %v811_v29 = vpop.f32.mrf.mxu1 }
  0xc8   : > { %v1090_v32 = vmax.f32 %v1065_v23, 0.0  ;;  %v988_v33 = vmax.f32 %v746_v28, %v808_v16 }
  0xca   : > { %v1569_v34 = vpack.c.bf16 %v1090_v32, %v1089_v31  ;;  %1464 = vmatmul.msk.bf16.gmra.mxu0 %vm564_vm2, %v1516_v25  ;;  %1477 = vmatmul.msk.bf16.gmra.mxu1 %vm564_vm2, %v1529_v26  ;;  %v1013_v35 = vmax.f32 %v988_v33, %v871_v13 }
  0xcb   : > { %1490 = vmatmul.msk.bf16.gmra.mxu2 %vm564_vm2, %v1542_v30 }
  0xcc   : > { %1617 = vst [vmem:[%s1920_s9 + $0x10] sm:$0xff] %v1569_v34   ;;  %v1038_v40 = vmax.f32 %v1013_v35, %v933_v6 }
  0xce   : > { %v876_v36 = vpop.f32.mrf.mxu2  ;;  %v941_v37 = vpop.f32.mrf.mxu3  ;;  %v1066_v45 = vadd.f32 %v1910_v19, %v1038_v40 }
  0xcf   : > { %v748_v38 = vpop.f32.mrf.mxu0  ;;  %v813_v39 = vpop.f32.mrf.mxu1 }
  0xd0   : > { %v989_v43 = vmax.f32 %v748_v38, %v811_v29  ;;  %v1091_v58 = vmax.f32 %v1066_v45, 0.0 }
  0xd2   : > { %v1014_v44 = vmax.f32 %v989_v43, %v873_v24 }
  0xd4   : > { %v1039_v48 = vmax.f32 %v1014_v44, %v936_v14 }
  0xd6   : > { %v1067_v50 = vadd.f32 %v1910_v19, %v1039_v48  ;;  %v878_v51 = vpop.f32.mrf.mxu2  ;;  %v943_v54 = vpop.f32.mrf.mxu3 }
  0xd7   : > { %v751_v55 = vpop.f32.mrf.mxu0  ;;  %v816_v56 = vpop.f32.mrf.mxu1 }
  0xd8   : > { %v1092_v60 = vmax.f32 %v1067_v50, 0.0  ;;  %v990_v61 = vmax.f32 %v751_v55, %v813_v39 }
  0xda   : > { %v1574_v62 = vpack.c.bf16 %v1092_v60, %v1091_v58  ;;  %1465 = vmatmul.msk.bf16.gmra.mxu0 %vm564_vm2, %v1517_v52  ;;  %1478 = vmatmul.msk.bf16.gmra.mxu1 %vm564_vm2, %v1530_v53  ;;  %v1015_v63 = vmax.f32 %v990_v61, %v876_v36 }
  0xdb   : > { %1491 = vmatmul.msk.bf16.gmra.mxu2 %vm564_vm2, %v1543_v57 }
  0xdc   : > { %1618 = vst [vmem:[%s1920_s9 + $0x18] sm:$0xff] %v1574_v62   ;;  %v1040_v6 = vmax.f32 %v1015_v63, %v938_v27 }
  0xde   : > { %v881_v0 = vpop.f32.mrf.mxu2  ;;  %v946_v3 = vpop.f32.mrf.mxu3  ;;  %v1068_v9 = vadd.f32 %v1910_v19, %v1040_v6 }
  0xdf   : > { %v753_v4 = vpop.f32.mrf.mxu0  ;;  %v818_v5 = vpop.f32.mrf.mxu1 }
  0xe0   : > { %v991_v7 = vmax.f32 %v753_v4, %v816_v56  ;;  %v1093_v16 = vmax.f32 %v1068_v9, 0.0 }
  0xe2   : > { %v1016_v8 = vmax.f32 %v991_v7, %v878_v51 }
  0xe4   : > { %v1041_v10 = vmax.f32 %v1016_v8, %v941_v37 }
  0xe6   : > { %v1069_v11 = vadd.f32 %v1910_v19, %v1041_v10  ;;  %v883_v12 = vpop.f32.mrf.mxu2  ;;  %v948_v13 = vpop.f32.mrf.mxu3 }
  0xe7   : > { %v756_v14 = vpop.f32.mrf.mxu0  ;;  %v821_v15 = vpop.f32.mrf.mxu1 }
  0xe8   : > { %v1094_v17 = vmax.f32 %v1069_v11, 0.0  ;;  %v992_v18 = vmax.f32 %v756_v14, %v818_v5 }
  0xea   : > { %v1579_v20 = vpack.c.bf16 %v1094_v17, %v1093_v16  ;;  %v1017_v21 = vmax.f32 %v992_v18, %v881_v0 }
  0xec   : > { %1619 = vst [vmem:[%s1920_s9 + $0x20] sm:$0xff] %v1579_v20   ;;  %v1042_v26 = vmax.f32 %v1017_v21, %v943_v54 }
  0xee   : > { %v886_v22 = vpop.f32.mrf.mxu2  ;;  %v951_v23 = vpop.f32.mrf.mxu3  ;;  %v1070_v29 = vadd.f32 %v1910_v19, %v1042_v26 }
  0xef   : > { %v758_v24 = vpop.f32.mrf.mxu0  ;;  %v823_v25 = vpop.f32.mrf.mxu1 }
  0xf0   : > { %v993_v27 = vmax.f32 %v758_v24, %v821_v15  ;;  %v1095_v36 = vmax.f32 %v1070_v29, 0.0 }
  0xf2   : > { %v1018_v28 = vmax.f32 %v993_v27, %v883_v12 }
  0xf4   : > { %v1043_v30 = vmax.f32 %v1018_v28, %v946_v3 }
  0xf6   : > { %v1071_v31 = vadd.f32 %v1910_v19, %v1043_v30  ;;  %v888_v32 = vpop.f32.mrf.mxu2  ;;  %v953_v33 = vpop.f32.mrf.mxu3 }
  0xf7   : > { %v761_v34 = vpop.f32.mrf.mxu0  ;;  %v826_v35 = vpop.f32.mrf.mxu1 }
  0xf8   : > { %v1096_v37 = vmax.f32 %v1071_v31, 0.0  ;;  %v994_v38 = vmax.f32 %v761_v34, %v823_v25 }
  0xfa   : > { %v1584_v39 = vpack.c.bf16 %v1096_v37, %v1095_v36  ;;  %v1019_v40 = vmax.f32 %v994_v38, %v886_v22 }
  0xfc   : > { %1620 = vst [vmem:[%s1920_s9 + $0x28] sm:$0xff] %v1584_v39   ;;  %v1044_v50 = vmax.f32 %v1019_v40, %v948_v13 }
  0xfe   : > { %v891_v43 = vpop.f32.mrf.mxu2  ;;  %v956_v44 = vpop.f32.mrf.mxu3  ;;  %v1072_v53 = vadd.f32 %v1910_v19, %v1044_v50 }
  0xff   : > { %v763_v45 = vpop.f32.mrf.mxu0  ;;  %v828_v48 = vpop.f32.mrf.mxu1 }
 0x100   : > { %v995_v51 = vmax.f32 %v763_v45, %v826_v35  ;;  %v1097_v60 = vmax.f32 %v1072_v53, 0.0 }
 0x102   : > { %v1020_v52 = vmax.f32 %v995_v51, %v888_v32 }
 0x104   : > { %v1045_v54 = vmax.f32 %v1020_v52, %v951_v23 }
 0x106   : > { %v1073_v55 = vadd.f32 %v1910_v19, %v1045_v54  ;;  %v893_v56 = vpop.f32.mrf.mxu2  ;;  %v958_v63 = vpop.f32.mrf.mxu3 }
 0x107   : > { %v766_v57 = vpop.f32.mrf.mxu0  ;;  %v831_v58 = vpop.f32.mrf.mxu1 }
 0x108   : > { %v1098_v61 = vmax.f32 %v1073_v55, 0.0  ;;  %v996_v62 = vmax.f32 %v766_v57, %v828_v48 }
 0x10a   : > { %v1589_v0 = vpack.c.bf16 %v1098_v61, %v1097_v60  ;;  %v1021_v3 = vmax.f32 %v996_v62, %v891_v43 }
 0x10c   : > { %1621 = vst [vmem:[%s1920_s9 + $0x30] sm:$0xff] %v1589_v0   ;;  %v1046_v7 = vmax.f32 %v1021_v3, %v953_v33 }
 0x10e   : > { %v896_v4 = vpop.f32.mrf.mxu2  ;;  %v961_v10 = vpop.f32.mrf.mxu3  ;;  %v1074_v11 = vadd.f32 %v1910_v19, %v1046_v7 }
 0x10f   : > { %v768_v5 = vpop.f32.mrf.mxu0  ;;  %v833_v6 = vpop.f32.mrf.mxu1 }
 0x110   : > { %v997_v8 = vmax.f32 %v768_v5, %v831_v58  ;;  %v1099_v17 = vmax.f32 %v1074_v11, 0.0 }
 0x112   : > { %v1022_v9 = vmax.f32 %v997_v8, %v893_v56 }
 0x114   : > { %v1047_v12 = vmax.f32 %v1022_v9, %v956_v44 }
 0x116   : > { %v1075_v13 = vadd.f32 %v1910_v19, %v1047_v12  ;;  %v898_v14 = vpop.f32.mrf.mxu2  ;;  %v963_v23 = vpop.f32.mrf.mxu3 }
 0x117   : > { %v771_v15 = vpop.f32.mrf.mxu0  ;;  %v836_v16 = vpop.f32.mrf.mxu1 }
 0x118   : > { %v1100_v18 = vmax.f32 %v1075_v13, 0.0  ;;  %v998_v20 = vmax.f32 %v771_v15, %v833_v6 }
 0x11a   : > { %v1594_v21 = vpack.c.bf16 %v1100_v18, %v1099_v17  ;;  %v1023_v22 = vmax.f32 %v998_v20, %v896_v4 }
 0x11c   : > { %1622 = vst [vmem:[%s1920_s9 + $0x38] sm:$0xff] %v1594_v21   ;;  %v1048_v27 = vmax.f32 %v1023_v22, %v958_v63 }
 0x11e   : > { %v901_v24 = vpop.f32.mrf.mxu2  ;;  %v1076_v30 = vadd.f32 %v1910_v19, %v1048_v27  ;;  %v966_v34 = vpop.f32.mrf.mxu3 }
 0x11f   : > { %v773_v25 = vpop.f32.mrf.mxu0  ;;  %v838_v26 = vpop.f32.mrf.mxu1 }
 0x120   : > { %v999_v28 = vmax.f32 %v773_v25, %v836_v16  ;;  %v1101_v37 = vmax.f32 %v1076_v30, 0.0 }
 0x122   : > { %v1024_v29 = vmax.f32 %v999_v28, %v898_v14 }
 0x124   : > { %v1049_v31 = vmax.f32 %v1024_v29, %v961_v10 }
 0x126   : > { %v1077_v32 = vadd.f32 %v1910_v19, %v1049_v31  ;;  %v903_v33 = vpop.f32.mrf.mxu2  ;;  %v968_v52 = vpop.f32.mrf.mxu3 }
 0x127   : > { %v776_v35 = vpop.f32.mrf.mxu0  ;;  %v841_v36 = vpop.f32.mrf.mxu1 }
 0x128   : > { %v1102_v38 = vmax.f32 %v1077_v32, 0.0  ;;  %v1000_v39 = vmax.f32 %v776_v35, %v838_v26 }
 0x12a   : > { %v1599_v40 = vpack.c.bf16 %v1102_v38, %v1101_v37  ;;  %v1025_v43 = vmax.f32 %v1000_v39, %v901_v24 }
 0x12c   : > { %1623 = vst [vmem:[%s1920_s9 + $0x40] sm:$0xff] %v1599_v40   ;;  %v1050_v50 = vmax.f32 %v1025_v43, %v963_v23 }
 0x12e   : > { %v906_v44 = vpop.f32.mrf.mxu2  ;;  %v1078_v54 = vadd.f32 %v1910_v19, %v1050_v50  ;;  %v971_v3 = vpop.f32.mrf.mxu3 }
 0x12f   : > { %v778_v45 = vpop.f32.mrf.mxu0  ;;  %v843_v48 = vpop.f32.mrf.mxu1 }
 0x130   : > { %v1001_v51 = vmax.f32 %v778_v45, %v841_v36  ;;  %v1103_v61 = vmax.f32 %v1078_v54, 0.0 }
 0x132   : > { %v1026_v53 = vmax.f32 %v1001_v51, %v903_v33 }
 0x134   : > { %v1051_v55 = vmax.f32 %v1026_v53, %v966_v34 }
 0x136   : > { %v1079_v56 = vadd.f32 %v1910_v19, %v1051_v55  ;;  %v908_v57 = vpop.f32.mrf.mxu2  ;;  %v973_v13 = vpop.f32.mrf.mxu3 }
 0x137   : > { %v781_v58 = vpop.f32.mrf.mxu0  ;;  %v846_v60 = vpop.f32.mrf.mxu1 }
 0x138   : > { %v1104_v62 = vmax.f32 %v1079_v56, 0.0  ;;  %v1002_v63 = vmax.f32 %v781_v58, %v843_v48 }
 0x13a   : > { %v1604_v0 = vpack.c.bf16 %v1104_v62, %v1103_v61  ;;  %v1027_v4 = vmax.f32 %v1002_v63, %v906_v44 }
 0x13c   : > { %1624 = vst [vmem:[%s1920_s9 + $0x48] sm:$0xff] %v1604_v0   ;;  %v1052_v8 = vmax.f32 %v1027_v4, %v968_v52 }
 0x13e   : > { %v911_v5 = vpop.f32.mrf.mxu2  ;;  %v1080_v11 = vadd.f32 %v1910_v19, %v1052_v8  ;;  %v976_v25 = vpop.f32.mrf.mxu3 }
 0x13f   : > { %v783_v6 = vpop.f32.mrf.mxu0  ;;  %v848_v7 = vpop.f32.mrf.mxu1 }
 0x140   : > { %v1003_v9 = vmax.f32 %v783_v6, %v846_v60  ;;  %v1105_v18 = vmax.f32 %v1080_v11, 0.0 }
 0x142   : > { %v1028_v10 = vmax.f32 %v1003_v9, %v908_v57 }
 0x144   : > { %v1053_v12 = vmax.f32 %v1028_v10, %v971_v3 }
 0x146   : > { %v1081_v14 = vadd.f32 %v1910_v19, %v1053_v12  ;;  %v913_v15 = vpop.f32.mrf.mxu2  ;;  %v978_v40 = vpop.f32.mrf.mxu3 }
 0x147   : > { %v786_v16 = vpop.f32.mrf.mxu0  ;;  %v851_v17 = vpop.f32.mrf.mxu1 }
 0x148   : > { %v1106_v20 = vmax.f32 %v1081_v14, 0.0  ;;  %v1004_v21 = vmax.f32 %v786_v16, %v848_v7 }
 0x14a   : > { %v1609_v22 = vpack.c.bf16 %v1106_v20, %v1105_v18  ;;  %v1029_v23 = vmax.f32 %v1004_v21, %v911_v5 }
 0x14c   : > { %1625 = vst [vmem:[%s1920_s9 + $0x50] sm:$0xff] %v1609_v22   ;;  %v1054_v28 = vmax.f32 %v1029_v23, %v973_v13 }
 0x14e   : > { %v916_v24 = vpop.f32.mrf.mxu2  ;;  %v1082_v31 = vadd.f32 %v1910_v19, %v1054_v28 }
 0x14f   : > { %v788_v26 = vpop.f32.mrf.mxu0  ;;  %v853_v27 = vpop.f32.mrf.mxu1 }
 0x150   : > { %v1005_v29 = vmax.f32 %v788_v26, %v851_v17  ;;  %v1107_v37 = vmax.f32 %v1082_v31, 0.0 }
 0x152   : > { %v1030_v30 = vmax.f32 %v1005_v29, %v913_v15 }
 0x154   : > { %v1055_v32 = vmax.f32 %v1030_v30, %v976_v25 }
 0x156   : > { %v1083_v33 = vadd.f32 %v1910_v19, %v1055_v32  ;;  %v918_v34 = vpop.f32.mrf.mxu2 }
 0x157   : > { %v791_v35 = vpop.f32.mrf.mxu0  ;;  %v856_v36 = vpop.f32.mrf.mxu1 }
 0x158   : > { %v1108_v38 = vmax.f32 %v1083_v33, 0.0  ;;  %v1006_v39 = vmax.f32 %v791_v35, %v853_v27 }
 0x15a   : > { %v1614_v43 = vpack.c.bf16 %v1108_v38, %v1107_v37  ;;  %v1031_v44 = vmax.f32 %v1006_v39, %v916_v24 }
 0x15c   : > { %1626 = vst [vmem:[%s1920_s9 + $0x58] sm:$0xff] %v1614_v43   ;;  %v1056_v45 = vmax.f32 %v1031_v44, %v978_v40 }
 0x15e   : > { %v1084_v48 = vadd.f32 %v1910_v19, %v1056_v45  ;;  %v921_v50 = vpop.f32.mrf.mxu2 }
 0x15f   : > { %v793_v51 = vpop.f32.mrf.mxu0  ;;  %v858_v52 = vpop.f32.mrf.mxu1 }
 0x160   : > { %v1109_v53 = vmax.f32 %v1084_v48, 0.0  ;;  %v982_v54 = vmax.f32 %v1871_v41, %v793_v51  ;;  %v1008_v55 = vmax.f32 %v983_v49, %v858_v52  ;;  %v1063_v41 = vadd.f32 %v1910_v19, %v1035_v2 }
 0x162   : > { %v1134_v56 = vpack.c.bf16 %v1109_v53, %v1109_v53  ;;  %v1007_v57 = vmax.f32 %v982_v54, %v856_v36  ;;  %v1033_v58 = vmax.f32 %v1008_v55, %v921_v50  ;;  %v1088_v4 = vmax.f32 %v1063_v41, 0.0 }
 0x164   : > { %1159 = vst [vmem:[%s1920_s9 + $0x60] sm:$0xf] %v1134_v56  ;;  %v1032_v60 = vmax.f32 %v1007_v57, %v918_v34  ;;  %v1061_v61 = vadd.f32 %v1910_v19, %v1033_v58 }
 0x166   : > { %v1060_v62 = vadd.f32 %v1910_v19, %v1032_v60  ;;  %v923_v63 = vpop.f32.mrf.mxu2  ;;  %v1086_v49 = vmax.f32 %v1061_v61, 0.0 }
 0x167   : > { %v1034_v42 = vmax.f32 %v1893_v59, %v923_v63 }
 0x168   : > { %v1085_v47 = vmax.f32 %v1060_v62, 0.0 }
 0x169   : > { %v1062_v0 = vadd.f32 %v1910_v19, %v1034_v42 }
 0x16a   : > { %v1559_v3 = vpack.c.bf16 %v1086_v49, %v1085_v47 }
 0x16b   : > { %v1087_v5 = vmax.f32 %v1062_v0, 0.0 }
 0x16c   : > { %1560 = vst [vmem:[%s1920_s9] sm:$0xff] %v1559_v3  }
 0x16d   : > { %v1564_v6 = vpack.c.bf16 %v1088_v4, %v1087_v5 }
 0x16f   : > { %1616 = vst [vmem:[%s1920_s9 + $0x8] sm:$0xff] %v1564_v6  }
 0x170 PF: > { %s15_s12 = sadd.s32 1, %s1737_s12  }
 0x171   : > { %p12_p8 = scmp.ge.s32.totalorder %s15_s12, 4  }
 0x173   :  { %14 = sbr.rel (!%p12_p8) target bundleno = 2 (0x2), region = 71 }
 0x178   :  { %1182 = vsyncpa [#allocation3], 1 }
 0x179   :  { %1184 = vsyncpa [#allocation3 + $0x1], 1 }
 0x17a   :  { %1185 = vsyncpa [#allocation5], 1 }

// kernel: cnn_middle_forward.5
= control target key start
LH: loop header
LB: loop body
LE: loop exit
PB: predicated region body
PF: predicated region fallthrough
CT: control target
= control target key end

     0   :  { %s1373_s12 = smov 0   ;;  %s1629_s0 = inlined_call_operand.vmem [shape: bf16[448,288], index: 0, kind: input, shape index: {}]   ;;  %s1630_s1 = inlined_call_operand.vmem [shape: bf16[288,128], index: 1, kind: input, shape index: {}]   ;;  %s1631_s2 = inlined_call_operand.vmem [shape: f32[1,128], index: 2, kind: input, shape index: {}]   ;;  %s1632_s3 = inlined_call_operand.vmem [shape: bf16[112,128], index: 3, kind: output, shape index: {}]  }
   0x1 LB: > { %s977_s13 = sadd.s32 4294967295, %s1351_s12   ;;  %p981_p0 = scmp.ge.s32.totalorder %s1351_s12, 1  ;;  %s1351_s12 = sphi %s1373_s12, %s13_s12  }
   0x2   : > { %p139_p1 = scmp.lt.s32.totalorder %s1351_s12, 3 }
   0x4   : > { %p140_p2 = pnand %p981_p0, %p139_p1 }
   0x5   : > { %s164_s20 = smul.u32 (!%p140_p2), 28, %s977_s13 }
   0x6   : > { %143 = sbr.rel (%p140_p2) target bundleno = 351 (0x15f), region = 32 }
   0x7   : > { %p165_p3 = scmp.lt.s32.totalorder (!%p140_p2), %s164_s20, 55  ;;  %s171_s30 = smul.u32 (!%p140_p2), 7, %s977_s13 }
   0x9   : > { %p172_p4 = scmp.lt.s32.totalorder (!%p140_p2), %s171_s30, 13 }
   0xb   : > { %v1289_v0 = vld [vmem:[%s1630_s1 + $0x38] sm:$0xff]  ;;  %v1392_v2 = vld [vmem:[%s1630_s1 + $0x88] sm:$0xff]  ;;  %v1288_v3 = vld [vmem:[%s1630_s1 + $0x30] sm:$0xff]  ;;  %s1634_s20 = smov (!%p165_p3, %s164_s20), 55  ;;  %vm588_vm0 = vcmask 261120   ;;  %s1636_s30 = smov (!%p172_p4, %s171_s30), 13 }
   0xc   : > { %v1387_v1 = vld [vmem:[%s1630_s1 + $0x78] sm:$0xff]  ;;  %631 = vmatpush.bf16.msra.mxu0 %v1289_v0  ;;  %1317 = vmatpush.bf16.msra.mxu3 %v1289_v0  ;;  %v1296_v4 = vld [vmem:[%s1630_s1 + $0x70] sm:$0xff]  ;;  %v1407_v5 = vld [vmem:[%s1630_s1 + $0x80] sm:$0xff]  ;;  %s1335_s29 = smul.u32 12, %s1634_s20  ;;  %s983_s13 = sshll.u32 %s1636_s30, 2 }
   0xd   : > { %710 = vmatpush.bf16.msra.mxu1 %v1387_v1  ;;  %795 = vmatpush.bf16.msra.mxu2 %v1392_v2  ;;  %v1287_v6 = vld [vmem:[%s1630_s1 + $0x28] sm:$0xff]  ;;  %v1286_v11 = vld [vmem:[%s1630_s1 + $0x20] sm:$0xff]  ;;  %v1285_v13 = vld [vmem:[%s1630_s1 + $0x18] sm:$0xff]  ;;  %s1611_s8 = scalar_lea.vmem %s1632_s3, %s983_s13 }
   0xe   : > { %v1295_v7 = vld [vmem:[%s1630_s1 + $0x68] sm:$0xff]  ;;  %s1419_s7 = scalar_lea.vmem %s1629_s0, %s1335_s29  ;;  %v1294_v12 = vld [vmem:[%s1630_s1 + $0x60] sm:$0xff]  ;;  %v1293_v14 = vld [vmem:[%s1630_s1 + $0x58] sm:$0xff] }
   0xf   : > { %v994_v8 = vld [vmem:[%s1419_s7 + $0x8] sm:$0xf]  ;;  %v1242_v9 = vld [vmem:[%s1419_s7 + $0x10] sm:$0xf0]  ;;  %v1006_v17 = vld [vmem:[%s1419_s7 + $0x20] sm:$0xf] }
  0x10   : > { %632 = vmatpush.bf16.msra.mxu0 %v1288_v3  ;;  %1318 = vmatpush.bf16.msra.mxu3 %v1288_v3  ;;  %v995_v10 = vor.u32 %v1242_v9, %v994_v8  ;;  %v1284_v15 = vld [vmem:[%s1630_s1 + $0x10] sm:$0xff]  ;;  %v1245_v18 = vld [vmem:[%s1419_s7 + $0x28] sm:$0xf0]  ;;  %v1282_v22 = vld [vmem:[%s1630_s1] sm:$0xff] }
  0x11   : > { %711 = vmatpush.bf16.msra.mxu1 %v1296_v4  ;;  %796 = vmatpush.bf16.msra.mxu2 %v1407_v5  ;;  %v1292_v16 = vld [vmem:[%s1630_s1 + $0x50] sm:$0xff]  ;;  %v1283_v19 = vld [vmem:[%s1630_s1 + $0x8] sm:$0xff]  ;;  %v1007_v21 = vor.u32 %v1245_v18, %v1006_v17  ;;  %v986_v23 = vld [vmem:[%s1419_s7] sm:$0xf] }
  0x12   : > { %v1291_v20 = vld [vmem:[%s1630_s1 + $0x48] sm:$0xff]  ;;  %v1274_v26 = vld [vmem:[%s1419_s7 + $0x110] sm:$0xf0]  ;;  %v1290_v27 = vld [vmem:[%s1630_s1 + $0x40] sm:$0xff] }
  0x13   : > { %v1241_v24 = vld [vmem:[%s1419_s7 + $0x8] sm:$0xf0]  ;;  %v1118_v25 = vld [vmem:[%s1419_s7 + $0x108] sm:$0xf]  ;;  %v1240_v28 = vld [vmem:[%s1419_s7 + $0x4] sm:$0xf] }
  0x14   : > { %633 = vmatpush.bf16.msra.mxu0 %v1287_v6  ;;  %1319 = vmatpush.bf16.msra.mxu3 %v1287_v6  ;;  %v988_v29 = vld [vmem:[%s1419_s7 + $0xc] sm:$0xf0]  ;;  %v987_v30 = vor.u32 %v1241_v24, %v986_v23  ;;  %v1119_v31 = vor.u32 %v1274_v26, %v1118_v25  ;;  %v1018_v33 = vld [vmem:[%s1419_s7 + $0x38] sm:$0xf]  ;;  %v1248_v34 = vld [vmem:[%s1419_s7 + $0x40] sm:$0xf0] }
  0x15   : > { %712 = vmatpush.bf16.msra.mxu1 %v1295_v7  ;;  %1224 = vmatmul.msk.bf16.vlgmr.msra.gmra.mxu2 %vm588_vm0, %v995_v10  ;;  %v991_v32 = vor.u32 %v1240_v28, %v988_v29  ;;  %v1019_v35 = vor.u32 %v1248_v34, %v1018_v33  ;;  %v998_v36 = vld [vmem:[%s1419_s7 + $0x18] sm:$0xf]  ;;  %v1244_v37 = vld [vmem:[%s1419_s7 + $0x20] sm:$0xf0]  ;;  %v1130_v38 = vld [vmem:[%s1419_s7 + $0x120] sm:$0xf] }
  0x16   : > { %v1277_v39 = vld [vmem:[%s1419_s7 + $0x128] sm:$0xf0]  ;;  %v1243_v40 = vld [vmem:[%s1419_s7 + $0x1c] sm:$0xf]  ;;  %v1000_v41 = vld [vmem:[%s1419_s7 + $0x24] sm:$0xf0]  ;;  %v999_v42 = vor.u32 %v1244_v37, %v998_v36 }
  0x17   : > { %v1131_v43 = vor.u32 %v1277_v39, %v1130_v38  ;;  %v1003_v44 = vor.u32 %v1243_v40, %v1000_v41  ;;  %v1030_v45 = vld [vmem:[%s1419_s7 + $0x50] sm:$0xf]  ;;  %v1251_v46 = vld [vmem:[%s1419_s7 + $0x58] sm:$0xf0]  ;;  %v1142_v50 = vld [vmem:[%s1419_s7 + $0x138] sm:$0xf] }
  0x18   : > { %634 = vmatpush.bf16.msra.mxu0 %v1286_v11  ;;  %1320 = vmatpush.bf16.msra.mxu3 %v1286_v11  ;;  %v1031_v47 = vor.u32 %v1251_v46, %v1030_v45  ;;  %v1010_v48 = vld [vmem:[%s1419_s7 + $0x30] sm:$0xf]  ;;  %v1247_v49 = vld [vmem:[%s1419_s7 + $0x38] sm:$0xf0]  ;;  %v1280_v51 = vld [vmem:[%s1419_s7 + $0x140] sm:$0xf0] }
  0x19   : > { %713 = vmatpush.bf16.msra.mxu1 %v1294_v12  ;;  %v1246_v52 = vld [vmem:[%s1419_s7 + $0x34] sm:$0xf]  ;;  %v1012_v53 = vld [vmem:[%s1419_s7 + $0x3c] sm:$0xf0]  ;;  %v1011_v54 = vor.u32 %v1247_v49, %v1010_v48  ;;  %v1143_v55 = vor.u32 %v1280_v51, %v1142_v50  ;;  %v1042_v57 = vld [vmem:[%s1419_s7 + $0x68] sm:$0xf] }
  0x1a   : > { %v1015_v56 = vor.u32 %v1246_v52, %v1012_v53  ;;  %v1254_v58 = vld [vmem:[%s1419_s7 + $0x70] sm:$0xf0]  ;;  %v1022_v60 = vld [vmem:[%s1419_s7 + $0x48] sm:$0xf]  ;;  %v1273_v62 = vld [vmem:[%s1419_s7 + $0x10c] sm:$0xf] }
  0x1b   : > { %v1043_v59 = vor.u32 %v1254_v58, %v1042_v57  ;;  %v1250_v61 = vld [vmem:[%s1419_s7 + $0x50] sm:$0xf0]  ;;  %v1120_v63 = vld [vmem:[%s1419_s7 + $0x114] sm:$0xf0]  ;;  %v1249_v0 = vld [vmem:[%s1419_s7 + $0x4c] sm:$0xf] }
  0x1c   : > { %635 = vmatpush.bf16.msra.mxu0 %v1285_v13  ;;  %1321 = vmatpush.bf16.msra.mxu3 %v1285_v13  ;;  %v1123_v3 = vor.u32 %v1273_v62, %v1120_v63  ;;  %v1257_v6 = vld [vmem:[%s1419_s7 + $0x88] sm:$0xf0]  ;;  %v1034_v8 = vld [vmem:[%s1419_s7 + $0x60] sm:$0xf]  ;;  %v1276_v10 = vld [vmem:[%s1419_s7 + $0x124] sm:$0xf] }
  0x1d   : > { %714 = vmatpush.bf16.msra.mxu1 %v1293_v14  ;;  %v1253_v9 = vld [vmem:[%s1419_s7 + $0x68] sm:$0xf0]  ;;  %v1132_v11 = vld [vmem:[%s1419_s7 + $0x12c] sm:$0xf0]  ;;  %v1066_v17 = vld [vmem:[%s1419_s7 + $0x98] sm:$0xf] }
  0x1e   : > { %v1036_v13 = vld [vmem:[%s1419_s7 + $0x6c] sm:$0xf0]  ;;  %v1260_v18 = vld [vmem:[%s1419_s7 + $0xa0] sm:$0xf0]  ;;  %v1144_v23 = vld [vmem:[%s1419_s7 + $0x144] sm:$0xf0] }
  0x1f   : > { %v1255_v24 = vld [vmem:[%s1419_s7 + $0x7c] sm:$0xf]  ;;  %v1048_v25 = vld [vmem:[%s1419_s7 + $0x84] sm:$0xf0]  ;;  %v1078_v29 = vld [vmem:[%s1419_s7 + $0xb0] sm:$0xf] }
  0x20   : > { %636 = vmatpush.bf16.msra.mxu0 %v1284_v15  ;;  %1322 = vmatpush.bf16.msra.mxu3 %v1284_v15  ;;  %v1135_v15 = vor.u32 %v1276_v10, %v1132_v11  ;;  %v1051_v28 = vor.u32 %v1255_v24, %v1048_v25  ;;  %v1259_v33 = vld [vmem:[%s1419_s7 + $0x98] sm:$0xf0]  ;;  %v1138_v34 = vld [vmem:[%s1419_s7 + $0x128] sm:$0xf]  ;;  %v1258_v36 = vld [vmem:[%s1419_s7 + $0x94] sm:$0xf] }
  0x21   : > { %715 = vmatpush.bf16.msra.mxu1 %v1292_v16  ;;  %v1060_v37 = vld [vmem:[%s1419_s7 + $0x9c] sm:$0xf0]  ;;  %v1090_v41 = vld [vmem:[%s1419_s7 + $0xc8] sm:$0xf]  ;;  %v1262_v45 = vld [vmem:[%s1419_s7 + $0xb0] sm:$0xf0] }
  0x22   : > { %v1063_v40 = vor.u32 %v1258_v36, %v1060_v37  ;;  %v1150_v46 = vld [vmem:[%s1419_s7 + $0x140] sm:$0xf]  ;;  %v1261_v48 = vld [vmem:[%s1419_s7 + $0xac] sm:$0xf]  ;;  %v1072_v49 = vld [vmem:[%s1419_s7 + $0xb4] sm:$0xf0] }
  0x23   : > { %v1075_v52 = vor.u32 %v1261_v48, %v1072_v49  ;;  %v1082_v58 = vld [vmem:[%s1419_s7 + $0xc0] sm:$0xf]  ;;  %v1271_v36 = vld [vmem:[%s1419_s7 + $0xf8] sm:$0xf0]  ;;  %v1270_v37 = vld [vmem:[%s1419_s7 + $0xf4] sm:$0xf] }
  0x24   : > { %637 = vmatpush.bf16.msra.mxu0 %v1283_v19  ;;  %1323 = vmatpush.bf16.msra.mxu3 %v1283_v19  ;;  %v1067_v19 = vor.u32 %v1260_v18, %v1066_v17  ;;  %v1096_v17 = vld [vmem:[%s1419_s7 + $0xe4] sm:$0xf0] }
  0x25   : > { %716 = vmatpush.bf16.msra.mxu1 %v1291_v20  ;;  %1225 = vmatmul.msk.bf16.gmra.mxu2 %vm588_vm0, %v1007_v21  ;;  %v1256_v21 = vld [vmem:[%s1419_s7 + $0x80] sm:$0xf0] }
  0x28   : > { %638 = vmatpush.bf16.msra.mxu0 %v1282_v22  ;;  %1324 = vmatpush.bf16.msra.mxu3 %v1282_v22  ;;  %v1279_v22 = vld [vmem:[%s1419_s7 + $0x13c] sm:$0xf] }
  0x29   : > { %717 = vmatpush.bf16.msra.mxu1 %v1290_v27 }
  0x2b   : > { %639 = vmatmul.bf16.vlgmr.msra.gmra.mxu0 %v987_v30  ;;  %694 = vmatmul.bf16.vlgmr.msra.gmra.mxu3 %v1119_v31  ;;  %v1263_v30 = vld [vmem:[%s1419_s7 + $0xb8] sm:$0xf0] }
  0x2c   : > { %1325 = vmatpush.bf16.msrb.mxu3 %v1387_v1  ;;  %718 = vmatmul.bf16.vlgmr.msra.gmra.mxu1 %v991_v32  ;;  %v1024_v1 = vld [vmem:[%s1419_s7 + $0x54] sm:$0xf0]  ;;  %v1079_v31 = vor.u32 %v1263_v30, %v1078_v29  ;;  %v1058_v32 = vld [vmem:[%s1419_s7 + $0x90] sm:$0xf] }
  0x2d   : > { %v1059_v38 = vor.u32 %v1259_v33, %v1058_v32 }
  0x30   : > { %1326 = vmatpush.bf16.msrb.mxu3 %v1296_v4  ;;  %v1027_v4 = vor.u32 %v1249_v0, %v1024_v1 }
  0x34   : > { %1327 = vmatpush.bf16.msrb.mxu3 %v1295_v7 }
  0x35   : > { %1226 = vmatmul.msk.bf16.gmra.mxu2 %vm588_vm0, %v1019_v35  ;;  %v1278_v35 = vld [vmem:[%s1419_s7 + $0x130] sm:$0xf0] }
  0x36   : > { %v1139_v39 = vor.u32 %v1278_v35, %v1138_v34  ;;  %v1106_v35 = vld [vmem:[%s1419_s7 + $0xf0] sm:$0xf] }
  0x38   : > { %1328 = vmatpush.bf16.msrb.mxu3 %v1294_v12  ;;  %v1252_v12 = vld [vmem:[%s1419_s7 + $0x64] sm:$0xf] }
  0x3b   : > { %644 = vmatmul.bf16.gmra.mxu0 %v999_v42  ;;  %699 = vmatmul.bf16.gmra.mxu3 %v1131_v43  ;;  %v1266_v42 = vld [vmem:[%s1419_s7 + $0xd0] sm:$0xf0] }
  0x3c   : > { %1329 = vmatpush.bf16.msrb.mxu3 %v1293_v14  ;;  %723 = vmatmul.bf16.gmra.mxu1 %v1003_v44  ;;  %v1035_v14 = vor.u32 %v1253_v9, %v1034_v8  ;;  %v1091_v43 = vor.u32 %v1266_v42, %v1090_v41  ;;  %v1070_v44 = vld [vmem:[%s1419_s7 + $0xa8] sm:$0xf] }
  0x3d   : > { %v1071_v50 = vor.u32 %v1262_v45, %v1070_v44 }
  0x40   : > { %1330 = vmatpush.bf16.msrb.mxu3 %v1292_v16  ;;  %v1039_v16 = vor.u32 %v1252_v12, %v1036_v13 }
  0x44   : > { %1331 = vmatpush.bf16.msrb.mxu3 %v1291_v20  ;;  %v1046_v20 = vld [vmem:[%s1419_s7 + $0x78] sm:$0xf] }
  0x45   : > { %1227 = vmatmul.msk.bf16.gmra.mxu2 %vm588_vm0, %v1031_v47  ;;  %v1047_v26 = vor.u32 %v1256_v21, %v1046_v20  ;;  %v1281_v47 = vld [vmem:[%s1419_s7 + $0x148] sm:$0xf0] }
  0x46   : > { %v1151_v51 = vor.u32 %v1281_v47, %v1150_v46 }
  0x48   : > { %1332 = vmatpush.bf16.msrb.mxu3 %v1290_v27  ;;  %v1147_v27 = vor.u32 %v1279_v22, %v1144_v23 }
  0x4b   : > { %649 = vmatmul.bf16.gmra.mxu0 %v1011_v54  ;;  %704 = vmatmul.bf16.gmra.mxu3 %v1143_v55  ;;  %v1102_v54 = vld [vmem:[%s1419_s7 + $0xe0] sm:$0xf]  ;;  %v1269_v55 = vld [vmem:[%s1419_s7 + $0xe8] sm:$0xf0] }
  0x4c   : > { %1333 = vmatpush.bf16.msra.mxu3 %v1392_v2  ;;  %728 = vmatmul.bf16.gmra.mxu1 %v1015_v56  ;;  %v1023_v2 = vor.u32 %v1250_v61, %v1022_v60  ;;  %v1103_v57 = vor.u32 %v1269_v55, %v1102_v54  ;;  %v1264_v60 = vld [vmem:[%s1419_s7 + $0xc4] sm:$0xf]  ;;  %v1084_v61 = vld [vmem:[%s1419_s7 + $0xcc] sm:$0xf0] }
  0x4d   : > { %v1087_v0 = vor.u32 %v1264_v60, %v1084_v61 }
  0x50   : > { %1334 = vmatpush.bf16.msra.mxu3 %v1407_v5  ;;  %v1054_v5 = vld [vmem:[%s1419_s7 + $0x80] sm:$0xf] }
  0x51   : > { %v1055_v7 = vor.u32 %v1257_v6, %v1054_v5  ;;  %v1114_v6 = vld [vmem:[%s1419_s7 + $0xf8] sm:$0xf] }
  0x55   : > { %1228 = vmatmul.msk.bf16.gmra.mxu2 %vm588_vm0, %v1043_v59  ;;  %v1265_v59 = vld [vmem:[%s1419_s7 + $0xc8] sm:$0xf0] }
  0x56   : > { %v1083_v62 = vor.u32 %v1265_v59, %v1082_v58 }
  0x5b   : > { %654 = vmatmul.bf16.gmra.mxu0 %v1023_v2  ;;  %773 = vmatmul.bf16.vlgmr.msrb.gmra.mxu3 %v1123_v3 }
  0x5c   : > { %733 = vmatmul.bf16.gmra.mxu1 %v1027_v4 }
  0x65   : > { %1229 = vmatmul.msk.bf16.gmra.mxu2 %vm588_vm0, %v1055_v7  ;;  %v1272_v7 = vld [vmem:[%s1419_s7 + $0x100] sm:$0xf0] }
  0x66   : > { %v1115_v12 = vor.u32 %v1272_v7, %v1114_v6 }
  0x6b   : > { %659 = vmatmul.bf16.gmra.mxu0 %v1035_v14  ;;  %778 = vmatmul.bf16.gmra.mxu3 %v1135_v15  ;;  %v1094_v14 = vld [vmem:[%s1419_s7 + $0xd8] sm:$0xf]  ;;  %v1268_v15 = vld [vmem:[%s1419_s7 + $0xe0] sm:$0xf0] }
  0x6c   : > { %738 = vmatmul.bf16.gmra.mxu1 %v1039_v16  ;;  %v1267_v16 = vld [vmem:[%s1419_s7 + $0xdc] sm:$0xf] }
  0x6d   : > { %v1099_v21 = vor.u32 %v1267_v16, %v1096_v17 }
  0x75   : > { %1230 = vmatmul.msk.bf16.gmra.mxu2 %vm588_vm0, %v1067_v19  ;;  %v1095_v19 = vor.u32 %v1268_v15, %v1094_v14 }
  0x7b   : > { %664 = vmatmul.bf16.gmra.mxu0 %v1047_v26  ;;  %783 = vmatmul.bf16.gmra.mxu3 %v1147_v27  ;;  %v1126_v27 = vld [vmem:[%s1419_s7 + $0x110] sm:$0xf] }
  0x7c   : > { %743 = vmatmul.bf16.gmra.mxu1 %v1051_v28  ;;  %v1275_v28 = vld [vmem:[%s1419_s7 + $0x118] sm:$0xf0] }
  0x7d   : > { %v1127_v33 = vor.u32 %v1275_v28, %v1126_v27 }
  0x85   : > { %1231 = vmatmul.msk.bf16.gmra.mxu2 %vm588_vm0, %v1079_v31 }
  0x8b   : > { %669 = vmatmul.bf16.gmra.mxu0 %v1059_v38  ;;  %1236 = vmatmul.msk.bf16.vlgmr.msra.gmra.mxu3 %vm588_vm0, %v1139_v39  ;;  %v1108_v38 = vld [vmem:[%s1419_s7 + $0xfc] sm:$0xf0] }
  0x8c   : > { %748 = vmatmul.bf16.gmra.mxu1 %v1063_v40  ;;  %v1107_v40 = vor.u32 %v1271_v36, %v1106_v35  ;;  %v1111_v42 = vor.u32 %v1270_v37, %v1108_v38 }
  0x95   : > { %1232 = vmatmul.msk.bf16.gmra.mxu2 %vm588_vm0, %v1091_v43 }
  0x98   : > { %v798_v53 = vpop.f32.mrf.mxu2 }
  0x9b   : > { %674 = vmatmul.bf16.gmra.mxu0 %v1071_v50  ;;  %1237 = vmatmul.msk.bf16.gmra.mxu3 %vm588_vm0, %v1151_v51 }
  0x9c   : > { %753 = vmatmul.bf16.gmra.mxu1 %v1075_v52 }
  0xa0   : > { %v800_v56 = vpop.f32.mrf.mxu2 }
  0xa5   : > { %1233 = vmatmul.msk.bf16.gmra.mxu2 %vm588_vm0, %v1103_v57 }
  0xa8   : > { %v640_v63 = vpop.f32.mrf.mxu0  ;;  %v803_v2 = vpop.f32.mrf.mxu2 }
  0xa9   : > { %v719_v1 = vpop.f32.mrf.mxu1 }
  0xaa   : > { %v720_v3 = vadd.f32 %v719_v1, %v640_v63 }
  0xab   : > { %679 = vmatmul.bf16.gmra.mxu0 %v1083_v62 }
  0xac   : > { %v1538_v4 = vadd.f32 %v798_v53, %v720_v3  ;;  %758 = vmatmul.bf16.gmra.mxu1 %v1087_v0 }
  0xae   : > { %v695_v5 = vpop.f32.mrf.mxu3 }
  0xb0   : > { %v642_v8 = vpop.f32.mrf.mxu0  ;;  %v805_v10 = vpop.f32.mrf.mxu2 }
  0xb1   : > { %v721_v9 = vpop.f32.mrf.mxu1 }
  0xb2   : > { %v722_v11 = vadd.f32 %v721_v9, %v642_v8 }
  0xb4   : > { %v1542_v13 = vadd.f32 %v800_v56, %v722_v11 }
  0xb5   : > { %1234 = vmatmul.msk.bf16.gmra.mxu2 %vm588_vm0, %v1115_v12 }
  0xb6   : > { %v697_v18 = vpop.f32.mrf.mxu3 }
  0xb8   : > { %v645_v20 = vpop.f32.mrf.mxu0  ;;  %v808_v23 = vpop.f32.mrf.mxu2 }
  0xb9   : > { %v724_v22 = vpop.f32.mrf.mxu1 }
  0xba   : > { %v725_v24 = vadd.f32 %v724_v22, %v645_v20 }
  0xbb   : > { %684 = vmatmul.bf16.gmra.mxu0 %v1095_v19 }
  0xbc   : > { %v1549_v25 = vadd.f32 %v803_v2, %v725_v24  ;;  %763 = vmatmul.bf16.gmra.mxu1 %v1099_v21 }
  0xbe   : > { %v1551_v26 = vpop.f32.mrf.mxu3 }
  0xc0   : > { %v647_v29 = vpop.f32.mrf.mxu0  ;;  %v810_v31 = vpop.f32.mrf.mxu2 }
  0xc1   : > { %v726_v30 = vpop.f32.mrf.mxu1 }
  0xc2   : > { %v727_v32 = vadd.f32 %v726_v30, %v647_v29 }
  0xc4   : > { %v1555_v34 = vadd.f32 %v805_v10, %v727_v32 }
  0xc5   : > { %1235 = vmatmul.msk.bf16.gmra.mxu2 %vm588_vm0, %v1127_v33 }
  0xc6   : > { %v1562_v39 = vpop.f32.mrf.mxu3 }
  0xc8   : > { %v650_v41 = vpop.f32.mrf.mxu0  ;;  %v813_v44 = vpop.f32.mrf.mxu2 }
  0xc9   : > { %v729_v43 = vpop.f32.mrf.mxu1 }
  0xca   : > { %v730_v45 = vadd.f32 %v729_v43, %v650_v41 }
  0xcb   : > { %689 = vmatmul.bf16.gmra.mxu0 %v1107_v40 }
  0xcc   : > { %v1564_v46 = vadd.f32 %v808_v23, %v730_v45  ;;  %768 = vmatmul.bf16.gmra.mxu1 %v1111_v42 }
  0xce   : > { %v1566_v47 = vpop.f32.mrf.mxu3 }
  0xd0   : > { %v652_v48 = vpop.f32.mrf.mxu0  ;;  %v815_v50 = vpop.f32.mrf.mxu2 }
  0xd1   : > { %v731_v49 = vpop.f32.mrf.mxu1 }
  0xd2   : > { %v732_v51 = vadd.f32 %v731_v49, %v652_v48 }
  0xd4   : > { %v1568_v52 = vadd.f32 %v810_v31, %v732_v51 }
  0xd6   : > { %v1570_v53 = vpop.f32.mrf.mxu3 }
  0xd8   : > { %v655_v54 = vpop.f32.mrf.mxu0  ;;  %v818_v56 = vpop.f32.mrf.mxu2 }
  0xd9   : > { %v734_v55 = vpop.f32.mrf.mxu1 }
  0xda   : > { %v735_v57 = vadd.f32 %v734_v55, %v655_v54 }
  0xdc   : > { %v1572_v58 = vadd.f32 %v813_v44, %v735_v57 }
  0xde   : > { %v774_v59 = vpop.f32.mrf.mxu3 }
  0xdf   : > { %v1574_v60 = vadd.f32 %v774_v59, %v695_v5 }
  0xe0   : > { %v657_v61 = vpop.f32.mrf.mxu0  ;;  %v820_v63 = vpop.f32.mrf.mxu2 }
  0xe1   : > { %v736_v62 = vpop.f32.mrf.mxu1 }
  0xe2   : > { %v737_v0 = vadd.f32 %v736_v62, %v657_v61 }
  0xe4   : > { %v816_v1 = vadd.f32 %v815_v50, %v737_v0 }
  0xe6   : > { %v869_v2 = vmax.f32 %v1538_v4, %v816_v1  ;;  %v776_v3 = vpop.f32.mrf.mxu3 }
  0xe7   : > { %v1577_v6 = vadd.f32 %v776_v3, %v697_v18 }
  0xe8   : > { %v660_v7 = vpop.f32.mrf.mxu0  ;;  %v823_v9 = vpop.f32.mrf.mxu2 }
  0xe9   : > { %v739_v8 = vpop.f32.mrf.mxu1 }
  0xea   : > { %v740_v10 = vadd.f32 %v739_v8, %v660_v7 }
  0xec   : > { %v819_v11 = vadd.f32 %v818_v56, %v740_v10 }
  0xee   : > { %v870_v12 = vmax.f32 %v1542_v13, %v819_v11  ;;  %v779_v29 = vpop.f32.mrf.mxu3 }
  0xf0   : > { %v662_v14 = vpop.f32.mrf.mxu0  ;;  %v825_v15 = vpop.f32.mrf.mxu2 }
  0xf1   : > { %v741_v5 = vpop.f32.mrf.mxu1 }
  0xf2   : > { %v742_v16 = vadd.f32 %v741_v5, %v662_v14 }
  0xf4   : > { %v1580_v17 = vadd.f32 %v820_v63, %v742_v16 }
  0xf6   : > { %v871_v19 = vmax.f32 %v1549_v25, %v1580_v17  ;;  %v781_v38 = vpop.f32.mrf.mxu3 }
  0xf8   : > { %v665_v4 = vpop.f32.mrf.mxu0  ;;  %v828_v18 = vpop.f32.mrf.mxu2 }
  0xf9   : > { %v744_v20 = vpop.f32.mrf.mxu1 }
  0xfa   : > { %v745_v21 = vadd.f32 %v744_v20, %v665_v4 }
  0xfc   : > { %v824_v22 = vadd.f32 %v823_v9, %v745_v21 }
  0xfe   : > { %v872_v23 = vmax.f32 %v1555_v34, %v824_v22  ;;  %v784_v48 = vpop.f32.mrf.mxu3  ;;  %v782_v22 = vadd.f32 %v781_v38, %v1562_v39  ;;  %v1344_v39 = vld [vmem:[%s1631_s2] ss:$0 sm:$0xff] }
 0x100   : > { %v667_v24 = vpop.f32.mrf.mxu0  ;;  %v830_v28 = vpop.f32.mrf.mxu2 }
 0x101   : > { %v746_v27 = vpop.f32.mrf.mxu1 }
 0x102   : > { %v747_v13 = vadd.f32 %v746_v27, %v667_v24 }
 0x104   : > { %v826_v30 = vadd.f32 %v825_v15, %v747_v13 }
 0x106   : > { %v873_v31 = vmax.f32 %v1564_v46, %v826_v30  ;;  %v786_v59 = vpop.f32.mrf.mxu3 }
 0x108   : > { %v670_v32 = vpop.f32.mrf.mxu0  ;;  %v833_v35 = vpop.f32.mrf.mxu2 }
 0x109   : > { %v749_v33 = vpop.f32.mrf.mxu1 }
 0x10a   : > { %v750_v36 = vadd.f32 %v749_v33, %v670_v32 }
 0x10c   : > { %v829_v37 = vadd.f32 %v828_v18, %v750_v36 }
 0x10e   : > { %v874_v40 = vmax.f32 %v1568_v52, %v829_v37  ;;  %v858_v7 = vpop.f32.mrf.mxu3 }
 0x110   : > { %v672_v41 = vpop.f32.mrf.mxu0  ;;  %v835_v43 = vpop.f32.mrf.mxu2 }
 0x111   : > { %v751_v42 = vpop.f32.mrf.mxu1 }
 0x112   : > { %v752_v34 = vadd.f32 %v751_v42, %v672_v41 }
 0x114   : > { %v1587_v44 = vadd.f32 %v830_v28, %v752_v34 }
 0x116   : > { %v875_v45 = vmax.f32 %v1572_v58, %v1587_v44  ;;  %v860_v15 = vpop.f32.mrf.mxu3 }
 0x117   : > { %v861_v27 = vadd.f32 %v860_v15, %v782_v22 }
 0x118   : > { %v675_v49 = vpop.f32.mrf.mxu0  ;;  %v1591_v50 = vpop.f32.mrf.mxu2 }
 0x119   : > { %v754_v46 = vpop.f32.mrf.mxu1 }
 0x11a   : > { %v755_v51 = vadd.f32 %v754_v46, %v675_v49 }
 0x11c   : > { %v834_v54 = vadd.f32 %v833_v35, %v755_v51 }
 0x11e   : > { %v1593_v55 = vmax.f32 %v869_v2, %v834_v54  ;;  %v780_v2 = vadd.f32 %v779_v29, %v1551_v26  ;;  %v863_v13 = vpop.f32.mrf.mxu3 }
 0x120   : > { %v677_v56 = vpop.f32.mrf.mxu0  ;;  %v840_v57 = vpop.f32.mrf.mxu2  ;;  %v859_v5 = vadd.f32 %v858_v7, %v780_v2 }
 0x121   : > { %v756_v52 = vpop.f32.mrf.mxu1 }
 0x122   : > { %v757_v61 = vadd.f32 %v756_v52, %v677_v56 }
 0x124   : > { %v836_v62 = vadd.f32 %v835_v43, %v757_v61 }
 0x126   : > { %v1595_v63 = vmax.f32 %v870_v12, %v836_v62 }
 0x128   : > { %v680_v0 = vpop.f32.mrf.mxu0  ;;  %v843_v3 = vpop.f32.mrf.mxu2 }
 0x129   : > { %v759_v1 = vpop.f32.mrf.mxu1 }
 0x12a   : > { %v760_v34 = vadd.f32 %v759_v1, %v680_v0 }
 0x12c   : > { %v839_v61 = vadd.f32 %v1591_v50, %v760_v34 }
 0x130   : > { %v682_v8 = vpop.f32.mrf.mxu0  ;;  %v845_v10 = vpop.f32.mrf.mxu2 }
 0x131   : > { %v761_v9 = vpop.f32.mrf.mxu1 }
 0x132   : > { %v762_v11 = vadd.f32 %v761_v9, %v682_v8  ;;  %v878_v8 = vmax.f32 %v871_v19, %v839_v61 }
 0x134   : > { %v841_v14 = vadd.f32 %v840_v57, %v762_v11 }
 0x136   : > { %v879_v16 = vmax.f32 %v872_v23, %v841_v14  ;;  %v785_v23 = vadd.f32 %v784_v48, %v1566_v47  ;;  %v787_v47 = vadd.f32 %v786_v59, %v1570_v53  ;;  %v865_v48 = vpop.f32.mrf.mxu3 }
 0x138   : > { %v886_v4 = vmax.f32 %v879_v16, %v859_v5  ;;  %v685_v20 = vpop.f32.mrf.mxu0  ;;  %v848_v12 = vpop.f32.mrf.mxu2  ;;  %v864_v36 = vadd.f32 %v863_v13, %v785_v23 }
 0x139   : > { %v764_v18 = vpop.f32.mrf.mxu1 }
 0x13a   : > { %v765_v21 = vadd.f32 %v764_v18, %v685_v20  ;;  %v896_v50 = vadd.f32 %v1344_v39, %v886_v4 }
 0x13c   : > { %v844_v24 = vadd.f32 %v843_v3, %v765_v21  ;;  %v903_v15 = vmax.f32 %v896_v50, 0.0 }
 0x13e   : > { %v880_v28 = vmax.f32 %v873_v31, %v844_v24 }
 0x140   : > { %v887_v30 = vmax.f32 %v880_v28, %v861_v27  ;;  %v687_v32 = vpop.f32.mrf.mxu0  ;;  %v850_v29 = vpop.f32.mrf.mxu2 }
 0x141   : > { %v766_v26 = vpop.f32.mrf.mxu1 }
 0x142   : > { %v767_v33 = vadd.f32 %v766_v26, %v687_v32  ;;  %v897_v31 = vadd.f32 %v1344_v39, %v887_v30 }
 0x144   : > { %v846_v35 = vadd.f32 %v845_v10, %v767_v33  ;;  %v904_v54 = vmax.f32 %v897_v31, 0.0 }
 0x146   : > { %v881_v37 = vmax.f32 %v874_v40, %v846_v35  ;;  %v866_v40 = vadd.f32 %v865_v48, %v787_v47 }
 0x148   : > { %v888_v38 = vmax.f32 %v881_v37, %v864_v36  ;;  %v690_v41 = vpop.f32.mrf.mxu0  ;;  %v853_v43 = vpop.f32.mrf.mxu2 }
 0x149   : > { %v769_v42 = vpop.f32.mrf.mxu1  ;;  %v854_v51 = vadd.f32 %v853_v43, %v1574_v60 }
 0x14a   : > { %v898_v49 = vadd.f32 %v1344_v39, %v888_v38  ;;  %v770_v46 = vadd.f32 %v769_v42, %v690_v41 }
 0x14b   : > { %v884_v57 = vmax.f32 %v1595_v63, %v854_v51 }
 0x14c   : > { %v905_v56 = vmax.f32 %v898_v49, 0.0  ;;  %v849_v52 = vadd.f32 %v848_v12, %v770_v46 }
 0x14d   : > { %v894_v10 = vadd.f32 %v1344_v39, %v884_v57 }
 0x14e   : > { %v1313_v62 = vpack.c.bf16 %v905_v56, %v904_v54  ;;  %v882_v53 = vmax.f32 %v875_v45, %v849_v52 }
 0x150   : > { %1316 = vst [vmem:[%s1611_s8 + $0x10] sm:$0xff] %v1313_v62   ;;  %v889_v60 = vmax.f32 %v882_v53, %v866_v40  ;;  %v692_v59 = vpop.f32.mrf.mxu0  ;;  %v855_v63 = vpop.f32.mrf.mxu2 }
 0x151   : > { %v771_v0 = vpop.f32.mrf.mxu1  ;;  %v856_v7 = vadd.f32 %v855_v63, %v1577_v6  ;;  %v901_v6 = vmax.f32 %v894_v10, 0.0 }
 0x152   : > { %v899_v1 = vadd.f32 %v1344_v39, %v889_v60  ;;  %v772_v3 = vadd.f32 %v771_v0, %v692_v59 }
 0x153   : > { %v885_v44 = vmax.f32 %v878_v8, %v856_v7 }
 0x154   : > { %v906_v9 = vmax.f32 %v899_v1, 0.0  ;;  %v851_v58 = vadd.f32 %v850_v29, %v772_v3 }
 0x155   : > { %v895_v2 = vadd.f32 %v1344_v39, %v885_v44 }
 0x156   : > { %v913_v45 = vpack.c.bf16 %v906_v9, %v906_v9  ;;  %v883_v11 = vmax.f32 %v1593_v55, %v851_v58 }
 0x157   : > { %v902_v5 = vmax.f32 %v895_v2, 0.0 }
 0x158   : > { %920 = vst [vmem:[%s1611_s8 + $0x18] sm:$0xf] %v913_v45  ;;  %v893_v14 = vadd.f32 %v1344_v39, %v883_v11 }
 0x159   : > { %v1308_v20 = vpack.c.bf16 %v903_v15, %v902_v5 }
 0x15a   : > { %v900_v16 = vmax.f32 %v893_v14, 0.0 }
 0x15b   : > { %1315 = vst [vmem:[%s1611_s8 + $0x8] sm:$0xff] %v1308_v20  }
 0x15c   : > { %v1303_v25 = vpack.c.bf16 %v901_v6, %v900_v16 }
 0x15e   : > { %1304 = vst [vmem:[%s1611_s8] sm:$0xff] %v1303_v25  }
 0x15f PF: > { %s13_s12 = sadd.s32 1, %s1351_s12  }
 0x160   : > { %p10_p5 = scmp.ge.s32.totalorder %s13_s12, 4  }
 0x162   :  { %12 = sbr.rel (!%p10_p5) target bundleno = 1 (0x1), region = 62 }

// kernel: cnn_middle_forward.6
= control target key start
LH: loop header
LB: loop body
LE: loop exit
PB: predicated region body
PF: predicated region fallthrough
CT: control target
= control target key end

     0   :  { %s1176_s12 = smov 0   ;;  %s1354_s0 = inlined_call_operand.vmem [shape: bf16[128,576], index: 0, kind: input, shape index: {}]   ;;  %s1355_s1 = inlined_call_operand.vmem [shape: bf16[576,128], index: 1, kind: input, shape index: {}]   ;;  %s1356_s2 = inlined_call_operand.vmem [shape: f32[1,128], index: 2, kind: input, shape index: {}]   ;;  %s1357_s3 = inlined_call_operand.vmem [shape: bf16[32,128], index: 3, kind: output, shape index: {}]  }
   0x1 LB: > { %s822_s13 = sadd.s32 4294967295, %s1154_s12   ;;  %p826_p0 = scmp.ge.s32.totalorder %s1154_s12, 1  ;;  %s1154_s12 = sphi %s1176_s12, %s13_s12  }
   0x2   : > { %p139_p1 = scmp.lt.s32.totalorder %s1154_s12, 3 }
   0x4   : > { %p140_p2 = pnand %p826_p0, %p139_p1 }
   0x5   : > { %s827_s24 = sshll.u32 (!%p140_p2), %s822_s13, 3 }
   0x6   : > { %143 = sbr.rel (%p140_p2) target bundleno = 278 (0x116), region = 32  ;;  %p165_p3 = scmp.lt.s32.totalorder (!%p140_p2), %s827_s24, 15 }
   0xb   : > { %v1088_v0 = vld [vmem:[%s1355_s1 + $0x38] sm:$0xff]  ;;  %v1087_v1 = vld [vmem:[%s1355_s1 + $0x30] sm:$0xff]  ;;  %v1086_v4 = vld [vmem:[%s1355_s1 + $0x28] sm:$0xff]  ;;  %s1359_s24 = smov (!%p165_p3, %s827_s24), 15  ;;  %vm590_vm0 = vcmask 523264  }
   0xc   : > { %1122 = vmatpush.bf16.msra.mxu1 %v1088_v0  ;;  %1123 = vmatpush.bf16.msra.mxu2 %v1088_v0  ;;  %v1112_v2 = vld [vmem:[%s1355_s1 + $0xf8] sm:$0xff]  ;;  %v1111_v3 = vld [vmem:[%s1355_s1 + $0xf0] sm:$0xff]  ;;  %v1110_v5 = vld [vmem:[%s1355_s1 + $0xe8] sm:$0xff]  ;;  %s1138_s10 = smul.u32 20, %s1359_s24 }
   0xd   : > { %603 = vmatpush.bf16.msra.mxu0 %v1088_v0  ;;  %690 = vmatpush.bf16.msra.mxu3 %v1112_v2  ;;  %v1085_v6 = vld [vmem:[%s1355_s1 + $0x20] sm:$0xff]  ;;  %v1084_v8 = vld [vmem:[%s1355_s1 + $0x18] sm:$0xff]  ;;  %v1083_v10 = vld [vmem:[%s1355_s1 + $0x10] sm:$0xff] }
   0xe   : > { %v1109_v7 = vld [vmem:[%s1355_s1 + $0xe0] sm:$0xff]  ;;  %v1108_v9 = vld [vmem:[%s1355_s1 + $0xd8] sm:$0xff]  ;;  %v1107_v11 = vld [vmem:[%s1355_s1 + $0xd0] sm:$0xff]  ;;  %s1228_s19 = scalar_lea.vmem %s1354_s0, %s1138_s10 }
   0xf   : > { %v1082_v12 = vld [vmem:[%s1355_s1 + $0x8] sm:$0xff]  ;;  %v1081_v14 = vld [vmem:[%s1355_s1] sm:$0xff]  ;;  %v1068_v16 = vld [vmem:[%s1228_s19 + $0x38] sm:$0xf0] }
  0x10   : > { %1124 = vmatpush.bf16.msra.mxu1 %v1087_v1  ;;  %1125 = vmatpush.bf16.msra.mxu2 %v1087_v1  ;;  %v1106_v13 = vld [vmem:[%s1355_s1 + $0xc8] sm:$0xff]  ;;  %v893_v17 = vld [vmem:[%s1228_s19 + $0x78] sm:$0xf]  ;;  %v833_v21 = vld [vmem:[%s1228_s19] sm:$0xf] }
  0x11   : > { %604 = vmatpush.bf16.msra.mxu0 %v1087_v1  ;;  %691 = vmatpush.bf16.msra.mxu3 %v1111_v3  ;;  %v853_v15 = vld [vmem:[%s1228_s19 + $0x28] sm:$0xf]  ;;  %v1078_v18 = vld [vmem:[%s1228_s19 + $0x88] sm:$0xf0]  ;;  %v1104_v19 = vld [vmem:[%s1355_s1 + $0xb8] sm:$0xff] }
  0x12   : > { %v1096_v20 = vld [vmem:[%s1355_s1 + $0x78] sm:$0xff]  ;;  %v1105_v22 = vld [vmem:[%s1355_s1 + $0xc0] sm:$0xff]  ;;  %v854_v23 = vor.u32 %v1068_v16, %v853_v15  ;;  %v894_v24 = vor.u32 %v1078_v18, %v893_v17  ;;  %v1063_v25 = vld [vmem:[%s1228_s19 + $0x10] sm:$0xf0] }
  0x13   : > { %v1062_v26 = vld [vmem:[%s1228_s19 + $0xc] sm:$0xf]  ;;  %v843_v27 = vld [vmem:[%s1228_s19 + $0x1c] sm:$0xf0]  ;;  %v1116_v28 = vld [vmem:[%s1355_s1 + $0x118] sm:$0xff]  ;;  %v834_v31 = vor.u32 %v1063_v25, %v833_v21 }
  0x14   : > { %1126 = vmatpush.bf16.msra.mxu1 %v1086_v4  ;;  %1127 = vmatpush.bf16.msra.mxu2 %v1086_v4  ;;  %v1103_v29 = vld [vmem:[%s1355_s1 + $0xb0] sm:$0xff]  ;;  %v846_v32 = vor.u32 %v1062_v26, %v843_v27  ;;  %v1102_v34 = vld [vmem:[%s1355_s1 + $0xa8] sm:$0xff]  ;;  %v1101_v37 = vld [vmem:[%s1355_s1 + $0xa0] sm:$0xff] }
  0x15   : > { %605 = vmatpush.bf16.msra.mxu0 %v1086_v4  ;;  %692 = vmatpush.bf16.msra.mxu3 %v1110_v5  ;;  %v1095_v30 = vld [vmem:[%s1355_s1 + $0x70] sm:$0xff]  ;;  %v1094_v35 = vld [vmem:[%s1355_s1 + $0x68] sm:$0xff]  ;;  %v1093_v38 = vld [vmem:[%s1355_s1 + $0x60] sm:$0xff] }
  0x16   : > { %v1115_v33 = vld [vmem:[%s1355_s1 + $0x110] sm:$0xff]  ;;  %v1114_v36 = vld [vmem:[%s1355_s1 + $0x108] sm:$0xff]  ;;  %v1073_v40 = vld [vmem:[%s1228_s19 + $0x60] sm:$0xf0] }
  0x17   : > { %v873_v39 = vld [vmem:[%s1228_s19 + $0x50] sm:$0xf]  ;;  %v1113_v41 = vld [vmem:[%s1355_s1 + $0x100] sm:$0xff]  ;;  %v1100_v42 = vld [vmem:[%s1355_s1 + $0x98] sm:$0xff] }
  0x18   : > { %1128 = vmatpush.bf16.msra.mxu1 %v1085_v6  ;;  %1129 = vmatpush.bf16.msra.mxu2 %v1085_v6  ;;  %v1092_v43 = vld [vmem:[%s1355_s1 + $0x58] sm:$0xff]  ;;  %v849_v44 = vld [vmem:[%s1228_s19 + $0x10] sm:$0xf]  ;;  %v874_v45 = vor.u32 %v1073_v40, %v873_v39  ;;  %v1065_v46 = vld [vmem:[%s1228_s19 + $0x20] sm:$0xf0] }
  0x19   : > { %606 = vmatpush.bf16.msra.mxu0 %v1085_v6  ;;  %693 = vmatpush.bf16.msra.mxu3 %v1109_v7  ;;  %v1067_v47 = vld [vmem:[%s1228_s19 + $0x34] sm:$0xf]  ;;  %v863_v48 = vld [vmem:[%s1228_s19 + $0x44] sm:$0xf0]  ;;  %v850_v51 = vor.u32 %v1065_v46, %v849_v44  ;;  %v1097_v55 = vld [vmem:[%s1355_s1 + $0x80] sm:$0xff] }
  0x1a   : > { %v1099_v49 = vld [vmem:[%s1355_s1 + $0x90] sm:$0xff]  ;;  %v866_v52 = vor.u32 %v1067_v47, %v863_v48  ;;  %v1098_v53 = vld [vmem:[%s1355_s1 + $0x88] sm:$0xff]  ;;  %v1089_v56 = vld [vmem:[%s1355_s1 + $0x40] sm:$0xff] }
  0x1b   : > { %v1091_v50 = vld [vmem:[%s1355_s1 + $0x50] sm:$0xff]  ;;  %v1090_v54 = vld [vmem:[%s1355_s1 + $0x48] sm:$0xff]  ;;  %v1064_v58 = vld [vmem:[%s1228_s19 + $0x18] sm:$0xf0] }
  0x1c   : > { %1130 = vmatpush.bf16.msra.mxu1 %v1084_v8  ;;  %1131 = vmatpush.bf16.msra.mxu2 %v1084_v8  ;;  %v841_v57 = vld [vmem:[%s1228_s19 + $0x8] sm:$0xf]  ;;  %v1061_v60 = vld [vmem:[%s1228_s19 + $0x4] sm:$0xf]  ;;  %v835_v61 = vld [vmem:[%s1228_s19 + $0x14] sm:$0xf0] }
  0x1d   : > { %607 = vmatpush.bf16.msra.mxu0 %v1084_v8  ;;  %694 = vmatpush.bf16.msra.mxu3 %v1108_v9  ;;  %v842_v59 = vor.u32 %v1064_v58, %v841_v57  ;;  %v869_v62 = vld [vmem:[%s1228_s19 + $0x38] sm:$0xf]  ;;  %v838_v63 = vor.u32 %v1061_v60, %v835_v61  ;;  %v1070_v0 = vld [vmem:[%s1228_s19 + $0x48] sm:$0xf0]  ;;  %v1072_v1 = vld [vmem:[%s1228_s19 + $0x5c] sm:$0xf] }
  0x1e   : > { %v883_v2 = vld [vmem:[%s1228_s19 + $0x6c] sm:$0xf0]  ;;  %v870_v3 = vor.u32 %v1070_v0, %v869_v62  ;;  %v1069_v6 = vld [vmem:[%s1228_s19 + $0x40] sm:$0xf0]  ;;  %v1066_v8 = vld [vmem:[%s1228_s19 + $0x2c] sm:$0xf] }
  0x1f   : > { %v886_v4 = vor.u32 %v1072_v1, %v883_v2  ;;  %v861_v5 = vld [vmem:[%s1228_s19 + $0x30] sm:$0xf]  ;;  %v855_v9 = vld [vmem:[%s1228_s19 + $0x3c] sm:$0xf0]  ;;  %v881_v17 = vld [vmem:[%s1228_s19 + $0x58] sm:$0xf] }
  0x20   : > { %1132 = vmatpush.bf16.msra.mxu1 %v1083_v10  ;;  %1133 = vmatpush.bf16.msra.mxu2 %v1083_v10  ;;  %v862_v7 = vor.u32 %v1069_v6, %v861_v5  ;;  %v1074_v18 = vld [vmem:[%s1228_s19 + $0x68] sm:$0xf0]  ;;  %v875_v21 = vld [vmem:[%s1228_s19 + $0x64] sm:$0xf0]  ;;  %v901_v26 = vld [vmem:[%s1228_s19 + $0x80] sm:$0xf] }
  0x21   : > { %608 = vmatpush.bf16.msra.mxu0 %v1083_v10  ;;  %695 = vmatpush.bf16.msra.mxu3 %v1107_v11  ;;  %v889_v10 = vld [vmem:[%s1228_s19 + $0x60] sm:$0xf]  ;;  %v858_v11 = vor.u32 %v1066_v8, %v855_v9  ;;  %v1079_v27 = vld [vmem:[%s1228_s19 + $0x90] sm:$0xf0] }
  0x24   : > { %1134 = vmatpush.bf16.msra.mxu1 %v1082_v12  ;;  %1135 = vmatpush.bf16.msra.mxu2 %v1082_v12 }
  0x25   : > { %609 = vmatpush.bf16.msra.mxu0 %v1082_v12  ;;  %696 = vmatpush.bf16.msra.mxu3 %v1106_v13  ;;  %v1075_v12 = vld [vmem:[%s1228_s19 + $0x70] sm:$0xf0]  ;;  %v1077_v13 = vld [vmem:[%s1228_s19 + $0x84] sm:$0xf] }
  0x26   : > { %v890_v15 = vor.u32 %v1075_v12, %v889_v10 }
  0x28   : > { %1136 = vmatpush.bf16.msra.mxu1 %v1081_v14  ;;  %1137 = vmatpush.bf16.msra.mxu2 %v1081_v14 }
  0x29   : > { %610 = vmatpush.bf16.msra.mxu0 %v1081_v14  ;;  %697 = vmatpush.bf16.msra.mxu3 %v1105_v22  ;;  %v903_v14 = vld [vmem:[%s1228_s19 + $0x94] sm:$0xf0] }
  0x2a   : > { %v906_v16 = vor.u32 %v1077_v13, %v903_v14 }
  0x2b   : > { %616 = vmatmul.bf16.vlgmr.msra.gmra.mxu1 %v854_v23  ;;  %626 = vmatmul.bf16.vlgmr.msra.gmra.mxu2 %v894_v24  ;;  %v909_v23 = vld [vmem:[%s1228_s19 + $0x88] sm:$0xf]  ;;  %v1080_v24 = vld [vmem:[%s1228_s19 + $0x98] sm:$0xf0] }
  0x2c   : > { %661 = vmatpush.bf16.msrb.mxu2 %v1104_v19  ;;  %632 = vmatpush.bf16.msrb.mxu1 %v1096_v20  ;;  %v882_v19 = vor.u32 %v1074_v18, %v881_v17  ;;  %v1071_v20 = vld [vmem:[%s1228_s19 + $0x54] sm:$0xf]  ;;  %v910_v25 = vor.u32 %v1080_v24, %v909_v23 }
  0x2d   : > { %723 = vmatpush.bf16.msrb.mxu0 %v1116_v28  ;;  %698 = vmatmul.bf16.vlgmr.msra.gmra.mxu3 %v846_v32  ;;  %v878_v22 = vor.u32 %v1071_v20, %v875_v21  ;;  %v902_v28 = vor.u32 %v1079_v27, %v901_v26 }
  0x2e   : > { %611 = vmatmul.bf16.vlgmr.msra.gmra.mxu0 %v834_v31 }
  0x30   : > { %662 = vmatpush.bf16.msrb.mxu2 %v1103_v29  ;;  %633 = vmatpush.bf16.msrb.mxu1 %v1095_v30  ;;  %v1076_v29 = vld [vmem:[%s1228_s19 + $0x7c] sm:$0xf]  ;;  %v895_v30 = vld [vmem:[%s1228_s19 + $0x8c] sm:$0xf0]  ;;  %s829_s19 = sshll.u32 %s822_s13, 1 }
  0x31   : > { %724 = vmatpush.bf16.msrb.mxu0 %v1115_v33  ;;  %v898_v31 = vor.u32 %v1076_v29, %v895_v30  ;;  %p172_p4 = scmp.lt.s32.totalorder %s829_s19, 3 }
  0x33   : > { %s1361_s19 = smov (!%p172_p4, %s829_s19), 3 }
  0x34   : > { %663 = vmatpush.bf16.msrb.mxu2 %v1102_v34  ;;  %634 = vmatpush.bf16.msrb.mxu1 %v1094_v35  ;;  %s830_s13 = sshll.u32 %s1361_s19, 2 }
  0x35   : > { %725 = vmatpush.bf16.msrb.mxu0 %v1114_v36  ;;  %s175_s22 = scalar_lea.vmem %s1357_s3, %s830_s13 }
  0x38   : > { %664 = vmatpush.bf16.msrb.mxu2 %v1101_v37  ;;  %635 = vmatpush.bf16.msrb.mxu1 %v1093_v38 }
  0x39   : > { %726 = vmatpush.bf16.msrb.mxu0 %v1113_v41 }
  0x3b   : > { %621 = vmatmul.bf16.gmra.mxu1 %v874_v45 }
  0x3c   : > { %665 = vmatpush.bf16.msrb.mxu2 %v1100_v42  ;;  %636 = vmatpush.bf16.msrb.mxu1 %v1092_v43 }
  0x3d   : > { %703 = vmatmul.bf16.gmra.mxu3 %v866_v52 }
  0x3e   : > { %1055 = vmatmul.msk.bf16.vlgmr.msrb.gmra.mxu0 %vm590_vm0, %v850_v51 }
  0x40   : > { %666 = vmatpush.bf16.msrb.mxu2 %v1099_v49  ;;  %637 = vmatpush.bf16.msrb.mxu1 %v1091_v50 }
  0x44   : > { %667 = vmatpush.bf16.msrb.mxu2 %v1098_v53  ;;  %638 = vmatpush.bf16.msrb.mxu1 %v1090_v54 }
  0x48   : > { %668 = vmatpush.bf16.msrb.mxu2 %v1097_v55  ;;  %639 = vmatpush.bf16.msrb.mxu1 %v1089_v56 }
  0x4b   : > { %669 = vmatmul.bf16.vlgmr.msrb.gmra.mxu2 %v842_v59  ;;  %640 = vmatmul.bf16.vlgmr.msrb.gmra.mxu1 %v838_v63 }
  0x4d   : > { %708 = vmatmul.bf16.gmra.mxu3 %v886_v4 }
  0x4e   : > { %1056 = vmatmul.msk.bf16.gmra.mxu0 %vm590_vm0, %v870_v3 }
  0x5b   : > { %674 = vmatmul.bf16.gmra.mxu2 %v862_v7  ;;  %645 = vmatmul.bf16.gmra.mxu1 %v858_v11 }
  0x5d   : > { %713 = vmatmul.bf16.gmra.mxu3 %v906_v16 }
  0x5e   : > { %1057 = vmatmul.msk.bf16.gmra.mxu0 %vm590_vm0, %v890_v15 }
  0x6b   : > { %679 = vmatmul.bf16.gmra.mxu2 %v882_v19  ;;  %650 = vmatmul.bf16.gmra.mxu1 %v878_v22 }
  0x6e   : > { %1058 = vmatmul.msk.bf16.gmra.mxu0 %vm590_vm0, %v910_v25 }
  0x7b   : > { %684 = vmatmul.bf16.gmra.mxu2 %v902_v28  ;;  %655 = vmatmul.bf16.gmra.mxu1 %v898_v31 }
  0xa8   : > { %v617_v32 = vpop.f32.mrf.mxu1 }
  0xab   : > { %v612_v33 = vpop.f32.mrf.mxu0 }
  0xae   : > { %v627_v37 = vpop.f32.mrf.mxu2 }
  0xb0   : > { %v619_v34 = vpop.f32.mrf.mxu1  ;;  %v699_v38 = vpop.f32.mrf.mxu3 }
  0xb3   : > { %v614_v35 = vpop.f32.mrf.mxu0 }
  0xb6   : > { %v629_v41 = vpop.f32.mrf.mxu2 }
  0xb8   : > { %v622_v36 = vpop.f32.mrf.mxu1  ;;  %v701_v43 = vpop.f32.mrf.mxu3 }
  0xbb   : > { %v728_v40 = vpop.f32.mrf.mxu0 }
  0xc0   : > { %v624_v39 = vpop.f32.mrf.mxu1  ;;  %v704_v48 = vpop.f32.mrf.mxu3 }
  0xc3   : > { %v730_v45 = vpop.f32.mrf.mxu0 }
  0xc8   : > { %v641_v42 = vpop.f32.mrf.mxu1  ;;  %v706_v52 = vpop.f32.mrf.mxu3 }
  0xc9   : > { %v642_v56 = vadd.f32 %v641_v42, %v612_v33  ;;  %v1147_v42 = vld [vmem:[%s1356_s2] ss:$0 sm:$0xff] }
  0xcb   : > { %v733_v49 = vpop.f32.mrf.mxu0 }
  0xce   : > { %v670_v44 = vpop.f32.mrf.mxu2 }
  0xcf   : > { %v671_v59 = vadd.f32 %v670_v44, %v642_v56 }
  0xd0   : > { %v643_v46 = vpop.f32.mrf.mxu1  ;;  %v709_v60 = vpop.f32.mrf.mxu3 }
  0xd1   : > { %v700_v1 = vadd.f32 %v699_v38, %v671_v59  ;;  %v644_v15 = vadd.f32 %v643_v46, %v614_v35 }
  0xd3   : > { %v735_v53 = vpop.f32.mrf.mxu0  ;;  %v729_v5 = vadd.f32 %v728_v40, %v700_v1 }
  0xd6   : > { %v672_v47 = vpop.f32.mrf.mxu2 }
  0xd7   : > { %v673_v22 = vadd.f32 %v672_v47, %v644_v15 }
  0xd8   : > { %v646_v50 = vpop.f32.mrf.mxu1  ;;  %v711_v10 = vpop.f32.mrf.mxu3 }
  0xd9   : > { %v647_v54 = vadd.f32 %v646_v50, %v617_v32  ;;  %v702_v28 = vadd.f32 %v701_v43, %v673_v22 }
  0xdb   : > { %v738_v63 = vpop.f32.mrf.mxu0 }
  0xde   : > { %v675_v51 = vpop.f32.mrf.mxu2 }
  0xdf   : > { %v676_v58 = vadd.f32 %v675_v51, %v647_v54 }
  0xe0   : > { %v648_v55 = vpop.f32.mrf.mxu1  ;;  %v714_v20 = vpop.f32.mrf.mxu3 }
  0xe1   : > { %v705_v61 = vadd.f32 %v704_v48, %v676_v58  ;;  %v649_v14 = vadd.f32 %v648_v55, %v619_v34 }
  0xe3   : > { %v734_v3 = vadd.f32 %v733_v49, %v705_v61  ;;  %v740_v12 = vpop.f32.mrf.mxu0 }
  0xe5   : > { %v749_v7 = vmax.f32 %v729_v5, %v734_v3 }
  0xe6   : > { %v677_v57 = vpop.f32.mrf.mxu2 }
  0xe7   : > { %v678_v19 = vadd.f32 %v677_v57, %v649_v14 }
  0xe8   : > { %v651_v62 = vpop.f32.mrf.mxu1 }
  0xe9   : > { %v652_v0 = vadd.f32 %v651_v62, %v622_v36  ;;  %v707_v26 = vadd.f32 %v706_v52, %v678_v19  ;;  %v731_v36 = vadd.f32 %v730_v45, %v702_v28 }
  0xeb   : > { %v743_v25 = vpop.f32.mrf.mxu0  ;;  %v736_v33 = vadd.f32 %v735_v53, %v707_v26 }
  0xed   : > { %v750_v40 = vmax.f32 %v731_v36, %v736_v33 }
  0xee   : > { %v680_v2 = vpop.f32.mrf.mxu2 }
  0xef   : > { %v681_v4 = vadd.f32 %v680_v2, %v652_v0 }
  0xf0   : > { %v653_v9 = vpop.f32.mrf.mxu1 }
  0xf1   : > { %v710_v6 = vadd.f32 %v709_v60, %v681_v4  ;;  %v654_v16 = vadd.f32 %v653_v9, %v624_v39  ;;  %v716_v39 = vpop.f32.mrf.mxu3 }
  0xf3   : > { %v739_v8 = vadd.f32 %v738_v63, %v710_v6  ;;  %v745_v44 = vpop.f32.mrf.mxu0 }
  0xf5   : > { %v751_v11 = vmax.f32 %v749_v7, %v739_v8 }
  0xf6   : > { %v682_v13 = vpop.f32.mrf.mxu2 }
  0xf7   : > { %v683_v23 = vadd.f32 %v682_v13, %v654_v16 }
  0xf8   : > { %v656_v17 = vpop.f32.mrf.mxu1 }
  0xf9   : > { %v657_v18 = vadd.f32 %v656_v17, %v627_v37  ;;  %v712_v29 = vadd.f32 %v711_v10, %v683_v23 }
  0xfb   : > { %v741_v37 = vadd.f32 %v740_v12, %v712_v29 }
  0xfd   : > { %v752_v46 = vmax.f32 %v750_v40, %v741_v37 }
  0xfe   : > { %v685_v21 = vpop.f32.mrf.mxu2 }
  0xff   : > { %v686_v24 = vadd.f32 %v685_v21, %v657_v18 }
 0x100   : > { %v658_v31 = vpop.f32.mrf.mxu1 }
 0x101   : > { %v715_v27 = vadd.f32 %v714_v20, %v686_v24  ;;  %v659_v32 = vadd.f32 %v658_v31, %v629_v41 }
 0x103   : > { %v744_v30 = vadd.f32 %v743_v25, %v715_v27 }
 0x105   : > { %v753_v34 = vmax.f32 %v751_v11, %v744_v30 }
 0x106   : > { %v687_v35 = vpop.f32.mrf.mxu2 }
 0x107   : > { %v688_v38 = vadd.f32 %v687_v35, %v659_v32  ;;  %v758_v47 = vadd.f32 %v1147_v42, %v753_v34 }
 0x109   : > { %v717_v43 = vadd.f32 %v716_v39, %v688_v38  ;;  %v760_v50 = vmax.f32 %v758_v47, 0.0 }
 0x10b   : > { %v746_v41 = vadd.f32 %v745_v44, %v717_v43 }
 0x10d   : > { %v754_v48 = vmax.f32 %v752_v46, %v746_v41 }
 0x10f   : > { %v759_v49 = vadd.f32 %v1147_v42, %v754_v48 }
 0x111   : > { %v761_v45 = vmax.f32 %v759_v49, 0.0 }
 0x113   : > { %v1120_v51 = vpack.c.bf16 %v761_v45, %v760_v50 }
 0x115   : > { %1121 = vst [vmem:[%s175_s22] sm:$0xff] %v1120_v51  }
 0x116 PF: > { %s13_s12 = sadd.s32 1, %s1154_s12  }
 0x117   : > { %p10_p5 = scmp.ge.s32.totalorder %s13_s12, 4  }
 0x119   :  { %12 = sbr.rel (!%p10_p5) target bundleno = 1 (0x1), region = 62 }

// kernel: cnn_middle_forward.7
= control target key start
LH: loop header
LB: loop body
LE: loop exit
PB: predicated region body
PF: predicated region fallthrough
CT: control target
= control target key end

     0   :  { %s16538_s1 = inlined_call_operand.vmem [shape: bf16[1152,1024], index: 1, kind: input, shape index: {}]   ;;  %s16539_s0 = inlined_call_operand.vmem [shape: bf16[8,1152], index: 0, kind: input, shape index: {}]   ;;  %s16540_s2 = inlined_call_operand.vmem [shape: f32[1,1024], index: 2, kind: input, shape index: {}]   ;;  %s16541_s3 = inlined_call_operand.vmem [shape: bf16[1024,512], index: 3, kind: input, shape index: {}]   ;;  %s16542_s4 = inlined_call_operand.vmem [shape: f32[1,512], index: 4, kind: input, shape index: {}]   ;;  %s16543_s5 = inlined_call_operand.vmem [shape: bf16[512,128], index: 5, kind: input, shape index: {}]   ;;  %s16544_s6 = inlined_call_operand.vmem [shape: f32[1,128], index: 6, kind: input, shape index: {}]   ;;  %s16545_s7 = inlined_call_operand.vmem [shape: f32[8,128], index: 7, kind: output, shape index: {}]  }
   0x1   :  { %v7002_v0 = vld [vmem:[%s16538_s1 + $0x1c0] sm:$0xf] }
   0x2   :  { %v10292_v1 = vld [vmem:[%s16538_s1 + $0x1dc] sm:$0xf0] }
   0x3   :  { %v7258_v2 = vld [vmem:[%s16538_s1 + $0x3c0] sm:$0xf]  ;;  %v7003_v3 = vor.u32 %v10292_v1, %v7002_v0 }
   0x4   :  { %v10356_v4 = vld [vmem:[%s16538_s1 + $0x3dc] sm:$0xf0] }
   0x5   :  { %v7514_v5 = vld [vmem:[%s16538_s1 + $0x5c0] sm:$0xf]  ;;  %v7259_v7 = vor.u32 %v10356_v4, %v7258_v2  ;;  %3537 = vmatpush.bf16.msra.mxu0 %v7003_v3 }
   0x6   :  { %v10420_v6 = vld [vmem:[%s16538_s1 + $0x5dc] sm:$0xf0] }
   0x7   :  { %v7515_v8 = vor.u32 %v10420_v6, %v7514_v5  ;;  %v7770_v9 = vld [vmem:[%s16538_s1 + $0x7c0] sm:$0xf]  ;;  %3550 = vmatpush.bf16.msra.mxu1 %v7259_v7 }
   0x8   :  { %v10484_v10 = vld [vmem:[%s16538_s1 + $0x7dc] sm:$0xf0] }
   0x9   :  { %v6970_v11 = vld [vmem:[%s16538_s1 + $0x180] sm:$0xf]  ;;  %v7771_v12 = vor.u32 %v10484_v10, %v7770_v9  ;;  %3563 = vmatpush.bf16.msra.mxu2 %v7515_v8 }
   0xa   :  { %v10284_v13 = vld [vmem:[%s16538_s1 + $0x19c] sm:$0xf0] }
   0xb   :  { %v7226_v14 = vld [vmem:[%s16538_s1 + $0x380] sm:$0xf]  ;;  %v6971_v16 = vor.u32 %v10284_v13, %v6970_v11  ;;  %3576 = vmatpush.bf16.msra.mxu3 %v7771_v12 }
   0xc   :  { %v10348_v15 = vld [vmem:[%s16538_s1 + $0x39c] sm:$0xf0] }
   0xd   :  { %v7227_v17 = vor.u32 %v10348_v15, %v7226_v14  ;;  %v7482_v18 = vld [vmem:[%s16538_s1 + $0x580] sm:$0xf]  ;;  %3538 = vmatpush.bf16.msra.mxu0 %v6971_v16 }
   0xe   :  { %v10412_v19 = vld [vmem:[%s16538_s1 + $0x59c] sm:$0xf0] }
   0xf   :  { %v7738_v20 = vld [vmem:[%s16538_s1 + $0x780] sm:$0xf]  ;;  %v7483_v21 = vor.u32 %v10412_v19, %v7482_v18  ;;  %3551 = vmatpush.bf16.msra.mxu1 %v7227_v17 }
  0x10   :  { %v10476_v22 = vld [vmem:[%s16538_s1 + $0x79c] sm:$0xf0] }
  0x11   :  { %v6938_v23 = vld [vmem:[%s16538_s1 + $0x140] sm:$0xf]  ;;  %v7739_v25 = vor.u32 %v10476_v22, %v7738_v20  ;;  %3564 = vmatpush.bf16.msra.mxu2 %v7483_v21 }
  0x12   :  { %v10276_v24 = vld [vmem:[%s16538_s1 + $0x15c] sm:$0xf0] }
  0x13   :  { %v7194_v26 = vld [vmem:[%s16538_s1 + $0x340] sm:$0xf]  ;;  %v6939_v29 = vor.u32 %v10276_v24, %v6938_v23  ;;  %3577 = vmatpush.bf16.msra.mxu3 %v7739_v25 }
  0x14   :  { %v10340_v27 = vld [vmem:[%s16538_s1 + $0x35c] sm:$0xf0] }
  0x15   :  { %v7450_v28 = vld [vmem:[%s16538_s1 + $0x540] sm:$0xf]  ;;  %v7195_v33 = vor.u32 %v10340_v27, %v7194_v26  ;;  %3539 = vmatpush.bf16.msra.mxu0 %v6939_v29 }
  0x16   :  { %v10404_v30 = vld [vmem:[%s16538_s1 + $0x55c] sm:$0xf0] }
  0x17   :  { %v7706_v31 = vld [vmem:[%s16538_s1 + $0x740] sm:$0xf]  ;;  %v7451_v34 = vor.u32 %v10404_v30, %v7450_v28  ;;  %3552 = vmatpush.bf16.msra.mxu1 %v7195_v33 }
  0x18   :  { %v10468_v32 = vld [vmem:[%s16538_s1 + $0x75c] sm:$0xf0] }
  0x19   :  { %v6906_v35 = vld [vmem:[%s16538_s1 + $0x100] sm:$0xf]  ;;  %v7707_v38 = vor.u32 %v10468_v32, %v7706_v31  ;;  %3565 = vmatpush.bf16.msra.mxu2 %v7451_v34 }
  0x1a   :  { %v10268_v36 = vld [vmem:[%s16538_s1 + $0x11c] sm:$0xf0] }
  0x1b   :  { %v7162_v37 = vld [vmem:[%s16538_s1 + $0x300] sm:$0xf]  ;;  %v6907_v44 = vor.u32 %v10268_v36, %v6906_v35  ;;  %3578 = vmatpush.bf16.msra.mxu3 %v7707_v38 }
  0x1c   :  { %v10332_v39 = vld [vmem:[%s16538_s1 + $0x31c] sm:$0xf0] }
  0x1d   :  { %v7418_v40 = vld [vmem:[%s16538_s1 + $0x500] sm:$0xf]  ;;  %v7163_v45 = vor.u32 %v10332_v39, %v7162_v37  ;;  %3540 = vmatpush.bf16.msra.mxu0 %v6907_v44 }
  0x1e   :  { %v10396_v41 = vld [vmem:[%s16538_s1 + $0x51c] sm:$0xf0] }
  0x1f   :  { %v7674_v42 = vld [vmem:[%s16538_s1 + $0x700] sm:$0xf]  ;;  %v7419_v46 = vor.u32 %v10396_v41, %v7418_v40  ;;  %3553 = vmatpush.bf16.msra.mxu1 %v7163_v45 }
  0x20   :  { %v10460_v43 = vld [vmem:[%s16538_s1 + $0x71c] sm:$0xf0] }
  0x21   :  { %v6874_v47 = vld [vmem:[%s16538_s1 + $0xc0] sm:$0xf]  ;;  %v7675_v50 = vor.u32 %v10460_v43, %v7674_v42  ;;  %3566 = vmatpush.bf16.msra.mxu2 %v7419_v46 }
  0x22   :  { %v10260_v48 = vld [vmem:[%s16538_s1 + $0xdc] sm:$0xf0] }
  0x23   :  { %v7130_v49 = vld [vmem:[%s16538_s1 + $0x2c0] sm:$0xf]  ;;  %v6875_v56 = vor.u32 %v10260_v48, %v6874_v47  ;;  %3579 = vmatpush.bf16.msra.mxu3 %v7675_v50 }
  0x24   :  { %v10324_v51 = vld [vmem:[%s16538_s1 + $0x2dc] sm:$0xf0] }
  0x25   :  { %v7386_v52 = vld [vmem:[%s16538_s1 + $0x4c0] sm:$0xf]  ;;  %v7131_v57 = vor.u32 %v10324_v51, %v7130_v49  ;;  %3541 = vmatpush.bf16.msra.mxu0 %v6875_v56 }
  0x26   :  { %v10388_v53 = vld [vmem:[%s16538_s1 + $0x4dc] sm:$0xf0] }
  0x27   :  { %v7642_v54 = vld [vmem:[%s16538_s1 + $0x6c0] sm:$0xf]  ;;  %v7387_v58 = vor.u32 %v10388_v53, %v7386_v52  ;;  %3554 = vmatpush.bf16.msra.mxu1 %v7131_v57 }
  0x28   :  { %v10452_v55 = vld [vmem:[%s16538_s1 + $0x6dc] sm:$0xf0] }
  0x29   :  { %v6842_v59 = vld [vmem:[%s16538_s1 + $0x80] sm:$0xf]  ;;  %v7643_v62 = vor.u32 %v10452_v55, %v7642_v54  ;;  %3567 = vmatpush.bf16.msra.mxu2 %v7387_v58 }
  0x2a   :  { %v10252_v60 = vld [vmem:[%s16538_s1 + $0x9c] sm:$0xf0] }
  0x2b   :  { %v7098_v61 = vld [vmem:[%s16538_s1 + $0x280] sm:$0xf]  ;;  %v6843_v4 = vor.u32 %v10252_v60, %v6842_v59  ;;  %3580 = vmatpush.bf16.msra.mxu3 %v7643_v62 }
  0x2c   :  { %v10316_v63 = vld [vmem:[%s16538_s1 + $0x29c] sm:$0xf0] }
  0x2d   :  { %v7354_v0 = vld [vmem:[%s16538_s1 + $0x480] sm:$0xf]  ;;  %v7099_v5 = vor.u32 %v10316_v63, %v7098_v61  ;;  %3542 = vmatpush.bf16.msra.mxu0 %v6843_v4 }
  0x2e   :  { %v10380_v1 = vld [vmem:[%s16538_s1 + $0x49c] sm:$0xf0] }
  0x2f   :  { %v7610_v2 = vld [vmem:[%s16538_s1 + $0x680] sm:$0xf]  ;;  %v7355_v6 = vor.u32 %v10380_v1, %v7354_v0  ;;  %3555 = vmatpush.bf16.msra.mxu1 %v7099_v5 }
  0x30   :  { %v10444_v3 = vld [vmem:[%s16538_s1 + $0x69c] sm:$0xf0] }
  0x31   :  { %v6810_v7 = vld [vmem:[%s16538_s1 + $0x40] sm:$0xf]  ;;  %v7611_v10 = vor.u32 %v10444_v3, %v7610_v2  ;;  %3568 = vmatpush.bf16.msra.mxu2 %v7355_v6  ;;  %v27_v2 = vld [vmem:[%s16539_s0 + $0x8] sm:$0xff] }
  0x32   :  { %v10244_v8 = vld [vmem:[%s16538_s1 + $0x5c] sm:$0xf0] }
  0x33   :  { %v7066_v9 = vld [vmem:[%s16538_s1 + $0x240] sm:$0xf]  ;;  %v6811_v16 = vor.u32 %v10244_v8, %v6810_v7  ;;  %3581 = vmatpush.bf16.msra.mxu3 %v7611_v10  ;;  %v632_v8 = vunpack.c.l.b16 %v27_v2  ;;  %v633_v10 = vunpack.c.h.b16 %v27_v2 }
  0x34   :  { %v10308_v11 = vld [vmem:[%s16538_s1 + $0x25c] sm:$0xf0] }
  0x35   :  { %v7322_v12 = vld [vmem:[%s16538_s1 + $0x440] sm:$0xf]  ;;  %v7067_v19 = vor.u32 %v10308_v11, %v7066_v9  ;;  %3543 = vmatpush.bf16.msra.mxu0 %v6811_v16 }
  0x36   :  { %v10372_v13 = vld [vmem:[%s16538_s1 + $0x45c] sm:$0xf0] }
  0x37   :  { %v7578_v14 = vld [vmem:[%s16538_s1 + $0x640] sm:$0xf]  ;;  %v7323_v20 = vor.u32 %v10372_v13, %v7322_v12  ;;  %3556 = vmatpush.bf16.msra.mxu1 %v7067_v19 }
  0x38   :  { %v10436_v15 = vld [vmem:[%s16538_s1 + $0x65c] sm:$0xf0] }
  0x39   :  { %v6778_v17 = vld [vmem:[%s16538_s1] sm:$0xf]  ;;  %v7579_v24 = vor.u32 %v10436_v15, %v7578_v14  ;;  %3569 = vmatpush.bf16.msra.mxu2 %v7323_v20  ;;  %v11439_v20 = vpack.c.b16 %v633_v10, %v633_v10  ;;  %v10288_v10 = vld [vmem:[%s16538_s1 + $0x1c4] sm:$0xf] }
  0x3a   :  { %v10236_v18 = vld [vmem:[%s16538_s1 + $0x1c] sm:$0xf0] }
  0x3b   :  { %v7034_v21 = vld [vmem:[%s16538_s1 + $0x200] sm:$0xf]  ;;  %v6779_v31 = vor.u32 %v10236_v18, %v6778_v17  ;;  %3582 = vmatpush.bf16.msra.mxu3 %v7579_v24  ;;  %v11435_v18 = vpack.c.b16 %v632_v8, %v632_v8 }
  0x3c   :  { %v10300_v22 = vld [vmem:[%s16538_s1 + $0x21c] sm:$0xf0] }
  0x3d   :  { %v7290_v23 = vld [vmem:[%s16538_s1 + $0x400] sm:$0xf]  ;;  %v7035_v35 = vor.u32 %v10300_v22, %v7034_v21  ;;  %3544 = vmatpush.bf16.msra.mxu0 %v6779_v31 }
  0x3e   :  { %v10364_v25 = vld [vmem:[%s16538_s1 + $0x41c] sm:$0xf0] }
  0x3f   :  { %v7546_v26 = vld [vmem:[%s16538_s1 + $0x600] sm:$0xf]  ;;  %v7291_v36 = vor.u32 %v10364_v25, %v7290_v23  ;;  %3557 = vmatpush.bf16.msra.mxu1 %v7035_v35 }
  0x40   :  { %v10428_v27 = vld [vmem:[%s16538_s1 + $0x61c] sm:$0xf0] }
  0x41   :  { %v8026_v28 = vld [vmem:[%s16538_s1 + $0x9c0] sm:$0xf]  ;;  %v7547_v39 = vor.u32 %v10428_v27, %v7546_v26  ;;  %3570 = vmatpush.bf16.msra.mxu2 %v7291_v36 }
  0x42   :  { %v10548_v29 = vld [vmem:[%s16538_s1 + $0x9dc] sm:$0xf0] }
  0x43   :  { %v8282_v30 = vld [vmem:[%s16538_s1 + $0xbc0] sm:$0xf]  ;;  %v8027_v40 = vor.u32 %v10548_v29, %v8026_v28  ;;  %3583 = vmatpush.bf16.msra.mxu3 %v7547_v39 }
  0x44   :  { %v10612_v32 = vld [vmem:[%s16538_s1 + $0xbdc] sm:$0xf0]  ;;  %3571 = vmatmul.bf16.vlgmr.msra.gmra.mxu2 %v11435_v18 }
  0x45   :  { %v8538_v33 = vld [vmem:[%s16538_s1 + $0xdc0] sm:$0xf]  ;;  %v8283_v41 = vor.u32 %v10612_v32, %v8282_v30  ;;  %3589 = vmatpush.bf16.msrb.mxu0 %v8027_v40 }
  0x46   :  { %v10676_v34 = vld [vmem:[%s16538_s1 + $0xddc] sm:$0xf0]  ;;  %3584 = vmatmul.bf16.vlgmr.msra.gmra.mxu3 %v11439_v20 }
  0x47   :  { %v8794_v37 = vld [vmem:[%s16538_s1 + $0xfc0] sm:$0xf]  ;;  %v8539_v42 = vor.u32 %v10676_v34, %v8538_v33  ;;  %3602 = vmatpush.bf16.msrb.mxu1 %v8283_v41 }
  0x48   :  { %v10740_v38 = vld [vmem:[%s16538_s1 + $0xfdc] sm:$0xf0] }
  0x49   :  { %v7994_v43 = vld [vmem:[%s16538_s1 + $0x980] sm:$0xf]  ;;  %v8795_v46 = vor.u32 %v10740_v38, %v8794_v37  ;;  %3615 = vmatpush.bf16.msrb.mxu2 %v8539_v42 }
  0x4a   :  { %v10540_v44 = vld [vmem:[%s16538_s1 + $0x99c] sm:$0xf0] }
  0x4b   :  { %v8250_v45 = vld [vmem:[%s16538_s1 + $0xb80] sm:$0xf]  ;;  %v7995_v52 = vor.u32 %v10540_v44, %v7994_v43  ;;  %3628 = vmatpush.bf16.msrb.mxu3 %v8795_v46 }
  0x4c   :  { %v10604_v47 = vld [vmem:[%s16538_s1 + $0xb9c] sm:$0xf0] }
  0x4d   :  { %v8506_v48 = vld [vmem:[%s16538_s1 + $0xd80] sm:$0xf]  ;;  %v8251_v54 = vor.u32 %v10604_v47, %v8250_v45  ;;  %3590 = vmatpush.bf16.msrb.mxu0 %v7995_v52 }
  0x4e   :  { %v10668_v49 = vld [vmem:[%s16538_s1 + $0xd9c] sm:$0xf0] }
  0x4f   :  { %v8762_v50 = vld [vmem:[%s16538_s1 + $0xf80] sm:$0xf]  ;;  %v8507_v55 = vor.u32 %v10668_v49, %v8506_v48  ;;  %3603 = vmatpush.bf16.msrb.mxu1 %v8251_v54 }
  0x50   :  { %v10732_v51 = vld [vmem:[%s16538_s1 + $0xf9c] sm:$0xf0] }
  0x51   :  { %v7962_v53 = vld [vmem:[%s16538_s1 + $0x940] sm:$0xf]  ;;  %v8763_v59 = vor.u32 %v10732_v51, %v8762_v50  ;;  %3616 = vmatpush.bf16.msrb.mxu2 %v8507_v55 }
  0x52   :  { %v10532_v56 = vld [vmem:[%s16538_s1 + $0x95c] sm:$0xf0] }
  0x53   :  { %v8218_v57 = vld [vmem:[%s16538_s1 + $0xb40] sm:$0xf]  ;;  %v7963_v0 = vor.u32 %v10532_v56, %v7962_v53  ;;  %3629 = vmatpush.bf16.msrb.mxu3 %v8763_v59 }
  0x54   :  { %v10596_v58 = vld [vmem:[%s16538_s1 + $0xb5c] sm:$0xf0] }
  0x55   :  { %v8474_v60 = vld [vmem:[%s16538_s1 + $0xd40] sm:$0xf]  ;;  %v8219_v1 = vor.u32 %v10596_v58, %v8218_v57  ;;  %3591 = vmatpush.bf16.msrb.mxu0 %v7963_v0 }
  0x56   :  { %v10660_v61 = vld [vmem:[%s16538_s1 + $0xd5c] sm:$0xf0] }
  0x57   :  { %v8730_v62 = vld [vmem:[%s16538_s1 + $0xf40] sm:$0xf]  ;;  %v8475_v4 = vor.u32 %v10660_v61, %v8474_v60  ;;  %3604 = vmatpush.bf16.msrb.mxu1 %v8219_v1 }
  0x58   :  { %v10724_v63 = vld [vmem:[%s16538_s1 + $0xf5c] sm:$0xf0] }
  0x59   :  { %v26_v3 = vld [vmem:[%s16539_s0] sm:$0xff]  ;;  %v8731_v11 = vor.u32 %v10724_v63, %v8730_v62  ;;  %3617 = vmatpush.bf16.msrb.mxu2 %v8475_v4 }
  0x5a   :  { %v7930_v5 = vld [vmem:[%s16538_s1 + $0x900] sm:$0xf]  ;;  %v630_v9 = vunpack.c.l.b16 %v26_v3  ;;  %v631_v15 = vunpack.c.h.b16 %v26_v3  ;;  %v29_v3 = vld [vmem:[%s16539_s0 + $0x18] sm:$0xff] }
  0x5b   :  { %v10524_v6 = vld [vmem:[%s16538_s1 + $0x91c] sm:$0xf0]  ;;  %3630 = vmatpush.bf16.msrb.mxu3 %v8731_v11 }
  0x5c   :  { %v8186_v7 = vld [vmem:[%s16538_s1 + $0xb00] sm:$0xf]  ;;  %v11437_v19 = vpack.c.b16 %v630_v9, %v630_v9  ;;  %v7931_v21 = vor.u32 %v10524_v6, %v7930_v5  ;;  %v11441_v22 = vpack.c.b16 %v631_v15, %v631_v15  ;;  %v636_v15 = vunpack.c.l.b16 %v29_v3 }
  0x5d   :  { %v10588_v12 = vld [vmem:[%s16538_s1 + $0xb1c] sm:$0xf0] }
  0x5e   :  { %v8442_v13 = vld [vmem:[%s16538_s1 + $0xd00] sm:$0xf]  ;;  %v8187_v23 = vor.u32 %v10588_v12, %v8186_v7  ;;  %3545 = vmatmul.bf16.vlgmr.msra.gmra.mxu0 %v11437_v19  ;;  %3558 = vmatmul.bf16.vlgmr.msra.gmra.mxu1 %v11441_v22  ;;  %v28_v7 = vld [vmem:[%s16539_s0 + $0x10] sm:$0xff]  ;;  %v7004_v12 = vld [vmem:[%s16538_s1 + $0x1e0] sm:$0xf0] }
  0x5f   :  { %v10652_v14 = vld [vmem:[%s16538_s1 + $0xd1c] sm:$0xf0]  ;;  %3592 = vmatpush.bf16.msrb.mxu0 %v7931_v21  ;;  %v10416_v21 = vld [vmem:[%s16538_s1 + $0x5c4] sm:$0xf] }
  0x60   :  { %v8698_v16 = vld [vmem:[%s16538_s1 + $0xf00] sm:$0xf]  ;;  %v8443_v24 = vor.u32 %v10652_v14, %v8442_v13  ;;  %3605 = vmatpush.bf16.msrb.mxu1 %v8187_v23  ;;  %v10352_v13 = vld [vmem:[%s16538_s1 + $0x3c4] sm:$0xf] }
  0x61   :  { %v10716_v17 = vld [vmem:[%s16538_s1 + $0xf1c] sm:$0xf0]  ;;  %v7260_v14 = vld [vmem:[%s16538_s1 + $0x3e0] sm:$0xf0] }
  0x62   :  { %v7898_v25 = vld [vmem:[%s16538_s1 + $0x8c0] sm:$0xf]  ;;  %v8699_v28 = vor.u32 %v10716_v17, %v8698_v16  ;;  %3618 = vmatpush.bf16.msrb.mxu2 %v8443_v24  ;;  %v7516_v23 = vld [vmem:[%s16538_s1 + $0x5e0] sm:$0xf0]  ;;  %v634_v24 = vunpack.c.l.b16 %v28_v7 }
  0x63   :  { %v10516_v26 = vld [vmem:[%s16538_s1 + $0x8dc] sm:$0xf0] }
  0x64   :  { %v8154_v27 = vld [vmem:[%s16538_s1 + $0xac0] sm:$0xf]  ;;  %v7899_v34 = vor.u32 %v10516_v26, %v7898_v25  ;;  %3631 = vmatpush.bf16.msrb.mxu3 %v8699_v28  ;;  %v637_v25 = vunpack.c.h.b16 %v29_v3  ;;  %v635_v28 = vunpack.c.h.b16 %v28_v7  ;;  %v7420_v3 = vld [vmem:[%s16538_s1 + $0x520] sm:$0xf0] }
  0x65   :  { %v10580_v29 = vld [vmem:[%s16538_s1 + $0xadc] sm:$0xf0] }
  0x66   :  { %v8410_v30 = vld [vmem:[%s16538_s1 + $0xcc0] sm:$0xf]  ;;  %v8155_v35 = vor.u32 %v10580_v29, %v8154_v27  ;;  %3593 = vmatpush.bf16.msrb.mxu0 %v7899_v34  ;;  %v7007_v29 = vor.u32 %v10288_v10, %v7004_v12  ;;  %v7519_v34 = vor.u32 %v10416_v21, %v7516_v23  ;;  %v10320_v12 = vld [vmem:[%s16538_s1 + $0x2c4] sm:$0xf] }
  0x67   :  { %v10644_v31 = vld [vmem:[%s16538_s1 + $0xcdc] sm:$0xf0] }
  0x68   :  { %v8666_v32 = vld [vmem:[%s16538_s1 + $0xec0] sm:$0xf]  ;;  %v8411_v36 = vor.u32 %v10644_v31, %v8410_v30  ;;  %3606 = vmatpush.bf16.msrb.mxu1 %v8155_v35  ;;  %v7263_v30 = vor.u32 %v10352_v13, %v7260_v14  ;;  %v6972_v35 = vld [vmem:[%s16538_s1 + $0x1a0] sm:$0xf0] }
  0x69   :  { %v10708_v33 = vld [vmem:[%s16538_s1 + $0xedc] sm:$0xf0]  ;;  %v7132_v13 = vld [vmem:[%s16538_s1 + $0x2e0] sm:$0xf0] }
  0x6a   :  { %v7866_v37 = vld [vmem:[%s16538_s1 + $0x880] sm:$0xf]  ;;  %v8667_v40 = vor.u32 %v10708_v33, %v8666_v32  ;;  %3619 = vmatpush.bf16.msrb.mxu2 %v8411_v36  ;;  %v10280_v33 = vld [vmem:[%s16538_s1 + $0x184] sm:$0xf]  ;;  %v7135_v21 = vor.u32 %v10320_v12, %v7132_v13 }
  0x6b   :  { %v10508_v38 = vld [vmem:[%s16538_s1 + $0x89c] sm:$0xf0]  ;;  %v10344_v36 = vld [vmem:[%s16538_s1 + $0x384] sm:$0xf] }
  0x6c   :  { %v8122_v39 = vld [vmem:[%s16538_s1 + $0xa80] sm:$0xf]  ;;  %v7867_v46 = vor.u32 %v10508_v38, %v7866_v37  ;;  %3632 = vmatpush.bf16.msrb.mxu3 %v8667_v40  ;;  %v7228_v37 = vld [vmem:[%s16538_s1 + $0x3a0] sm:$0xf0]  ;;  %v11591_v38 = vpack.c.b16 %v636_v15, %v636_v15 }
  0x6d   :  { %v10572_v41 = vld [vmem:[%s16538_s1 + $0xa9c] sm:$0xf0]  ;;  %v7484_v40 = vld [vmem:[%s16538_s1 + $0x5a0] sm:$0xf0] }
  0x6e   :  { %v8378_v42 = vld [vmem:[%s16538_s1 + $0xc80] sm:$0xf]  ;;  %v8123_v47 = vor.u32 %v10572_v41, %v8122_v39  ;;  %3594 = vmatpush.bf16.msrb.mxu0 %v7867_v46  ;;  %v10408_v39 = vld [vmem:[%s16538_s1 + $0x584] sm:$0xf]  ;;  %v11599_v41 = vpack.c.b16 %v634_v24, %v634_v24  ;;  %v7231_v46 = vor.u32 %v10344_v36, %v7228_v37 }
  0x6f   :  { %v10636_v43 = vld [vmem:[%s16538_s1 + $0xc9c] sm:$0xf0]  ;;  %v10384_v14 = vld [vmem:[%s16538_s1 + $0x4c4] sm:$0xf] }
  0x70   :  { %v8634_v44 = vld [vmem:[%s16538_s1 + $0xe80] sm:$0xf]  ;;  %v8379_v48 = vor.u32 %v10636_v43, %v8378_v42  ;;  %3607 = vmatpush.bf16.msrb.mxu1 %v8123_v47  ;;  %v11601_v42 = vpack.c.b16 %v637_v25, %v637_v25  ;;  %v7388_v15 = vld [vmem:[%s16538_s1 + $0x4e0] sm:$0xf0] }
  0x71   :  { %v10700_v45 = vld [vmem:[%s16538_s1 + $0xe9c] sm:$0xf0]  ;;  %v10248_v25 = vld [vmem:[%s16538_s1 + $0x84] sm:$0xf] }
  0x72   :  { %v7834_v49 = vld [vmem:[%s16538_s1 + $0x840] sm:$0xf]  ;;  %v8635_v52 = vor.u32 %v10700_v45, %v8634_v44  ;;  %3620 = vmatpush.bf16.msrb.mxu2 %v8379_v48  ;;  %v11603_v44 = vpack.c.b16 %v635_v28, %v635_v28  ;;  %v6975_v45 = vor.u32 %v10280_v33, %v6972_v35  ;;  %v10312_v28 = vld [vmem:[%s16538_s1 + $0x284] sm:$0xf] }
  0x73   :  { %v10500_v50 = vld [vmem:[%s16538_s1 + $0x85c] sm:$0xf0]  ;;  %v10240_v37 = vld [vmem:[%s16538_s1 + $0x44] sm:$0xf] }
  0x74   :  { %v8090_v51 = vld [vmem:[%s16538_s1 + $0xa40] sm:$0xf]  ;;  %v7835_v59 = vor.u32 %v10500_v50, %v7834_v49  ;;  %3633 = vmatpush.bf16.msrb.mxu3 %v8635_v52  ;;  %v10272_v49 = vld [vmem:[%s16538_s1 + $0x144] sm:$0xf]  ;;  %v7487_v50 = vor.u32 %v10408_v39, %v7484_v40 }
  0x75   :  { %v10564_v53 = vld [vmem:[%s16538_s1 + $0xa5c] sm:$0xf0]  ;;  %v10336_v52 = vld [vmem:[%s16538_s1 + $0x344] sm:$0xf] }
  0x76   :  { %v8346_v54 = vld [vmem:[%s16538_s1 + $0xc40] sm:$0xf]  ;;  %v8091_v63 = vor.u32 %v10564_v53, %v8090_v51  ;;  %3595 = vmatpush.bf16.msrb.mxu0 %v7835_v59  ;;  %v6940_v51 = vld [vmem:[%s16538_s1 + $0x160] sm:$0xf0] }
  0x77   :  { %v10628_v55 = vld [vmem:[%s16538_s1 + $0xc5c] sm:$0xf0]  ;;  %v7196_v53 = vld [vmem:[%s16538_s1 + $0x360] sm:$0xf0] }
  0x78   :  { %v8602_v56 = vld [vmem:[%s16538_s1 + $0xe40] sm:$0xf]  ;;  %v8347_v0 = vor.u32 %v10628_v55, %v8346_v54  ;;  %3608 = vmatpush.bf16.msrb.mxu1 %v8091_v63  ;;  %v10400_v54 = vld [vmem:[%s16538_s1 + $0x544] sm:$0xf] }
  0x79   :  { %v10692_v57 = vld [vmem:[%s16538_s1 + $0xe5c] sm:$0xf0]  ;;  %v7452_v55 = vld [vmem:[%s16538_s1 + $0x560] sm:$0xf0] }
  0x7a   :  { %v7802_v58 = vld [vmem:[%s16538_s1 + $0x800] sm:$0xf]  ;;  %v8603_v4 = vor.u32 %v10692_v57, %v8602_v56  ;;  %3621 = vmatpush.bf16.msrb.mxu2 %v8347_v0  ;;  %v6943_v57 = vor.u32 %v10272_v49, %v6940_v51  ;;  %v6908_v63 = vld [vmem:[%s16538_s1 + $0x120] sm:$0xf0] }
  0x7b   :  { %v10492_v60 = vld [vmem:[%s16538_s1 + $0x81c] sm:$0xf0]  ;;  %v10328_v0 = vld [vmem:[%s16538_s1 + $0x304] sm:$0xf] }
  0x7c   :  { %v8058_v61 = vld [vmem:[%s16538_s1 + $0xa00] sm:$0xf]  ;;  %v7803_v11 = vor.u32 %v10492_v60, %v7802_v58  ;;  %3634 = vmatpush.bf16.msrb.mxu3 %v8603_v4  ;;  %v7199_v58 = vor.u32 %v10336_v52, %v7196_v53  ;;  %v6812_v40 = vld [vmem:[%s16538_s1 + $0x60] sm:$0xf0] }
  0x7d   :  { %v10556_v62 = vld [vmem:[%s16538_s1 + $0xa1c] sm:$0xf0]  ;;  %v10232_v51 = vld [vmem:[%s16538_s1 + $0x4] sm:$0xf]  ;;  %v6815_v52 = vor.u32 %v10240_v37, %v6812_v40 }
  0x7e   :  { %v8314_v1 = vld [vmem:[%s16538_s1 + $0xc00] sm:$0xf]  ;;  %v8059_v16 = vor.u32 %v10556_v62, %v8058_v61  ;;  %3596 = vmatpush.bf16.msrb.mxu0 %v7803_v11  ;;  %v10264_v61 = vld [vmem:[%s16538_s1 + $0x104] sm:$0xf]  ;;  %v7455_v62 = vor.u32 %v10400_v54, %v7452_v55 }
  0x7f   :  { %v10620_v2 = vld [vmem:[%s16538_s1 + $0xc1c] sm:$0xf0]  ;;  %v6876_v11 = vld [vmem:[%s16538_s1 + $0xe0] sm:$0xf0] }
  0x80   :  { %v8570_v5 = vld [vmem:[%s16538_s1 + $0xe00] sm:$0xf]  ;;  %v8315_v17 = vor.u32 %v10620_v2, %v8314_v1  ;;  %3609 = vmatpush.bf16.msrb.mxu1 %v8059_v16  ;;  %v7164_v1 = vld [vmem:[%s16538_s1 + $0x320] sm:$0xf0] }
  0x81   :  { %v10684_v6 = vld [vmem:[%s16538_s1 + $0xe1c] sm:$0xf0]  ;;  %3597 = vmatmul.bf16.vlgmr.msrb.gmra.mxu0 %v11599_v41  ;;  %v10392_v2 = vld [vmem:[%s16538_s1 + $0x504] sm:$0xf] }
  0x82   :  { %v9050_v8 = vld [vmem:[%s16538_s1 + $0x11c0] sm:$0xf]  ;;  %v8571_v26 = vor.u32 %v10684_v6, %v8570_v5  ;;  %3622 = vmatpush.bf16.msrb.mxu2 %v8315_v17  ;;  %v6911_v5 = vor.u32 %v10264_v61, %v6908_v63  ;;  %v7167_v6 = vor.u32 %v10328_v0, %v7164_v1  ;;  %v7423_v10 = vor.u32 %v10392_v2, %v7420_v3  ;;  %v6780_v54 = vld [vmem:[%s16538_s1 + $0x20] sm:$0xf0] }
  0x83   :  { %v10804_v9 = vld [vmem:[%s16538_s1 + $0x11dc] sm:$0xf0]  ;;  %3610 = vmatmul.bf16.vlgmr.msrb.gmra.mxu1 %v11603_v44  ;;  %v10296_v55 = vld [vmem:[%s16538_s1 + $0x204] sm:$0xf] }
  0x84   :  { %v9051_v27 = vor.u32 %v10804_v9, %v9050_v8  ;;  %v9018_v31 = vld [vmem:[%s16538_s1 + $0x1180] sm:$0xf]  ;;  %3635 = vmatpush.bf16.msrb.mxu3 %v8571_v26  ;;  %3654 = vmatpush.bf16.msra.mxu1 %v7007_v29  ;;  %v10256_v9 = vld [vmem:[%s16538_s1 + $0xc4] sm:$0xf]  ;;  %v7391_v26 = vor.u32 %v10384_v14, %v7388_v15 }
  0x85   :  { %v10796_v32 = vld [vmem:[%s16538_s1 + $0x119c] sm:$0xf0]  ;;  %3623 = vmatmul.bf16.vlgmr.msrb.gmra.mxu2 %v11591_v38  ;;  %v6879_v17 = vor.u32 %v10256_v9, %v6876_v11  ;;  %v7100_v29 = vld [vmem:[%s16538_s1 + $0x2a0] sm:$0xf0] }
  0x86   :  { %3641 = vmatpush.bf16.msra.mxu0 %v9051_v27  ;;  %v9019_v43 = vor.u32 %v10796_v32, %v9018_v31  ;;  %3667 = vmatpush.bf16.msra.mxu2 %v7263_v30  ;;  %v8986_v47 = vld [vmem:[%s16538_s1 + $0x1140] sm:$0xf]  ;;  %v6844_v27 = vld [vmem:[%s16538_s1 + $0xa0] sm:$0xf0] }
  0x87   :  { %v10788_v48 = vld [vmem:[%s16538_s1 + $0x115c] sm:$0xf0]  ;;  %3636 = vmatmul.bf16.vlgmr.msrb.gmra.mxu3 %v11601_v42  ;;  %v10376_v30 = vld [vmem:[%s16538_s1 + $0x484] sm:$0xf]  ;;  %v6847_v33 = vor.u32 %v10248_v25, %v6844_v27 }
  0x88   :  { %3680 = vmatpush.bf16.msra.mxu3 %v7519_v34  ;;  %v8987_v56 = vor.u32 %v10788_v48, %v8986_v47  ;;  %3655 = vmatpush.bf16.msra.mxu1 %v6975_v45  ;;  %v8954_v59 = vld [vmem:[%s16538_s1 + $0x1100] sm:$0xf]  ;;  %v7356_v31 = vld [vmem:[%s16538_s1 + $0x4a0] sm:$0xf0]  ;;  %v7103_v34 = vor.u32 %v10312_v28, %v7100_v29 }
  0x89   :  { %v10780_v60 = vld [vmem:[%s16538_s1 + $0x111c] sm:$0xf0]  ;;  %v7359_v39 = vor.u32 %v10376_v30, %v7356_v31  ;;  %v7068_v45 = vld [vmem:[%s16538_s1 + $0x260] sm:$0xf0] }
  0x8a   :  { %3642 = vmatpush.bf16.msra.mxu0 %v9019_v43  ;;  %3668 = vmatpush.bf16.msra.mxu2 %v7231_v46  ;;  %v8955_v4 = vor.u32 %v10780_v60, %v8954_v59  ;;  %v8922_v7 = vld [vmem:[%s16538_s1 + $0x10c0] sm:$0xf]  ;;  %v10304_v43 = vld [vmem:[%s16538_s1 + $0x244] sm:$0xf] }
  0x8b   :  { %v10772_v8 = vld [vmem:[%s16538_s1 + $0x10dc] sm:$0xf0]  ;;  %v10368_v46 = vld [vmem:[%s16538_s1 + $0x444] sm:$0xf]  ;;  %v7071_v53 = vor.u32 %v10304_v43, %v7068_v45 }
  0x8c   :  { %3681 = vmatpush.bf16.msra.mxu3 %v7487_v50  ;;  %3656 = vmatpush.bf16.msra.mxu1 %v6943_v57  ;;  %v8923_v16 = vor.u32 %v10772_v8, %v8922_v7  ;;  %v8890_v23 = vld [vmem:[%s16538_s1 + $0x1080] sm:$0xf]  ;;  %v7324_v47 = vld [vmem:[%s16538_s1 + $0x460] sm:$0xf0] }
  0x8d   :  { %v10764_v24 = vld [vmem:[%s16538_s1 + $0x109c] sm:$0xf0]  ;;  %v7327_v57 = vor.u32 %v10368_v46, %v7324_v47  ;;  %v10360_v59 = vld [vmem:[%s16538_s1 + $0x404] sm:$0xf] }
  0x8e   :  { %3643 = vmatpush.bf16.msra.mxu0 %v8987_v56  ;;  %3669 = vmatpush.bf16.msra.mxu2 %v7199_v58  ;;  %v8891_v32 = vor.u32 %v10764_v24, %v8890_v23  ;;  %v8858_v35 = vld [vmem:[%s16538_s1 + $0x1040] sm:$0xf]  ;;  %v7036_v58 = vld [vmem:[%s16538_s1 + $0x220] sm:$0xf0] }
  0x8f   :  { %v10756_v36 = vld [vmem:[%s16538_s1 + $0x105c] sm:$0xf0]  ;;  %v7292_v60 = vld [vmem:[%s16538_s1 + $0x420] sm:$0xf0] }
  0x90   :  { %3682 = vmatpush.bf16.msra.mxu3 %v7455_v62  ;;  %3657 = vmatpush.bf16.msra.mxu1 %v6911_v5  ;;  %v8859_v48 = vor.u32 %v10756_v36, %v8858_v35  ;;  %v8826_v49 = vld [vmem:[%s16538_s1 + $0x1000] sm:$0xf]  ;;  %v10480_v61 = vld [vmem:[%s16538_s1 + $0x7c4] sm:$0xf]  ;;  %v6783_v5 = vor.u32 %v10232_v51, %v6780_v54  ;;  %v7295_v9 = vor.u32 %v10360_v59, %v7292_v60 }
  0x91   :  { %v10748_v50 = vld [vmem:[%s16538_s1 + $0x101c] sm:$0xf0]  ;;  %v7772_v62 = vld [vmem:[%s16538_s1 + $0x7e0] sm:$0xf0] }
  0x92   :  { %3644 = vmatpush.bf16.msra.mxu0 %v8955_v4  ;;  %3670 = vmatpush.bf16.msra.mxu2 %v7167_v6  ;;  %v30_v56 = vld [vmem:[%s16539_s0 + $0x20] sm:$0xf]  ;;  %v10544_v63 = vld [vmem:[%s16538_s1 + $0x9c4] sm:$0xf]  ;;  %v8827_v0 = vor.u32 %v10748_v50, %v8826_v49  ;;  %v7039_v6 = vor.u32 %v10296_v55, %v7036_v58 }
  0x93   :  { %v8028_v1 = vld [vmem:[%s16538_s1 + $0x9e0] sm:$0xf0]  ;;  %v638_v4 = vunpack.c.l.b16 %v30_v56 }
  0x94   :  { %3683 = vmatpush.bf16.msra.mxu3 %v7423_v10  ;;  %3658 = vmatpush.bf16.msra.mxu1 %v6879_v17  ;;  %v10608_v2 = vld [vmem:[%s16538_s1 + $0xbc4] sm:$0xf]  ;;  %v7775_v10 = vor.u32 %v10480_v61, %v7772_v62  ;;  %v8031_v11 = vor.u32 %v10544_v63, %v8028_v1 }
  0x95   :  { %v8284_v3 = vld [vmem:[%s16538_s1 + $0xbe0] sm:$0xf0]  ;;  %v11789_v17 = vpack.c.b16 %v638_v4, %v638_v4 }
  0x96   :  { %3645 = vmatpush.bf16.msra.mxu0 %v8923_v16  ;;  %3671 = vmatpush.bf16.msra.mxu2 %v7135_v21  ;;  %v10672_v7 = vld [vmem:[%s16538_s1 + $0xdc4] sm:$0xf]  ;;  %v8287_v12 = vor.u32 %v10608_v2, %v8284_v3 }
  0x97   :  { %v8540_v8 = vld [vmem:[%s16538_s1 + $0xde0] sm:$0xf0] }
  0x98   :  { %3684 = vmatpush.bf16.msra.mxu3 %v7391_v26  ;;  %3659 = vmatpush.bf16.msra.mxu1 %v6847_v33  ;;  %v10472_v13 = vld [vmem:[%s16538_s1 + $0x784] sm:$0xf]  ;;  %v8543_v16 = vor.u32 %v10672_v7, %v8540_v8 }
  0x99   :  { %v7740_v14 = vld [vmem:[%s16538_s1 + $0x7a0] sm:$0xf0] }
  0x9a   :  { %3646 = vmatpush.bf16.msra.mxu0 %v8891_v32  ;;  %3672 = vmatpush.bf16.msra.mxu2 %v7103_v34  ;;  %v10536_v15 = vld [vmem:[%s16538_s1 + $0x984] sm:$0xf]  ;;  %v7743_v27 = vor.u32 %v10472_v13, %v7740_v14 }
  0x9b   :  { %v7996_v21 = vld [vmem:[%s16538_s1 + $0x9a0] sm:$0xf0] }
  0x9c   :  { %3685 = vmatpush.bf16.msra.mxu3 %v7359_v39  ;;  %3660 = vmatpush.bf16.msra.mxu1 %v6815_v52  ;;  %v10600_v23 = vld [vmem:[%s16538_s1 + $0xb84] sm:$0xf]  ;;  %v7999_v28 = vor.u32 %v10536_v15, %v7996_v21 }
  0x9d   :  { %v8252_v24 = vld [vmem:[%s16538_s1 + $0xba0] sm:$0xf0] }
  0x9e   :  { %3647 = vmatpush.bf16.msra.mxu0 %v8859_v48  ;;  %3673 = vmatpush.bf16.msra.mxu2 %v7071_v53  ;;  %v10664_v25 = vld [vmem:[%s16538_s1 + $0xd84] sm:$0xf]  ;;  %v8255_v29 = vor.u32 %v10600_v23, %v8252_v24 }
  0x9f   :  { %v8508_v26 = vld [vmem:[%s16538_s1 + $0xda0] sm:$0xf0] }
  0xa0   :  { %3686 = vmatpush.bf16.msra.mxu3 %v7327_v57  ;;  %3661 = vmatpush.bf16.msra.mxu1 %v6783_v5  ;;  %v10464_v30 = vld [vmem:[%s16538_s1 + $0x744] sm:$0xf]  ;;  %v8511_v33 = vor.u32 %v10664_v25, %v8508_v26 }
  0xa1   :  { %v7708_v31 = vld [vmem:[%s16538_s1 + $0x760] sm:$0xf0] }
  0xa2   :  { %3648 = vmatpush.bf16.msra.mxu0 %v8827_v0  ;;  %3674 = vmatpush.bf16.msra.mxu2 %v7039_v6  ;;  %v10528_v32 = vld [vmem:[%s16538_s1 + $0x944] sm:$0xf]  ;;  %v7711_v40 = vor.u32 %v10464_v30, %v7708_v31 }
  0xa3   :  { %v7964_v34 = vld [vmem:[%s16538_s1 + $0x960] sm:$0xf0]  ;;  %3662 = vmatmul.bf16.vlgmr.msra.gmra.mxu1 %v11437_v19 }
  0xa4   :  { %3687 = vmatpush.bf16.msra.mxu3 %v7295_v9  ;;  %3706 = vmatpush.bf16.msrb.mxu1 %v8031_v11  ;;  %v10592_v35 = vld [vmem:[%s16538_s1 + $0xb44] sm:$0xf]  ;;  %v7967_v43 = vor.u32 %v10528_v32, %v7964_v34 }
  0xa5   :  { %3649 = vmatmul.bf16.vlgmr.msra.gmra.mxu0 %v11789_v17  ;;  %v8220_v36 = vld [vmem:[%s16538_s1 + $0xb60] sm:$0xf0]  ;;  %3675 = vmatmul.bf16.vlgmr.msra.gmra.mxu2 %v11441_v22 }
  0xa6   :  { %3693 = vmatpush.bf16.msrb.mxu0 %v7775_v10  ;;  %3719 = vmatpush.bf16.msrb.mxu2 %v8287_v12  ;;  %v10656_v37 = vld [vmem:[%s16538_s1 + $0xd44] sm:$0xf]  ;;  %v8223_v45 = vor.u32 %v10592_v35, %v8220_v36 }
  0xa7   :  { %v8476_v39 = vld [vmem:[%s16538_s1 + $0xd60] sm:$0xf0]  ;;  %3688 = vmatmul.bf16.vlgmr.msra.gmra.mxu3 %v11435_v18 }
  0xa8   :  { %3732 = vmatpush.bf16.msrb.mxu3 %v8543_v16  ;;  %3707 = vmatpush.bf16.msrb.mxu1 %v7999_v28  ;;  %v10456_v46 = vld [vmem:[%s16538_s1 + $0x704] sm:$0xf]  ;;  %v8479_v49 = vor.u32 %v10656_v37, %v8476_v39 }
  0xa9   :  { %v7676_v47 = vld [vmem:[%s16538_s1 + $0x720] sm:$0xf0] }
  0xaa   :  { %3694 = vmatpush.bf16.msrb.mxu0 %v7743_v27  ;;  %3720 = vmatpush.bf16.msrb.mxu2 %v8255_v29  ;;  %v10520_v48 = vld [vmem:[%s16538_s1 + $0x904] sm:$0xf]  ;;  %v7679_v55 = vor.u32 %v10456_v46, %v7676_v47 }
  0xab   :  { %v7932_v50 = vld [vmem:[%s16538_s1 + $0x920] sm:$0xf0] }
  0xac   :  { %3733 = vmatpush.bf16.msrb.mxu3 %v8511_v33  ;;  %v10584_v51 = vld [vmem:[%s16538_s1 + $0xb04] sm:$0xf]  ;;  %3708 = vmatpush.bf16.msrb.mxu1 %v7967_v43  ;;  %v7935_v56 = vor.u32 %v10520_v48, %v7932_v50 }
  0xad   :  { %v8188_v52 = vld [vmem:[%s16538_s1 + $0xb20] sm:$0xf0] }
  0xae   :  { %v10648_v53 = vld [vmem:[%s16538_s1 + $0xd04] sm:$0xf]  ;;  %3695 = vmatpush.bf16.msrb.mxu0 %v7711_v40  ;;  %3721 = vmatpush.bf16.msrb.mxu2 %v8223_v45  ;;  %v8191_v57 = vor.u32 %v10584_v51, %v8188_v52 }
  0xaf   :  { %v8444_v54 = vld [vmem:[%s16538_s1 + $0xd20] sm:$0xf0] }
  0xb0   :  { %v10448_v58 = vld [vmem:[%s16538_s1 + $0x6c4] sm:$0xf]  ;;  %3734 = vmatpush.bf16.msrb.mxu3 %v8479_v49  ;;  %v8447_v61 = vor.u32 %v10648_v53, %v8444_v54  ;;  %3709 = vmatpush.bf16.msrb.mxu1 %v7935_v56  ;;  %v7010_v53 = vld [vmem:[%s16538_s1 + $0x1c8] sm:$0xf] }
  0xb1   :  { %v7644_v59 = vld [vmem:[%s16538_s1 + $0x6e0] sm:$0xf0]  ;;  %v10293_v54 = vld [vmem:[%s16538_s1 + $0x1e4] sm:$0xf0] }
  0xb2   :  { %v10512_v60 = vld [vmem:[%s16538_s1 + $0x8c4] sm:$0xf]  ;;  %3696 = vmatpush.bf16.msrb.mxu0 %v7679_v55  ;;  %v7647_v3 = vor.u32 %v10448_v58, %v7644_v59  ;;  %3722 = vmatpush.bf16.msrb.mxu2 %v8191_v57  ;;  %v7266_v57 = vld [vmem:[%s16538_s1 + $0x3c8] sm:$0xf] }
  0xb3   :  { %v7900_v62 = vld [vmem:[%s16538_s1 + $0x8e0] sm:$0xf0]  ;;  %v10357_v58 = vld [vmem:[%s16538_s1 + $0x3e4] sm:$0xf0] }
  0xb4   :  { %v10576_v63 = vld [vmem:[%s16538_s1 + $0xac4] sm:$0xf]  ;;  %v7903_v4 = vor.u32 %v10512_v60, %v7900_v62  ;;  %3735 = vmatpush.bf16.msrb.mxu3 %v8447_v61  ;;  %v7011_v62 = vor.u32 %v10293_v54, %v7010_v53 }
  0xb5   :  { %v8156_v0 = vld [vmem:[%s16538_s1 + $0xae0] sm:$0xf0] }
  0xb6   :  { %v10640_v1 = vld [vmem:[%s16538_s1 + $0xcc4] sm:$0xf]  ;;  %v8159_v5 = vor.u32 %v10576_v63, %v8156_v0  ;;  %3697 = vmatpush.bf16.msrb.mxu0 %v7647_v3  ;;  %3710 = vmatpush.bf16.msrb.mxu1 %v7903_v4  ;;  %v6978_v4 = vld [vmem:[%s16538_s1 + $0x188] sm:$0xf] }
  0xb7   :  { %v8412_v2 = vld [vmem:[%s16538_s1 + $0xce0] sm:$0xf0] }
  0xb8   :  { %v10440_v6 = vld [vmem:[%s16538_s1 + $0x684] sm:$0xf]  ;;  %v8415_v9 = vor.u32 %v10640_v1, %v8412_v2  ;;  %3723 = vmatpush.bf16.msrb.mxu2 %v8159_v5  ;;  %v7267_v2 = vor.u32 %v10357_v58, %v7266_v57  ;;  %v10285_v5 = vld [vmem:[%s16538_s1 + $0x1a4] sm:$0xf0] }
  0xb9   :  { %v7612_v7 = vld [vmem:[%s16538_s1 + $0x6a0] sm:$0xf0] }
  0xba   :  { %v10504_v8 = vld [vmem:[%s16538_s1 + $0x884] sm:$0xf]  ;;  %v7615_v15 = vor.u32 %v10440_v6, %v7612_v7  ;;  %3736 = vmatpush.bf16.msrb.mxu3 %v8415_v9  ;;  %v7234_v6 = vld [vmem:[%s16538_s1 + $0x388] sm:$0xf] }
  0xbb   :  { %v7868_v10 = vld [vmem:[%s16538_s1 + $0x8a0] sm:$0xf0]  ;;  %v10349_v7 = vld [vmem:[%s16538_s1 + $0x3a4] sm:$0xf0] }
  0xbc   :  { %v10568_v11 = vld [vmem:[%s16538_s1 + $0xa84] sm:$0xf]  ;;  %v7871_v16 = vor.u32 %v10504_v8, %v7868_v10  ;;  %3698 = vmatpush.bf16.msrb.mxu0 %v7615_v15  ;;  %v6979_v10 = vor.u32 %v10285_v5, %v6978_v4 }
  0xbd   :  { %v8124_v12 = vld [vmem:[%s16538_s1 + $0xaa0] sm:$0xf0] }
  0xbe   :  { %v10632_v13 = vld [vmem:[%s16538_s1 + $0xc84] sm:$0xf]  ;;  %v8127_v21 = vor.u32 %v10568_v11, %v8124_v12  ;;  %3711 = vmatpush.bf16.msrb.mxu1 %v7871_v16  ;;  %v6946_v16 = vld [vmem:[%s16538_s1 + $0x148] sm:$0xf] }
  0xbf   :  { %v8380_v14 = vld [vmem:[%s16538_s1 + $0xca0] sm:$0xf0] }
  0xc0   :  { %v10432_v23 = vld [vmem:[%s16538_s1 + $0x644] sm:$0xf]  ;;  %v8383_v26 = vor.u32 %v10632_v13, %v8380_v14  ;;  %3724 = vmatpush.bf16.msrb.mxu2 %v8127_v21  ;;  %v7235_v14 = vor.u32 %v10349_v7, %v7234_v6  ;;  %v10277_v21 = vld [vmem:[%s16538_s1 + $0x164] sm:$0xf0] }
  0xc1   :  { %v7580_v24 = vld [vmem:[%s16538_s1 + $0x660] sm:$0xf0] }
  0xc2   :  { %v10496_v25 = vld [vmem:[%s16538_s1 + $0x844] sm:$0xf]  ;;  %v7583_v32 = vor.u32 %v10432_v23, %v7580_v24  ;;  %3737 = vmatpush.bf16.msrb.mxu3 %v8383_v26  ;;  %v7202_v23 = vld [vmem:[%s16538_s1 + $0x348] sm:$0xf] }
  0xc3   :  { %v7836_v27 = vld [vmem:[%s16538_s1 + $0x860] sm:$0xf0]  ;;  %v10341_v24 = vld [vmem:[%s16538_s1 + $0x364] sm:$0xf0] }
  0xc4   :  { %v10560_v28 = vld [vmem:[%s16538_s1 + $0xa44] sm:$0xf]  ;;  %v7839_v35 = vor.u32 %v10496_v25, %v7836_v27  ;;  %3699 = vmatpush.bf16.msrb.mxu0 %v7583_v32  ;;  %v6947_v27 = vor.u32 %v10277_v21, %v6946_v16 }
  0xc5   :  { %v8092_v29 = vld [vmem:[%s16538_s1 + $0xa60] sm:$0xf0] }
  0xc6   :  { %v10624_v30 = vld [vmem:[%s16538_s1 + $0xc44] sm:$0xf]  ;;  %v8095_v36 = vor.u32 %v10560_v28, %v8092_v29  ;;  %3712 = vmatpush.bf16.msrb.mxu1 %v7839_v35  ;;  %v7170_v35 = vld [vmem:[%s16538_s1 + $0x308] sm:$0xf] }
  0xc7   :  { %v8348_v31 = vld [vmem:[%s16538_s1 + $0xc60] sm:$0xf0] }
  0xc8   :  { %v10424_v33 = vld [vmem:[%s16538_s1 + $0x604] sm:$0xf]  ;;  %v8351_v43 = vor.u32 %v10624_v30, %v8348_v31  ;;  %3725 = vmatpush.bf16.msrb.mxu2 %v8095_v36  ;;  %v7203_v31 = vor.u32 %v10341_v24, %v7202_v23  ;;  %v10333_v36 = vld [vmem:[%s16538_s1 + $0x324] sm:$0xf0] }
  0xc9   :  { %v7548_v34 = vld [vmem:[%s16538_s1 + $0x620] sm:$0xf0] }
  0xca   :  { %v10488_v37 = vld [vmem:[%s16538_s1 + $0x804] sm:$0xf]  ;;  %v7551_v51 = vor.u32 %v10424_v33, %v7548_v34  ;;  %3738 = vmatpush.bf16.msrb.mxu3 %v8351_v43  ;;  %v6914_v33 = vld [vmem:[%s16538_s1 + $0x108] sm:$0xf] }
  0xcb   :  { %v7804_v39 = vld [vmem:[%s16538_s1 + $0x820] sm:$0xf0]  ;;  %v10269_v34 = vld [vmem:[%s16538_s1 + $0x124] sm:$0xf0] }
  0xcc   :  { %v10552_v40 = vld [vmem:[%s16538_s1 + $0xa04] sm:$0xf]  ;;  %v7807_v55 = vor.u32 %v10488_v37, %v7804_v39  ;;  %3700 = vmatpush.bf16.msrb.mxu0 %v7551_v51  ;;  %v7138_v51 = vld [vmem:[%s16538_s1 + $0x2c8] sm:$0xf] }
  0xcd   :  { %v8060_v45 = vld [vmem:[%s16538_s1 + $0xa20] sm:$0xf0] }
  0xce   :  { %v10616_v46 = vld [vmem:[%s16538_s1 + $0xc04] sm:$0xf]  ;;  %v8063_v56 = vor.u32 %v10552_v40, %v8060_v45  ;;  %3713 = vmatpush.bf16.msrb.mxu1 %v7807_v55  ;;  %v6915_v40 = vor.u32 %v10269_v34, %v6914_v33  ;;  %v10485_v34 = vld [vmem:[%s16538_s1 + $0x7e4] sm:$0xf0] }
  0xcf   :  { %v8316_v47 = vld [vmem:[%s16538_s1 + $0xc20] sm:$0xf0]  ;;  %3701 = vmatmul.bf16.vlgmr.msrb.gmra.mxu0 %v11439_v20 }
  0xd0   :  { %v10736_v48 = vld [vmem:[%s16538_s1 + $0xfc4] sm:$0xf]  ;;  %v8319_v59 = vor.u32 %v10616_v46, %v8316_v47  ;;  %3726 = vmatpush.bf16.msrb.mxu2 %v8063_v56  ;;  %v7171_v47 = vor.u32 %v10333_v36, %v7170_v35  ;;  %v8034_v35 = vld [vmem:[%s16538_s1 + $0x9c8] sm:$0xf] }
  0xd1   :  { %v8796_v49 = vld [vmem:[%s16538_s1 + $0xfe0] sm:$0xf0]  ;;  %3714 = vmatmul.bf16.vlgmr.msrb.gmra.mxu1 %v11599_v41  ;;  %v10549_v36 = vld [vmem:[%s16538_s1 + $0x9e4] sm:$0xf0] }
  0xd2   :  { %v10800_v50 = vld [vmem:[%s16538_s1 + $0x11c4] sm:$0xf]  ;;  %v8799_v60 = vor.u32 %v10736_v48, %v8796_v49  ;;  %3739 = vmatpush.bf16.msrb.mxu3 %v8319_v59  ;;  %v6882_v49 = vld [vmem:[%s16538_s1 + $0xc8] sm:$0xf] }
  0xd3   :  { %v9052_v52 = vld [vmem:[%s16538_s1 + $0x11e0] sm:$0xf0]  ;;  %3727 = vmatmul.bf16.vlgmr.msrb.gmra.mxu2 %v11603_v44 }
  0xd4   :  { %v9055_v61 = vor.u32 %v10800_v50, %v9052_v52  ;;  %v10728_v63 = vld [vmem:[%s16538_s1 + $0xf84] sm:$0xf]  ;;  %3745 = vmatpush.bf16.msra.mxu0 %v8799_v60  ;;  %3771 = vmatpush.bf16.msra.mxu2 %v7011_v62  ;;  %v10261_v50 = vld [vmem:[%s16538_s1 + $0xe4] sm:$0xf0] }
  0xd5   :  { %v8764_v0 = vld [vmem:[%s16538_s1 + $0xfa0] sm:$0xf0]  ;;  %3740 = vmatmul.bf16.vlgmr.msrb.gmra.mxu3 %v11591_v38  ;;  %v10325_v52 = vld [vmem:[%s16538_s1 + $0x2e4] sm:$0xf0]  ;;  %v6883_v55 = vor.u32 %v10261_v50, %v6882_v49 }
  0xd6   :  { %v10792_v1 = vld [vmem:[%s16538_s1 + $0x1184] sm:$0xf]  ;;  %v8767_v8 = vor.u32 %v10728_v63, %v8764_v0  ;;  %3758 = vmatpush.bf16.msra.mxu1 %v9055_v61  ;;  %3784 = vmatpush.bf16.msra.mxu3 %v7267_v2  ;;  %v7139_v59 = vor.u32 %v10325_v52, %v7138_v51  ;;  %v6850_v61 = vld [vmem:[%s16538_s1 + $0x88] sm:$0xf] }
  0xd7   :  { %v9020_v3 = vld [vmem:[%s16538_s1 + $0x11a0] sm:$0xf0]  ;;  %v10253_v62 = vld [vmem:[%s16538_s1 + $0xa4] sm:$0xf0] }
  0xd8   :  { %v9023_v9 = vor.u32 %v10792_v1, %v9020_v3  ;;  %v10720_v11 = vld [vmem:[%s16538_s1 + $0xf44] sm:$0xf]  ;;  %3746 = vmatpush.bf16.msra.mxu0 %v8767_v8  ;;  %3772 = vmatpush.bf16.msra.mxu2 %v6979_v10  ;;  %v7106_v63 = vld [vmem:[%s16538_s1 + $0x288] sm:$0xf]  ;;  %v6851_v3 = vor.u32 %v10253_v62, %v6850_v61 }
  0xd9   :  { %v8732_v12 = vld [vmem:[%s16538_s1 + $0xf60] sm:$0xf0]  ;;  %v10317_v0 = vld [vmem:[%s16538_s1 + $0x2a4] sm:$0xf0] }
  0xda   :  { %v10784_v13 = vld [vmem:[%s16538_s1 + $0x1144] sm:$0xf]  ;;  %v8735_v25 = vor.u32 %v10720_v11, %v8732_v12  ;;  %3759 = vmatpush.bf16.msra.mxu1 %v9023_v9  ;;  %3785 = vmatpush.bf16.msra.mxu3 %v7235_v14  ;;  %v7107_v7 = vor.u32 %v10317_v0, %v7106_v63  ;;  %v6818_v9 = vld [vmem:[%s16538_s1 + $0x48] sm:$0xf] }
  0xdb   :  { %v8988_v15 = vld [vmem:[%s16538_s1 + $0x1160] sm:$0xf0]  ;;  %v10245_v10 = vld [vmem:[%s16538_s1 + $0x64] sm:$0xf0] }
  0xdc   :  { %v8991_v26 = vor.u32 %v10784_v13, %v8988_v15  ;;  %v10712_v28 = vld [vmem:[%s16538_s1 + $0xf04] sm:$0xf]  ;;  %3747 = vmatpush.bf16.msra.mxu0 %v8735_v25  ;;  %3773 = vmatpush.bf16.msra.mxu2 %v6947_v27  ;;  %v7074_v11 = vld [vmem:[%s16538_s1 + $0x248] sm:$0xf]  ;;  %v6819_v21 = vor.u32 %v10245_v10, %v6818_v9 }
  0xdd   :  { %v8700_v29 = vld [vmem:[%s16538_s1 + $0xf20] sm:$0xf0]  ;;  %v10309_v12 = vld [vmem:[%s16538_s1 + $0x264] sm:$0xf0] }
  0xde   :  { %v10776_v30 = vld [vmem:[%s16538_s1 + $0x1104] sm:$0xf]  ;;  %v8703_v37 = vor.u32 %v10712_v28, %v8700_v29  ;;  %3760 = vmatpush.bf16.msra.mxu1 %v8991_v26  ;;  %3786 = vmatpush.bf16.msra.mxu3 %v7203_v31  ;;  %v6786_v25 = vld [vmem:[%s16538_s1 + $0x8] sm:$0xf]  ;;  %v7075_v26 = vor.u32 %v10309_v12, %v7074_v11 }
  0xdf   :  { %v8956_v32 = vld [vmem:[%s16538_s1 + $0x1120] sm:$0xf0]  ;;  %v10237_v27 = vld [vmem:[%s16538_s1 + $0x24] sm:$0xf0] }
  0xe0   :  { %v8959_v39 = vor.u32 %v10776_v30, %v8956_v32  ;;  %v10704_v43 = vld [vmem:[%s16538_s1 + $0xec4] sm:$0xf]  ;;  %3748 = vmatpush.bf16.msra.mxu0 %v8703_v37  ;;  %3774 = vmatpush.bf16.msra.mxu2 %v6915_v40  ;;  %v7042_v28 = vld [vmem:[%s16538_s1 + $0x208] sm:$0xf] }
  0xe1   :  { %v8668_v45 = vld [vmem:[%s16538_s1 + $0xee0] sm:$0xf0]  ;;  %v10301_v29 = vld [vmem:[%s16538_s1 + $0x224] sm:$0xf0] }
  0xe2   :  { %v10768_v46 = vld [vmem:[%s16538_s1 + $0x10c4] sm:$0xf]  ;;  %v8671_v53 = vor.u32 %v10704_v43, %v8668_v45  ;;  %3761 = vmatpush.bf16.msra.mxu1 %v8959_v39  ;;  %3787 = vmatpush.bf16.msra.mxu3 %v7171_v47  ;;  %v7522_v30 = vld [vmem:[%s16538_s1 + $0x5c8] sm:$0xf]  ;;  %v6787_v39 = vor.u32 %v10237_v27, %v6786_v25  ;;  %v7043_v45 = vor.u32 %v10301_v29, %v7042_v28 }
  0xe3   :  { %v8924_v48 = vld [vmem:[%s16538_s1 + $0x10e0] sm:$0xf0]  ;;  %v10421_v31 = vld [vmem:[%s16538_s1 + $0x5e4] sm:$0xf0] }
  0xe4   :  { %v8927_v54 = vor.u32 %v10768_v46, %v8924_v48  ;;  %v10696_v56 = vld [vmem:[%s16538_s1 + $0xe84] sm:$0xf]  ;;  %3749 = vmatpush.bf16.msra.mxu0 %v8671_v53  ;;  %3775 = vmatpush.bf16.msra.mxu2 %v6883_v55  ;;  %v7778_v32 = vld [vmem:[%s16538_s1 + $0x7c8] sm:$0xf]  ;;  %v7523_v46 = vor.u32 %v10421_v31, %v7522_v30  ;;  %v8035_v48 = vor.u32 %v10549_v36, %v8034_v35 }
  0xe5   :  { %v8636_v57 = vld [vmem:[%s16538_s1 + $0xea0] sm:$0xf0]  ;;  %v8290_v40 = vld [vmem:[%s16538_s1 + $0xbc8] sm:$0xf]  ;;  %v7779_v47 = vor.u32 %v10485_v34, %v7778_v32 }
  0xe6   :  { %v10760_v58 = vld [vmem:[%s16538_s1 + $0x1084] sm:$0xf]  ;;  %v8639_v1 = vor.u32 %v10696_v56, %v8636_v57  ;;  %3762 = vmatpush.bf16.msra.mxu1 %v8927_v54  ;;  %3788 = vmatpush.bf16.msra.mxu3 %v7139_v59  ;;  %v10613_v43 = vld [vmem:[%s16538_s1 + $0xbe4] sm:$0xf0] }
  0xe7   :  { %v8892_v60 = vld [vmem:[%s16538_s1 + $0x10a0] sm:$0xf0]  ;;  %v7490_v49 = vld [vmem:[%s16538_s1 + $0x588] sm:$0xf]  ;;  %v8291_v52 = vor.u32 %v10613_v43, %v8290_v40 }
  0xe8   :  { %v8895_v2 = vor.u32 %v10760_v58, %v8892_v60  ;;  %v10688_v4 = vld [vmem:[%s16538_s1 + $0xe44] sm:$0xf]  ;;  %3750 = vmatpush.bf16.msra.mxu0 %v8639_v1  ;;  %3776 = vmatpush.bf16.msra.mxu2 %v6851_v3  ;;  %v10413_v50 = vld [vmem:[%s16538_s1 + $0x5a4] sm:$0xf0] }
  0xe9   :  { %v8604_v5 = vld [vmem:[%s16538_s1 + $0xe60] sm:$0xf0]  ;;  %v7746_v51 = vld [vmem:[%s16538_s1 + $0x788] sm:$0xf]  ;;  %v7491_v58 = vor.u32 %v10413_v50, %v7490_v49 }
  0xea   :  { %v10752_v6 = vld [vmem:[%s16538_s1 + $0x1044] sm:$0xf]  ;;  %v8607_v13 = vor.u32 %v10688_v4, %v8604_v5  ;;  %3763 = vmatpush.bf16.msra.mxu1 %v8895_v2  ;;  %3789 = vmatpush.bf16.msra.mxu3 %v7107_v7  ;;  %v10477_v53 = vld [vmem:[%s16538_s1 + $0x7a4] sm:$0xf0] }
  0xeb   :  { %v8860_v8 = vld [vmem:[%s16538_s1 + $0x1060] sm:$0xf0]  ;;  %v8002_v54 = vld [vmem:[%s16538_s1 + $0x988] sm:$0xf]  ;;  %v7747_v59 = vor.u32 %v10477_v53, %v7746_v51 }
  0xec   :  { %v10680_v14 = vld [vmem:[%s16538_s1 + $0xe04] sm:$0xf]  ;;  %v8863_v16 = vor.u32 %v10752_v6, %v8860_v8  ;;  %3751 = vmatpush.bf16.msra.mxu0 %v8607_v13  ;;  %3777 = vmatpush.bf16.msra.mxu2 %v6819_v21  ;;  %v10541_v55 = vld [vmem:[%s16538_s1 + $0x9a4] sm:$0xf0] }
  0xed   :  { %v8572_v15 = vld [vmem:[%s16538_s1 + $0xe20] sm:$0xf0]  ;;  %v8258_v56 = vld [vmem:[%s16538_s1 + $0xb88] sm:$0xf]  ;;  %v8003_v60 = vor.u32 %v10541_v55, %v8002_v54  ;;  %v3546_v54 = vpop.f32.mrf.mxu0 }
  0xee   :  { %v10744_v23 = vld [vmem:[%s16538_s1 + $0x1004] sm:$0xf]  ;;  %v8575_v33 = vor.u32 %v10680_v14, %v8572_v15  ;;  %3764 = vmatpush.bf16.msra.mxu1 %v8863_v16  ;;  %3790 = vmatpush.bf16.msra.mxu3 %v7075_v26  ;;  %v10605_v57 = vld [vmem:[%s16538_s1 + $0xba4] sm:$0xf0] }
  0xef   :  { %v8828_v24 = vld [vmem:[%s16538_s1 + $0x1020] sm:$0xf0]  ;;  %v7458_v61 = vld [vmem:[%s16538_s1 + $0x548] sm:$0xf]  ;;  %v8259_v0 = vor.u32 %v10605_v57, %v8258_v56 }
  0xf0   :  { %v8831_v37 = vor.u32 %v10744_v23, %v8828_v24  ;;  %3752 = vmatpush.bf16.msra.mxu0 %v8575_v33  ;;  %3778 = vmatpush.bf16.msra.mxu2 %v6787_v39  ;;  %v10405_v62 = vld [vmem:[%s16538_s1 + $0x564] sm:$0xf0]  ;;  %v12271_v33 = vld [vmem:[%s16540_s2] sm:$0xff] }
  0xf1   :  { %v7714_v63 = vld [vmem:[%s16538_s1 + $0x748] sm:$0xf]  ;;  %v7459_v6 = vor.u32 %v10405_v62, %v7458_v61  ;;  %v3559_v61 = vpop.f32.mrf.mxu1 }
  0xf2   :  { %3765 = vmatpush.bf16.msra.mxu1 %v8831_v37  ;;  %3791 = vmatpush.bf16.msra.mxu3 %v7043_v45  ;;  %v10469_v1 = vld [vmem:[%s16538_s1 + $0x764] sm:$0xf0] }
  0xf3   :  { %3753 = vmatmul.bf16.vlgmr.msra.gmra.mxu0 %v11601_v42  ;;  %v7970_v2 = vld [vmem:[%s16538_s1 + $0x948] sm:$0xf]  ;;  %3779 = vmatmul.bf16.vlgmr.msra.gmra.mxu2 %v11437_v19  ;;  %v7715_v7 = vor.u32 %v10469_v1, %v7714_v63 }
  0xf4   :  { %3797 = vmatpush.bf16.msrb.mxu0 %v7523_v46  ;;  %3823 = vmatpush.bf16.msrb.mxu2 %v8035_v48  ;;  %v10533_v3 = vld [vmem:[%s16538_s1 + $0x964] sm:$0xf0]  ;;  %v609_v46 = vperm.slane %v12271_v33, 0 }
  0xf5   :  { %3766 = vmatmul.bf16.vlgmr.msra.gmra.mxu1 %v11789_v17  ;;  %v8226_v4 = vld [vmem:[%s16538_s1 + $0xb48] sm:$0xf]  ;;  %3792 = vmatmul.bf16.vlgmr.msra.gmra.mxu3 %v11441_v22  ;;  %v7971_v8 = vor.u32 %v10533_v3, %v7970_v2 }
  0xf6   :  { %3810 = vmatpush.bf16.msrb.mxu1 %v7779_v47  ;;  %3836 = vmatpush.bf16.msrb.mxu3 %v8291_v52  ;;  %v10597_v5 = vld [vmem:[%s16538_s1 + $0xb64] sm:$0xf0] }
  0xf7   :  { %v7426_v9 = vld [vmem:[%s16538_s1 + $0x508] sm:$0xf]  ;;  %v8227_v12 = vor.u32 %v10597_v5, %v8226_v4 }
  0xf8   :  { %3798 = vmatpush.bf16.msrb.mxu0 %v7491_v58  ;;  %3824 = vmatpush.bf16.msrb.mxu2 %v8003_v60  ;;  %v10397_v10 = vld [vmem:[%s16538_s1 + $0x524] sm:$0xf0]  ;;  %v3547_v60 = vadd.f32 %v3546_v54, %v609_v46 }
  0xf9   :  { %v7682_v11 = vld [vmem:[%s16538_s1 + $0x708] sm:$0xf]  ;;  %v7427_v23 = vor.u32 %v10397_v10, %v7426_v9 }
  0xfa   :  { %3811 = vmatpush.bf16.msrb.mxu1 %v7747_v59  ;;  %3837 = vmatpush.bf16.msrb.mxu3 %v8259_v0  ;;  %v10461_v13 = vld [vmem:[%s16538_s1 + $0x724] sm:$0xf0]  ;;  %v3560_v4 = vadd.f32 %v3559_v61, %v3547_v60 }
  0xfb   :  { %v7938_v14 = vld [vmem:[%s16538_s1 + $0x908] sm:$0xf]  ;;  %v7683_v25 = vor.u32 %v10461_v13, %v7682_v11  ;;  %v3572_v13 = vpop.f32.mrf.mxu2 }
  0xfc   :  { %v10525_v15 = vld [vmem:[%s16538_s1 + $0x924] sm:$0xf0]  ;;  %3799 = vmatpush.bf16.msrb.mxu0 %v7459_v6  ;;  %3825 = vmatpush.bf16.msrb.mxu2 %v7971_v8 }
  0xfd   :  { %v8194_v16 = vld [vmem:[%s16538_s1 + $0xb08] sm:$0xf]  ;;  %v7939_v26 = vor.u32 %v10525_v15, %v7938_v14 }
  0xfe   :  { %v10589_v21 = vld [vmem:[%s16538_s1 + $0xb24] sm:$0xf0]  ;;  %3812 = vmatpush.bf16.msrb.mxu1 %v7715_v7  ;;  %3838 = vmatpush.bf16.msrb.mxu3 %v8227_v12 }
  0xff   :  { %v7394_v24 = vld [vmem:[%s16538_s1 + $0x4c8] sm:$0xf]  ;;  %v8195_v30 = vor.u32 %v10589_v21, %v8194_v16 }
 0x100   :  { %v10389_v27 = vld [vmem:[%s16538_s1 + $0x4e4] sm:$0xf0]  ;;  %3800 = vmatpush.bf16.msrb.mxu0 %v7427_v23  ;;  %3826 = vmatpush.bf16.msrb.mxu2 %v7939_v26  ;;  %v3573_v23 = vadd.f32 %v3572_v13, %v3560_v4 }
 0x101   :  { %v7650_v28 = vld [vmem:[%s16538_s1 + $0x6c8] sm:$0xf]  ;;  %v7395_v36 = vor.u32 %v10389_v27, %v7394_v24  ;;  %v3585_v24 = vpop.f32.mrf.mxu3 }
 0x102   :  { %v10453_v29 = vld [vmem:[%s16538_s1 + $0x6e4] sm:$0xf0]  ;;  %3813 = vmatpush.bf16.msrb.mxu1 %v7683_v25  ;;  %3839 = vmatpush.bf16.msrb.mxu3 %v8195_v30 }
 0x103   :  { %v7906_v31 = vld [vmem:[%s16538_s1 + $0x8c8] sm:$0xf]  ;;  %v7651_v39 = vor.u32 %v10453_v29, %v7650_v28 }
 0x104   :  { %v10517_v32 = vld [vmem:[%s16538_s1 + $0x8e4] sm:$0xf0]  ;;  %3801 = vmatpush.bf16.msrb.mxu0 %v7395_v36 }
 0x105   :  { %v8162_v34 = vld [vmem:[%s16538_s1 + $0xac8] sm:$0xf]  ;;  %v7907_v40 = vor.u32 %v10517_v32, %v7906_v31  ;;  %v12370_v32 = vadd.f32 %v3585_v24, %v3573_v23  ;;  %v6916_v23 = vld [vmem:[%s16538_s1 + $0x128] sm:$0xf0] }
 0x106   :  { %v10581_v35 = vld [vmem:[%s16538_s1 + $0xae4] sm:$0xf0]  ;;  %3814 = vmatpush.bf16.msrb.mxu1 %v7651_v39  ;;  %v7012_v39 = vld [vmem:[%s16538_s1 + $0x1e8] sm:$0xf0] }
 0x107   :  { %v7362_v37 = vld [vmem:[%s16538_s1 + $0x488] sm:$0xf]  ;;  %v8163_v47 = vor.u32 %v10581_v35, %v8162_v34  ;;  %3827 = vmatpush.bf16.msrb.mxu2 %v7907_v40  ;;  %v3548_v34 = vpop.f32.mrf.mxu0  ;;  %v3561_v40 = vpop.f32.mrf.mxu1 }
 0x108   :  { %v10381_v43 = vld [vmem:[%s16538_s1 + $0x4a4] sm:$0xf0]  ;;  %v10257_v40 = vld [vmem:[%s16538_s1 + $0xcc] sm:$0xf] }
 0x109   :  { %v7618_v45 = vld [vmem:[%s16538_s1 + $0x688] sm:$0xf]  ;;  %v7363_v53 = vor.u32 %v10381_v43, %v7362_v37  ;;  %3840 = vmatpush.bf16.msrb.mxu3 %v8163_v47  ;;  %v10289_v37 = vld [vmem:[%s16538_s1 + $0x1cc] sm:$0xf] }
 0x10a   :  { %v10445_v48 = vld [vmem:[%s16538_s1 + $0x6a4] sm:$0xf0] }
 0x10b   :  { %v7874_v49 = vld [vmem:[%s16538_s1 + $0x888] sm:$0xf]  ;;  %v7619_v55 = vor.u32 %v10445_v48, %v7618_v45  ;;  %3802 = vmatpush.bf16.msrb.mxu0 %v7363_v53 }
 0x10c   :  { %v10509_v50 = vld [vmem:[%s16538_s1 + $0x8a4] sm:$0xf0] }
 0x10d   :  { %v8130_v51 = vld [vmem:[%s16538_s1 + $0xa88] sm:$0xf]  ;;  %v7875_v56 = vor.u32 %v10509_v50, %v7874_v49  ;;  %3815 = vmatpush.bf16.msrb.mxu1 %v7619_v55  ;;  %v10281_v55 = vld [vmem:[%s16538_s1 + $0x18c] sm:$0xf] }
 0x10e   :  { %v10573_v52 = vld [vmem:[%s16538_s1 + $0xaa4] sm:$0xf0] }
 0x10f   :  { %v7330_v57 = vld [vmem:[%s16538_s1 + $0x448] sm:$0xf]  ;;  %v8131_v62 = vor.u32 %v10573_v52, %v8130_v51  ;;  %3828 = vmatpush.bf16.msrb.mxu2 %v7875_v56  ;;  %v7015_v51 = vor.u32 %v10289_v37, %v7012_v39  ;;  %v6980_v56 = vld [vmem:[%s16538_s1 + $0x1a8] sm:$0xf0]  ;;  %v3611_v34 = vpop.f32.mrf.mxu1 }
 0x110   :  { %v10373_v58 = vld [vmem:[%s16538_s1 + $0x464] sm:$0xf0] }
 0x111   :  { %v7586_v59 = vld [vmem:[%s16538_s1 + $0x648] sm:$0xf]  ;;  %v7331_v5 = vor.u32 %v10373_v58, %v7330_v57  ;;  %3841 = vmatpush.bf16.msrb.mxu3 %v8131_v62  ;;  %v3574_v57 = vpop.f32.mrf.mxu2 }
 0x112   :  { %v10437_v63 = vld [vmem:[%s16538_s1 + $0x664] sm:$0xf0] }
 0x113   :  { %v7842_v0 = vld [vmem:[%s16538_s1 + $0x848] sm:$0xf]  ;;  %v7587_v8 = vor.u32 %v10437_v63, %v7586_v59  ;;  %3803 = vmatpush.bf16.msrb.mxu0 %v7331_v5  ;;  %v3587_v59 = vpop.f32.mrf.mxu3  ;;  %v10273_v5 = vld [vmem:[%s16538_s1 + $0x14c] sm:$0xf] }
 0x114   :  { %v10501_v1 = vld [vmem:[%s16538_s1 + $0x864] sm:$0xf0]  ;;  %v6852_v59 = vld [vmem:[%s16538_s1 + $0xa8] sm:$0xf0] }
 0x115   :  { %v8098_v2 = vld [vmem:[%s16538_s1 + $0xa48] sm:$0xf]  ;;  %v7843_v9 = vor.u32 %v10501_v1, %v7842_v0  ;;  %3816 = vmatpush.bf16.msrb.mxu1 %v7587_v8  ;;  %v6983_v1 = vor.u32 %v10281_v55, %v6980_v56 }
 0x116   :  { %v10565_v3 = vld [vmem:[%s16538_s1 + $0xa64] sm:$0xf0] }
 0x117   :  { %v7298_v6 = vld [vmem:[%s16538_s1 + $0x408] sm:$0xf]  ;;  %v8099_v14 = vor.u32 %v10565_v3, %v8098_v2  ;;  %3829 = vmatpush.bf16.msrb.mxu2 %v7843_v9 }
 0x118   :  { %v10365_v7 = vld [vmem:[%s16538_s1 + $0x424] sm:$0xf0] }
 0x119   :  { %v7554_v10 = vld [vmem:[%s16538_s1 + $0x608] sm:$0xf]  ;;  %v7299_v28 = vor.u32 %v10365_v7, %v7298_v6  ;;  %3842 = vmatpush.bf16.msrb.mxu3 %v8099_v14  ;;  %v6948_v6 = vld [vmem:[%s16538_s1 + $0x168] sm:$0xf0] }
 0x11a   :  { %v10429_v11 = vld [vmem:[%s16538_s1 + $0x624] sm:$0xf0]  ;;  %v6951_v13 = vor.u32 %v10273_v5, %v6948_v6 }
 0x11b   :  { %v7810_v12 = vld [vmem:[%s16538_s1 + $0x808] sm:$0xf]  ;;  %v7555_v35 = vor.u32 %v10429_v11, %v7554_v10  ;;  %3804 = vmatpush.bf16.msrb.mxu0 %v7299_v28  ;;  %v3637_v57 = vpop.f32.mrf.mxu3 }
 0x11c   :  { %v10493_v15 = vld [vmem:[%s16538_s1 + $0x824] sm:$0xf0] }
 0x11d   :  { %v8066_v16 = vld [vmem:[%s16538_s1 + $0xa08] sm:$0xf]  ;;  %v7811_v36 = vor.u32 %v10493_v15, %v7810_v12  ;;  %3817 = vmatpush.bf16.msrb.mxu1 %v7555_v35 }
 0x11e   :  { %v10557_v21 = vld [vmem:[%s16538_s1 + $0xa24] sm:$0xf0]  ;;  %3805 = vmatmul.bf16.vlgmr.msrb.gmra.mxu0 %v11435_v18 }
 0x11f   :  { %v8546_v25 = vld [vmem:[%s16538_s1 + $0xdc8] sm:$0xf]  ;;  %v8067_v43 = vor.u32 %v10557_v21, %v8066_v16  ;;  %3830 = vmatpush.bf16.msrb.mxu2 %v7811_v36  ;;  %v10265_v21 = vld [vmem:[%s16538_s1 + $0x10c] sm:$0xf] }
 0x120   :  { %v10677_v26 = vld [vmem:[%s16538_s1 + $0xde4] sm:$0xf0]  ;;  %3818 = vmatmul.bf16.vlgmr.msrb.gmra.mxu1 %v11439_v20  ;;  %v6919_v35 = vor.u32 %v10265_v21, %v6916_v23 }
 0x121   :  { %v8802_v27 = vld [vmem:[%s16538_s1 + $0xfc8] sm:$0xf]  ;;  %v8547_v45 = vor.u32 %v10677_v26, %v8546_v25  ;;  %3843 = vmatpush.bf16.msrb.mxu3 %v8067_v43  ;;  %v3598_v25 = vpop.f32.mrf.mxu0 }
 0x122   :  { %v10741_v29 = vld [vmem:[%s16538_s1 + $0xfe4] sm:$0xf0]  ;;  %3831 = vmatmul.bf16.vlgmr.msrb.gmra.mxu2 %v11599_v41 }
 0x123   :  { %v9058_v30 = vld [vmem:[%s16538_s1 + $0x11c8] sm:$0xf]  ;;  %v8803_v46 = vor.u32 %v10741_v29, %v8802_v27  ;;  %3849 = vmatpush.bf16.msra.mxu0 %v8547_v45 }
 0x124   :  { %v10805_v31 = vld [vmem:[%s16538_s1 + $0x11e4] sm:$0xf0]  ;;  %3844 = vmatmul.bf16.vlgmr.msrb.gmra.mxu3 %v11603_v44 }
 0x125   :  { %v9059_v47 = vor.u32 %v10805_v31, %v9058_v30  ;;  %v8514_v48 = vld [vmem:[%s16538_s1 + $0xd88] sm:$0xf]  ;;  %3862 = vmatpush.bf16.msra.mxu1 %v8803_v46  ;;  %3888 = vmatpush.bf16.msra.mxu3 %v7015_v51  ;;  %v3599_v31 = vadd.f32 %v3598_v25, %v12370_v32  ;;  %v6884_v32 = vld [vmem:[%s16538_s1 + $0xe8] sm:$0xf0]  ;;  %v3624_v51 = vpop.f32.mrf.mxu2 }
 0x126   :  { %v10669_v49 = vld [vmem:[%s16538_s1 + $0xda4] sm:$0xf0] }
 0x127   :  { %v8770_v50 = vld [vmem:[%s16538_s1 + $0xf88] sm:$0xf]  ;;  %v8515_v58 = vor.u32 %v10669_v49, %v8514_v48  ;;  %3875 = vmatpush.bf16.msra.mxu2 %v9059_v47  ;;  %v3612_v43 = vadd.f32 %v3611_v34, %v3599_v31  ;;  %v7268_v31 = vld [vmem:[%s16538_s1 + $0x3e8] sm:$0xf0] }
 0x128   :  { %v10733_v52 = vld [vmem:[%s16538_s1 + $0xfa4] sm:$0xf0]  ;;  %v10417_v34 = vld [vmem:[%s16538_s1 + $0x5cc] sm:$0xf] }
 0x129   :  { %v9026_v53 = vld [vmem:[%s16538_s1 + $0x1188] sm:$0xf]  ;;  %v8771_v60 = vor.u32 %v10733_v52, %v8770_v50  ;;  %3850 = vmatpush.bf16.msra.mxu0 %v8515_v58  ;;  %3889 = vmatpush.bf16.msra.mxu3 %v6983_v1  ;;  %v6887_v52 = vor.u32 %v10257_v40, %v6884_v32  ;;  %v3625_v56 = vadd.f32 %v3624_v51, %v3612_v43  ;;  %v10249_v58 = vld [vmem:[%s16538_s1 + $0x8c] sm:$0xf] }
 0x12a   :  { %v10797_v54 = vld [vmem:[%s16538_s1 + $0x11a4] sm:$0xf0]  ;;  %v6855_v5 = vor.u32 %v10249_v58, %v6852_v59  ;;  %v10545_v43 = vld [vmem:[%s16538_s1 + $0x9cc] sm:$0xf] }
 0x12b   :  { %v9027_v61 = vor.u32 %v10797_v54, %v9026_v53  ;;  %v8482_v62 = vld [vmem:[%s16538_s1 + $0xd48] sm:$0xf]  ;;  %3863 = vmatpush.bf16.msra.mxu1 %v8771_v60  ;;  %v7236_v51 = vld [vmem:[%s16538_s1 + $0x3a8] sm:$0xf0] }
 0x12c   :  { %v10661_v63 = vld [vmem:[%s16538_s1 + $0xd64] sm:$0xf0]  ;;  %v8004_v58 = vld [vmem:[%s16538_s1 + $0x9a8] sm:$0xf0] }
 0x12d   :  { %v8738_v0 = vld [vmem:[%s16538_s1 + $0xf48] sm:$0xf]  ;;  %v8483_v7 = vor.u32 %v10661_v63, %v8482_v62  ;;  %3876 = vmatpush.bf16.msra.mxu2 %v9027_v61  ;;  %3890 = vmatpush.bf16.msra.mxu3 %v6951_v13  ;;  %v12503_v61 = vadd.f32 %v3637_v57, %v3625_v56  ;;  %v3600_v62 = vpop.f32.mrf.mxu0  ;;  %v7748_v56 = vld [vmem:[%s16538_s1 + $0x7a8] sm:$0xf0] }
 0x12e   :  { %v10725_v2 = vld [vmem:[%s16538_s1 + $0xf64] sm:$0xf0]  ;;  %v10537_v57 = vld [vmem:[%s16538_s1 + $0x98c] sm:$0xf] }
 0x12f   :  { %v8994_v3 = vld [vmem:[%s16538_s1 + $0x1148] sm:$0xf]  ;;  %v8739_v8 = vor.u32 %v10725_v2, %v8738_v0  ;;  %3851 = vmatpush.bf16.msra.mxu0 %v8483_v7 }
 0x130   :  { %v10789_v4 = vld [vmem:[%s16538_s1 + $0x1164] sm:$0xf0] }
 0x131   :  { %v8995_v9 = vor.u32 %v10789_v4, %v8994_v3  ;;  %v8450_v10 = vld [vmem:[%s16538_s1 + $0xd08] sm:$0xf]  ;;  %3864 = vmatpush.bf16.msra.mxu1 %v8739_v8  ;;  %3891 = vmatpush.bf16.msra.mxu3 %v6919_v35  ;;  %v3613_v4 = vpop.f32.mrf.mxu1 }
 0x132   :  { %v10653_v11 = vld [vmem:[%s16538_s1 + $0xd24] sm:$0xf0]  ;;  %v10465_v4 = vld [vmem:[%s16538_s1 + $0x74c] sm:$0xf] }
 0x133   :  { %v8706_v12 = vld [vmem:[%s16538_s1 + $0xf08] sm:$0xf]  ;;  %v8451_v24 = vor.u32 %v10653_v11, %v8450_v10  ;;  %3877 = vmatpush.bf16.msra.mxu2 %v8995_v9  ;;  %v10241_v9 = vld [vmem:[%s16538_s1 + $0x4c] sm:$0xf] }
 0x134   :  { %v10717_v14 = vld [vmem:[%s16538_s1 + $0xf24] sm:$0xf0]  ;;  %v6820_v10 = vld [vmem:[%s16538_s1 + $0x68] sm:$0xf0] }
 0x135   :  { %v8962_v15 = vld [vmem:[%s16538_s1 + $0x1108] sm:$0xf]  ;;  %v8707_v26 = vor.u32 %v10717_v14, %v8706_v12  ;;  %3852 = vmatpush.bf16.msra.mxu0 %v8451_v24  ;;  %3892 = vmatpush.bf16.msra.mxu3 %v6887_v52  ;;  %v3626_v24 = vpop.f32.mrf.mxu2  ;;  %v6823_v25 = vor.u32 %v10241_v9, %v6820_v10  ;;  %v10409_v52 = vld [vmem:[%s16538_s1 + $0x58c] sm:$0xf] }
 0x136   :  { %v10781_v16 = vld [vmem:[%s16538_s1 + $0x1124] sm:$0xf0]  ;;  %v10521_v24 = vld [vmem:[%s16538_s1 + $0x90c] sm:$0xf] }
 0x137   :  { %v8963_v27 = vor.u32 %v10781_v16, %v8962_v15  ;;  %v8418_v28 = vld [vmem:[%s16538_s1 + $0xcc8] sm:$0xf]  ;;  %3865 = vmatpush.bf16.msra.mxu1 %v8707_v26 }
 0x138   :  { %v10645_v29 = vld [vmem:[%s16538_s1 + $0xce4] sm:$0xf0] }
 0x139   :  { %v8674_v30 = vld [vmem:[%s16538_s1 + $0xec8] sm:$0xf]  ;;  %v8419_v45 = vor.u32 %v10645_v29, %v8418_v28  ;;  %3878 = vmatpush.bf16.msra.mxu2 %v8963_v27  ;;  %3893 = vmatpush.bf16.msra.mxu3 %v6855_v5  ;;  %v10233_v27 = vld [vmem:[%s16538_s1 + $0xc] sm:$0xf]  ;;  %v3639_v29 = vpop.f32.mrf.mxu3 }
 0x13a   :  { %v10709_v36 = vld [vmem:[%s16538_s1 + $0xee4] sm:$0xf0]  ;;  %v6788_v28 = vld [vmem:[%s16538_s1 + $0x28] sm:$0xf0] }
 0x13b   :  { %v8930_v37 = vld [vmem:[%s16538_s1 + $0x10c8] sm:$0xf]  ;;  %v8675_v46 = vor.u32 %v10709_v36, %v8674_v30  ;;  %3853 = vmatpush.bf16.msra.mxu0 %v8419_v45  ;;  %v10353_v30 = vld [vmem:[%s16538_s1 + $0x3cc] sm:$0xf] }
 0x13c   :  { %v10773_v39 = vld [vmem:[%s16538_s1 + $0x10e4] sm:$0xf0]  ;;  %v7524_v36 = vld [vmem:[%s16538_s1 + $0x5e8] sm:$0xf0] }
 0x13d   :  { %v8931_v47 = vor.u32 %v10773_v39, %v8930_v37  ;;  %v8386_v48 = vld [vmem:[%s16538_s1 + $0xc88] sm:$0xf]  ;;  %3866 = vmatpush.bf16.msra.mxu1 %v8675_v46  ;;  %v10481_v37 = vld [vmem:[%s16538_s1 + $0x7cc] sm:$0xf]  ;;  %3894 = vmatpush.bf16.msra.mxu3 %v6823_v25  ;;  %v6791_v46 = vor.u32 %v10233_v27, %v6788_v28 }
 0x13e   :  { %v10637_v49 = vld [vmem:[%s16538_s1 + $0xca4] sm:$0xf0]  ;;  %v7780_v39 = vld [vmem:[%s16538_s1 + $0x7e8] sm:$0xf0] }
 0x13f   :  { %v8642_v50 = vld [vmem:[%s16538_s1 + $0xe88] sm:$0xf]  ;;  %v8387_v60 = vor.u32 %v10637_v49, %v8386_v48  ;;  %3879 = vmatpush.bf16.msra.mxu2 %v8931_v47  ;;  %v8036_v45 = vld [vmem:[%s16538_s1 + $0x9e8] sm:$0xf0]  ;;  %v7271_v47 = vor.u32 %v10353_v30, %v7268_v31  ;;  %v7527_v48 = vor.u32 %v10417_v34, %v7524_v36  ;;  %v7783_v49 = vor.u32 %v10481_v37, %v7780_v39 }
 0x140   :  { %v10701_v53 = vld [vmem:[%s16538_s1 + $0xea4] sm:$0xf0]  ;;  %v7716_v5 = vld [vmem:[%s16538_s1 + $0x768] sm:$0xf0] }
 0x141   :  { %v8898_v54 = vld [vmem:[%s16538_s1 + $0x1088] sm:$0xf]  ;;  %v8643_v63 = vor.u32 %v10701_v53, %v8642_v50  ;;  %3854 = vmatpush.bf16.msra.mxu0 %v8387_v60  ;;  %v10345_v50 = vld [vmem:[%s16538_s1 + $0x38c] sm:$0xf]  ;;  %v8039_v53 = vor.u32 %v10545_v43, %v8036_v45  ;;  %3895 = vmatpush.bf16.msra.mxu3 %v6791_v46  ;;  %v7719_v10 = vor.u32 %v10465_v4, %v7716_v5 }
 0x142   :  { %v10765_v55 = vld [vmem:[%s16538_s1 + $0x10a4] sm:$0xf0]  ;;  %v7239_v59 = vor.u32 %v10345_v50, %v7236_v51  ;;  %v7940_v25 = vld [vmem:[%s16538_s1 + $0x928] sm:$0xf0] }
 0x143   :  { %v8899_v0 = vor.u32 %v10765_v55, %v8898_v54  ;;  %v8354_v1 = vld [vmem:[%s16538_s1 + $0xc48] sm:$0xf]  ;;  %3867 = vmatpush.bf16.msra.mxu1 %v8643_v63  ;;  %v7492_v54 = vld [vmem:[%s16538_s1 + $0x5a8] sm:$0xf0] }
 0x144   :  { %v10629_v2 = vld [vmem:[%s16538_s1 + $0xc64] sm:$0xf0]  ;;  %v10473_v55 = vld [vmem:[%s16538_s1 + $0x78c] sm:$0xf]  ;;  %v7495_v60 = vor.u32 %v10409_v52, %v7492_v54  ;;  %3896 = vmatmul.bf16.vlgmr.msra.gmra.mxu3 %v11437_v19 }
 0x145   :  { %v8610_v3 = vld [vmem:[%s16538_s1 + $0xe48] sm:$0xf]  ;;  %v8355_v11 = vor.u32 %v10629_v2, %v8354_v1  ;;  %3880 = vmatpush.bf16.msra.mxu2 %v8899_v0  ;;  %v7751_v62 = vor.u32 %v10473_v55, %v7748_v56  ;;  %v10337_v63 = vld [vmem:[%s16538_s1 + $0x34c] sm:$0xf]  ;;  %3940 = vmatpush.bf16.msrb.mxu3 %v8039_v53  ;;  %v8007_v2 = vor.u32 %v10537_v57, %v8004_v58  ;;  %v3676_v55 = vpop.f32.mrf.mxu2  ;;  %v3689_v56 = vpop.f32.mrf.mxu3 }
 0x146   :  { %v10693_v6 = vld [vmem:[%s16538_s1 + $0xe64] sm:$0xf0]  ;;  %v7204_v0 = vld [vmem:[%s16538_s1 + $0x368] sm:$0xf0] }
 0x147   :  { %v8866_v7 = vld [vmem:[%s16538_s1 + $0x1048] sm:$0xf]  ;;  %v8611_v14 = vor.u32 %v10693_v6, %v8610_v3  ;;  %3855 = vmatpush.bf16.msra.mxu0 %v8355_v11  ;;  %v10401_v1 = vld [vmem:[%s16538_s1 + $0x54c] sm:$0xf] }
 0x148   :  { %v10757_v8 = vld [vmem:[%s16538_s1 + $0x1064] sm:$0xf0]  ;;  %v7460_v3 = vld [vmem:[%s16538_s1 + $0x568] sm:$0xf0] }
 0x149   :  { %v8322_v12 = vld [vmem:[%s16538_s1 + $0xc08] sm:$0xf]  ;;  %v8867_v15 = vor.u32 %v10757_v8, %v8866_v7  ;;  %3868 = vmatpush.bf16.msra.mxu1 %v8611_v14  ;;  %v10529_v6 = vld [vmem:[%s16538_s1 + $0x94c] sm:$0xf]  ;;  %v7207_v8 = vor.u32 %v10337_v63, %v7204_v0  ;;  %v7463_v9 = vor.u32 %v10401_v1, %v7460_v3  ;;  %3941 = vmatpush.bf16.msrb.mxu3 %v8007_v2 }
 0x14a   :  { %v10621_v13 = vld [vmem:[%s16538_s1 + $0xc24] sm:$0xf0]  ;;  %v7972_v7 = vld [vmem:[%s16538_s1 + $0x968] sm:$0xf0] }
 0x14b   :  { %v8578_v16 = vld [vmem:[%s16538_s1 + $0xe08] sm:$0xf]  ;;  %v8323_v35 = vor.u32 %v10621_v13, %v8322_v12  ;;  %3881 = vmatpush.bf16.msra.mxu2 %v8867_v15  ;;  %v10329_v11 = vld [vmem:[%s16538_s1 + $0x30c] sm:$0xf]  ;;  %v7975_v14 = vor.u32 %v10529_v6, %v7972_v7 }
 0x14c   :  { %v10685_v21 = vld [vmem:[%s16538_s1 + $0xe24] sm:$0xf0]  ;;  %v7172_v12 = vld [vmem:[%s16538_s1 + $0x328] sm:$0xf0] }
 0x14d   :  { %v8834_v23 = vld [vmem:[%s16538_s1 + $0x1008] sm:$0xf]  ;;  %v8579_v40 = vor.u32 %v10685_v21, %v8578_v16  ;;  %3856 = vmatpush.bf16.msra.mxu0 %v8323_v35  ;;  %v10393_v13 = vld [vmem:[%s16538_s1 + $0x50c] sm:$0xf]  ;;  %v7175_v28 = vor.u32 %v10329_v11, %v7172_v12  ;;  %v3663_v35 = vpop.f32.mrf.mxu1  ;;  %3942 = vmatpush.bf16.msrb.mxu3 %v7975_v14 }
 0x14e   :  { %v10749_v26 = vld [vmem:[%s16538_s1 + $0x1024] sm:$0xf0]  ;;  %v7428_v15 = vld [vmem:[%s16538_s1 + $0x528] sm:$0xf0] }
 0x14f   :  { %v8835_v32 = vor.u32 %v10749_v26, %v8834_v23  ;;  %3869 = vmatpush.bf16.msra.mxu1 %v8579_v40  ;;  %v10457_v16 = vld [vmem:[%s16538_s1 + $0x70c] sm:$0xf]  ;;  %v3650_v23 = vpop.f32.mrf.mxu0  ;;  %v610_v26 = vperm.slane %v12271_v33, 1  ;;  %v7431_v29 = vor.u32 %v10393_v13, %v7428_v15 }
 0x150   :  { %3857 = vmatmul.bf16.vlgmr.msra.gmra.mxu0 %v11591_v38  ;;  %v7684_v21 = vld [vmem:[%s16538_s1 + $0x728] sm:$0xf0]  ;;  %v12655_v27 = vadd.f32 %v3650_v23, %v12503_v61  ;;  %v7943_v61 = vor.u32 %v10521_v24, %v7940_v25 }
 0x151   :  { %3882 = vmatpush.bf16.msra.mxu2 %v8835_v32  ;;  %3901 = vmatpush.bf16.msrb.mxu0 %v7271_v47  ;;  %v7687_v30 = vor.u32 %v10457_v16, %v7684_v21  ;;  %v10321_v31 = vld [vmem:[%s16538_s1 + $0x2cc] sm:$0xf]  ;;  %v3664_v43 = vadd.f32 %v3663_v35, %v610_v26 }
 0x152   :  { %3870 = vmatmul.bf16.vlgmr.msra.gmra.mxu1 %v11601_v42  ;;  %v7140_v34 = vld [vmem:[%s16538_s1 + $0x2e8] sm:$0xf0]  ;;  %3943 = vmatpush.bf16.msrb.mxu3 %v7943_v61 }
 0x153   :  { %3914 = vmatpush.bf16.msrb.mxu1 %v7527_v48  ;;  %v10385_v33 = vld [vmem:[%s16538_s1 + $0x4cc] sm:$0xf]  ;;  %v7143_v45 = vor.u32 %v10321_v31, %v7140_v34  ;;  %v3691_v31 = vpop.f32.mrf.mxu3 }
 0x154   :  { %3883 = vmatmul.bf16.vlgmr.msra.gmra.mxu2 %v11789_v17  ;;  %v7396_v36 = vld [vmem:[%s16538_s1 + $0x4e8] sm:$0xf0] }
 0x155   :  { %3927 = vmatpush.bf16.msrb.mxu2 %v7783_v49  ;;  %3902 = vmatpush.bf16.msrb.mxu0 %v7239_v59  ;;  %v10449_v37 = vld [vmem:[%s16538_s1 + $0x6cc] sm:$0xf]  ;;  %v7399_v46 = vor.u32 %v10385_v33, %v7396_v36  ;;  %v3677_v59 = vadd.f32 %v3676_v55, %v3664_v43  ;;  %v3665_v5 = vpop.f32.mrf.mxu1 }
 0x156   :  { %v7652_v39 = vld [vmem:[%s16538_s1 + $0x6e8] sm:$0xf0] }
 0x157   :  { %3915 = vmatpush.bf16.msrb.mxu1 %v7495_v60  ;;  %v10513_v40 = vld [vmem:[%s16538_s1 + $0x8cc] sm:$0xf]  ;;  %v7655_v47 = vor.u32 %v10449_v37, %v7652_v39  ;;  %v3652_v60 = vpop.f32.mrf.mxu0  ;;  %v12714_v4 = vadd.f32 %v3689_v56, %v3677_v59 }
 0x158   :  { %v7908_v32 = vld [vmem:[%s16538_s1 + $0x8e8] sm:$0xf0] }
 0x159   :  { %3928 = vmatpush.bf16.msrb.mxu2 %v7751_v62  ;;  %3903 = vmatpush.bf16.msrb.mxu0 %v7207_v8  ;;  %v10313_v48 = vld [vmem:[%s16538_s1 + $0x28c] sm:$0xf]  ;;  %v7911_v51 = vor.u32 %v10513_v40, %v7908_v32 }
 0x15a   :  { %v7108_v49 = vld [vmem:[%s16538_s1 + $0x2a8] sm:$0xf0] }
 0x15b   :  { %3916 = vmatpush.bf16.msrb.mxu1 %v7463_v9  ;;  %v10377_v50 = vld [vmem:[%s16538_s1 + $0x48c] sm:$0xf]  ;;  %v7111_v62 = vor.u32 %v10313_v48, %v7108_v49  ;;  %3944 = vmatpush.bf16.msrb.mxu3 %v7911_v51 }
 0x15c   :  { %v7364_v52 = vld [vmem:[%s16538_s1 + $0x4a8] sm:$0xf0] }
 0x15d   :  { %3929 = vmatpush.bf16.msrb.mxu2 %v7719_v10  ;;  %3904 = vmatpush.bf16.msrb.mxu0 %v7175_v28  ;;  %v10441_v53 = vld [vmem:[%s16538_s1 + $0x68c] sm:$0xf]  ;;  %v7367_v63 = vor.u32 %v10377_v50, %v7364_v52 }
 0x15e   :  { %v7620_v54 = vld [vmem:[%s16538_s1 + $0x6a8] sm:$0xf0] }
 0x15f   :  { %3917 = vmatpush.bf16.msrb.mxu1 %v7431_v29  ;;  %v10505_v57 = vld [vmem:[%s16538_s1 + $0x88c] sm:$0xf]  ;;  %v7623_v0 = vor.u32 %v10441_v53, %v7620_v54 }
 0x160   :  { %v7876_v58 = vld [vmem:[%s16538_s1 + $0x8a8] sm:$0xf0] }
 0x161   :  { %3930 = vmatpush.bf16.msrb.mxu2 %v7687_v30  ;;  %3905 = vmatpush.bf16.msrb.mxu0 %v7143_v45  ;;  %v10305_v1 = vld [vmem:[%s16538_s1 + $0x24c] sm:$0xf]  ;;  %v7879_v6 = vor.u32 %v10505_v57, %v7876_v58  ;;  %v3678_v30 = vpop.f32.mrf.mxu2 }
 0x162   :  { %v7076_v2 = vld [vmem:[%s16538_s1 + $0x268] sm:$0xf0] }
 0x163   :  { %3918 = vmatpush.bf16.msrb.mxu1 %v7399_v46  ;;  %v10369_v3 = vld [vmem:[%s16538_s1 + $0x44c] sm:$0xf]  ;;  %v7079_v12 = vor.u32 %v10305_v1, %v7076_v2  ;;  %3945 = vmatpush.bf16.msrb.mxu3 %v7879_v6 }
 0x164   :  { %v7332_v7 = vld [vmem:[%s16538_s1 + $0x468] sm:$0xf0] }
 0x165   :  { %3931 = vmatpush.bf16.msrb.mxu2 %v7655_v47  ;;  %v10433_v8 = vld [vmem:[%s16538_s1 + $0x64c] sm:$0xf]  ;;  %3906 = vmatpush.bf16.msrb.mxu0 %v7111_v62  ;;  %v7335_v15 = vor.u32 %v10369_v3, %v7332_v7 }
 0x166   :  { %v7588_v9 = vld [vmem:[%s16538_s1 + $0x668] sm:$0xf0] }
 0x167   :  { %v10497_v10 = vld [vmem:[%s16538_s1 + $0x84c] sm:$0xf]  ;;  %3919 = vmatpush.bf16.msrb.mxu1 %v7367_v63  ;;  %v7591_v16 = vor.u32 %v10433_v8, %v7588_v9 }
 0x168   :  { %v7844_v11 = vld [vmem:[%s16538_s1 + $0x868] sm:$0xf0] }
 0x169   :  { %v10297_v13 = vld [vmem:[%s16538_s1 + $0x20c] sm:$0xf]  ;;  %3932 = vmatpush.bf16.msrb.mxu2 %v7623_v0  ;;  %v7847_v25 = vor.u32 %v10497_v10, %v7844_v11  ;;  %3907 = vmatpush.bf16.msrb.mxu0 %v7079_v12 }
 0x16a   :  { %v7044_v14 = vld [vmem:[%s16538_s1 + $0x228] sm:$0xf0] }
 0x16b   :  { %v10361_v21 = vld [vmem:[%s16538_s1 + $0x40c] sm:$0xf]  ;;  %v7047_v61 = vor.u32 %v10297_v13, %v7044_v14  ;;  %3920 = vmatpush.bf16.msrb.mxu1 %v7335_v15  ;;  %3946 = vmatpush.bf16.msrb.mxu3 %v7847_v25 }
 0x16c   :  { %v7300_v23 = vld [vmem:[%s16538_s1 + $0x428] sm:$0xf0] }
 0x16d   :  { %v10425_v24 = vld [vmem:[%s16538_s1 + $0x60c] sm:$0xf]  ;;  %3933 = vmatpush.bf16.msrb.mxu2 %v7591_v16  ;;  %v7303_v40 = vor.u32 %v10361_v21, %v7300_v23  ;;  %3908 = vmatpush.bf16.msrb.mxu0 %v7047_v61  ;;  %v3715_v61 = vpop.f32.mrf.mxu1 }
 0x16e   :  { %v7556_v26 = vld [vmem:[%s16538_s1 + $0x628] sm:$0xf0] }
 0x16f   :  { %v10489_v28 = vld [vmem:[%s16538_s1 + $0x80c] sm:$0xf]  ;;  %v7559_v32 = vor.u32 %v10425_v24, %v7556_v26  ;;  %3921 = vmatpush.bf16.msrb.mxu1 %v7303_v40 }
 0x170   :  { %v7812_v29 = vld [vmem:[%s16538_s1 + $0x828] sm:$0xf0]  ;;  %3909 = vmatmul.bf16.vlgmr.msrb.gmra.mxu0 %v11441_v22 }
 0x171   :  { %v10609_v34 = vld [vmem:[%s16538_s1 + $0xbcc] sm:$0xf]  ;;  %v7815_v46 = vor.u32 %v10489_v28, %v7812_v29  ;;  %3934 = vmatpush.bf16.msrb.mxu2 %v7559_v32  ;;  %v3702_v28 = vpop.f32.mrf.mxu0 }
 0x172   :  { %v8292_v33 = vld [vmem:[%s16538_s1 + $0xbe8] sm:$0xf0]  ;;  %3922 = vmatmul.bf16.vlgmr.msrb.gmra.mxu1 %v11435_v18 }
 0x173   :  { %v10673_v35 = vld [vmem:[%s16538_s1 + $0xdcc] sm:$0xf]  ;;  %v8295_v47 = vor.u32 %v10609_v34, %v8292_v33  ;;  %3947 = vmatpush.bf16.msrb.mxu3 %v7815_v46 }
 0x174   :  { %v8548_v36 = vld [vmem:[%s16538_s1 + $0xde8] sm:$0xf0]  ;;  %3935 = vmatmul.bf16.vlgmr.msrb.gmra.mxu2 %v11439_v20 }
 0x175   :  { %v10737_v37 = vld [vmem:[%s16538_s1 + $0xfcc] sm:$0xf]  ;;  %v8551_v48 = vor.u32 %v10673_v35, %v8548_v36  ;;  %3953 = vmatpush.bf16.msra.mxu0 %v8295_v47  ;;  %v3703_v35 = vadd.f32 %v3702_v28, %v12714_v4 }
 0x176   :  { %v8804_v39 = vld [vmem:[%s16538_s1 + $0xfe8] sm:$0xf0]  ;;  %3948 = vmatmul.bf16.vlgmr.msrb.gmra.mxu3 %v11599_v41 }
 0x177   :  { %v10801_v43 = vld [vmem:[%s16538_s1 + $0x11cc] sm:$0xf]  ;;  %v8807_v49 = vor.u32 %v10737_v37, %v8804_v39  ;;  %3966 = vmatpush.bf16.msra.mxu1 %v8551_v48 }
 0x178   :  { %v9060_v45 = vld [vmem:[%s16538_s1 + $0x11e8] sm:$0xf0] }
 0x179   :  { %v10601_v50 = vld [vmem:[%s16538_s1 + $0xb8c] sm:$0xf]  ;;  %v9063_v53 = vor.u32 %v10801_v43, %v9060_v45  ;;  %3979 = vmatpush.bf16.msra.mxu2 %v8807_v49  ;;  %v3716_v43 = vadd.f32 %v3715_v61, %v3703_v35  ;;  %v10294_v35 = vld [vmem:[%s16538_s1 + $0x1ec] sm:$0xf0] }
 0x17a   :  { %v8260_v51 = vld [vmem:[%s16538_s1 + $0xba8] sm:$0xf0]  ;;  %v7274_v61 = vld [vmem:[%s16538_s1 + $0x3d0] sm:$0xf] }
 0x17b   :  { %v10665_v52 = vld [vmem:[%s16538_s1 + $0xd8c] sm:$0xf]  ;;  %v8263_v59 = vor.u32 %v10601_v50, %v8260_v51  ;;  %3992 = vmatpush.bf16.msra.mxu3 %v9063_v53  ;;  %v3728_v51 = vpop.f32.mrf.mxu2 }
 0x17c   :  { %v8516_v54 = vld [vmem:[%s16538_s1 + $0xda8] sm:$0xf0] }
 0x17d   :  { %v10729_v55 = vld [vmem:[%s16538_s1 + $0xf8c] sm:$0xf]  ;;  %v8519_v60 = vor.u32 %v10665_v52, %v8516_v54  ;;  %3954 = vmatpush.bf16.msra.mxu0 %v8263_v59 }
 0x17e   :  { %v8772_v56 = vld [vmem:[%s16538_s1 + $0xfa8] sm:$0xf0] }
 0x17f   :  { %v10793_v57 = vld [vmem:[%s16538_s1 + $0x118c] sm:$0xf]  ;;  %v8775_v62 = vor.u32 %v10729_v55, %v8772_v56  ;;  %3967 = vmatpush.bf16.msra.mxu1 %v8519_v60  ;;  %v3729_v56 = vadd.f32 %v3728_v51, %v3716_v43  ;;  %v7786_v43 = vld [vmem:[%s16538_s1 + $0x7d0] sm:$0xf] }
 0x180   :  { %v9028_v58 = vld [vmem:[%s16538_s1 + $0x11a8] sm:$0xf0]  ;;  %v10286_v51 = vld [vmem:[%s16538_s1 + $0x1ac] sm:$0xf0] }
 0x181   :  { %v10593_v63 = vld [vmem:[%s16538_s1 + $0xb4c] sm:$0xf]  ;;  %v9031_v2 = vor.u32 %v10793_v57, %v9028_v58  ;;  %3980 = vmatpush.bf16.msra.mxu2 %v8775_v62  ;;  %v3741_v57 = vpop.f32.mrf.mxu3 }
 0x182   :  { %v8228_v0 = vld [vmem:[%s16538_s1 + $0xb68] sm:$0xf0]  ;;  %v12904_v62 = vadd.f32 %v3741_v57, %v3729_v56  ;;  %v10414_v56 = vld [vmem:[%s16538_s1 + $0x5ac] sm:$0xf0] }
 0x183   :  { %v10657_v1 = vld [vmem:[%s16538_s1 + $0xd4c] sm:$0xf]  ;;  %v8231_v9 = vor.u32 %v10593_v63, %v8228_v0  ;;  %3993 = vmatpush.bf16.msra.mxu3 %v9031_v2  ;;  %v3704_v63 = vpop.f32.mrf.mxu0  ;;  %v7754_v57 = vld [vmem:[%s16538_s1 + $0x790] sm:$0xf] }
 0x184   :  { %v8484_v3 = vld [vmem:[%s16538_s1 + $0xd68] sm:$0xf0] }
 0x185   :  { %v10721_v5 = vld [vmem:[%s16538_s1 + $0xf4c] sm:$0xf]  ;;  %v8487_v10 = vor.u32 %v10657_v1, %v8484_v3  ;;  %3955 = vmatpush.bf16.msra.mxu0 %v8231_v9 }
 0x186   :  { %v8740_v6 = vld [vmem:[%s16538_s1 + $0xf68] sm:$0xf0] }
 0x187   :  { %v10785_v7 = vld [vmem:[%s16538_s1 + $0x114c] sm:$0xf]  ;;  %v8743_v11 = vor.u32 %v10721_v5, %v8740_v6  ;;  %3968 = vmatpush.bf16.msra.mxu1 %v8487_v10  ;;  %v3717_v6 = vpop.f32.mrf.mxu1 }
 0x188   :  { %v8996_v8 = vld [vmem:[%s16538_s1 + $0x1168] sm:$0xf0]  ;;  %v7466_v6 = vld [vmem:[%s16538_s1 + $0x550] sm:$0xf] }
 0x189   :  { %v10585_v12 = vld [vmem:[%s16538_s1 + $0xb0c] sm:$0xf]  ;;  %v8999_v15 = vor.u32 %v10785_v7, %v8996_v8  ;;  %3981 = vmatpush.bf16.msra.mxu2 %v8743_v11 }
 0x18a   :  { %v8196_v13 = vld [vmem:[%s16538_s1 + $0xb28] sm:$0xf0] }
 0x18b   :  { %v10649_v14 = vld [vmem:[%s16538_s1 + $0xd0c] sm:$0xf]  ;;  %v8199_v26 = vor.u32 %v10585_v12, %v8196_v13  ;;  %3994 = vmatpush.bf16.msra.mxu3 %v8999_v15 }
 0x18c   :  { %v8452_v16 = vld [vmem:[%s16538_s1 + $0xd28] sm:$0xf0] }
 0x18d   :  { %v10713_v21 = vld [vmem:[%s16538_s1 + $0xf0c] sm:$0xf]  ;;  %v8455_v29 = vor.u32 %v10649_v14, %v8452_v16  ;;  %3956 = vmatpush.bf16.msra.mxu0 %v8199_v26  ;;  %v3730_v26 = vpop.f32.mrf.mxu2 }
 0x18e   :  { %v8708_v23 = vld [vmem:[%s16538_s1 + $0xf28] sm:$0xf0]  ;;  %v7690_v26 = vld [vmem:[%s16538_s1 + $0x710] sm:$0xf] }
 0x18f   :  { %v10777_v24 = vld [vmem:[%s16538_s1 + $0x110c] sm:$0xf]  ;;  %v8711_v30 = vor.u32 %v10713_v21, %v8708_v23  ;;  %3969 = vmatpush.bf16.msra.mxu1 %v8455_v29 }
 0x190   :  { %v8964_v25 = vld [vmem:[%s16538_s1 + $0x1128] sm:$0xf0] }
 0x191   :  { %v10577_v31 = vld [vmem:[%s16538_s1 + $0xacc] sm:$0xf]  ;;  %v8967_v36 = vor.u32 %v10777_v24, %v8964_v25  ;;  %3982 = vmatpush.bf16.msra.mxu2 %v8711_v30 }
 0x192   :  { %v8164_v34 = vld [vmem:[%s16538_s1 + $0xae8] sm:$0xf0] }
 0x193   :  { %v10641_v33 = vld [vmem:[%s16538_s1 + $0xccc] sm:$0xf]  ;;  %v8167_v45 = vor.u32 %v10577_v31, %v8164_v34  ;;  %3995 = vmatpush.bf16.msra.mxu3 %v8967_v36  ;;  %v3743_v34 = vpop.f32.mrf.mxu3 }
 0x194   :  { %v8420_v37 = vld [vmem:[%s16538_s1 + $0xce8] sm:$0xf0] }
 0x195   :  { %v10705_v39 = vld [vmem:[%s16538_s1 + $0xecc] sm:$0xf]  ;;  %v8423_v46 = vor.u32 %v10641_v33, %v8420_v37  ;;  %3957 = vmatpush.bf16.msra.mxu0 %v8167_v45  ;;  %v7018_v33 = vld [vmem:[%s16538_s1 + $0x1d0] sm:$0xf] }
 0x196   :  { %v8676_v40 = vld [vmem:[%s16538_s1 + $0xee8] sm:$0xf0]  ;;  %v10358_v37 = vld [vmem:[%s16538_s1 + $0x3ec] sm:$0xf0] }
 0x197   :  { %v10769_v32 = vld [vmem:[%s16538_s1 + $0x10cc] sm:$0xf]  ;;  %v8679_v47 = vor.u32 %v10705_v39, %v8676_v40  ;;  %3970 = vmatpush.bf16.msra.mxu1 %v8423_v46  ;;  %v7530_v39 = vld [vmem:[%s16538_s1 + $0x5d0] sm:$0xf] }
 0x198   :  { %v8932_v4 = vld [vmem:[%s16538_s1 + $0x10e8] sm:$0xf0]  ;;  %v10422_v40 = vld [vmem:[%s16538_s1 + $0x5ec] sm:$0xf0] }
 0x199   :  { %v10569_v48 = vld [vmem:[%s16538_s1 + $0xa8c] sm:$0xf]  ;;  %v8935_v52 = vor.u32 %v10769_v32, %v8932_v4  ;;  %3983 = vmatpush.bf16.msra.mxu2 %v8679_v47  ;;  %v10486_v45 = vld [vmem:[%s16538_s1 + $0x7ec] sm:$0xf0]  ;;  %v7019_v47 = vor.u32 %v10294_v35, %v7018_v33 }
 0x19a   :  { %v8132_v49 = vld [vmem:[%s16538_s1 + $0xaa8] sm:$0xf0]  ;;  %v6890_v35 = vld [vmem:[%s16538_s1 + $0xd0] sm:$0xf] }
 0x19b   :  { %v10633_v50 = vld [vmem:[%s16538_s1 + $0xc8c] sm:$0xf]  ;;  %v8135_v60 = vor.u32 %v10569_v48, %v8132_v49  ;;  %3996 = vmatpush.bf16.msra.mxu3 %v8935_v52  ;;  %v7275_v48 = vor.u32 %v10358_v37, %v7274_v61  ;;  %v7531_v49 = vor.u32 %v10422_v40, %v7530_v39  ;;  %v7242_v52 = vld [vmem:[%s16538_s1 + $0x390] sm:$0xf] }
 0x19c   :  { %v8388_v53 = vld [vmem:[%s16538_s1 + $0xca8] sm:$0xf0]  ;;  %v10262_v61 = vld [vmem:[%s16538_s1 + $0xec] sm:$0xf0] }
 0x19d   :  { %v10697_v54 = vld [vmem:[%s16538_s1 + $0xe8c] sm:$0xf]  ;;  %v8391_v0 = vor.u32 %v10633_v50, %v8388_v53  ;;  %3958 = vmatpush.bf16.msra.mxu0 %v8135_v60  ;;  %v6986_v50 = vld [vmem:[%s16538_s1 + $0x190] sm:$0xf]  ;;  %v7787_v53 = vor.u32 %v10486_v45, %v7786_v43  ;;  %v13084_v45 = vld [vmem:[%s16540_s2] sm:$0xff] }
 0x19e   :  { %v8644_v55 = vld [vmem:[%s16538_s1 + $0xea8] sm:$0xf0]  ;;  %v10326_v39 = vld [vmem:[%s16538_s1 + $0x2ec] sm:$0xf0] }
 0x19f   :  { %v10761_v58 = vld [vmem:[%s16538_s1 + $0x108c] sm:$0xf]  ;;  %v8647_v1 = vor.u32 %v10697_v54, %v8644_v55  ;;  %3971 = vmatpush.bf16.msra.mxu1 %v8391_v0  ;;  %v10350_v54 = vld [vmem:[%s16538_s1 + $0x3ac] sm:$0xf0] }
 0x1a0   :  { %v8900_v59 = vld [vmem:[%s16538_s1 + $0x10a8] sm:$0xf0]  ;;  %v7498_v55 = vld [vmem:[%s16538_s1 + $0x590] sm:$0xf]  ;;  %v7243_v60 = vor.u32 %v10350_v54, %v7242_v52 }
 0x1a1   :  { %v10561_v2 = vld [vmem:[%s16538_s1 + $0xa4c] sm:$0xf]  ;;  %v8903_v7 = vor.u32 %v10761_v58, %v8900_v59  ;;  %3984 = vmatpush.bf16.msra.mxu2 %v8647_v1  ;;  %v10478_v58 = vld [vmem:[%s16538_s1 + $0x7ac] sm:$0xf0]  ;;  %v6987_v59 = vor.u32 %v10286_v51, %v6986_v50  ;;  %v7499_v63 = vor.u32 %v10414_v56, %v7498_v55 }
 0x1a2   :  { %v8100_v3 = vld [vmem:[%s16538_s1 + $0xa68] sm:$0xf0]  ;;  %v6954_v0 = vld [vmem:[%s16538_s1 + $0x150] sm:$0xf] }
 0x1a3   :  { %v10625_v5 = vld [vmem:[%s16538_s1 + $0xc4c] sm:$0xf]  ;;  %v8103_v13 = vor.u32 %v10561_v2, %v8100_v3  ;;  %3997 = vmatpush.bf16.msra.mxu3 %v8903_v7  ;;  %v10278_v1 = vld [vmem:[%s16538_s1 + $0x16c] sm:$0xf0]  ;;  %v7755_v3 = vor.u32 %v10478_v58, %v7754_v57  ;;  %v3780_v57 = vpop.f32.mrf.mxu2 }
 0x1a4   :  { %v8356_v8 = vld [vmem:[%s16538_s1 + $0xc68] sm:$0xf0]  ;;  %v7210_v2 = vld [vmem:[%s16538_s1 + $0x350] sm:$0xf] }
 0x1a5   :  { %v10689_v9 = vld [vmem:[%s16538_s1 + $0xe4c] sm:$0xf]  ;;  %v8359_v16 = vor.u32 %v10625_v5, %v8356_v8  ;;  %3959 = vmatpush.bf16.msra.mxu0 %v8103_v13  ;;  %v10342_v5 = vld [vmem:[%s16538_s1 + $0x36c] sm:$0xf0] }
 0x1a6   :  { %v8612_v10 = vld [vmem:[%s16538_s1 + $0xe68] sm:$0xf0]  ;;  %v10406_v7 = vld [vmem:[%s16538_s1 + $0x56c] sm:$0xf0] }
 0x1a7   :  { %v10753_v11 = vld [vmem:[%s16538_s1 + $0x104c] sm:$0xf]  ;;  %v8615_v21 = vor.u32 %v10689_v9, %v8612_v10  ;;  %3972 = vmatpush.bf16.msra.mxu1 %v8359_v16  ;;  %v7722_v8 = vld [vmem:[%s16538_s1 + $0x750] sm:$0xf]  ;;  %v6955_v10 = vor.u32 %v10278_v1, %v6954_v0 }
 0x1a8   :  { %v8868_v12 = vld [vmem:[%s16538_s1 + $0x1068] sm:$0xf0]  ;;  %v10470_v9 = vld [vmem:[%s16538_s1 + $0x76c] sm:$0xf0] }
 0x1a9   :  { %v10553_v14 = vld [vmem:[%s16538_s1 + $0xa0c] sm:$0xf]  ;;  %v8871_v28 = vor.u32 %v10753_v11, %v8868_v12  ;;  %3985 = vmatpush.bf16.msra.mxu2 %v8615_v21  ;;  %v7211_v11 = vor.u32 %v10342_v5, %v7210_v2  ;;  %v7467_v12 = vor.u32 %v10406_v7, %v7466_v6  ;;  %v6922_v13 = vld [vmem:[%s16538_s1 + $0x110] sm:$0xf]  ;;  %v7723_v16 = vor.u32 %v10470_v9, %v7722_v8 }
 0x1aa   :  { %v8068_v15 = vld [vmem:[%s16538_s1 + $0xa28] sm:$0xf0]  ;;  %v10334_v21 = vld [vmem:[%s16538_s1 + $0x32c] sm:$0xf0] }
 0x1ab   :  { %v10617_v23 = vld [vmem:[%s16538_s1 + $0xc0c] sm:$0xf]  ;;  %v8071_v36 = vor.u32 %v10553_v14, %v8068_v15  ;;  %3998 = vmatpush.bf16.msra.mxu3 %v8871_v28  ;;  %v10270_v14 = vld [vmem:[%s16538_s1 + $0x12c] sm:$0xf0] }
 0x1ac   :  { %v8324_v24 = vld [vmem:[%s16538_s1 + $0xc28] sm:$0xf0]  ;;  %v7178_v15 = vld [vmem:[%s16538_s1 + $0x310] sm:$0xf] }
 0x1ad   :  { %v10681_v25 = vld [vmem:[%s16538_s1 + $0xe0c] sm:$0xf]  ;;  %v8327_v32 = vor.u32 %v10617_v23, %v8324_v24  ;;  %3960 = vmatpush.bf16.msra.mxu0 %v8071_v36  ;;  %v7434_v23 = vld [vmem:[%s16538_s1 + $0x510] sm:$0xf]  ;;  %v7179_v34 = vor.u32 %v10334_v21, %v7178_v15 }
 0x1ae   :  { %v8580_v29 = vld [vmem:[%s16538_s1 + $0xe28] sm:$0xf0]  ;;  %v10398_v24 = vld [vmem:[%s16538_s1 + $0x52c] sm:$0xf0] }
 0x1af   :  { %v10745_v30 = vld [vmem:[%s16538_s1 + $0x100c] sm:$0xf]  ;;  %v8583_v4 = vor.u32 %v10681_v25, %v8580_v29  ;;  %3973 = vmatpush.bf16.msra.mxu1 %v8327_v32  ;;  %v3754_v25 = vpop.f32.mrf.mxu0  ;;  %v10462_v28 = vld [vmem:[%s16538_s1 + $0x72c] sm:$0xf0]  ;;  %v7435_v33 = vor.u32 %v10398_v24, %v7434_v23 }
 0x1b0   :  { %v8836_v31 = vld [vmem:[%s16538_s1 + $0x1028] sm:$0xf0]  ;;  %3961 = vmatmul.bf16.vlgmr.msra.gmra.mxu0 %v11603_v44  ;;  %v3755_v29 = vadd.f32 %v3754_v25, %v12904_v62  ;;  %v7146_v36 = vld [vmem:[%s16538_s1 + $0x2d0] sm:$0xf]  ;;  %v7691_v62 = vor.u32 %v10462_v28, %v7690_v26 }
 0x1b1   :  { %v8839_v46 = vor.u32 %v10745_v30, %v8836_v31  ;;  %3986 = vmatpush.bf16.msra.mxu2 %v8583_v4  ;;  %4005 = vmatpush.bf16.msrb.mxu0 %v7019_v47  ;;  %v6923_v30 = vor.u32 %v10270_v14, %v6922_v13  ;;  %v3767_v31 = vpop.f32.mrf.mxu1  ;;  %v7402_v40 = vld [vmem:[%s16538_s1 + $0x4d0] sm:$0xf]  ;;  %v6891_v47 = vor.u32 %v10262_v61, %v6890_v35  ;;  %v3782_v35 = vpop.f32.mrf.mxu2 }
 0x1b2   :  { %3974 = vmatmul.bf16.vlgmr.msra.gmra.mxu1 %v11591_v38  ;;  %v13064_v37 = vadd.f32 %v3767_v31, %v3755_v29  ;;  %v10390_v32 = vld [vmem:[%s16538_s1 + $0x4ec] sm:$0xf0] }
 0x1b3   :  { %3999 = vmatpush.bf16.msra.mxu3 %v8839_v46  ;;  %4018 = vmatpush.bf16.msrb.mxu1 %v7275_v48  ;;  %v7658_v4 = vld [vmem:[%s16538_s1 + $0x6d0] sm:$0xf]  ;;  %v611_v46 = vperm.slane %v13084_v45, 2  ;;  %v7147_v48 = vor.u32 %v10326_v39, %v7146_v36 }
 0x1b4   :  { %3987 = vmatmul.bf16.vlgmr.msra.gmra.mxu2 %v11601_v42  ;;  %v10454_v43 = vld [vmem:[%s16538_s1 + $0x6ec] sm:$0xf0] }
 0x1b5   :  { %4031 = vmatpush.bf16.msrb.mxu2 %v7531_v49  ;;  %4006 = vmatpush.bf16.msrb.mxu0 %v6987_v59  ;;  %v7403_v49 = vor.u32 %v10390_v32, %v7402_v40  ;;  %v6858_v50 = vld [vmem:[%s16538_s1 + $0x90] sm:$0xf] }
 0x1b6   :  { %4000 = vmatmul.bf16.vlgmr.msra.gmra.mxu3 %v11789_v17  ;;  %v10254_v51 = vld [vmem:[%s16538_s1 + $0xac] sm:$0xf0] }
 0x1b7   :  { %4044 = vmatpush.bf16.msrb.mxu3 %v7787_v53  ;;  %4019 = vmatpush.bf16.msrb.mxu1 %v7243_v60  ;;  %v7114_v52 = vld [vmem:[%s16538_s1 + $0x290] sm:$0xf]  ;;  %v7659_v53 = vor.u32 %v10454_v43, %v7658_v4  ;;  %v3781_v60 = vadd.f32 %v3780_v57, %v611_v46  ;;  %v3756_v0 = vpop.f32.mrf.mxu0  ;;  %v6859_v1 = vor.u32 %v10254_v51, %v6858_v50 }
 0x1b8   :  { %v10318_v54 = vld [vmem:[%s16538_s1 + $0x2ac] sm:$0xf0] }
 0x1b9   :  { %4032 = vmatpush.bf16.msrb.mxu2 %v7499_v63  ;;  %4007 = vmatpush.bf16.msrb.mxu0 %v6955_v10  ;;  %v7370_v55 = vld [vmem:[%s16538_s1 + $0x490] sm:$0xf]  ;;  %v3793_v63 = vpop.f32.mrf.mxu3  ;;  %v3769_v2 = vpop.f32.mrf.mxu1 }
 0x1ba   :  { %v10382_v56 = vld [vmem:[%s16538_s1 + $0x4ac] sm:$0xf0]  ;;  %v13120_v9 = vadd.f32 %v3793_v63, %v3781_v60 }
 0x1bb   :  { %4045 = vmatpush.bf16.msrb.mxu3 %v7755_v3  ;;  %4020 = vmatpush.bf16.msrb.mxu1 %v7211_v11  ;;  %v7626_v58 = vld [vmem:[%s16538_s1 + $0x690] sm:$0xf]  ;;  %v7115_v3 = vor.u32 %v10318_v54, %v7114_v52  ;;  %v7371_v5 = vor.u32 %v10382_v56, %v7370_v55 }
 0x1bc   :  { %v10446_v59 = vld [vmem:[%s16538_s1 + $0x6ac] sm:$0xf0] }
 0x1bd   :  { %4033 = vmatpush.bf16.msrb.mxu2 %v7467_v12  ;;  %4008 = vmatpush.bf16.msrb.mxu0 %v6923_v30  ;;  %v6826_v6 = vld [vmem:[%s16538_s1 + $0x50] sm:$0xf]  ;;  %v7627_v10 = vor.u32 %v10446_v59, %v7626_v58 }
 0x1be   :  { %v10246_v7 = vld [vmem:[%s16538_s1 + $0x6c] sm:$0xf0] }
 0x1bf   :  { %4046 = vmatpush.bf16.msrb.mxu3 %v7723_v16  ;;  %4021 = vmatpush.bf16.msrb.mxu1 %v7179_v34  ;;  %v7082_v8 = vld [vmem:[%s16538_s1 + $0x250] sm:$0xf]  ;;  %v6827_v16 = vor.u32 %v10246_v7, %v6826_v6  ;;  %v3806_v35 = vpop.f32.mrf.mxu0 }
 0x1c0   :  { %v10310_v11 = vld [vmem:[%s16538_s1 + $0x26c] sm:$0xf0] }
 0x1c1   :  { %4034 = vmatpush.bf16.msrb.mxu2 %v7435_v33  ;;  %4009 = vmatpush.bf16.msrb.mxu0 %v6891_v47  ;;  %v7338_v12 = vld [vmem:[%s16538_s1 + $0x450] sm:$0xf]  ;;  %v7083_v24 = vor.u32 %v10310_v11, %v7082_v8  ;;  %v3795_v39 = vpop.f32.mrf.mxu3 }
 0x1c2   :  { %v10374_v13 = vld [vmem:[%s16538_s1 + $0x46c] sm:$0xf0] }
 0x1c3   :  { %4047 = vmatpush.bf16.msrb.mxu3 %v7691_v62  ;;  %4022 = vmatpush.bf16.msrb.mxu1 %v7147_v48  ;;  %v7594_v14 = vld [vmem:[%s16538_s1 + $0x650] sm:$0xf]  ;;  %v7339_v25 = vor.u32 %v10374_v13, %v7338_v12 }
 0x1c4   :  { %v10438_v15 = vld [vmem:[%s16538_s1 + $0x66c] sm:$0xf0] }
 0x1c5   :  { %4035 = vmatpush.bf16.msrb.mxu2 %v7403_v49  ;;  %4010 = vmatpush.bf16.msrb.mxu0 %v6859_v1  ;;  %v6794_v21 = vld [vmem:[%s16538_s1 + $0x10] sm:$0xf]  ;;  %v7595_v30 = vor.u32 %v10438_v15, %v7594_v14 }
 0x1c6   :  { %v10238_v23 = vld [vmem:[%s16538_s1 + $0x2c] sm:$0xf0] }
 0x1c7   :  { %4048 = vmatpush.bf16.msrb.mxu3 %v7659_v53  ;;  %4023 = vmatpush.bf16.msrb.mxu1 %v7115_v3  ;;  %v7050_v26 = vld [vmem:[%s16538_s1 + $0x210] sm:$0xf]  ;;  %v6795_v40 = vor.u32 %v10238_v23, %v6794_v21 }
 0x1c8   :  { %v10302_v28 = vld [vmem:[%s16538_s1 + $0x22c] sm:$0xf0] }
 0x1c9   :  { %4036 = vmatpush.bf16.msrb.mxu2 %v7371_v5  ;;  %v7306_v29 = vld [vmem:[%s16538_s1 + $0x410] sm:$0xf]  ;;  %4011 = vmatpush.bf16.msrb.mxu0 %v6827_v16  ;;  %v7051_v46 = vor.u32 %v10302_v28, %v7050_v26 }
 0x1ca   :  { %v10366_v31 = vld [vmem:[%s16538_s1 + $0x42c] sm:$0xf0] }
 0x1cb   :  { %4049 = vmatpush.bf16.msrb.mxu3 %v7627_v10  ;;  %v7562_v34 = vld [vmem:[%s16538_s1 + $0x610] sm:$0xf]  ;;  %4024 = vmatpush.bf16.msrb.mxu1 %v7083_v24  ;;  %v7307_v47 = vor.u32 %v10366_v31, %v7306_v29 }
 0x1cc   :  { %v10430_v33 = vld [vmem:[%s16538_s1 + $0x62c] sm:$0xf0] }
 0x1cd   :  { %v8042_v61 = vld [vmem:[%s16538_s1 + $0x9d0] sm:$0xf]  ;;  %4037 = vmatpush.bf16.msrb.mxu2 %v7339_v25  ;;  %v7563_v50 = vor.u32 %v10430_v33, %v7562_v34  ;;  %4012 = vmatpush.bf16.msrb.mxu0 %v6795_v40 }
 0x1ce   :  { %v10550_v36 = vld [vmem:[%s16538_s1 + $0x9ec] sm:$0xf0] }
 0x1cf   :  { %v8298_v62 = vld [vmem:[%s16538_s1 + $0xbd0] sm:$0xf]  ;;  %4050 = vmatpush.bf16.msrb.mxu3 %v7595_v30  ;;  %v8043_v51 = vor.u32 %v10550_v36, %v8042_v61  ;;  %4025 = vmatpush.bf16.msrb.mxu1 %v7051_v46 }
 0x1d0   :  { %v10614_v32 = vld [vmem:[%s16538_s1 + $0xbec] sm:$0xf0]  ;;  %4013 = vmatmul.bf16.vlgmr.msrb.gmra.mxu0 %v11437_v19 }
 0x1d1   :  { %v8554_v4 = vld [vmem:[%s16538_s1 + $0xdd0] sm:$0xf]  ;;  %v8299_v52 = vor.u32 %v10614_v32, %v8298_v62  ;;  %4038 = vmatpush.bf16.msrb.mxu2 %v7307_v47  ;;  %4057 = vmatpush.bf16.msra.mxu0 %v8043_v51  ;;  %v3807_v32 = vadd.f32 %v3806_v35, %v13120_v9 }
 0x1d2   :  { %v10678_v43 = vld [vmem:[%s16538_s1 + $0xdec] sm:$0xf0]  ;;  %4026 = vmatmul.bf16.vlgmr.msrb.gmra.mxu1 %v11441_v22 }
 0x1d3   :  { %v8810_v48 = vld [vmem:[%s16538_s1 + $0xfd0] sm:$0xf]  ;;  %v8555_v53 = vor.u32 %v10678_v43, %v8554_v4  ;;  %4051 = vmatpush.bf16.msrb.mxu3 %v7563_v50  ;;  %4070 = vmatpush.bf16.msra.mxu1 %v8299_v52  ;;  %v3819_v4 = vpop.f32.mrf.mxu1 }
 0x1d4   :  { %v10742_v49 = vld [vmem:[%s16538_s1 + $0xfec] sm:$0xf0]  ;;  %4039 = vmatmul.bf16.vlgmr.msrb.gmra.mxu2 %v11435_v18  ;;  %v3820_v50 = vadd.f32 %v3819_v4, %v3807_v32 }
 0x1d5   :  { %v8010_v54 = vld [vmem:[%s16538_s1 + $0x990] sm:$0xf]  ;;  %v8811_v57 = vor.u32 %v10742_v49, %v8810_v48  ;;  %4083 = vmatpush.bf16.msra.mxu2 %v8555_v53 }
 0x1d6   :  { %v10542_v55 = vld [vmem:[%s16538_s1 + $0x9ac] sm:$0xf0]  ;;  %4052 = vmatmul.bf16.vlgmr.msrb.gmra.mxu3 %v11439_v20 }
 0x1d7   :  { %v8266_v56 = vld [vmem:[%s16538_s1 + $0xb90] sm:$0xf]  ;;  %v8011_v1 = vor.u32 %v10542_v55, %v8010_v54  ;;  %4096 = vmatpush.bf16.msra.mxu3 %v8811_v57  ;;  %v3832_v57 = vpop.f32.mrf.mxu2 }
 0x1d8   :  { %v10606_v58 = vld [vmem:[%s16538_s1 + $0xbac] sm:$0xf0] }
 0x1d9   :  { %v8522_v59 = vld [vmem:[%s16538_s1 + $0xd90] sm:$0xf]  ;;  %v8267_v2 = vor.u32 %v10606_v58, %v8266_v56  ;;  %4058 = vmatpush.bf16.msra.mxu0 %v8011_v1  ;;  %v3845_v1 = vpop.f32.mrf.mxu3 }
 0x1da   :  { %v10670_v60 = vld [vmem:[%s16538_s1 + $0xdac] sm:$0xf0] }
 0x1db   :  { %v8778_v63 = vld [vmem:[%s16538_s1 + $0xf90] sm:$0xf]  ;;  %v8523_v3 = vor.u32 %v10670_v60, %v8522_v59  ;;  %4071 = vmatpush.bf16.msra.mxu1 %v8267_v2 }
 0x1dc   :  { %v10734_v0 = vld [vmem:[%s16538_s1 + $0xfac] sm:$0xf0] }
 0x1dd   :  { %v7978_v5 = vld [vmem:[%s16538_s1 + $0x950] sm:$0xf]  ;;  %v8779_v8 = vor.u32 %v10734_v0, %v8778_v63  ;;  %4084 = vmatpush.bf16.msra.mxu2 %v8523_v3  ;;  %v3833_v0 = vadd.f32 %v3832_v57, %v3820_v50 }
 0x1de   :  { %v10534_v6 = vld [vmem:[%s16538_s1 + $0x96c] sm:$0xf0] }
 0x1df   :  { %v8234_v7 = vld [vmem:[%s16538_s1 + $0xb50] sm:$0xf]  ;;  %v7979_v15 = vor.u32 %v10534_v6, %v7978_v5  ;;  %4097 = vmatpush.bf16.msra.mxu3 %v8779_v8  ;;  %v13310_v6 = vadd.f32 %v3845_v1, %v3833_v0  ;;  %v6988_v0 = vld [vmem:[%s16538_s1 + $0x1b0] sm:$0xf0] }
 0x1e0   :  { %v10598_v10 = vld [vmem:[%s16538_s1 + $0xb6c] sm:$0xf0]  ;;  %v10346_v1 = vld [vmem:[%s16538_s1 + $0x394] sm:$0xf] }
 0x1e1   :  { %v8490_v11 = vld [vmem:[%s16538_s1 + $0xd50] sm:$0xf]  ;;  %v8235_v16 = vor.u32 %v10598_v10, %v8234_v7  ;;  %4059 = vmatpush.bf16.msra.mxu0 %v7979_v15  ;;  %v3808_v7 = vpop.f32.mrf.mxu0  ;;  %v3847_v32 = vpop.f32.mrf.mxu3 }
 0x1e2   :  { %v10662_v12 = vld [vmem:[%s16538_s1 + $0xd6c] sm:$0xf0] }
 0x1e3   :  { %v8746_v13 = vld [vmem:[%s16538_s1 + $0xf50] sm:$0xf]  ;;  %v8491_v21 = vor.u32 %v10662_v12, %v8490_v11  ;;  %4072 = vmatpush.bf16.msra.mxu1 %v8235_v16 }
 0x1e4   :  { %v10726_v14 = vld [vmem:[%s16538_s1 + $0xf6c] sm:$0xf0] }
 0x1e5   :  { %v7946_v23 = vld [vmem:[%s16538_s1 + $0x910] sm:$0xf]  ;;  %v8747_v26 = vor.u32 %v10726_v14, %v8746_v13  ;;  %4085 = vmatpush.bf16.msra.mxu2 %v8491_v21  ;;  %v3821_v14 = vpop.f32.mrf.mxu1 }
 0x1e6   :  { %v10526_v24 = vld [vmem:[%s16538_s1 + $0x92c] sm:$0xf0] }
 0x1e7   :  { %v8202_v25 = vld [vmem:[%s16538_s1 + $0xb10] sm:$0xf]  ;;  %v7947_v33 = vor.u32 %v10526_v24, %v7946_v23  ;;  %4098 = vmatpush.bf16.msra.mxu3 %v8747_v26 }
 0x1e8   :  { %v10590_v28 = vld [vmem:[%s16538_s1 + $0xb2c] sm:$0xf0] }
 0x1e9   :  { %v8458_v29 = vld [vmem:[%s16538_s1 + $0xd10] sm:$0xf]  ;;  %v8203_v61 = vor.u32 %v10590_v28, %v8202_v25  ;;  %4060 = vmatpush.bf16.msra.mxu0 %v7947_v33 }
 0x1ea   :  { %v10654_v30 = vld [vmem:[%s16538_s1 + $0xd2c] sm:$0xf0] }
 0x1eb   :  { %v8714_v31 = vld [vmem:[%s16538_s1 + $0xf10] sm:$0xf]  ;;  %v8459_v36 = vor.u32 %v10654_v30, %v8458_v29  ;;  %4073 = vmatpush.bf16.msra.mxu1 %v8203_v61  ;;  %v3834_v61 = vpop.f32.mrf.mxu2 }
 0x1ec   :  { %v10718_v34 = vld [vmem:[%s16538_s1 + $0xf2c] sm:$0xf0]  ;;  %v7180_v61 = vld [vmem:[%s16538_s1 + $0x330] sm:$0xf0] }
 0x1ed   :  { %v7914_v62 = vld [vmem:[%s16538_s1 + $0x8d0] sm:$0xf]  ;;  %v8715_v43 = vor.u32 %v10718_v34, %v8714_v31  ;;  %4086 = vmatpush.bf16.msra.mxu2 %v8459_v36 }
 0x1ee   :  { %v10518_v39 = vld [vmem:[%s16538_s1 + $0x8ec] sm:$0xf0] }
 0x1ef   :  { %v8170_v40 = vld [vmem:[%s16538_s1 + $0xad0] sm:$0xf]  ;;  %v7915_v51 = vor.u32 %v10518_v39, %v7914_v62  ;;  %4099 = vmatpush.bf16.msra.mxu3 %v8715_v43 }
 0x1f0   :  { %v10582_v46 = vld [vmem:[%s16538_s1 + $0xaec] sm:$0xf0] }
 0x1f1   :  { %v8426_v47 = vld [vmem:[%s16538_s1 + $0xcd0] sm:$0xf]  ;;  %v8171_v52 = vor.u32 %v10582_v46, %v8170_v40  ;;  %4061 = vmatpush.bf16.msra.mxu0 %v7915_v51  ;;  %v10290_v46 = vld [vmem:[%s16538_s1 + $0x1d4] sm:$0xf] }
 0x1f2   :  { %v10646_v48 = vld [vmem:[%s16538_s1 + $0xcec] sm:$0xf0] }
 0x1f3   :  { %v8682_v49 = vld [vmem:[%s16538_s1 + $0xed0] sm:$0xf]  ;;  %v8427_v53 = vor.u32 %v10646_v48, %v8426_v47  ;;  %4074 = vmatpush.bf16.msra.mxu1 %v8171_v52  ;;  %v7020_v48 = vld [vmem:[%s16538_s1 + $0x1f0] sm:$0xf0] }
 0x1f4   :  { %v10710_v9 = vld [vmem:[%s16538_s1 + $0xeec] sm:$0xf0]  ;;  %v10418_v52 = vld [vmem:[%s16538_s1 + $0x5d4] sm:$0xf] }
 0x1f5   :  { %v7882_v54 = vld [vmem:[%s16538_s1 + $0x890] sm:$0xf]  ;;  %v8683_v58 = vor.u32 %v10710_v9, %v8682_v49  ;;  %4087 = vmatpush.bf16.msra.mxu2 %v8427_v53  ;;  %v10354_v49 = vld [vmem:[%s16538_s1 + $0x3d4] sm:$0xf] }
 0x1f6   :  { %v10510_v55 = vld [vmem:[%s16538_s1 + $0x8ac] sm:$0xf0]  ;;  %v7276_v9 = vld [vmem:[%s16538_s1 + $0x3f0] sm:$0xf0] }
 0x1f7   :  { %v8138_v56 = vld [vmem:[%s16538_s1 + $0xa90] sm:$0xf]  ;;  %v7883_v5 = vor.u32 %v10510_v55, %v7882_v54  ;;  %4100 = vmatpush.bf16.msra.mxu3 %v8683_v58  ;;  %v7532_v53 = vld [vmem:[%s16538_s1 + $0x5f0] sm:$0xf0]  ;;  %v7279_v57 = vor.u32 %v10354_v49, %v7276_v9 }
 0x1f8   :  { %v10574_v59 = vld [vmem:[%s16538_s1 + $0xaac] sm:$0xf0]  ;;  %v10258_v49 = vld [vmem:[%s16538_s1 + $0xd4] sm:$0xf] }
 0x1f9   :  { %v8394_v60 = vld [vmem:[%s16538_s1 + $0xc90] sm:$0xf]  ;;  %v8139_v8 = vor.u32 %v10574_v59, %v8138_v56  ;;  %4062 = vmatpush.bf16.msra.mxu0 %v7883_v5  ;;  %v7023_v56 = vor.u32 %v10290_v46, %v7020_v48  ;;  %v7500_v5 = vld [vmem:[%s16538_s1 + $0x5b0] sm:$0xf0] }
 0x1fa   :  { %v10638_v63 = vld [vmem:[%s16538_s1 + $0xcac] sm:$0xf0] }
 0x1fb   :  { %v8650_v2 = vld [vmem:[%s16538_s1 + $0xe90] sm:$0xf]  ;;  %v8395_v10 = vor.u32 %v10638_v63, %v8394_v60  ;;  %4075 = vmatpush.bf16.msra.mxu1 %v8139_v8  ;;  %v10282_v60 = vld [vmem:[%s16538_s1 + $0x194] sm:$0xf]  ;;  %v7535_v63 = vor.u32 %v10418_v52, %v7532_v53 }
 0x1fc   :  { %v10702_v3 = vld [vmem:[%s16538_s1 + $0xeac] sm:$0xf0]  ;;  %v6991_v8 = vor.u32 %v10282_v60, %v6988_v0  ;;  %v7148_v52 = vld [vmem:[%s16538_s1 + $0x2f0] sm:$0xf0]  ;;  %v3884_v0 = vpop.f32.mrf.mxu2 }
 0x1fd   :  { %v7850_v11 = vld [vmem:[%s16538_s1 + $0x850] sm:$0xf]  ;;  %v8651_v15 = vor.u32 %v10702_v3, %v8650_v2  ;;  %4088 = vmatpush.bf16.msra.mxu2 %v8395_v10  ;;  %v7244_v2 = vld [vmem:[%s16538_s1 + $0x3b0] sm:$0xf0] }
 0x1fe   :  { %v10502_v12 = vld [vmem:[%s16538_s1 + $0x86c] sm:$0xf0]  ;;  %v10410_v3 = vld [vmem:[%s16538_s1 + $0x594] sm:$0xf]  ;;  %v7247_v10 = vor.u32 %v10346_v1, %v7244_v2 }
 0x1ff   :  { %v8106_v13 = vld [vmem:[%s16538_s1 + $0xa50] sm:$0xf]  ;;  %v7851_v26 = vor.u32 %v10502_v12, %v7850_v11  ;;  %4101 = vmatpush.bf16.msra.mxu3 %v8651_v15  ;;  %v7503_v14 = vor.u32 %v10410_v3, %v7500_v5  ;;  %v6956_v15 = vld [vmem:[%s16538_s1 + $0x170] sm:$0xf0] }
 0x200   :  { %v10566_v16 = vld [vmem:[%s16538_s1 + $0xa6c] sm:$0xf0]  ;;  %v10386_v53 = vld [vmem:[%s16538_s1 + $0x4d4] sm:$0xf] }
 0x201   :  { %v8362_v21 = vld [vmem:[%s16538_s1 + $0xc50] sm:$0xf]  ;;  %v8107_v30 = vor.u32 %v10566_v16, %v8106_v13  ;;  %4063 = vmatpush.bf16.msra.mxu0 %v7851_v26  ;;  %v10274_v13 = vld [vmem:[%s16538_s1 + $0x154] sm:$0xf] }
 0x202   :  { %v10630_v23 = vld [vmem:[%s16538_s1 + $0xc6c] sm:$0xf0]  ;;  %v10338_v16 = vld [vmem:[%s16538_s1 + $0x354] sm:$0xf]  ;;  %v6959_v26 = vor.u32 %v10274_v13, %v6956_v15 }
 0x203   :  { %v8618_v24 = vld [vmem:[%s16538_s1 + $0xe50] sm:$0xf]  ;;  %v8363_v31 = vor.u32 %v10630_v23, %v8362_v21  ;;  %4076 = vmatpush.bf16.msra.mxu1 %v8107_v30  ;;  %v7212_v21 = vld [vmem:[%s16538_s1 + $0x370] sm:$0xf0] }
 0x204   :  { %v10694_v25 = vld [vmem:[%s16538_s1 + $0xe6c] sm:$0xf0]  ;;  %v10402_v23 = vld [vmem:[%s16538_s1 + $0x554] sm:$0xf] }
 0x205   :  { %v7818_v28 = vld [vmem:[%s16538_s1 + $0x810] sm:$0xf]  ;;  %v8619_v36 = vor.u32 %v10694_v25, %v8618_v24  ;;  %4089 = vmatpush.bf16.msra.mxu2 %v8363_v31  ;;  %v7468_v24 = vld [vmem:[%s16538_s1 + $0x570] sm:$0xf0] }
 0x206   :  { %v10494_v29 = vld [vmem:[%s16538_s1 + $0x82c] sm:$0xf0]  ;;  %v10266_v31 = vld [vmem:[%s16538_s1 + $0x114] sm:$0xf] }
 0x207   :  { %v8074_v34 = vld [vmem:[%s16538_s1 + $0xa10] sm:$0xf]  ;;  %v7819_v47 = vor.u32 %v10494_v29, %v7818_v28  ;;  %4102 = vmatpush.bf16.msra.mxu3 %v8619_v36  ;;  %v7215_v28 = vor.u32 %v10338_v16, %v7212_v21  ;;  %v3858_v36 = vpop.f32.mrf.mxu0  ;;  %v10250_v60 = vld [vmem:[%s16538_s1 + $0x94] sm:$0xf] }
 0x208   :  { %v10558_v33 = vld [vmem:[%s16538_s1 + $0xa2c] sm:$0xf0]  ;;  %v6860_v1 = vld [vmem:[%s16538_s1 + $0xb0] sm:$0xf0] }
 0x209   :  { %v8330_v35 = vld [vmem:[%s16538_s1 + $0xc10] sm:$0xf]  ;;  %v8075_v50 = vor.u32 %v10558_v33, %v8074_v34  ;;  %4064 = vmatpush.bf16.msra.mxu0 %v7819_v47  ;;  %v7471_v34 = vor.u32 %v10402_v23, %v7468_v24  ;;  %v6924_v33 = vld [vmem:[%s16538_s1 + $0x130] sm:$0xf0] }
 0x20a   :  { %v10622_v62 = vld [vmem:[%s16538_s1 + $0xc2c] sm:$0xf0]  ;;  %v10314_v2 = vld [vmem:[%s16538_s1 + $0x294] sm:$0xf] }
 0x20b   :  { %v8586_v39 = vld [vmem:[%s16538_s1 + $0xe10] sm:$0xf]  ;;  %v8331_v51 = vor.u32 %v10622_v62, %v8330_v35  ;;  %4077 = vmatpush.bf16.msra.mxu1 %v8075_v50  ;;  %v10330_v35 = vld [vmem:[%s16538_s1 + $0x314] sm:$0xf] }
 0x20c   :  { %v10686_v40 = vld [vmem:[%s16538_s1 + $0xe2c] sm:$0xf0]  ;;  %4065 = vmatmul.bf16.vlgmr.msra.gmra.mxu0 %v11599_v41  ;;  %v10394_v62 = vld [vmem:[%s16538_s1 + $0x514] sm:$0xf]  ;;  %v7183_v46 = vor.u32 %v10330_v35, %v7180_v61 }
 0x20d   :  { %v9066_v4 = vld [vmem:[%s16538_s1 + $0x11d0] sm:$0xf]  ;;  %v8587_v54 = vor.u32 %v10686_v40, %v8586_v39  ;;  %4090 = vmatpush.bf16.msra.mxu2 %v8331_v51  ;;  %v7436_v39 = vld [vmem:[%s16538_s1 + $0x530] sm:$0xf0]  ;;  %v3859_v40 = vadd.f32 %v3858_v36, %v13310_v6 }
 0x20e   :  { %v10806_v43 = vld [vmem:[%s16538_s1 + $0x11ec] sm:$0xf0]  ;;  %4078 = vmatmul.bf16.vlgmr.msra.gmra.mxu1 %v11603_v44  ;;  %v7439_v6 = vor.u32 %v10394_v62, %v7436_v39  ;;  %v6892_v50 = vld [vmem:[%s16538_s1 + $0xf0] sm:$0xf0] }
 0x20f   :  { %v9067_v55 = vor.u32 %v10806_v43, %v9066_v4  ;;  %v9034_v58 = vld [vmem:[%s16538_s1 + $0x1190] sm:$0xf]  ;;  %4103 = vmatpush.bf16.msra.mxu3 %v8587_v54  ;;  %4122 = vmatpush.bf16.msrb.mxu1 %v7023_v56  ;;  %v3871_v4 = vpop.f32.mrf.mxu1  ;;  %v6927_v43 = vor.u32 %v10266_v31, %v6924_v33  ;;  %v10322_v51 = vld [vmem:[%s16538_s1 + $0x2d4] sm:$0xf]  ;;  %v6895_v56 = vor.u32 %v10258_v49, %v6892_v50 }
 0x210   :  { %v10798_v59 = vld [vmem:[%s16538_s1 + $0x11ac] sm:$0xf0]  ;;  %4091 = vmatmul.bf16.vlgmr.msra.gmra.mxu2 %v11591_v38  ;;  %v3872_v9 = vadd.f32 %v3871_v4, %v3859_v40  ;;  %v7404_v54 = vld [vmem:[%s16538_s1 + $0x4f0] sm:$0xf0] }
 0x211   :  { %4109 = vmatpush.bf16.msrb.mxu0 %v9067_v55  ;;  %v9035_v7 = vor.u32 %v10798_v59, %v9034_v58  ;;  %4135 = vmatpush.bf16.msrb.mxu2 %v7279_v57  ;;  %v9002_v11 = vld [vmem:[%s16538_s1 + $0x1150] sm:$0xf]  ;;  %v7151_v57 = vor.u32 %v10322_v51, %v7148_v52  ;;  %v7116_v3 = vld [vmem:[%s16538_s1 + $0x2b0] sm:$0xf0] }
 0x212   :  { %v10790_v12 = vld [vmem:[%s16538_s1 + $0x116c] sm:$0xf0]  ;;  %4104 = vmatmul.bf16.vlgmr.msra.gmra.mxu3 %v11601_v42  ;;  %v13503_v5 = vadd.f32 %v3884_v0, %v3872_v9  ;;  %v7119_v15 = vor.u32 %v10314_v2, %v7116_v3  ;;  %v10242_v23 = vld [vmem:[%s16538_s1 + $0x54] sm:$0xf] }
 0x213   :  { %4148 = vmatpush.bf16.msrb.mxu3 %v7535_v63  ;;  %v9003_v25 = vor.u32 %v10790_v12, %v9002_v11  ;;  %4123 = vmatpush.bf16.msrb.mxu1 %v6991_v8  ;;  %v8970_v29 = vld [vmem:[%s16538_s1 + $0x1110] sm:$0xf]  ;;  %v7407_v63 = vor.u32 %v10386_v53, %v7404_v54  ;;  %v7372_v8 = vld [vmem:[%s16538_s1 + $0x4b0] sm:$0xf0]  ;;  %v3860_v11 = vpop.f32.mrf.mxu0 }
 0x214   :  { %v10782_v30 = vld [vmem:[%s16538_s1 + $0x112c] sm:$0xf0]  ;;  %v10234_v36 = vld [vmem:[%s16538_s1 + $0x14] sm:$0xf] }
 0x215   :  { %4110 = vmatpush.bf16.msrb.mxu0 %v9035_v7  ;;  %4136 = vmatpush.bf16.msrb.mxu2 %v7247_v10  ;;  %v8971_v32 = vor.u32 %v10782_v30, %v8970_v29  ;;  %v8938_v47 = vld [vmem:[%s16538_s1 + $0x10d0] sm:$0xf]  ;;  %v10378_v7 = vld [vmem:[%s16538_s1 + $0x494] sm:$0xf]  ;;  %v13511_v10 = vpop.f32.mrf.mxu3 }
 0x216   :  { %v10774_v48 = vld [vmem:[%s16538_s1 + $0x10ec] sm:$0xf0]  ;;  %v7375_v24 = vor.u32 %v10378_v7, %v7372_v8  ;;  %v10370_v29 = vld [vmem:[%s16538_s1 + $0x454] sm:$0xf] }
 0x217   :  { %4149 = vmatpush.bf16.msrb.mxu3 %v7503_v14  ;;  %4124 = vmatpush.bf16.msrb.mxu1 %v6959_v26  ;;  %v8939_v55 = vor.u32 %v10774_v48, %v8938_v47  ;;  %v8906_v58 = vld [vmem:[%s16538_s1 + $0x1090] sm:$0xf]  ;;  %v3873_v13 = vpop.f32.mrf.mxu1  ;;  %v6863_v14 = vor.u32 %v10250_v60, %v6860_v1  ;;  %v10306_v26 = vld [vmem:[%s16538_s1 + $0x254] sm:$0xf] }
 0x218   :  { %v10766_v59 = vld [vmem:[%s16538_s1 + $0x10ac] sm:$0xf0]  ;;  %v7340_v30 = vld [vmem:[%s16538_s1 + $0x470] sm:$0xf0] }
 0x219   :  { %4111 = vmatpush.bf16.msrb.mxu0 %v9003_v25  ;;  %4137 = vmatpush.bf16.msrb.mxu2 %v7215_v28  ;;  %v8907_v12 = vor.u32 %v10766_v59, %v8906_v58  ;;  %v8874_v16 = vld [vmem:[%s16538_s1 + $0x1050] sm:$0xf]  ;;  %v6828_v25 = vld [vmem:[%s16538_s1 + $0x70] sm:$0xf0]  ;;  %v7343_v40 = vor.u32 %v10370_v29, %v7340_v30 }
 0x21a   :  { %v10758_v21 = vld [vmem:[%s16538_s1 + $0x106c] sm:$0xf0]  ;;  %v7084_v28 = vld [vmem:[%s16538_s1 + $0x270] sm:$0xf0]  ;;  %v6831_v35 = vor.u32 %v10242_v23, %v6828_v25 }
 0x21b   :  { %4150 = vmatpush.bf16.msrb.mxu3 %v7471_v34  ;;  %4125 = vmatpush.bf16.msrb.mxu1 %v6927_v43  ;;  %v8875_v31 = vor.u32 %v10758_v21, %v8874_v16  ;;  %v8842_v34 = vld [vmem:[%s16538_s1 + $0x1010] sm:$0xf]  ;;  %v7087_v61 = vor.u32 %v10306_v26, %v7084_v28  ;;  %v6796_v62 = vld [vmem:[%s16538_s1 + $0x30] sm:$0xf0] }
 0x21c   :  { %v10750_v33 = vld [vmem:[%s16538_s1 + $0x102c] sm:$0xf0]  ;;  %v10298_v39 = vld [vmem:[%s16538_s1 + $0x214] sm:$0xf]  ;;  %v6799_v53 = vor.u32 %v10234_v36, %v6796_v62 }
 0x21d   :  { %4112 = vmatpush.bf16.msrb.mxu0 %v8971_v32  ;;  %4138 = vmatpush.bf16.msrb.mxu2 %v7183_v46  ;;  %v7052_v32 = vld [vmem:[%s16538_s1 + $0x230] sm:$0xf0]  ;;  %v3886_v46 = vpop.f32.mrf.mxu2  ;;  %v8843_v9 = vor.u32 %v10750_v33, %v8842_v34 }
 0x21e   :  { %v10362_v4 = vld [vmem:[%s16538_s1 + $0x414] sm:$0xf]  ;;  %v7055_v54 = vor.u32 %v10298_v39, %v7052_v32 }
 0x21f   :  { %4151 = vmatpush.bf16.msrb.mxu3 %v7439_v6  ;;  %4126 = vmatpush.bf16.msrb.mxu1 %v6895_v56  ;;  %v7308_v43 = vld [vmem:[%s16538_s1 + $0x430] sm:$0xf0]  ;;  %v3899_v6 = vpop.f32.mrf.mxu3 }
 0x220   :  { %v10482_v47 = vld [vmem:[%s16538_s1 + $0x7d4] sm:$0xf] }
 0x221   :  { %4113 = vmatpush.bf16.msrb.mxu0 %v8939_v55  ;;  %4139 = vmatpush.bf16.msrb.mxu2 %v7151_v57  ;;  %v7788_v48 = vld [vmem:[%s16538_s1 + $0x7f0] sm:$0xf0]  ;;  %v7311_v57 = vor.u32 %v10362_v4, %v7308_v43 }
 0x222   :  { %v10546_v49 = vld [vmem:[%s16538_s1 + $0x9d4] sm:$0xf]  ;;  %v7791_v58 = vor.u32 %v10482_v47, %v7788_v48  ;;  %v3910_v47 = vpop.f32.mrf.mxu0 }
 0x223   :  { %4152 = vmatpush.bf16.msrb.mxu3 %v7407_v63  ;;  %4127 = vmatpush.bf16.msrb.mxu1 %v6863_v14  ;;  %v8044_v50 = vld [vmem:[%s16538_s1 + $0x9f0] sm:$0xf0] }
 0x224   :  { %v10610_v51 = vld [vmem:[%s16538_s1 + $0xbd4] sm:$0xf]  ;;  %v8047_v59 = vor.u32 %v10546_v49, %v8044_v50 }
 0x225   :  { %4114 = vmatpush.bf16.msrb.mxu0 %v8907_v12  ;;  %4140 = vmatpush.bf16.msrb.mxu2 %v7119_v15  ;;  %v8300_v52 = vld [vmem:[%s16538_s1 + $0xbf0] sm:$0xf0] }
 0x226   :  { %v10674_v55 = vld [vmem:[%s16538_s1 + $0xdd4] sm:$0xf]  ;;  %v8303_v60 = vor.u32 %v10610_v51, %v8300_v52  ;;  %v3923_v52 = vpop.f32.mrf.mxu1 }
 0x227   :  { %4153 = vmatpush.bf16.msrb.mxu3 %v7375_v24  ;;  %4128 = vmatpush.bf16.msrb.mxu1 %v6831_v35  ;;  %v8556_v56 = vld [vmem:[%s16538_s1 + $0xdf0] sm:$0xf0]  ;;  %v612_v24 = vperm.slane %v13084_v45, 3 }
 0x228   :  { %v10474_v63 = vld [vmem:[%s16538_s1 + $0x794] sm:$0xf]  ;;  %v8559_v2 = vor.u32 %v10674_v55, %v8556_v56 }
 0x229   :  { %4115 = vmatpush.bf16.msrb.mxu0 %v8875_v31  ;;  %4141 = vmatpush.bf16.msrb.mxu2 %v7087_v61  ;;  %v7756_v0 = vld [vmem:[%s16538_s1 + $0x7b0] sm:$0xf0]  ;;  %v3898_v35 = vadd.f32 %v13511_v10, %v612_v24 }
 0x22a   :  { %v10538_v1 = vld [vmem:[%s16538_s1 + $0x994] sm:$0xf]  ;;  %v7759_v13 = vor.u32 %v10474_v63, %v7756_v0 }
 0x22b   :  { %4154 = vmatpush.bf16.msrb.mxu3 %v7343_v40  ;;  %v8012_v3 = vld [vmem:[%s16538_s1 + $0x9b0] sm:$0xf0]  ;;  %4129 = vmatpush.bf16.msrb.mxu1 %v6799_v53  ;;  %v3911_v51 = vadd.f32 %v3910_v47, %v3898_v35 }
 0x22c   :  { %v10602_v7 = vld [vmem:[%s16538_s1 + $0xb94] sm:$0xf]  ;;  %v8015_v15 = vor.u32 %v10538_v1, %v8012_v3 }
 0x22d   :  { %4116 = vmatpush.bf16.msrb.mxu0 %v8843_v9  ;;  %v8268_v8 = vld [vmem:[%s16538_s1 + $0xbb0] sm:$0xf0]  ;;  %4142 = vmatpush.bf16.msrb.mxu2 %v7055_v54 }
 0x22e   :  { %v10666_v11 = vld [vmem:[%s16538_s1 + $0xd94] sm:$0xf]  ;;  %v8271_v16 = vor.u32 %v10602_v7, %v8268_v8  ;;  %4130 = vmatmul.bf16.vlgmr.msrb.gmra.mxu1 %v11437_v19  ;;  %v3936_v7 = vpop.f32.mrf.mxu2 }
 0x22f   :  { %v8524_v12 = vld [vmem:[%s16538_s1 + $0xdb0] sm:$0xf0]  ;;  %4155 = vmatpush.bf16.msrb.mxu3 %v7311_v57  ;;  %4174 = vmatpush.bf16.msra.mxu1 %v8047_v59  ;;  %v3924_v59 = vadd.f32 %v3923_v52, %v3911_v51 }
 0x230   :  { %v10466_v14 = vld [vmem:[%s16538_s1 + $0x754] sm:$0xf]  ;;  %4117 = vmatmul.bf16.vlgmr.msrb.gmra.mxu0 %v11789_v17  ;;  %v8527_v25 = vor.u32 %v10666_v11, %v8524_v12  ;;  %4143 = vmatmul.bf16.vlgmr.msrb.gmra.mxu2 %v11441_v22 }
 0x231   :  { %4161 = vmatpush.bf16.msra.mxu0 %v7791_v58  ;;  %4187 = vmatpush.bf16.msra.mxu2 %v8303_v60  ;;  %v7724_v21 = vld [vmem:[%s16538_s1 + $0x770] sm:$0xf0] }
 0x232   :  { %v10530_v23 = vld [vmem:[%s16538_s1 + $0x954] sm:$0xf]  ;;  %4156 = vmatmul.bf16.vlgmr.msrb.gmra.mxu3 %v11435_v18  ;;  %v7727_v31 = vor.u32 %v10466_v14, %v7724_v21  ;;  %v3937_v14 = vadd.f32 %v3936_v7, %v3924_v59 }
 0x233   :  { %4200 = vmatpush.bf16.msra.mxu3 %v8559_v2  ;;  %v7980_v26 = vld [vmem:[%s16538_s1 + $0x970] sm:$0xf0]  ;;  %4175 = vmatpush.bf16.msra.mxu1 %v8015_v15  ;;  %v3949_v15 = vpop.f32.mrf.mxu3 }
 0x234   :  { %v10594_v28 = vld [vmem:[%s16538_s1 + $0xb54] sm:$0xf]  ;;  %v7983_v34 = vor.u32 %v10530_v23, %v7980_v26  ;;  %v13711_v24 = vadd.f32 %v3949_v15, %v3937_v14  ;;  %v6994_v15 = vld [vmem:[%s16538_s1 + $0x198] sm:$0xf] }
 0x235   :  { %v8236_v29 = vld [vmem:[%s16538_s1 + $0xb70] sm:$0xf0]  ;;  %4162 = vmatpush.bf16.msra.mxu0 %v7759_v13  ;;  %4188 = vmatpush.bf16.msra.mxu2 %v8271_v16 }
 0x236   :  { %v10658_v45 = vld [vmem:[%s16538_s1 + $0xd54] sm:$0xf]  ;;  %v8239_v33 = vor.u32 %v10594_v28, %v8236_v29 }
 0x237   :  { %v8492_v30 = vld [vmem:[%s16538_s1 + $0xd70] sm:$0xf0]  ;;  %4201 = vmatpush.bf16.msra.mxu3 %v8527_v25  ;;  %4176 = vmatpush.bf16.msra.mxu1 %v7983_v34  ;;  %v3912_v25 = vpop.f32.mrf.mxu0 }
 0x238   :  { %v10458_v61 = vld [vmem:[%s16538_s1 + $0x714] sm:$0xf]  ;;  %v8495_v39 = vor.u32 %v10658_v45, %v8492_v30 }
 0x239   :  { %v7692_v36 = vld [vmem:[%s16538_s1 + $0x730] sm:$0xf0]  ;;  %4163 = vmatpush.bf16.msra.mxu0 %v7727_v31  ;;  %4189 = vmatpush.bf16.msra.mxu2 %v8239_v33  ;;  %v3925_v31 = vpop.f32.mrf.mxu1 }
 0x23a   :  { %v10522_v62 = vld [vmem:[%s16538_s1 + $0x914] sm:$0xf]  ;;  %v7695_v46 = vor.u32 %v10458_v61, %v7692_v36 }
 0x23b   :  { %v7948_v40 = vld [vmem:[%s16538_s1 + $0x930] sm:$0xf0]  ;;  %4202 = vmatpush.bf16.msra.mxu3 %v8495_v39  ;;  %v3951_v51 = vpop.f32.mrf.mxu3 }
 0x23c   :  { %v10586_v10 = vld [vmem:[%s16538_s1 + $0xb14] sm:$0xf]  ;;  %v7951_v48 = vor.u32 %v10522_v62, %v7948_v40 }
 0x23d   :  { %v8204_v32 = vld [vmem:[%s16538_s1 + $0xb30] sm:$0xf0]  ;;  %4164 = vmatpush.bf16.msra.mxu0 %v7695_v46 }
 0x23e   :  { %v10650_v4 = vld [vmem:[%s16538_s1 + $0xd14] sm:$0xf]  ;;  %v8207_v49 = vor.u32 %v10586_v10, %v8204_v32  ;;  %4177 = vmatpush.bf16.msra.mxu1 %v7951_v48  ;;  %v3938_v48 = vpop.f32.mrf.mxu2 }
 0x23f   :  { %v8460_v43 = vld [vmem:[%s16538_s1 + $0xd30] sm:$0xf0]  ;;  %v10271_v48 = vld [vmem:[%s16538_s1 + $0x134] sm:$0xf0] }
 0x240   :  { %v10450_v6 = vld [vmem:[%s16538_s1 + $0x6d4] sm:$0xf]  ;;  %v8463_v53 = vor.u32 %v10650_v4, %v8460_v43  ;;  %4190 = vmatpush.bf16.msra.mxu2 %v8207_v49 }
 0x241   :  { %v7660_v9 = vld [vmem:[%s16538_s1 + $0x6f0] sm:$0xf0] }
 0x242   :  { %v10514_v50 = vld [vmem:[%s16538_s1 + $0x8d4] sm:$0xf]  ;;  %v7663_v60 = vor.u32 %v10450_v6, %v7660_v9  ;;  %4203 = vmatpush.bf16.msra.mxu3 %v8463_v53 }
 0x243   :  { %v7916_v54 = vld [vmem:[%s16538_s1 + $0x8f0] sm:$0xf0] }
 0x244   :  { %v10578_v55 = vld [vmem:[%s16538_s1 + $0xad4] sm:$0xf]  ;;  %v7919_v63 = vor.u32 %v10514_v50, %v7916_v54  ;;  %4165 = vmatpush.bf16.msra.mxu0 %v7663_v60 }
 0x245   :  { %v8172_v56 = vld [vmem:[%s16538_s1 + $0xaf0] sm:$0xf0] }
 0x246   :  { %v10642_v57 = vld [vmem:[%s16538_s1 + $0xcd4] sm:$0xf]  ;;  %v8175_v0 = vor.u32 %v10578_v55, %v8172_v56  ;;  %4178 = vmatpush.bf16.msra.mxu1 %v7919_v63  ;;  %v7282_v63 = vld [vmem:[%s16538_s1 + $0x3d8] sm:$0xf] }
 0x247   :  { %v8428_v58 = vld [vmem:[%s16538_s1 + $0xcf0] sm:$0xf0] }
 0x248   :  { %v10442_v1 = vld [vmem:[%s16538_s1 + $0x694] sm:$0xf]  ;;  %v8431_v8 = vor.u32 %v10642_v57, %v8428_v58  ;;  %4191 = vmatpush.bf16.msra.mxu2 %v8175_v0  ;;  %v7026_v57 = vld [vmem:[%s16538_s1 + $0x1d8] sm:$0xf] }
 0x249   :  { %v7628_v2 = vld [vmem:[%s16538_s1 + $0x6b0] sm:$0xf0]  ;;  %v10295_v58 = vld [vmem:[%s16538_s1 + $0x1f4] sm:$0xf0] }
 0x24a   :  { %v10506_v3 = vld [vmem:[%s16538_s1 + $0x894] sm:$0xf]  ;;  %v7631_v23 = vor.u32 %v10442_v1, %v7628_v2  ;;  %4204 = vmatpush.bf16.msra.mxu3 %v8431_v8  ;;  %v10359_v0 = vld [vmem:[%s16538_s1 + $0x3f4] sm:$0xf0]  ;;  %v7027_v7 = vor.u32 %v10295_v58, %v7026_v57 }
 0x24b   :  { %v7884_v11 = vld [vmem:[%s16538_s1 + $0x8b0] sm:$0xf0] }
 0x24c   :  { %v10570_v12 = vld [vmem:[%s16538_s1 + $0xa94] sm:$0xf]  ;;  %v7887_v26 = vor.u32 %v10506_v3, %v7884_v11  ;;  %4166 = vmatpush.bf16.msra.mxu0 %v7631_v23  ;;  %v10351_v23 = vld [vmem:[%s16538_s1 + $0x3b4] sm:$0xf0] }
 0x24d   :  { %v8140_v13 = vld [vmem:[%s16538_s1 + $0xab0] sm:$0xf0] }
 0x24e   :  { %v10634_v16 = vld [vmem:[%s16538_s1 + $0xc94] sm:$0xf]  ;;  %v8143_v28 = vor.u32 %v10570_v12, %v8140_v13  ;;  %4179 = vmatpush.bf16.msra.mxu1 %v7887_v26  ;;  %v7283_v13 = vor.u32 %v10359_v0, %v7282_v63  ;;  %v10263_v63 = vld [vmem:[%s16538_s1 + $0xf4] sm:$0xf0] }
 0x24f   :  { %v8396_v21 = vld [vmem:[%s16538_s1 + $0xcb0] sm:$0xf0]  ;;  %v7154_v0 = vld [vmem:[%s16538_s1 + $0x2d8] sm:$0xf] }
 0x250   :  { %v10434_v29 = vld [vmem:[%s16538_s1 + $0x654] sm:$0xf]  ;;  %v8399_v34 = vor.u32 %v10634_v16, %v8396_v21  ;;  %4192 = vmatpush.bf16.msra.mxu2 %v8143_v28  ;;  %v10287_v16 = vld [vmem:[%s16538_s1 + $0x1b4] sm:$0xf0] }
 0x251   :  { %v7596_v45 = vld [vmem:[%s16538_s1 + $0x670] sm:$0xf0]  ;;  %v7250_v21 = vld [vmem:[%s16538_s1 + $0x398] sm:$0xf]  ;;  %v6995_v28 = vor.u32 %v10287_v16, %v6994_v15 }
 0x252   :  { %v10498_v30 = vld [vmem:[%s16538_s1 + $0x854] sm:$0xf]  ;;  %v7599_v39 = vor.u32 %v10434_v29, %v7596_v45  ;;  %4205 = vmatpush.bf16.msra.mxu3 %v8399_v34  ;;  %v7251_v31 = vor.u32 %v10351_v23, %v7250_v21  ;;  %v6866_v16 = vld [vmem:[%s16538_s1 + $0x98] sm:$0xf] }
 0x253   :  { %v7852_v33 = vld [vmem:[%s16538_s1 + $0x870] sm:$0xf0]  ;;  %v10255_v21 = vld [vmem:[%s16538_s1 + $0xb4] sm:$0xf0] }
 0x254   :  { %v10562_v35 = vld [vmem:[%s16538_s1 + $0xa54] sm:$0xf]  ;;  %v7855_v32 = vor.u32 %v10498_v30, %v7852_v33  ;;  %4167 = vmatpush.bf16.msra.mxu0 %v7599_v39  ;;  %v6962_v33 = vld [vmem:[%s16538_s1 + $0x158] sm:$0xf] }
 0x255   :  { %v8108_v61 = vld [vmem:[%s16538_s1 + $0xa70] sm:$0xf0] }
 0x256   :  { %v10626_v36 = vld [vmem:[%s16538_s1 + $0xc54] sm:$0xf]  ;;  %v8111_v4 = vor.u32 %v10562_v35, %v8108_v61  ;;  %4180 = vmatpush.bf16.msra.mxu1 %v7855_v32  ;;  %v10279_v35 = vld [vmem:[%s16538_s1 + $0x174] sm:$0xf0] }
 0x257   :  { %v8364_v62 = vld [vmem:[%s16538_s1 + $0xc70] sm:$0xf0]  ;;  %v7218_v61 = vld [vmem:[%s16538_s1 + $0x358] sm:$0xf] }
 0x258   :  { %v10426_v40 = vld [vmem:[%s16538_s1 + $0x614] sm:$0xf]  ;;  %v8367_v49 = vor.u32 %v10626_v36, %v8364_v62  ;;  %4193 = vmatpush.bf16.msra.mxu2 %v8111_v4  ;;  %v10343_v36 = vld [vmem:[%s16538_s1 + $0x374] sm:$0xf0] }
 0x259   :  { %v7564_v10 = vld [vmem:[%s16538_s1 + $0x630] sm:$0xf0] }
 0x25a   :  { %v10490_v43 = vld [vmem:[%s16538_s1 + $0x814] sm:$0xf]  ;;  %v7567_v55 = vor.u32 %v10426_v40, %v7564_v10  ;;  %4206 = vmatpush.bf16.msra.mxu3 %v8367_v49  ;;  %v6963_v40 = vor.u32 %v10279_v35, %v6962_v33  ;;  %v3962_v49 = vpop.f32.mrf.mxu0  ;;  %v6867_v33 = vor.u32 %v10255_v21, %v6866_v16  ;;  %v7762_v16 = vld [vmem:[%s16538_s1 + $0x798] sm:$0xf] }
 0x25b   :  { %v7820_v46 = vld [vmem:[%s16538_s1 + $0x830] sm:$0xf0] }
 0x25c   :  { %v10554_v47 = vld [vmem:[%s16538_s1 + $0xa14] sm:$0xf]  ;;  %v7823_v59 = vor.u32 %v10490_v43, %v7820_v46  ;;  %4168 = vmatpush.bf16.msra.mxu0 %v7567_v55  ;;  %v7219_v43 = vor.u32 %v10343_v36, %v7218_v61 }
 0x25d   :  { %v8076_v6 = vld [vmem:[%s16538_s1 + $0xa30] sm:$0xf0] }
 0x25e   :  { %v10618_v9 = vld [vmem:[%s16538_s1 + $0xc14] sm:$0xf]  ;;  %v8079_v60 = vor.u32 %v10554_v47, %v8076_v6  ;;  %4181 = vmatpush.bf16.msra.mxu1 %v7823_v59  ;;  %v6930_v47 = vld [vmem:[%s16538_s1 + $0x118] sm:$0xf] }
 0x25f   :  { %v8332_v50 = vld [vmem:[%s16538_s1 + $0xc30] sm:$0xf0]  ;;  %4169 = vmatmul.bf16.vlgmr.msra.gmra.mxu0 %v11439_v20  ;;  %v7186_v6 = vld [vmem:[%s16538_s1 + $0x318] sm:$0xf] }
 0x260   :  { %v10738_v52 = vld [vmem:[%s16538_s1 + $0xfd4] sm:$0xf]  ;;  %v8335_v1 = vor.u32 %v10618_v9, %v8332_v50  ;;  %4194 = vmatpush.bf16.msra.mxu2 %v8079_v60  ;;  %v10335_v9 = vld [vmem:[%s16538_s1 + $0x334] sm:$0xf0]  ;;  %v3963_v50 = vadd.f32 %v3962_v49, %v13711_v24 }
 0x261   :  { %v8812_v53 = vld [vmem:[%s16538_s1 + $0xff0] sm:$0xf0]  ;;  %4182 = vmatmul.bf16.vlgmr.msra.gmra.mxu1 %v11599_v41  ;;  %v7187_v24 = vor.u32 %v10335_v9, %v7186_v6  ;;  %v6898_v60 = vld [vmem:[%s16538_s1 + $0xd8] sm:$0xf] }
 0x262   :  { %v10802_v54 = vld [vmem:[%s16538_s1 + $0x11d4] sm:$0xf]  ;;  %v8815_v2 = vor.u32 %v10738_v52, %v8812_v53  ;;  %4207 = vmatpush.bf16.msra.mxu3 %v8335_v1  ;;  %v3975_v52 = vpop.f32.mrf.mxu1  ;;  %v10327_v1 = vld [vmem:[%s16538_s1 + $0x2f4] sm:$0xf0] }
 0x263   :  { %v9068_v56 = vld [vmem:[%s16538_s1 + $0x11f0] sm:$0xf0]  ;;  %4195 = vmatmul.bf16.vlgmr.msra.gmra.mxu2 %v11603_v44  ;;  %v3976_v58 = vadd.f32 %v3975_v52, %v3963_v50  ;;  %v6802_v50 = vld [vmem:[%s16538_s1 + $0x18] sm:$0xf] }
 0x264   :  { %v9071_v3 = vor.u32 %v10802_v54, %v9068_v56  ;;  %v10730_v8 = vld [vmem:[%s16538_s1 + $0xf94] sm:$0xf]  ;;  %4213 = vmatpush.bf16.msrb.mxu0 %v8815_v2  ;;  %4239 = vmatpush.bf16.msrb.mxu2 %v7027_v7  ;;  %v6931_v54 = vor.u32 %v10271_v48, %v6930_v47  ;;  %v6899_v7 = vor.u32 %v10263_v63, %v6898_v60  ;;  %v10239_v52 = vld [vmem:[%s16538_s1 + $0x34] sm:$0xf0] }
 0x265   :  { %v8780_v11 = vld [vmem:[%s16538_s1 + $0xfb0] sm:$0xf0]  ;;  %4208 = vmatmul.bf16.vlgmr.msra.gmra.mxu3 %v11591_v38  ;;  %v10487_v60 = vld [vmem:[%s16538_s1 + $0x7f4] sm:$0xf0] }
 0x266   :  { %v10794_v12 = vld [vmem:[%s16538_s1 + $0x1194] sm:$0xf]  ;;  %v8783_v25 = vor.u32 %v10730_v8, %v8780_v11  ;;  %4226 = vmatpush.bf16.msrb.mxu1 %v9071_v3  ;;  %4252 = vmatpush.bf16.msrb.mxu3 %v7283_v13  ;;  %v7155_v13 = vor.u32 %v10327_v1, %v7154_v0  ;;  %v8050_v63 = vld [vmem:[%s16538_s1 + $0x9d8] sm:$0xf] }
 0x267   :  { %v9036_v14 = vld [vmem:[%s16538_s1 + $0x11b0] sm:$0xf0]  ;;  %v10551_v0 = vld [vmem:[%s16538_s1 + $0x9f4] sm:$0xf0] }
 0x268   :  { %v9039_v26 = vor.u32 %v10794_v12, %v9036_v14  ;;  %v10722_v29 = vld [vmem:[%s16538_s1 + $0xf54] sm:$0xf]  ;;  %4214 = vmatpush.bf16.msrb.mxu0 %v8783_v25  ;;  %4240 = vmatpush.bf16.msrb.mxu2 %v6995_v28  ;;  %v3988_v14 = vpop.f32.mrf.mxu2  ;;  %v4001_v25 = vpop.f32.mrf.mxu3  ;;  %v10319_v28 = vld [vmem:[%s16538_s1 + $0x2b4] sm:$0xf0] }
 0x269   :  { %v8748_v45 = vld [vmem:[%s16538_s1 + $0xf70] sm:$0xf0]  ;;  %v3989_v23 = vadd.f32 %v3988_v14, %v3976_v58  ;;  %v7506_v14 = vld [vmem:[%s16538_s1 + $0x598] sm:$0xf] }
 0x26a   :  { %v10786_v30 = vld [vmem:[%s16538_s1 + $0x1154] sm:$0xf]  ;;  %v8751_v62 = vor.u32 %v10722_v29, %v8748_v45  ;;  %4227 = vmatpush.bf16.msrb.mxu1 %v9039_v26  ;;  %4253 = vmatpush.bf16.msrb.mxu3 %v7251_v31  ;;  %v7122_v26 = vld [vmem:[%s16538_s1 + $0x298] sm:$0xf]  ;;  %v3964_v29 = vpop.f32.mrf.mxu0 }
 0x26b   :  { %v9004_v34 = vld [vmem:[%s16538_s1 + $0x1170] sm:$0xf0]  ;;  %v13910_v31 = vadd.f32 %v4001_v25, %v3989_v23  ;;  %v10479_v23 = vld [vmem:[%s16538_s1 + $0x7b4] sm:$0xf0] }
 0x26c   :  { %v9007_v39 = vor.u32 %v10786_v30, %v9004_v34  ;;  %v10714_v10 = vld [vmem:[%s16538_s1 + $0xf14] sm:$0xf]  ;;  %4215 = vmatpush.bf16.msrb.mxu0 %v8751_v62  ;;  %4241 = vmatpush.bf16.msrb.mxu2 %v6963_v40  ;;  %v3977_v30 = vpop.f32.mrf.mxu1  ;;  %v7123_v62 = vor.u32 %v10319_v28, %v7122_v26  ;;  %v6834_v40 = vld [vmem:[%s16538_s1 + $0x58] sm:$0xf] }
 0x26d   :  { %v8716_v32 = vld [vmem:[%s16538_s1 + $0xf30] sm:$0xf0]  ;;  %v8018_v25 = vld [vmem:[%s16538_s1 + $0x998] sm:$0xf]  ;;  %v7763_v30 = vor.u32 %v10479_v23, %v7762_v16 }
 0x26e   :  { %v10778_v4 = vld [vmem:[%s16538_s1 + $0x1114] sm:$0xf]  ;;  %v8719_v51 = vor.u32 %v10714_v10, %v8716_v32  ;;  %4228 = vmatpush.bf16.msrb.mxu1 %v9007_v39  ;;  %4254 = vmatpush.bf16.msrb.mxu3 %v7219_v43  ;;  %v10247_v10 = vld [vmem:[%s16538_s1 + $0x74] sm:$0xf0] }
 0x26f   :  { %v8972_v46 = vld [vmem:[%s16538_s1 + $0x1130] sm:$0xf0]  ;;  %v7090_v32 = vld [vmem:[%s16538_s1 + $0x258] sm:$0xf]  ;;  %v6835_v49 = vor.u32 %v10247_v10, %v6834_v40 }
 0x270   :  { %v8975_v53 = vor.u32 %v10778_v4, %v8972_v46  ;;  %v10706_v55 = vld [vmem:[%s16538_s1 + $0xed4] sm:$0xf]  ;;  %4216 = vmatpush.bf16.msrb.mxu0 %v8719_v51  ;;  %4242 = vmatpush.bf16.msrb.mxu2 %v6931_v54  ;;  %v10311_v4 = vld [vmem:[%s16538_s1 + $0x274] sm:$0xf0]  ;;  %v4003_v58 = vpop.f32.mrf.mxu3 }
 0x271   :  { %v8684_v56 = vld [vmem:[%s16538_s1 + $0xef0] sm:$0xf0]  ;;  %v7091_v51 = vor.u32 %v10311_v4, %v7090_v32  ;;  %v10303_v54 = vld [vmem:[%s16538_s1 + $0x234] sm:$0xf0] }
 0x272   :  { %v10770_v57 = vld [vmem:[%s16538_s1 + $0x10d4] sm:$0xf]  ;;  %v8687_v2 = vor.u32 %v10706_v55, %v8684_v56  ;;  %4229 = vmatpush.bf16.msrb.mxu1 %v8975_v53  ;;  %4255 = vmatpush.bf16.msrb.mxu3 %v7187_v24  ;;  %v7058_v53 = vld [vmem:[%s16538_s1 + $0x218] sm:$0xf]  ;;  %v3990_v55 = vpop.f32.mrf.mxu2 }
 0x273   :  { %v8940_v59 = vld [vmem:[%s16538_s1 + $0x10f0] sm:$0xf0]  ;;  %v7538_v56 = vld [vmem:[%s16538_s1 + $0x5d8] sm:$0xf] }
 0x274   :  { %v8943_v3 = vor.u32 %v10770_v57, %v8940_v59  ;;  %v10698_v8 = vld [vmem:[%s16538_s1 + $0xe94] sm:$0xf]  ;;  %4217 = vmatpush.bf16.msrb.mxu0 %v8687_v2  ;;  %4243 = vmatpush.bf16.msrb.mxu2 %v6899_v7  ;;  %v10423_v57 = vld [vmem:[%s16538_s1 + $0x5f4] sm:$0xf0]  ;;  %v6803_v2 = vor.u32 %v10239_v52, %v6802_v50 }
 0x275   :  { %v8652_v11 = vld [vmem:[%s16538_s1 + $0xeb0] sm:$0xf0]  ;;  %v7794_v24 = vld [vmem:[%s16538_s1 + $0x7d8] sm:$0xf] }
 0x276   :  { %v10762_v12 = vld [vmem:[%s16538_s1 + $0x1094] sm:$0xf]  ;;  %v8655_v45 = vor.u32 %v10698_v8, %v8652_v11  ;;  %4230 = vmatpush.bf16.msrb.mxu1 %v8943_v3  ;;  %4256 = vmatpush.bf16.msrb.mxu3 %v7155_v13  ;;  %v8306_v3 = vld [vmem:[%s16538_s1 + $0xbd8] sm:$0xf]  ;;  %v7059_v8 = vor.u32 %v10303_v54, %v7058_v53  ;;  %v7539_v11 = vor.u32 %v10423_v57, %v7538_v56  ;;  %v4014_v57 = vpop.f32.mrf.mxu0 }
 0x277   :  { %v8908_v15 = vld [vmem:[%s16538_s1 + $0x10b0] sm:$0xf0]  ;;  %v10615_v7 = vld [vmem:[%s16538_s1 + $0xbf4] sm:$0xf0]  ;;  %v8051_v13 = vor.u32 %v10551_v0, %v8050_v63 }
 0x278   :  { %v8911_v34 = vor.u32 %v10762_v12, %v8908_v15  ;;  %v10690_v35 = vld [vmem:[%s16538_s1 + $0xe54] sm:$0xf]  ;;  %4218 = vmatpush.bf16.msrb.mxu0 %v8655_v45  ;;  %4244 = vmatpush.bf16.msrb.mxu2 %v6867_v33  ;;  %v7795_v12 = vor.u32 %v10487_v60, %v7794_v24  ;;  %v10415_v15 = vld [vmem:[%s16538_s1 + $0x5b4] sm:$0xf0]  ;;  %v8307_v21 = vor.u32 %v10615_v7, %v8306_v3 }
 0x279   :  { %v8620_v61 = vld [vmem:[%s16538_s1 + $0xe70] sm:$0xf0]  ;;  %v10543_v26 = vld [vmem:[%s16538_s1 + $0x9b4] sm:$0xf0]  ;;  %v7507_v45 = vor.u32 %v10415_v15, %v7506_v14 }
 0x27a   :  { %v10754_v36 = vld [vmem:[%s16538_s1 + $0x1054] sm:$0xf]  ;;  %v8623_v43 = vor.u32 %v10690_v35, %v8620_v61  ;;  %4231 = vmatpush.bf16.msrb.mxu1 %v8911_v34  ;;  %4257 = vmatpush.bf16.msrb.mxu3 %v7123_v62  ;;  %v8274_v28 = vld [vmem:[%s16538_s1 + $0xb98] sm:$0xf]  ;;  %v8019_v34 = vor.u32 %v10543_v26, %v8018_v25  ;;  %v4040_v26 = vpop.f32.mrf.mxu2 }
 0x27b   :  { %v8876_v39 = vld [vmem:[%s16538_s1 + $0x1070] sm:$0xf0]  ;;  %v10607_v29 = vld [vmem:[%s16538_s1 + $0xbb4] sm:$0xf0] }
 0x27c   :  { %v10682_v46 = vld [vmem:[%s16538_s1 + $0xe14] sm:$0xf]  ;;  %v8879_v48 = vor.u32 %v10754_v36, %v8876_v39  ;;  %4219 = vmatpush.bf16.msrb.mxu0 %v8623_v43  ;;  %4245 = vmatpush.bf16.msrb.mxu2 %v6835_v49  ;;  %v7474_v33 = vld [vmem:[%s16538_s1 + $0x558] sm:$0xf]  ;;  %v8275_v36 = vor.u32 %v10607_v29, %v8274_v28 }
 0x27d   :  { %v8588_v47 = vld [vmem:[%s16538_s1 + $0xe30] sm:$0xf0]  ;;  %v10407_v35 = vld [vmem:[%s16538_s1 + $0x574] sm:$0xf0] }
 0x27e   :  { %v10746_v6 = vld [vmem:[%s16538_s1 + $0x1014] sm:$0xf]  ;;  %v8591_v59 = vor.u32 %v10682_v46, %v8588_v47  ;;  %4232 = vmatpush.bf16.msrb.mxu1 %v8879_v48  ;;  %4258 = vmatpush.bf16.msrb.mxu3 %v7091_v51  ;;  %v7730_v61 = vld [vmem:[%s16538_s1 + $0x758] sm:$0xf]  ;;  %v7475_v4 = vor.u32 %v10407_v35, %v7474_v33  ;;  %v4053_v33 = vpop.f32.mrf.mxu3 }
 0x27f   :  { %v8844_v9 = vld [vmem:[%s16538_s1 + $0x1030] sm:$0xf0]  ;;  %v10471_v62 = vld [vmem:[%s16538_s1 + $0x774] sm:$0xf0] }
 0x280   :  { %v8847_v1 = vor.u32 %v10746_v6, %v8844_v9  ;;  %4220 = vmatpush.bf16.msrb.mxu0 %v8591_v59  ;;  %4246 = vmatpush.bf16.msrb.mxu2 %v6803_v2  ;;  %v7986_v39 = vld [vmem:[%s16538_s1 + $0x958] sm:$0xf]  ;;  %v7731_v46 = vor.u32 %v10471_v62, %v7730_v61  ;;  %v14048_v6 = vld [vmem:[%s16540_s2] sm:$0xff] }
 0x281   :  { %v10535_v40 = vld [vmem:[%s16538_s1 + $0x974] sm:$0xf0]  ;;  %v613_v9 = vperm.slane %v14048_v6, 4 }
 0x282   :  { %4233 = vmatpush.bf16.msrb.mxu1 %v8847_v1  ;;  %4259 = vmatpush.bf16.msrb.mxu3 %v7059_v8  ;;  %v8242_v10 = vld [vmem:[%s16538_s1 + $0xb58] sm:$0xf]  ;;  %v7987_v47 = vor.u32 %v10535_v40, %v7986_v39  ;;  %v4027_v1 = vpop.f32.mrf.mxu1  ;;  %v4016_v39 = vpop.f32.mrf.mxu0 }
 0x283   :  { %4221 = vmatmul.bf16.vlgmr.msrb.gmra.mxu0 %v11601_v42  ;;  %v10599_v32 = vld [vmem:[%s16538_s1 + $0xb74] sm:$0xf0]  ;;  %4247 = vmatmul.bf16.vlgmr.msrb.gmra.mxu2 %v11437_v19  ;;  %v4015_v0 = vadd.f32 %v4014_v57, %v613_v9  ;;  %v10283_v39 = vld [vmem:[%s16538_s1 + $0x19c] sm:$0xf] }
 0x284   :  { %4265 = vmatpush.bf16.msra.mxu0 %v7539_v11  ;;  %4291 = vmatpush.bf16.msra.mxu2 %v8051_v13  ;;  %v7442_v43 = vld [vmem:[%s16538_s1 + $0x518] sm:$0xf]  ;;  %v8243_v50 = vor.u32 %v10599_v32, %v8242_v10 }
 0x285   :  { %4234 = vmatmul.bf16.vlgmr.msrb.gmra.mxu1 %v11789_v17  ;;  %4260 = vmatmul.bf16.vlgmr.msrb.gmra.mxu3 %v11441_v22  ;;  %v10399_v48 = vld [vmem:[%s16538_s1 + $0x534] sm:$0xf0]  ;;  %v4028_v13 = vadd.f32 %v4027_v1, %v4015_v0 }
 0x286   :  { %4278 = vmatpush.bf16.msra.mxu1 %v7795_v12  ;;  %4304 = vmatpush.bf16.msra.mxu3 %v8307_v21  ;;  %v7698_v49 = vld [vmem:[%s16538_s1 + $0x718] sm:$0xf]  ;;  %v7443_v56 = vor.u32 %v10399_v48, %v7442_v43 }
 0x287   :  { %v10463_v51 = vld [vmem:[%s16538_s1 + $0x734] sm:$0xf0] }
 0x288   :  { %4266 = vmatpush.bf16.msra.mxu0 %v7507_v45  ;;  %4292 = vmatpush.bf16.msra.mxu2 %v8019_v34  ;;  %v7954_v52 = vld [vmem:[%s16538_s1 + $0x918] sm:$0xf]  ;;  %v7699_v24 = vor.u32 %v10463_v51, %v7698_v49  ;;  %v4041_v34 = vadd.f32 %v4040_v26, %v4028_v13 }
 0x289   :  { %v10527_v53 = vld [vmem:[%s16538_s1 + $0x934] sm:$0xf0] }
 0x28a   :  { %4279 = vmatpush.bf16.msra.mxu1 %v7763_v30  ;;  %4305 = vmatpush.bf16.msra.mxu3 %v8275_v36  ;;  %v8210_v54 = vld [vmem:[%s16538_s1 + $0xb18] sm:$0xf]  ;;  %v7955_v58 = vor.u32 %v10527_v53, %v7954_v52  ;;  %v14114_v62 = vadd.f32 %v4053_v33, %v4041_v34 }
 0x28b   :  { %v10591_v55 = vld [vmem:[%s16538_s1 + $0xb34] sm:$0xf0] }
 0x28c   :  { %4267 = vmatpush.bf16.msra.mxu0 %v7475_v4  ;;  %4293 = vmatpush.bf16.msra.mxu2 %v7987_v47  ;;  %v7410_v59 = vld [vmem:[%s16538_s1 + $0x4d8] sm:$0xf]  ;;  %v8211_v2 = vor.u32 %v10591_v55, %v8210_v54 }
 0x28d   :  { %v10391_v60 = vld [vmem:[%s16538_s1 + $0x4f4] sm:$0xf0] }
 0x28e   :  { %4280 = vmatpush.bf16.msra.mxu1 %v7731_v46  ;;  %v7666_v63 = vld [vmem:[%s16538_s1 + $0x6d8] sm:$0xf]  ;;  %4306 = vmatpush.bf16.msra.mxu3 %v8243_v50  ;;  %v7411_v14 = vor.u32 %v10391_v60, %v7410_v59  ;;  %v4029_v46 = vpop.f32.mrf.mxu1  ;;  %v4042_v59 = vpop.f32.mrf.mxu2 }
 0x28f   :  { %v10455_v3 = vld [vmem:[%s16538_s1 + $0x6f4] sm:$0xf0] }
 0x290   :  { %v7922_v7 = vld [vmem:[%s16538_s1 + $0x8d8] sm:$0xf]  ;;  %4268 = vmatpush.bf16.msra.mxu0 %v7443_v56  ;;  %4294 = vmatpush.bf16.msra.mxu2 %v7955_v58  ;;  %v7667_v15 = vor.u32 %v10455_v3, %v7666_v63 }
 0x291   :  { %v10519_v8 = vld [vmem:[%s16538_s1 + $0x8f4] sm:$0xf0] }
 0x292   :  { %v8178_v11 = vld [vmem:[%s16538_s1 + $0xad8] sm:$0xf]  ;;  %4281 = vmatpush.bf16.msra.mxu1 %v7699_v24  ;;  %v7923_v16 = vor.u32 %v10519_v8, %v7922_v7  ;;  %4307 = vmatpush.bf16.msra.mxu3 %v8211_v2  ;;  %v4055_v2 = vpop.f32.mrf.mxu3 }
 0x293   :  { %v10583_v12 = vld [vmem:[%s16538_s1 + $0xaf4] sm:$0xf0] }
 0x294   :  { %v7378_v21 = vld [vmem:[%s16538_s1 + $0x498] sm:$0xf]  ;;  %v8179_v28 = vor.u32 %v10583_v12, %v8178_v11  ;;  %4269 = vmatpush.bf16.msra.mxu0 %v7411_v14  ;;  %4295 = vmatpush.bf16.msra.mxu2 %v7923_v16 }
 0x295   :  { %v10383_v23 = vld [vmem:[%s16538_s1 + $0x4b4] sm:$0xf0] }
 0x296   :  { %v7634_v25 = vld [vmem:[%s16538_s1 + $0x698] sm:$0xf]  ;;  %v7379_v36 = vor.u32 %v10383_v23, %v7378_v21  ;;  %4282 = vmatpush.bf16.msra.mxu1 %v7667_v15  ;;  %4308 = vmatpush.bf16.msra.mxu3 %v8179_v28  ;;  %v10291_v21 = vld [vmem:[%s16538_s1 + $0x1dc] sm:$0xf] }
 0x297   :  { %v10447_v29 = vld [vmem:[%s16538_s1 + $0x6b4] sm:$0xf0]  ;;  %v7028_v23 = vld [vmem:[%s16538_s1 + $0x1f8] sm:$0xf0] }
 0x298   :  { %v7890_v45 = vld [vmem:[%s16538_s1 + $0x898] sm:$0xf]  ;;  %v7635_v40 = vor.u32 %v10447_v29, %v7634_v25  ;;  %4270 = vmatpush.bf16.msra.mxu0 %v7379_v36  ;;  %v7031_v33 = vor.u32 %v10291_v21, %v7028_v23 }
 0x299   :  { %v10511_v30 = vld [vmem:[%s16538_s1 + $0x8b4] sm:$0xf0] }
 0x29a   :  { %v8146_v35 = vld [vmem:[%s16538_s1 + $0xa98] sm:$0xf]  ;;  %v7891_v10 = vor.u32 %v10511_v30, %v7890_v45  ;;  %4283 = vmatpush.bf16.msra.mxu1 %v7635_v40  ;;  %v6996_v40 = vld [vmem:[%s16538_s1 + $0x1b8] sm:$0xf0] }
 0x29b   :  { %v10575_v61 = vld [vmem:[%s16538_s1 + $0xab4] sm:$0xf0] }
 0x29c   :  { %v7346_v32 = vld [vmem:[%s16538_s1 + $0x458] sm:$0xf]  ;;  %v8147_v47 = vor.u32 %v10575_v61, %v8146_v35  ;;  %4296 = vmatpush.bf16.msra.mxu2 %v7891_v10 }
 0x29d   :  { %v10375_v4 = vld [vmem:[%s16538_s1 + $0x474] sm:$0xf0] }
 0x29e   :  { %v7602_v43 = vld [vmem:[%s16538_s1 + $0x658] sm:$0xf]  ;;  %v7347_v52 = vor.u32 %v10375_v4, %v7346_v32  ;;  %4309 = vmatpush.bf16.msra.mxu3 %v8147_v47 }
 0x29f   :  { %v10439_v48 = vld [vmem:[%s16538_s1 + $0x674] sm:$0xf0] }
 0x2a0   :  { %v7858_v49 = vld [vmem:[%s16538_s1 + $0x858] sm:$0xf]  ;;  %v7603_v55 = vor.u32 %v10439_v48, %v7602_v43  ;;  %4271 = vmatpush.bf16.msra.mxu0 %v7347_v52  ;;  %v6999_v48 = vor.u32 %v10283_v39, %v6996_v40  ;;  %v6964_v52 = vld [vmem:[%s16538_s1 + $0x178] sm:$0xf0] }
 0x2a1   :  { %v10503_v9 = vld [vmem:[%s16538_s1 + $0x874] sm:$0xf0] }
 0x2a2   :  { %v8114_v50 = vld [vmem:[%s16538_s1 + $0xa58] sm:$0xf]  ;;  %v7859_v56 = vor.u32 %v10503_v9, %v7858_v49  ;;  %4284 = vmatpush.bf16.msra.mxu1 %v7603_v55 }
 0x2a3   :  { %v10567_v51 = vld [vmem:[%s16538_s1 + $0xa74] sm:$0xf0] }
 0x2a4   :  { %v7314_v53 = vld [vmem:[%s16538_s1 + $0x418] sm:$0xf]  ;;  %v8115_v60 = vor.u32 %v10567_v51, %v8114_v50  ;;  %4297 = vmatpush.bf16.msra.mxu2 %v7859_v56  ;;  %v10275_v51 = vld [vmem:[%s16538_s1 + $0x15c] sm:$0xf] }
 0x2a5   :  { %v10367_v54 = vld [vmem:[%s16538_s1 + $0x434] sm:$0xf0] }
 0x2a6   :  { %v7570_v57 = vld [vmem:[%s16538_s1 + $0x618] sm:$0xf]  ;;  %v7315_v11 = vor.u32 %v10367_v54, %v7314_v53  ;;  %4310 = vmatpush.bf16.msra.mxu3 %v8115_v60 }
 0x2a7   :  { %v10431_v24 = vld [vmem:[%s16538_s1 + $0x634] sm:$0xf0] }
 0x2a8   :  { %v7826_v58 = vld [vmem:[%s16538_s1 + $0x818] sm:$0xf]  ;;  %v7571_v15 = vor.u32 %v10431_v24, %v7570_v57  ;;  %4272 = vmatpush.bf16.msra.mxu0 %v7315_v11 }
 0x2a9   :  { %v10495_v63 = vld [vmem:[%s16538_s1 + $0x834] sm:$0xf0] }
 0x2aa   :  { %v8082_v0 = vld [vmem:[%s16538_s1 + $0xa18] sm:$0xf]  ;;  %v7827_v16 = vor.u32 %v10495_v63, %v7826_v58  ;;  %4285 = vmatpush.bf16.msra.mxu1 %v7571_v15  ;;  %v6967_v58 = vor.u32 %v10275_v51, %v6964_v52  ;;  %v4079_v15 = vpop.f32.mrf.mxu1 }
 0x2ab   :  { %v10559_v1 = vld [vmem:[%s16538_s1 + $0xa34] sm:$0xf0]  ;;  %4273 = vmatmul.bf16.vlgmr.msra.gmra.mxu0 %v11435_v18 }
 0x2ac   :  { %v8562_v3 = vld [vmem:[%s16538_s1 + $0xdd8] sm:$0xf]  ;;  %v8083_v25 = vor.u32 %v10559_v1, %v8082_v0  ;;  %4298 = vmatpush.bf16.msra.mxu2 %v7827_v16  ;;  %v10267_v0 = vld [vmem:[%s16538_s1 + $0x11c] sm:$0xf] }
 0x2ad   :  { %v10679_v7 = vld [vmem:[%s16538_s1 + $0xdf4] sm:$0xf0]  ;;  %4286 = vmatmul.bf16.vlgmr.msra.gmra.mxu1 %v11439_v20  ;;  %v6932_v1 = vld [vmem:[%s16538_s1 + $0x138] sm:$0xf0] }
 0x2ae   :  { %v8818_v8 = vld [vmem:[%s16538_s1 + $0xfd8] sm:$0xf]  ;;  %v8563_v26 = vor.u32 %v10679_v7, %v8562_v3  ;;  %4311 = vmatpush.bf16.msra.mxu3 %v8083_v25  ;;  %v4066_v3 = vpop.f32.mrf.mxu0  ;;  %v6935_v16 = vor.u32 %v10267_v0, %v6932_v1 }
 0x2af   :  { %v10743_v12 = vld [vmem:[%s16538_s1 + $0xff4] sm:$0xf0]  ;;  %4299 = vmatmul.bf16.vlgmr.msra.gmra.mxu2 %v11599_v41 }
 0x2b0   :  { %v9074_v13 = vld [vmem:[%s16538_s1 + $0x11d8] sm:$0xf]  ;;  %v8819_v28 = vor.u32 %v10743_v12, %v8818_v8  ;;  %4317 = vmatpush.bf16.msrb.mxu0 %v8563_v26  ;;  %v10259_v26 = vld [vmem:[%s16538_s1 + $0xdc] sm:$0xf] }
 0x2b1   :  { %v10807_v14 = vld [vmem:[%s16538_s1 + $0x11f4] sm:$0xf0]  ;;  %4312 = vmatmul.bf16.vlgmr.msra.gmra.mxu3 %v11603_v44 }
 0x2b2   :  { %v9075_v29 = vor.u32 %v10807_v14, %v9074_v13  ;;  %v8530_v45 = vld [vmem:[%s16538_s1 + $0xd98] sm:$0xf]  ;;  %4330 = vmatpush.bf16.msrb.mxu1 %v8819_v28  ;;  %4356 = vmatpush.bf16.msrb.mxu3 %v7031_v33  ;;  %v4067_v14 = vadd.f32 %v4066_v3, %v14114_v62  ;;  %v6900_v62 = vld [vmem:[%s16538_s1 + $0xf8] sm:$0xf0] }
 0x2b3   :  { %v10671_v30 = vld [vmem:[%s16538_s1 + $0xdb4] sm:$0xf0] }
 0x2b4   :  { %v8786_v34 = vld [vmem:[%s16538_s1 + $0xf98] sm:$0xf]  ;;  %v8531_v10 = vor.u32 %v10671_v30, %v8530_v45  ;;  %4343 = vmatpush.bf16.msrb.mxu2 %v9075_v29  ;;  %v4080_v28 = vadd.f32 %v4079_v15, %v4067_v14  ;;  %v10235_v14 = vld [vmem:[%s16538_s1 + $0x1c] sm:$0xf] }
 0x2b5   :  { %v10735_v35 = vld [vmem:[%s16538_s1 + $0xfb4] sm:$0xf0]  ;;  %v6804_v15 = vld [vmem:[%s16538_s1 + $0x38] sm:$0xf0] }
 0x2b6   :  { %v9042_v61 = vld [vmem:[%s16538_s1 + $0x1198] sm:$0xf]  ;;  %v8787_v32 = vor.u32 %v10735_v35, %v8786_v34  ;;  %4318 = vmatpush.bf16.msrb.mxu0 %v8531_v10  ;;  %4357 = vmatpush.bf16.msrb.mxu3 %v6999_v48 }
 0x2b7   :  { %v10799_v36 = vld [vmem:[%s16538_s1 + $0x11b4] sm:$0xf0] }
 0x2b8   :  { %v9043_v4 = vor.u32 %v10799_v36, %v9042_v61  ;;  %v8498_v43 = vld [vmem:[%s16538_s1 + $0xd58] sm:$0xf]  ;;  %4331 = vmatpush.bf16.msrb.mxu1 %v8787_v32  ;;  %v4092_v61 = vpop.f32.mrf.mxu2  ;;  %v6903_v36 = vor.u32 %v10259_v26, %v6900_v62  ;;  %v7540_v62 = vld [vmem:[%s16538_s1 + $0x5f8] sm:$0xf0] }
 0x2b9   :  { %v10663_v46 = vld [vmem:[%s16538_s1 + $0xd74] sm:$0xf0]  ;;  %v4093_v32 = vadd.f32 %v4092_v61, %v4080_v28  ;;  %v10483_v28 = vld [vmem:[%s16538_s1 + $0x7dc] sm:$0xf] }
 0x2ba   :  { %v8754_v47 = vld [vmem:[%s16538_s1 + $0xf58] sm:$0xf]  ;;  %v8499_v53 = vor.u32 %v10663_v46, %v8498_v43  ;;  %4344 = vmatpush.bf16.msrb.mxu2 %v9043_v4  ;;  %4358 = vmatpush.bf16.msrb.mxu3 %v6967_v58  ;;  %v4105_v4 = vpop.f32.mrf.mxu3  ;;  %v10251_v43 = vld [vmem:[%s16538_s1 + $0x9c] sm:$0xf] }
 0x2bb   :  { %v10727_v49 = vld [vmem:[%s16538_s1 + $0xf74] sm:$0xf0]  ;;  %v6868_v46 = vld [vmem:[%s16538_s1 + $0xb8] sm:$0xf0]  ;;  %v14313_v48 = vadd.f32 %v4105_v4, %v4093_v32 }
 0x2bc   :  { %v9010_v9 = vld [vmem:[%s16538_s1 + $0x1158] sm:$0xf]  ;;  %v8755_v54 = vor.u32 %v10727_v49, %v8754_v47  ;;  %4319 = vmatpush.bf16.msrb.mxu0 %v8499_v53  ;;  %v4068_v49 = vpop.f32.mrf.mxu0  ;;  %v10243_v58 = vld [vmem:[%s16538_s1 + $0x5c] sm:$0xf] }
 0x2bd   :  { %v10791_v50 = vld [vmem:[%s16538_s1 + $0x1174] sm:$0xf0]  ;;  %v10411_v32 = vld [vmem:[%s16538_s1 + $0x59c] sm:$0xf] }
 0x2be   :  { %v9011_v55 = vor.u32 %v10791_v50, %v9010_v9  ;;  %v8466_v56 = vld [vmem:[%s16538_s1 + $0xd18] sm:$0xf]  ;;  %4332 = vmatpush.bf16.msrb.mxu1 %v8755_v54  ;;  %4359 = vmatpush.bf16.msrb.mxu3 %v6935_v16  ;;  %v4081_v54 = vpop.f32.mrf.mxu1  ;;  %v10539_v49 = vld [vmem:[%s16538_s1 + $0x99c] sm:$0xf] }
 0x2bf   :  { %v10655_v57 = vld [vmem:[%s16538_s1 + $0xd34] sm:$0xf0]  ;;  %v7220_v54 = vld [vmem:[%s16538_s1 + $0x378] sm:$0xf0] }
 0x2c0   :  { %v8722_v24 = vld [vmem:[%s16538_s1 + $0xf18] sm:$0xf]  ;;  %v8467_v2 = vor.u32 %v10655_v57, %v8466_v56  ;;  %4345 = vmatpush.bf16.msrb.mxu2 %v9011_v55  ;;  %v6871_v55 = vor.u32 %v10251_v43, %v6868_v46  ;;  %v7508_v43 = vld [vmem:[%s16538_s1 + $0x5b8] sm:$0xf0] }
 0x2c1   :  { %v10719_v59 = vld [vmem:[%s16538_s1 + $0xf34] sm:$0xf0]  ;;  %v10475_v46 = vld [vmem:[%s16538_s1 + $0x79c] sm:$0xf] }
 0x2c2   :  { %v8978_v60 = vld [vmem:[%s16538_s1 + $0x1118] sm:$0xf]  ;;  %v8723_v7 = vor.u32 %v10719_v59, %v8722_v24  ;;  %4320 = vmatpush.bf16.msrb.mxu0 %v8467_v2  ;;  %4360 = vmatpush.bf16.msrb.mxu3 %v6903_v36  ;;  %v6836_v59 = vld [vmem:[%s16538_s1 + $0x78] sm:$0xf0]  ;;  %v4107_v16 = vpop.f32.mrf.mxu3 }
 0x2c3   :  { %v10783_v63 = vld [vmem:[%s16538_s1 + $0x1134] sm:$0xf0]  ;;  %v614_v16 = vperm.slane %v14048_v6, 5  ;;  %v10387_v6 = vld [vmem:[%s16538_s1 + $0x4dc] sm:$0xf] }
 0x2c4   :  { %v8979_v8 = vor.u32 %v10783_v63, %v8978_v60  ;;  %v8434_v11 = vld [vmem:[%s16538_s1 + $0xcd8] sm:$0xf]  ;;  %4333 = vmatpush.bf16.msrb.mxu1 %v8723_v7 }
 0x2c5   :  { %v10647_v12 = vld [vmem:[%s16538_s1 + $0xcf4] sm:$0xf0] }
 0x2c6   :  { %v8690_v13 = vld [vmem:[%s16538_s1 + $0xed8] sm:$0xf]  ;;  %v8435_v29 = vor.u32 %v10647_v12, %v8434_v11  ;;  %4346 = vmatpush.bf16.msrb.mxu2 %v8979_v8  ;;  %v4094_v11 = vpop.f32.mrf.mxu2  ;;  %4361 = vmatpush.bf16.msrb.mxu3 %v6871_v55  ;;  %v6839_v12 = vor.u32 %v10243_v58, %v6836_v59  ;;  %v10403_v55 = vld [vmem:[%s16538_s1 + $0x55c] sm:$0xf] }
 0x2c7   :  { %v10711_v21 = vld [vmem:[%s16538_s1 + $0xef4] sm:$0xf0]  ;;  %v7732_v58 = vld [vmem:[%s16538_s1 + $0x778] sm:$0xf0] }
 0x2c8   :  { %v8946_v23 = vld [vmem:[%s16538_s1 + $0x10d8] sm:$0xf]  ;;  %v8691_v45 = vor.u32 %v10711_v21, %v8690_v13  ;;  %4321 = vmatpush.bf16.msrb.mxu0 %v8435_v29  ;;  %v10355_v21 = vld [vmem:[%s16538_s1 + $0x3dc] sm:$0xf] }
 0x2c9   :  { %v10775_v25 = vld [vmem:[%s16538_s1 + $0x10f4] sm:$0xf0]  ;;  %v7796_v29 = vld [vmem:[%s16538_s1 + $0x7f8] sm:$0xf0] }
 0x2ca   :  { %v8947_v30 = vor.u32 %v10775_v25, %v8946_v23  ;;  %v8402_v34 = vld [vmem:[%s16538_s1 + $0xc98] sm:$0xf]  ;;  %4334 = vmatpush.bf16.msrb.mxu1 %v8691_v45  ;;  %v7284_v23 = vld [vmem:[%s16538_s1 + $0x3f8] sm:$0xf0]  ;;  %4362 = vmatpush.bf16.msrb.mxu3 %v6839_v12 }
 0x2cb   :  { %v10639_v33 = vld [vmem:[%s16538_s1 + $0xcb4] sm:$0xf0]  ;;  %v10419_v25 = vld [vmem:[%s16538_s1 + $0x5dc] sm:$0xf]  ;;  %v7287_v61 = vor.u32 %v10355_v21, %v7284_v23 }
 0x2cc   :  { %v8658_v35 = vld [vmem:[%s16538_s1 + $0xe98] sm:$0xf]  ;;  %v8403_v47 = vor.u32 %v10639_v33, %v8402_v34  ;;  %4347 = vmatpush.bf16.msrb.mxu2 %v8947_v30  ;;  %v10547_v34 = vld [vmem:[%s16538_s1 + $0x9dc] sm:$0xf]  ;;  %v7543_v36 = vor.u32 %v10419_v25, %v7540_v62 }
 0x2cd   :  { %v10703_v39 = vld [vmem:[%s16538_s1 + $0xeb4] sm:$0xf0]  ;;  %v8052_v33 = vld [vmem:[%s16538_s1 + $0x9f8] sm:$0xf0] }
 0x2ce   :  { %v8914_v40 = vld [vmem:[%s16538_s1 + $0x1098] sm:$0xf]  ;;  %v8659_v9 = vor.u32 %v10703_v39, %v8658_v35  ;;  %4322 = vmatpush.bf16.msrb.mxu0 %v8403_v47  ;;  %v6807_v35 = vor.u32 %v10235_v14, %v6804_v15  ;;  %v7799_v39 = vor.u32 %v10483_v28, %v7796_v29  ;;  %v8055_v4 = vor.u32 %v10547_v34, %v8052_v33  ;;  %v7764_v47 = vld [vmem:[%s16538_s1 + $0x7b8] sm:$0xf0]  ;;  %v4131_v29 = vpop.f32.mrf.mxu1 }
 0x2cf   :  { %v10767_v10 = vld [vmem:[%s16538_s1 + $0x10b4] sm:$0xf0]  ;;  %v10531_v59 = vld [vmem:[%s16538_s1 + $0x95c] sm:$0xf] }
 0x2d0   :  { %v8915_v50 = vor.u32 %v10767_v10, %v8914_v40  ;;  %v8370_v51 = vld [vmem:[%s16538_s1 + $0xc58] sm:$0xf]  ;;  %4335 = vmatpush.bf16.msrb.mxu1 %v8659_v9  ;;  %v10347_v40 = vld [vmem:[%s16538_s1 + $0x39c] sm:$0xf]  ;;  %4363 = vmatpush.bf16.msrb.mxu3 %v6807_v35 }
 0x2d1   :  { %v10631_v52 = vld [vmem:[%s16538_s1 + $0xc74] sm:$0xf0]  ;;  %v7252_v10 = vld [vmem:[%s16538_s1 + $0x3b8] sm:$0xf0] }
 0x2d2   :  { %v8626_v53 = vld [vmem:[%s16538_s1 + $0xe58] sm:$0xf]  ;;  %v8371_v60 = vor.u32 %v10631_v52, %v8370_v51  ;;  %4348 = vmatpush.bf16.msrb.mxu2 %v8915_v50  ;;  %v8020_v9 = vld [vmem:[%s16538_s1 + $0x9b8] sm:$0xf0]  ;;  %v7255_v50 = vor.u32 %v10347_v40, %v7252_v10  ;;  %v7511_v51 = vor.u32 %v10411_v32, %v7508_v43  ;;  %v7767_v52 = vor.u32 %v10475_v46, %v7764_v47 }
 0x2d3   :  { %v10695_v56 = vld [vmem:[%s16538_s1 + $0xe74] sm:$0xf0]  ;;  %4364 = vmatmul.bf16.vlgmr.msrb.gmra.mxu3 %v11437_v19  ;;  %v7444_v19 = vld [vmem:[%s16538_s1 + $0x538] sm:$0xf0] }
 0x2d4   :  { %v8882_v57 = vld [vmem:[%s16538_s1 + $0x1058] sm:$0xf]  ;;  %v8627_v1 = vor.u32 %v10695_v56, %v8626_v53  ;;  %4323 = vmatpush.bf16.msrb.mxu0 %v8371_v60  ;;  %v10339_v53 = vld [vmem:[%s16538_s1 + $0x35c] sm:$0xf]  ;;  %4408 = vmatpush.bf16.msra.mxu3 %v8055_v4  ;;  %v8023_v56 = vor.u32 %v10539_v49, %v8020_v9  ;;  %v4144_v9 = vpop.f32.mrf.mxu2 }
 0x2d5   :  { %v10759_v24 = vld [vmem:[%s16538_s1 + $0x1074] sm:$0xf0]  ;;  %v7988_v60 = vld [vmem:[%s16538_s1 + $0x978] sm:$0xf0] }
 0x2d6   :  { %v8338_v63 = vld [vmem:[%s16538_s1 + $0xc18] sm:$0xf]  ;;  %v8883_v2 = vor.u32 %v10759_v24, %v8882_v57  ;;  %4336 = vmatpush.bf16.msrb.mxu1 %v8627_v1  ;;  %v7476_v57 = vld [vmem:[%s16538_s1 + $0x578] sm:$0xf0] }
 0x2d7   :  { %v10623_v0 = vld [vmem:[%s16538_s1 + $0xc34] sm:$0xf0]  ;;  %v10467_v24 = vld [vmem:[%s16538_s1 + $0x75c] sm:$0xf] }
 0x2d8   :  { %v8594_v3 = vld [vmem:[%s16538_s1 + $0xe18] sm:$0xf]  ;;  %v8339_v26 = vor.u32 %v10623_v0, %v8338_v63  ;;  %4349 = vmatpush.bf16.msrb.mxu2 %v8883_v2  ;;  %v7223_v63 = vor.u32 %v10339_v53, %v7220_v54  ;;  %v7479_v0 = vor.u32 %v10403_v55, %v7476_v57  ;;  %v7735_v1 = vor.u32 %v10467_v24, %v7732_v58  ;;  %v10331_v2 = vld [vmem:[%s16538_s1 + $0x31c] sm:$0xf] }
 0x2d9   :  { %v10687_v7 = vld [vmem:[%s16538_s1 + $0xe34] sm:$0xf0]  ;;  %4409 = vmatpush.bf16.msra.mxu3 %v8023_v56  ;;  %v10459_v11 = vld [vmem:[%s16538_s1 + $0x71c] sm:$0xf] }
 0x2da   :  { %v8850_v8 = vld [vmem:[%s16538_s1 + $0x1018] sm:$0xf]  ;;  %v8595_v45 = vor.u32 %v10687_v7, %v8594_v3  ;;  %4324 = vmatpush.bf16.msrb.mxu0 %v8339_v26  ;;  %v7188_v3 = vld [vmem:[%s16538_s1 + $0x338] sm:$0xf0] }
 0x2db   :  { %v10751_v13 = vld [vmem:[%s16538_s1 + $0x1034] sm:$0xf0]  ;;  %v10395_v7 = vld [vmem:[%s16538_s1 + $0x51c] sm:$0xf]  ;;  %v7191_v23 = vor.u32 %v10331_v2, %v7188_v3 }
 0x2dc   :  { %v8851_v30 = vor.u32 %v10751_v13, %v8850_v8  ;;  %4337 = vmatpush.bf16.msrb.mxu1 %v8595_v45  ;;  %v7991_v8 = vor.u32 %v10531_v59, %v7988_v60  ;;  %v7700_v12 = vld [vmem:[%s16538_s1 + $0x738] sm:$0xf0]  ;;  %v4118_v13 = vpop.f32.mrf.mxu0  ;;  %v7447_v25 = vor.u32 %v10395_v7, %v7444_v19 }
 0x2dd   :  { %4325 = vmatmul.bf16.vlgmr.msrb.gmra.mxu0 %v11591_v38  ;;  %v10523_v14 = vld [vmem:[%s16538_s1 + $0x91c] sm:$0xf]  ;;  %v14465_v21 = vadd.f32 %v4118_v13, %v14313_v48  ;;  %v7703_v26 = vor.u32 %v10459_v11, %v7700_v12 }
 0x2de   :  { %4350 = vmatpush.bf16.msrb.mxu2 %v8851_v30  ;;  %4369 = vmatpush.bf16.msra.mxu0 %v7287_v61  ;;  %v7956_v15 = vld [vmem:[%s16538_s1 + $0x938] sm:$0xf0]  ;;  %v4132_v61 = vadd.f32 %v4131_v29, %v614_v16 }
 0x2df   :  { %4338 = vmatmul.bf16.vlgmr.msrb.gmra.mxu1 %v11601_v42  ;;  %v10323_v62 = vld [vmem:[%s16538_s1 + $0x2dc] sm:$0xf]  ;;  %4410 = vmatpush.bf16.msra.mxu3 %v7991_v8  ;;  %v7959_v48 = vor.u32 %v10523_v14, %v7956_v15 }
 0x2e0   :  { %4382 = vmatpush.bf16.msra.mxu1 %v7543_v36  ;;  %v7156_v28 = vld [vmem:[%s16538_s1 + $0x2f8] sm:$0xf0]  ;;  %v4145_v53 = vadd.f32 %v4144_v9, %v4132_v61 }
 0x2e1   :  { %4351 = vmatmul.bf16.vlgmr.msrb.gmra.mxu2 %v11789_v17  ;;  %v7412_v45 = vld [vmem:[%s16538_s1 + $0x4f8] sm:$0xf0]  ;;  %v7159_v36 = vor.u32 %v10323_v62, %v7156_v28 }
 0x2e2   :  { %4395 = vmatpush.bf16.msra.mxu2 %v7799_v39  ;;  %4370 = vmatpush.bf16.msra.mxu0 %v7255_v50  ;;  %v10451_v30 = vld [vmem:[%s16538_s1 + $0x6dc] sm:$0xf]  ;;  %v7415_v39 = vor.u32 %v10387_v6, %v7412_v45  ;;  %v4157_v50 = vpop.f32.mrf.mxu3  ;;  %v4146_v6 = vpop.f32.mrf.mxu2 }
 0x2e3   :  { %v7668_v34 = vld [vmem:[%s16538_s1 + $0x6f8] sm:$0xf0]  ;;  %4411 = vmatpush.bf16.msra.mxu3 %v7959_v48  ;;  %v14524_v60 = vadd.f32 %v4157_v50, %v4145_v53 }
 0x2e4   :  { %4383 = vmatpush.bf16.msra.mxu1 %v7511_v51  ;;  %v10515_v33 = vld [vmem:[%s16538_s1 + $0x8dc] sm:$0xf]  ;;  %v7671_v40 = vor.u32 %v10451_v30, %v7668_v34  ;;  %v4120_v54 = vpop.f32.mrf.mxu0 }
 0x2e5   :  { %v7924_v35 = vld [vmem:[%s16538_s1 + $0x8f8] sm:$0xf0] }
 0x2e6   :  { %4396 = vmatpush.bf16.msra.mxu2 %v7767_v52  ;;  %4371 = vmatpush.bf16.msra.mxu0 %v7223_v63  ;;  %v10315_v10 = vld [vmem:[%s16538_s1 + $0x29c] sm:$0xf]  ;;  %v7927_v43 = vor.u32 %v10515_v33, %v7924_v35  ;;  %v4133_v63 = vpop.f32.mrf.mxu1 }
 0x2e7   :  { %v7124_v32 = vld [vmem:[%s16538_s1 + $0x2b8] sm:$0xf0] }
 0x2e8   :  { %4384 = vmatpush.bf16.msra.mxu1 %v7479_v0  ;;  %v10379_v4 = vld [vmem:[%s16538_s1 + $0x49c] sm:$0xf]  ;;  %v7127_v55 = vor.u32 %v10315_v10, %v7124_v32  ;;  %4412 = vmatpush.bf16.msra.mxu3 %v7927_v43 }
 0x2e9   :  { %v7380_v46 = vld [vmem:[%s16538_s1 + $0x4b8] sm:$0xf0] }
 0x2ea   :  { %4397 = vmatpush.bf16.msra.mxu2 %v7735_v1  ;;  %4372 = vmatpush.bf16.msra.mxu0 %v7191_v23  ;;  %v10443_v47 = vld [vmem:[%s16538_s1 + $0x69c] sm:$0xf]  ;;  %v7383_v56 = vor.u32 %v10379_v4, %v7380_v46  ;;  %v4159_v29 = vpop.f32.mrf.mxu3 }
 0x2eb   :  { %v7636_v49 = vld [vmem:[%s16538_s1 + $0x6b8] sm:$0xf0] }
 0x2ec   :  { %4385 = vmatpush.bf16.msra.mxu1 %v7447_v25  ;;  %v10507_v51 = vld [vmem:[%s16538_s1 + $0x89c] sm:$0xf]  ;;  %v7639_v57 = vor.u32 %v10443_v47, %v7636_v49 }
 0x2ed   :  { %v7892_v52 = vld [vmem:[%s16538_s1 + $0x8b8] sm:$0xf0] }
 0x2ee   :  { %4398 = vmatpush.bf16.msra.mxu2 %v7703_v26  ;;  %4373 = vmatpush.bf16.msra.mxu0 %v7159_v36  ;;  %v10307_v24 = vld [vmem:[%s16538_s1 + $0x25c] sm:$0xf]  ;;  %v7895_v0 = vor.u32 %v10507_v51, %v7892_v52 }
 0x2ef   :  { %v7092_v58 = vld [vmem:[%s16538_s1 + $0x278] sm:$0xf0] }
 0x2f0   :  { %4386 = vmatpush.bf16.msra.mxu1 %v7415_v39  ;;  %v10371_v59 = vld [vmem:[%s16538_s1 + $0x45c] sm:$0xf]  ;;  %v7095_v19 = vor.u32 %v10307_v24, %v7092_v58  ;;  %4413 = vmatpush.bf16.msra.mxu3 %v7895_v0 }
 0x2f1   :  { %v7348_v1 = vld [vmem:[%s16538_s1 + $0x478] sm:$0xf0] }
 0x2f2   :  { %4399 = vmatpush.bf16.msra.mxu2 %v7671_v40  ;;  %v10435_v2 = vld [vmem:[%s16538_s1 + $0x65c] sm:$0xf]  ;;  %4374 = vmatpush.bf16.msra.mxu0 %v7127_v55  ;;  %v7351_v13 = vor.u32 %v10371_v59, %v7348_v1 }
 0x2f3   :  { %v7604_v3 = vld [vmem:[%s16538_s1 + $0x678] sm:$0xf0] }
 0x2f4   :  { %v10499_v7 = vld [vmem:[%s16538_s1 + $0x85c] sm:$0xf]  ;;  %4387 = vmatpush.bf16.msra.mxu1 %v7383_v56  ;;  %v7607_v14 = vor.u32 %v10435_v2, %v7604_v3 }
 0x2f5   :  { %v7860_v8 = vld [vmem:[%s16538_s1 + $0x878] sm:$0xf0] }
 0x2f6   :  { %v10299_v11 = vld [vmem:[%s16538_s1 + $0x21c] sm:$0xf]  ;;  %4400 = vmatpush.bf16.msra.mxu2 %v7639_v57  ;;  %v7863_v25 = vor.u32 %v10499_v7, %v7860_v8  ;;  %4375 = vmatpush.bf16.msra.mxu0 %v7095_v19 }
 0x2f7   :  { %v7060_v12 = vld [vmem:[%s16538_s1 + $0x238] sm:$0xf0] }
 0x2f8   :  { %v10363_v15 = vld [vmem:[%s16538_s1 + $0x41c] sm:$0xf]  ;;  %v7063_v34 = vor.u32 %v10299_v11, %v7060_v12  ;;  %4388 = vmatpush.bf16.msra.mxu1 %v7351_v13  ;;  %4414 = vmatpush.bf16.msra.mxu3 %v7863_v25 }
 0x2f9   :  { %v7316_v16 = vld [vmem:[%s16538_s1 + $0x438] sm:$0xf0] }
 0x2fa   :  { %v10427_v23 = vld [vmem:[%s16538_s1 + $0x61c] sm:$0xf]  ;;  %4401 = vmatpush.bf16.msra.mxu2 %v7607_v14  ;;  %v7319_v36 = vor.u32 %v10363_v15, %v7316_v16  ;;  %4376 = vmatpush.bf16.msra.mxu0 %v7063_v34 }
 0x2fb   :  { %v7572_v26 = vld [vmem:[%s16538_s1 + $0x638] sm:$0xf0] }
 0x2fc   :  { %v10491_v62 = vld [vmem:[%s16538_s1 + $0x81c] sm:$0xf]  ;;  %v7575_v39 = vor.u32 %v10427_v23, %v7572_v26  ;;  %4389 = vmatpush.bf16.msra.mxu1 %v7319_v36  ;;  %v4170_v26 = vpop.f32.mrf.mxu0 }
 0x2fd   :  { %v7828_v28 = vld [vmem:[%s16538_s1 + $0x838] sm:$0xf0]  ;;  %4377 = vmatmul.bf16.vlgmr.msra.gmra.mxu0 %v11441_v22 }
 0x2fe   :  { %v10611_v48 = vld [vmem:[%s16538_s1 + $0xbdc] sm:$0xf]  ;;  %v7831_v32 = vor.u32 %v10491_v62, %v7828_v28  ;;  %4402 = vmatpush.bf16.msra.mxu2 %v7575_v39 }
 0x2ff   :  { %v8308_v45 = vld [vmem:[%s16538_s1 + $0xbf8] sm:$0xf0]  ;;  %4390 = vmatmul.bf16.vlgmr.msra.gmra.mxu1 %v11435_v18 }
 0x300   :  { %v10675_v30 = vld [vmem:[%s16538_s1 + $0xddc] sm:$0xf]  ;;  %v8311_v4 = vor.u32 %v10611_v48, %v8308_v45  ;;  %4415 = vmatpush.bf16.msra.mxu3 %v7831_v32  ;;  %v4171_v45 = vadd.f32 %v4170_v26, %v14524_v60 }
 0x301   :  { %v8564_v33 = vld [vmem:[%s16538_s1 + $0xdf8] sm:$0xf0]  ;;  %4403 = vmatmul.bf16.vlgmr.msra.gmra.mxu2 %v11439_v20 }
 0x302   :  { %v10739_v35 = vld [vmem:[%s16538_s1 + $0xfdc] sm:$0xf]  ;;  %v8567_v43 = vor.u32 %v10675_v30, %v8564_v33  ;;  %4421 = vmatpush.bf16.msrb.mxu0 %v8311_v4  ;;  %v4183_v30 = vpop.f32.mrf.mxu1 }
 0x303   :  { %v8820_v61 = vld [vmem:[%s16538_s1 + $0xff8] sm:$0xf0]  ;;  %4416 = vmatmul.bf16.vlgmr.msra.gmra.mxu3 %v11599_v41  ;;  %v4184_v39 = vadd.f32 %v4183_v30, %v4171_v45  ;;  %v9322_v45 = vld [vmem:[%s16541_s3 + $0x1e0] sm:$0xf] }
 0x304   :  { %v10803_v40 = vld [vmem:[%s16538_s1 + $0x11dc] sm:$0xf]  ;;  %v8823_v46 = vor.u32 %v10739_v35, %v8820_v61  ;;  %4434 = vmatpush.bf16.msrb.mxu1 %v8567_v43 }
 0x305   :  { %v9076_v10 = vld [vmem:[%s16538_s1 + $0x11f8] sm:$0xf0] }
 0x306   :  { %v10603_v47 = vld [vmem:[%s16538_s1 + $0xb9c] sm:$0xf]  ;;  %v9079_v50 = vor.u32 %v10803_v40, %v9076_v10  ;;  %4447 = vmatpush.bf16.msrb.mxu2 %v8823_v46 }
 0x307   :  { %v8276_v49 = vld [vmem:[%s16538_s1 + $0xbb8] sm:$0xf0] }
 0x308   :  { %v10667_v9 = vld [vmem:[%s16538_s1 + $0xd9c] sm:$0xf]  ;;  %v8279_v56 = vor.u32 %v10603_v47, %v8276_v49  ;;  %4460 = vmatpush.bf16.msrb.mxu3 %v9079_v50  ;;  %v4196_v47 = vpop.f32.mrf.mxu2 }
 0x309   :  { %v8532_v51 = vld [vmem:[%s16538_s1 + $0xdb8] sm:$0xf0] }
 0x30a   :  { %v10731_v52 = vld [vmem:[%s16538_s1 + $0xf9c] sm:$0xf]  ;;  %v8535_v57 = vor.u32 %v10667_v9, %v8532_v51  ;;  %4422 = vmatpush.bf16.msrb.mxu0 %v8279_v56 }
 0x30b   :  { %v8788_v53 = vld [vmem:[%s16538_s1 + $0xfb8] sm:$0xf0] }
 0x30c   :  { %v10795_v54 = vld [vmem:[%s16538_s1 + $0x119c] sm:$0xf]  ;;  %v8791_v24 = vor.u32 %v10731_v52, %v8788_v53  ;;  %4435 = vmatpush.bf16.msrb.mxu1 %v8535_v57  ;;  %v4197_v52 = vadd.f32 %v4196_v47, %v4184_v39  ;;  %v4209_v53 = vpop.f32.mrf.mxu3  ;;  %v10934_v39 = vld [vmem:[%s16541_s3 + $0x3ec] sm:$0xf0]  ;;  %v9306_v47 = vld [vmem:[%s16541_s3 + $0x1c0] sm:$0xf] }
 0x30d   :  { %v9044_v55 = vld [vmem:[%s16538_s1 + $0x11b8] sm:$0xf0] }
 0x30e   :  { %v10595_v58 = vld [vmem:[%s16538_s1 + $0xb5c] sm:$0xf]  ;;  %v9047_v0 = vor.u32 %v10795_v54, %v9044_v55  ;;  %4448 = vmatpush.bf16.msrb.mxu2 %v8791_v24  ;;  %v14714_v57 = vadd.f32 %v4209_v53, %v4197_v52  ;;  %v4172_v24 = vpop.f32.mrf.mxu0  ;;  %v9562_v52 = vld [vmem:[%s16541_s3 + $0x3c0] sm:$0xf]  ;;  %v10930_v53 = vld [vmem:[%s16541_s3 + $0x3cc] sm:$0xf0] }
 0x30f   :  { %v8244_v59 = vld [vmem:[%s16538_s1 + $0xb78] sm:$0xf0]  ;;  %v9162_v24 = vld [vmem:[%s16541_s3 + $0xa0] sm:$0xf] }
 0x310   :  { %v10659_v63 = vld [vmem:[%s16538_s1 + $0xd5c] sm:$0xf]  ;;  %v8247_v8 = vor.u32 %v10595_v58, %v8244_v59  ;;  %4461 = vmatpush.bf16.msrb.mxu3 %v9047_v0 }
 0x311   :  { %v8500_v1 = vld [vmem:[%s16538_s1 + $0xd78] sm:$0xf0] }
 0x312   :  { %v10723_v2 = vld [vmem:[%s16538_s1 + $0xf5c] sm:$0xf]  ;;  %v8503_v19 = vor.u32 %v10659_v63, %v8500_v1  ;;  %4423 = vmatpush.bf16.msrb.mxu0 %v8247_v8 }
 0x313   :  { %v8756_v3 = vld [vmem:[%s16538_s1 + $0xf78] sm:$0xf0] }
 0x314   :  { %v10787_v7 = vld [vmem:[%s16538_s1 + $0x115c] sm:$0xf]  ;;  %v8759_v11 = vor.u32 %v10723_v2, %v8756_v3  ;;  %4436 = vmatpush.bf16.msrb.mxu1 %v8503_v19  ;;  %v4185_v2 = vpop.f32.mrf.mxu1 }
 0x315   :  { %v9012_v20 = vld [vmem:[%s16538_s1 + $0x1178] sm:$0xf0]  ;;  %v10894_v2 = vld [vmem:[%s16541_s3 + $0x2ac] sm:$0xf0] }
 0x316   :  { %v10587_v12 = vld [vmem:[%s16538_s1 + $0xb1c] sm:$0xf]  ;;  %v9015_v41 = vor.u32 %v10787_v7, %v9012_v20  ;;  %4449 = vmatpush.bf16.msrb.mxu2 %v8759_v11 }
 0x317   :  { %v8212_v13 = vld [vmem:[%s16538_s1 + $0xb38] sm:$0xf0] }
 0x318   :  { %v10651_v22 = vld [vmem:[%s16538_s1 + $0xd1c] sm:$0xf]  ;;  %v8215_v25 = vor.u32 %v10587_v12, %v8212_v13  ;;  %4462 = vmatpush.bf16.msrb.mxu3 %v9015_v41 }
 0x319   :  { %v8468_v18 = vld [vmem:[%s16538_s1 + $0xd38] sm:$0xf0] }
 0x31a   :  { %v10715_v14 = vld [vmem:[%s16538_s1 + $0xf1c] sm:$0xf]  ;;  %v8471_v62 = vor.u32 %v10651_v22, %v8468_v18  ;;  %4424 = vmatpush.bf16.msrb.mxu0 %v8215_v25 }
 0x31b   :  { %v8724_v15 = vld [vmem:[%s16538_s1 + $0xf38] sm:$0xf0] }
 0x31c   :  { %v10779_v16 = vld [vmem:[%s16538_s1 + $0x111c] sm:$0xf]  ;;  %v8727_v28 = vor.u32 %v10715_v14, %v8724_v15  ;;  %4437 = vmatpush.bf16.msrb.mxu1 %v8471_v62 }
 0x31d   :  { %v8980_v23 = vld [vmem:[%s16538_s1 + $0x1138] sm:$0xf0] }
 0x31e   :  { %v10579_v6 = vld [vmem:[%s16538_s1 + $0xadc] sm:$0xf]  ;;  %v8983_v34 = vor.u32 %v10779_v16, %v8980_v23  ;;  %4450 = vmatpush.bf16.msrb.mxu2 %v8727_v28  ;;  %v4198_v23 = vpop.f32.mrf.mxu2 }
 0x31f   :  { %v8180_v29 = vld [vmem:[%s16538_s1 + $0xaf8] sm:$0xf0] }
 0x320   :  { %v10643_v48 = vld [vmem:[%s16538_s1 + $0xcdc] sm:$0xf]  ;;  %v8183_v40 = vor.u32 %v10579_v6, %v8180_v29  ;;  %4463 = vmatpush.bf16.msrb.mxu3 %v8983_v34  ;;  %v4211_v6 = vpop.f32.mrf.mxu3  ;;  %v9194_v29 = vld [vmem:[%s16541_s3 + $0xe0] sm:$0xf]  ;;  %v10870_v34 = vld [vmem:[%s16541_s3 + $0x1ec] sm:$0xf0] }
 0x321   :  { %v8436_v33 = vld [vmem:[%s16538_s1 + $0xcf8] sm:$0xf0]  ;;  %v10854_v6 = vld [vmem:[%s16541_s3 + $0x16c] sm:$0xf0] }
 0x322   :  { %v10707_v35 = vld [vmem:[%s16538_s1 + $0xedc] sm:$0xf]  ;;  %v8439_v10 = vor.u32 %v10643_v48, %v8436_v33  ;;  %4425 = vmatpush.bf16.msrb.mxu0 %v8183_v40  ;;  %v10838_v48 = vld [vmem:[%s16541_s3 + $0xec] sm:$0xf0]  ;;  %v9450_v33 = vld [vmem:[%s16541_s3 + $0x2e0] sm:$0xf] }
 0x323   :  { %v8692_v61 = vld [vmem:[%s16538_s1 + $0xef8] sm:$0xf0] }
 0x324   :  { %v10771_v36 = vld [vmem:[%s16538_s1 + $0x10dc] sm:$0xf]  ;;  %v8695_v32 = vor.u32 %v10707_v35, %v8692_v61  ;;  %4438 = vmatpush.bf16.msrb.mxu1 %v8439_v10  ;;  %v10902_v35 = vld [vmem:[%s16541_s3 + $0x2ec] sm:$0xf0]  ;;  %v9195_v10 = vor.u32 %v10838_v48, %v9194_v29  ;;  %v9386_v29 = vld [vmem:[%s16541_s3 + $0x260] sm:$0xf] }
 0x325   :  { %v8948_v60 = vld [vmem:[%s16538_s1 + $0x10f8] sm:$0xf0]  ;;  %v10886_v48 = vld [vmem:[%s16541_s3 + $0x26c] sm:$0xf0] }
 0x326   :  { %v10571_v4 = vld [vmem:[%s16538_s1 + $0xa9c] sm:$0xf]  ;;  %v8951_v49 = vor.u32 %v10771_v36, %v8948_v60  ;;  %4451 = vmatpush.bf16.msrb.mxu2 %v8695_v32  ;;  %v9578_v60 = vld [vmem:[%s16541_s3 + $0x3e0] sm:$0xf]  ;;  %v9323_v32 = vor.u32 %v10870_v34, %v9322_v45 }
 0x327   :  { %v8148_v43 = vld [vmem:[%s16538_s1 + $0xab8] sm:$0xf0]  ;;  %v9514_v45 = vld [vmem:[%s16541_s3 + $0x360] sm:$0xf] }
 0x328   :  { %v10635_v46 = vld [vmem:[%s16538_s1 + $0xc9c] sm:$0xf]  ;;  %v8151_v56 = vor.u32 %v10571_v4, %v8148_v43  ;;  %4464 = vmatpush.bf16.msrb.mxu3 %v8951_v49  ;;  %v9451_v4 = vor.u32 %v10902_v35, %v9450_v33  ;;  %v9178_v43 = vld [vmem:[%s16541_s3 + $0xc0] sm:$0xf]  ;;  %v9579_v49 = vor.u32 %v10934_v39, %v9578_v60  ;;  %v9387_v35 = vor.u32 %v10886_v48, %v9386_v29 }
 0x329   :  { %v8404_v9 = vld [vmem:[%s16538_s1 + $0xcb8] sm:$0xf0]  ;;  %v9242_v60 = vld [vmem:[%s16541_s3 + $0x140] sm:$0xf]  ;;  %v4475_v48 = vmax.f32 %v13503_v5, 0.0 }
 0x32a   :  { %v10699_v50 = vld [vmem:[%s16538_s1 + $0xe9c] sm:$0xf]  ;;  %v8407_v58 = vor.u32 %v10635_v46, %v8404_v9  ;;  %4426 = vmatpush.bf16.msrb.mxu0 %v8151_v56  ;;  %v10834_v46 = vld [vmem:[%s16541_s3 + $0xcc] sm:$0xf0] }
 0x32b   :  { %v8660_v51 = vld [vmem:[%s16538_s1 + $0xeb8] sm:$0xf0]  ;;  %v10866_v9 = vld [vmem:[%s16541_s3 + $0x1cc] sm:$0xf0] }
 0x32c   :  { %v10763_v54 = vld [vmem:[%s16538_s1 + $0x109c] sm:$0xf]  ;;  %v8663_v59 = vor.u32 %v10699_v50, %v8660_v51  ;;  %4439 = vmatpush.bf16.msrb.mxu1 %v8407_v58  ;;  %v9434_v50 = vld [vmem:[%s16541_s3 + $0x2c0] sm:$0xf]  ;;  %v10898_v51 = vld [vmem:[%s16541_s3 + $0x2cc] sm:$0xf0] }
 0x32d   :  { %v8916_v55 = vld [vmem:[%s16538_s1 + $0x10b8] sm:$0xf0]  ;;  %v9435_v56 = vor.u32 %v10898_v51, %v9434_v50  ;;  %v10830_v58 = vld [vmem:[%s16541_s3 + $0xac] sm:$0xf0] }
 0x32e   :  { %v10563_v63 = vld [vmem:[%s16538_s1 + $0xa5c] sm:$0xf]  ;;  %v8919_v3 = vor.u32 %v10763_v54, %v8916_v55  ;;  %4452 = vmatpush.bf16.msrb.mxu2 %v8663_v59  ;;  %v9179_v54 = vor.u32 %v10834_v46, %v9178_v43  ;;  %v9307_v55 = vor.u32 %v10866_v9, %v9306_v47  ;;  %v9290_v59 = vld [vmem:[%s16541_s3 + $0x1a0] sm:$0xf]  ;;  %v10914_v46 = vld [vmem:[%s16541_s3 + $0x34c] sm:$0xf0]  ;;  %v14918_v47 = vpop.f32.mrf.mxu3 }
 0x32f   :  { %v8116_v0 = vld [vmem:[%s16538_s1 + $0xa78] sm:$0xf0]  ;;  %v9498_v43 = vld [vmem:[%s16541_s3 + $0x340] sm:$0xf]  ;;  %v10994_v5 = vld [vmem:[%s16541_s3 + $0x5cc] sm:$0xf0] }
 0x330   :  { %v10627_v1 = vld [vmem:[%s16538_s1 + $0xc5c] sm:$0xf]  ;;  %v8119_v12 = vor.u32 %v10563_v63, %v8116_v0  ;;  %4465 = vmatpush.bf16.msrb.mxu3 %v8919_v3  ;;  %v9563_v63 = vor.u32 %v10930_v53, %v9562_v52  ;;  %v10862_v0 = vld [vmem:[%s16541_s3 + $0x1ac] sm:$0xf0]  ;;  %v9098_v53 = vld [vmem:[%s16541_s3 + $0x20] sm:$0xf] }
 0x331   :  { %v8372_v7 = vld [vmem:[%s16538_s1 + $0xc78] sm:$0xf0]  ;;  %v10926_v3 = vld [vmem:[%s16541_s3 + $0x3ac] sm:$0xf0] }
 0x332   :  { %v10691_v20 = vld [vmem:[%s16538_s1 + $0xe5c] sm:$0xf]  ;;  %v8375_v41 = vor.u32 %v10627_v1, %v8372_v7  ;;  %4427 = vmatpush.bf16.msrb.mxu0 %v8119_v12  ;;  %v9418_v1 = vld [vmem:[%s16541_s3 + $0x2a0] sm:$0xf]  ;;  %v9163_v7 = vor.u32 %v10830_v58, %v9162_v24  ;;  %v10846_v24 = vld [vmem:[%s16541_s3 + $0x12c] sm:$0xf0] }
 0x333   :  { %v8628_v8 = vld [vmem:[%s16538_s1 + $0xe78] sm:$0xf0]  ;;  %v9402_v12 = vld [vmem:[%s16541_s3 + $0x280] sm:$0xf] }
 0x334   :  { %v10755_v19 = vld [vmem:[%s16538_s1 + $0x105c] sm:$0xf]  ;;  %v8631_v18 = vor.u32 %v10691_v20, %v8628_v8  ;;  %4440 = vmatpush.bf16.msrb.mxu1 %v8375_v41  ;;  %v9291_v20 = vor.u32 %v10862_v0, %v9290_v59  ;;  %v9419_v8 = vor.u32 %v10894_v2, %v9418_v1  ;;  %v9530_v41 = vld [vmem:[%s16541_s3 + $0x380] sm:$0xf]  ;;  %v10878_v59 = vld [vmem:[%s16541_s3 + $0x22c] sm:$0xf0] }
 0x335   :  { %v8884_v11 = vld [vmem:[%s16538_s1 + $0x1078] sm:$0xf0]  ;;  %v9354_v58 = vld [vmem:[%s16541_s3 + $0x220] sm:$0xf]  ;;  %v10910_v0 = vld [vmem:[%s16541_s3 + $0x32c] sm:$0xf0] }
 0x336   :  { %v10555_v13 = vld [vmem:[%s16538_s1 + $0xa1c] sm:$0xf]  ;;  %v8887_v25 = vor.u32 %v10755_v19, %v8884_v11  ;;  %4453 = vmatpush.bf16.msrb.mxu2 %v8631_v18  ;;  %v9274_v19 = vld [vmem:[%s16541_s3 + $0x180] sm:$0xf]  ;;  %v10858_v11 = vld [vmem:[%s16541_s3 + $0x18c] sm:$0xf0] }
 0x337   :  { %v8084_v22 = vld [vmem:[%s16538_s1 + $0xa38] sm:$0xf0]  ;;  %v10922_v18 = vld [vmem:[%s16541_s3 + $0x38c] sm:$0xf0]  ;;  %v9082_v2 = vld [vmem:[%s16541_s3] sm:$0xf] }
 0x338   :  { %v10619_v14 = vld [vmem:[%s16538_s1 + $0xc1c] sm:$0xf]  ;;  %v8087_v30 = vor.u32 %v10555_v13, %v8084_v22  ;;  %4466 = vmatpush.bf16.msrb.mxu3 %v8887_v25  ;;  %v10890_v13 = vld [vmem:[%s16541_s3 + $0x28c] sm:$0xf0]  ;;  %v14858_v22 = vpop.f32.mrf.mxu0  ;;  %v9130_v25 = vld [vmem:[%s16541_s3 + $0x60] sm:$0xf] }
 0x339   :  { %v8340_v15 = vld [vmem:[%s16538_s1 + $0xc38] sm:$0xf0]  ;;  %v9403_v23 = vor.u32 %v10890_v13, %v9402_v12  ;;  %v9706_v13 = vld [vmem:[%s16541_s3 + $0x4e0] sm:$0xf] }
 0x33a   :  { %v10683_v16 = vld [vmem:[%s16538_s1 + $0xe1c] sm:$0xf]  ;;  %v8343_v61 = vor.u32 %v10619_v14, %v8340_v15  ;;  %4428 = vmatpush.bf16.msrb.mxu0 %v8087_v30  ;;  %v14866_v15 = vpop.f32.mrf.mxu1  ;;  %v10918_v30 = vld [vmem:[%s16541_s3 + $0x36c] sm:$0xf0] }
 0x33b   :  { %v8596_v26 = vld [vmem:[%s16538_s1 + $0xe38] sm:$0xf0]  ;;  %v9515_v39 = vor.u32 %v10918_v30, %v9514_v45  ;;  %v4476_v45 = vmax.f32 %v13910_v31, 0.0  ;;  %v9946_v31 = vld [vmem:[%s16541_s3 + $0x6c0] sm:$0xf] }
 0x33c   :  { %v10747_v62 = vld [vmem:[%s16538_s1 + $0x101c] sm:$0xf]  ;;  %v8599_v36 = vor.u32 %v10683_v16, %v8596_v26  ;;  %4441 = vmatpush.bf16.msrb.mxu1 %v8343_v61  ;;  %v9275_v16 = vor.u32 %v10858_v11, %v9274_v19  ;;  %v10822_v26 = vld [vmem:[%s16541_s3 + $0x6c] sm:$0xf0]  ;;  %v9114_v61 = vld [vmem:[%s16541_s3 + $0x40] sm:$0xf] }
 0x33d   :  { %v8852_v28 = vld [vmem:[%s16538_s1 + $0x1038] sm:$0xf0]  ;;  %4429 = vmatmul.bf16.vlgmr.msrb.gmra.mxu0 %v11603_v44  ;;  %v9546_v44 = vld [vmem:[%s16541_s3 + $0x3a0] sm:$0xf]  ;;  %v9131_v34 = vor.u32 %v10822_v26, %v9130_v25  ;;  %v10874_v19 = vld [vmem:[%s16541_s3 + $0x20c] sm:$0xf0] }
 0x33e   :  { %v8855_v40 = vor.u32 %v10747_v62, %v8852_v28  ;;  %4454 = vmatpush.bf16.msrb.mxu2 %v8599_v36  ;;  %6035 = vmatpush.bf16.msra.mxu0 %v9195_v10  ;;  %v9258_v62 = vld [vmem:[%s16541_s3 + $0x160] sm:$0xf]  ;;  %v9531_v28 = vor.u32 %v10922_v18, %v9530_v41  ;;  %v10818_v36 = vld [vmem:[%s16541_s3 + $0x4c] sm:$0xf0] }
 0x33f   :  { %4442 = vmatmul.bf16.vlgmr.msrb.gmra.mxu1 %v11591_v38  ;;  %v9146_v38 = vld [vmem:[%s16541_s3 + $0x80] sm:$0xf]  ;;  %v9259_v33 = vor.u32 %v10854_v6, %v9258_v62  ;;  %v9115_v9 = vor.u32 %v10818_v36, %v9114_v61  ;;  %v10906_v11 = vld [vmem:[%s16541_s3 + $0x30c] sm:$0xf0]  ;;  %v4473_v62 = vmax.f32 %v12655_v27, 0.0 }
 0x340   :  { %4467 = vmatpush.bf16.msrb.mxu3 %v8855_v40  ;;  %6048 = vmatpush.bf16.msra.mxu1 %v9323_v32  ;;  %v10850_v40 = vld [vmem:[%s16541_s3 + $0x14c] sm:$0xf0]  ;;  %v9370_v10 = vld [vmem:[%s16541_s3 + $0x240] sm:$0xf] }
 0x341   :  { %4455 = vmatmul.bf16.vlgmr.msrb.gmra.mxu2 %v11601_v42  ;;  %v10826_v42 = vld [vmem:[%s16541_s3 + $0x8c] sm:$0xf0]  ;;  %v9243_v51 = vor.u32 %v10850_v40, %v9242_v60  ;;  %v9834_v18 = vld [vmem:[%s16541_s3 + $0x5e0] sm:$0xf]  ;;  %v15008_v60 = vpack.c.bf16 %v4473_v62, %v4473_v62  ;;  %v15012_v40 = vpack.c.bf16 %v4475_v48, %v4475_v48  ;;  %v4223_v48 = vadd.f32 %v14858_v22, %v14714_v57 }
 0x342   :  { %6061 = vmatpush.bf16.msra.mxu2 %v9451_v4  ;;  %6036 = vmatpush.bf16.msra.mxu0 %v9179_v54  ;;  %v9147_v14 = vor.u32 %v10826_v42, %v9146_v38  ;;  %v10882_v32 = vld [vmem:[%s16541_s3 + $0x24c] sm:$0xf0]  ;;  %v14910_v4 = vpop.f32.mrf.mxu2  ;;  %v4237_v50 = vpop.f32.mrf.mxu1  ;;  %v9338_v38 = vld [vmem:[%s16541_s3 + $0x200] sm:$0xf] }
 0x343   :  { %4468 = vmatmul.bf16.vlgmr.msrb.gmra.mxu3 %v11789_v17  ;;  %v9547_v17 = vor.u32 %v10926_v3, %v9546_v44  ;;  %v9371_v52 = vor.u32 %v10882_v32, %v9370_v10  ;;  %v10814_v54 = vld [vmem:[%s16541_s3 + $0x2c] sm:$0xf0]  ;;  %v9962_v25 = vld [vmem:[%s16541_s3 + $0x6e0] sm:$0xf]  ;;  %v9339_v29 = vor.u32 %v10874_v19, %v9338_v38  ;;  %v15014_v32 = vpack.c.bf16 %v4476_v45, %v4476_v45 }
 0x344   :  { %6074 = vmatpush.bf16.msra.mxu3 %v9579_v49  ;;  %6049 = vmatpush.bf16.msra.mxu1 %v9307_v55  ;;  %v4224_v49 = vpop.f32.mrf.mxu0  ;;  %v9226_v55 = vld [vmem:[%s16541_s3 + $0x120] sm:$0xf]  ;;  %v9099_v1 = vor.u32 %v10814_v54, %v9098_v53  ;;  %v10810_v44 = vld [vmem:[%s16541_s3 + $0xc] sm:$0xf0] }
 0x345   :  { %v9227_v3 = vor.u32 %v10846_v24, %v9226_v55  ;;  %v10966_v41 = vld [vmem:[%s16541_s3 + $0x4ec] sm:$0xf0]  ;;  %v9690_v61 = vld [vmem:[%s16541_s3 + $0x4c0] sm:$0xf] }
 0x346   :  { %6062 = vmatpush.bf16.msra.mxu2 %v9435_v56  ;;  %6037 = vmatpush.bf16.msra.mxu0 %v9163_v7  ;;  %v9499_v56 = vor.u32 %v10914_v46, %v9498_v43  ;;  %v9355_v7 = vor.u32 %v10878_v59, %v9354_v58  ;;  %v11030_v26 = vld [vmem:[%s16541_s3 + $0x6ec] sm:$0xf0]  ;;  %v9674_v49 = vld [vmem:[%s16541_s3 + $0x4a0] sm:$0xf] }
 0x347   :  { %v10962_v27 = vld [vmem:[%s16541_s3 + $0x4cc] sm:$0xf0]  ;;  %v9802_v50 = vld [vmem:[%s16541_s3 + $0x5a0] sm:$0xf] }
 0x348   :  { %6075 = vmatpush.bf16.msra.mxu3 %v9563_v63  ;;  %6050 = vmatpush.bf16.msra.mxu1 %v9291_v20  ;;  %v9482_v63 = vld [vmem:[%s16541_s3 + $0x320] sm:$0xf]  ;;  %v11026_v36 = vld [vmem:[%s16541_s3 + $0x6cc] sm:$0xf0]  ;;  %v9691_v10 = vor.u32 %v10962_v27, %v9690_v61 }
 0x349   :  { %v9210_v20 = vld [vmem:[%s16541_s3 + $0x100] sm:$0xf]  ;;  %v9483_v42 = vor.u32 %v10910_v0, %v9482_v63  ;;  %v9947_v46 = vor.u32 %v11026_v36, %v9946_v31  ;;  %v11022_v53 = vld [vmem:[%s16541_s3 + $0x6ac] sm:$0xf0]  ;;  %v4236_v31 = vadd.f32 %v14866_v15, %v4223_v48 }
 0x34a   :  { %6063 = vmatpush.bf16.msra.mxu2 %v9419_v8  ;;  %6038 = vmatpush.bf16.msra.mxu0 %v9147_v14  ;;  %v10842_v8 = vld [vmem:[%s16541_s3 + $0x10c] sm:$0xf0]  ;;  %v4250_v12 = vpop.f32.mrf.mxu2  ;;  %v4263_v14 = vpop.f32.mrf.mxu3  ;;  %v9658_v24 = vld [vmem:[%s16541_s3 + $0x480] sm:$0xf] }
 0x34b   :  { %v9211_v6 = vor.u32 %v10842_v8, %v9210_v20  ;;  %v10954_v58 = vld [vmem:[%s16541_s3 + $0x48c] sm:$0xf0]  ;;  %v9786_v59 = vld [vmem:[%s16541_s3 + $0x580] sm:$0xf] }
 0x34c   :  { %6076 = vmatpush.bf16.msra.mxu3 %v9547_v17  ;;  %6051 = vmatpush.bf16.msra.mxu1 %v9275_v16  ;;  %v9466_v17 = vld [vmem:[%s16541_s3 + $0x300] sm:$0xf]  ;;  %v9083_v16 = vor.u32 %v10810_v44, %v9082_v2  ;;  %v10986_v63 = vld [vmem:[%s16541_s3 + $0x58c] sm:$0xf0]  ;;  %v9659_v2 = vor.u32 %v10954_v58, %v9658_v24  ;;  %v15056_v44 = vpop.f32.mrf.mxu0  ;;  %v9196_v24 = vld [vmem:[%s16541_s3 + $0xf0] sm:$0xf0] }
 0x34d   :  { %v9467_v30 = vor.u32 %v10906_v11, %v9466_v17  ;;  %v9914_v0 = vld [vmem:[%s16541_s3 + $0x680] sm:$0xf]  ;;  %v10950_v8 = vld [vmem:[%s16541_s3 + $0x46c] sm:$0xf0]  ;;  %v10868_v58 = vld [vmem:[%s16541_s3 + $0x1e4] sm:$0xf] }
 0x34e   :  { %6064 = vmatpush.bf16.msra.mxu2 %v9403_v23  ;;  %6039 = vmatpush.bf16.msra.mxu0 %v9131_v34  ;;  %v10998_v23 = vld [vmem:[%s16541_s3 + $0x5ec] sm:$0xf0]  ;;  %v9707_v34 = vor.u32 %v10966_v41, %v9706_v13  ;;  %v9642_v20 = vld [vmem:[%s16541_s3 + $0x460] sm:$0xf] }
 0x34f   :  { %v9770_v38 = vld [vmem:[%s16541_s3 + $0x560] sm:$0xf]  ;;  %v10982_v19 = vld [vmem:[%s16541_s3 + $0x56c] sm:$0xf0]  ;;  %v9643_v41 = vor.u32 %v10950_v8, %v9642_v20 }
 0x350   :  { %6077 = vmatpush.bf16.msra.mxu3 %v9531_v28  ;;  %6052 = vmatpush.bf16.msra.mxu1 %v9259_v33  ;;  %v4474_v28 = vmax.f32 %v13064_v37, 0.0  ;;  %v9835_v33 = vor.u32 %v10998_v23, %v9834_v18  ;;  %v9818_v37 = vld [vmem:[%s16541_s3 + $0x5c0] sm:$0xf]  ;;  %v11014_v11 = vld [vmem:[%s16541_s3 + $0x66c] sm:$0xf0]  ;;  %v9771_v18 = vor.u32 %v10982_v19, %v9770_v38 }
 0x351   :  { %v9819_v43 = vor.u32 %v10994_v5, %v9818_v37  ;;  %v9898_v17 = vld [vmem:[%s16541_s3 + $0x660] sm:$0xf]  ;;  %v10946_v23 = vld [vmem:[%s16541_s3 + $0x44c] sm:$0xf0] }
 0x352   :  { %6065 = vmatpush.bf16.msra.mxu2 %v9387_v35  ;;  %6040 = vmatpush.bf16.msra.mxu0 %v9115_v9  ;;  %v9963_v35 = vor.u32 %v11030_v26, %v9962_v25  ;;  %v10958_v9 = vld [vmem:[%s16541_s3 + $0x4ac] sm:$0xf0]  ;;  %v15081_v12 = vld [vmem:[%s16540_s2] sm:$0xff]  ;;  %v9899_v14 = vor.u32 %v11014_v11, %v9898_v17  ;;  %v15093_v26 = vpop.f32.mrf.mxu2  ;;  %v9180_v11 = vld [vmem:[%s16541_s3 + $0xd0] sm:$0xf0] }
 0x353   :  { %v9675_v54 = vor.u32 %v10958_v9, %v9674_v49  ;;  %v615_v13 = vperm.slane %v15081_v12, 6  ;;  %v9754_v25 = vld [vmem:[%s16541_s3 + $0x540] sm:$0xf]  ;;  %v10978_v62 = vld [vmem:[%s16541_s3 + $0x54c] sm:$0xf0] }
 0x354   :  { %6078 = vmatpush.bf16.msra.mxu3 %v9515_v39  ;;  %6053 = vmatpush.bf16.msra.mxu1 %v9243_v51  ;;  %v15010_v39 = vpack.c.bf16 %v4474_v28, %v4474_v28  ;;  %v10990_v51 = vld [vmem:[%s16541_s3 + $0x5ac] sm:$0xf0]  ;;  %v9882_v28 = vld [vmem:[%s16541_s3 + $0x640] sm:$0xf] }
 0x355   :  { %v9803_v55 = vor.u32 %v10990_v51, %v9802_v50  ;;  %v9610_v61 = vld [vmem:[%s16541_s3 + $0x420] sm:$0xf]  ;;  %v10942_v27 = vld [vmem:[%s16541_s3 + $0x42c] sm:$0xf0] }
 0x356   :  { %6066 = vmatpush.bf16.msra.mxu2 %v9371_v52  ;;  %6041 = vmatpush.bf16.msra.mxu0 %v9099_v1  ;;  %v9930_v52 = vld [vmem:[%s16541_s3 + $0x6a0] sm:$0xf]  ;;  %v11018_v1 = vld [vmem:[%s16541_s3 + $0x68c] sm:$0xf0]  ;;  %v9611_v36 = vor.u32 %v10942_v27, %v9610_v61 }
 0x357   :  { %v9738_v57 = vld [vmem:[%s16541_s3 + $0x520] sm:$0xf]  ;;  %v11006_v5 = vld [vmem:[%s16541_s3 + $0x62c] sm:$0xf0] }
 0x358   :  { %6079 = vmatpush.bf16.msra.mxu3 %v9499_v56  ;;  %6054 = vmatpush.bf16.msra.mxu1 %v9227_v3  ;;  %v9931_v56 = vor.u32 %v11022_v53, %v9930_v52  ;;  %v9787_v3 = vor.u32 %v10986_v63, %v9786_v59  ;;  %v9866_v37 = vld [vmem:[%s16541_s3 + $0x620] sm:$0xf]  ;;  %v10970_v50 = vld [vmem:[%s16541_s3 + $0x50c] sm:$0xf0]  ;;  %v9324_v59 = vld [vmem:[%s16541_s3 + $0x1f0] sm:$0xf0] }
 0x359   :  { %v9867_v15 = vor.u32 %v11006_v5, %v9866_v37  ;;  %v9850_v51 = vld [vmem:[%s16541_s3 + $0x600] sm:$0xf]  ;;  %v11002_v52 = vld [vmem:[%s16541_s3 + $0x60c] sm:$0xf0]  ;;  %v9327_v17 = vor.u32 %v10868_v58, %v9324_v59  ;;  %v10852_v58 = vld [vmem:[%s16541_s3 + $0x164] sm:$0xf] }
 0x35a   :  { %6067 = vmatpush.bf16.msra.mxu2 %v9355_v7  ;;  %6042 = vmatpush.bf16.msra.mxu0 %v9083_v16  ;;  %v9915_v7 = vor.u32 %v11018_v1, %v9914_v0  ;;  %v9626_v16 = vld [vmem:[%s16541_s3 + $0x440] sm:$0xf]  ;;  %v4302_v53 = vpop.f32.mrf.mxu2  ;;  %v4477_v0 = vmax.f32 %v14465_v21, 0.0  ;;  %v9851_v38 = vor.u32 %v11002_v52, %v9850_v51  ;;  %v10832_v21 = vld [vmem:[%s16541_s3 + $0xc4] sm:$0xf] }
 0x35b   :  { %v9627_v45 = vor.u32 %v10946_v23, %v9626_v16  ;;  %v10896_v16 = vld [vmem:[%s16541_s3 + $0x2c4] sm:$0xf]  ;;  %v9436_v23 = vld [vmem:[%s16541_s3 + $0x2d0] sm:$0xf0]  ;;  %v9183_v48 = vor.u32 %v10832_v21, %v9180_v11  ;;  %v10058_v61 = vld [vmem:[%s16541_s3 + $0x7a0] sm:$0xf] }
 0x35c   :  { %6080 = vmatpush.bf16.msra.mxu3 %v9483_v42  ;;  %6055 = vmatpush.bf16.msra.mxu1 %v9211_v6  ;;  %v15067_v42 = vpop.f32.mrf.mxu1  ;;  %v11010_v6 = vld [vmem:[%s16541_s3 + $0x64c] sm:$0xf0] }
 0x35d   :  { %6043 = vmatmul.bf16.vlgmr.msra.gmra.mxu0 %v15008_v60  ;;  %v11054_v27 = vld [vmem:[%s16541_s3 + $0x7ac] sm:$0xf0] }
 0x35e   :  { %6068 = vmatpush.bf16.msra.mxu2 %v9339_v29  ;;  %6087 = vmatpush.bf16.msrb.mxu0 %v9707_v34  ;;  %v15104_v29 = vpop.f32.mrf.mxu3  ;;  %v4249_v34 = vadd.f32 %v14910_v4, %v615_v13  ;;  %v10974_v4 = vld [vmem:[%s16541_s3 + $0x52c] sm:$0xf0]  ;;  %v10864_v13 = vld [vmem:[%s16541_s3 + $0x1c4] sm:$0xf] }
 0x35f   :  { %6056 = vmatmul.bf16.vlgmr.msra.gmra.mxu1 %v15010_v39  ;;  %v9739_v9 = vor.u32 %v10974_v4, %v9738_v57  ;;  %v10892_v57 = vld [vmem:[%s16541_s3 + $0x2a4] sm:$0xf]  ;;  %v10059_v4 = vor.u32 %v11054_v27, %v10058_v61  ;;  %v11038_v61 = vld [vmem:[%s16541_s3 + $0x72c] sm:$0xf0] }
 0x360   :  { %6081 = vmatpush.bf16.msra.mxu3 %v9467_v30  ;;  %6100 = vmatpush.bf16.msrb.mxu1 %v9835_v33  ;;  %v4276_v30 = vpop.f32.mrf.mxu0  ;;  %v9755_v33 = vor.u32 %v10978_v62, %v9754_v25  ;;  %v4262_v49 = vadd.f32 %v14918_v47, %v4249_v34  ;;  %v10836_v47 = vld [vmem:[%s16541_s3 + $0xe4] sm:$0xf]  ;;  %v15197_v62 = vpack.c.bf16 %v4477_v0, %v4477_v0  ;;  %v9164_v34 = vld [vmem:[%s16541_s3 + $0xb0] sm:$0xf0]  ;;  %v10026_v0 = vld [vmem:[%s16541_s3 + $0x760] sm:$0xf] }
 0x361   :  { %6069 = vmatmul.bf16.vlgmr.msra.gmra.mxu2 %v15012_v40  ;;  %v9199_v19 = vor.u32 %v10836_v47, %v9196_v24  ;;  %v10828_v30 = vld [vmem:[%s16541_s3 + $0xa4] sm:$0xf]  ;;  %v9132_v24 = vld [vmem:[%s16541_s3 + $0x70] sm:$0xf0] }
 0x362   :  { %6113 = vmatpush.bf16.msrb.mxu2 %v9963_v35  ;;  %6088 = vmatpush.bf16.msrb.mxu0 %v9691_v10  ;;  %v9883_v35 = vor.u32 %v11010_v6, %v9882_v28  ;;  %v9594_v10 = vld [vmem:[%s16541_s3 + $0x400] sm:$0xf]  ;;  %v4275_v20 = vadd.f32 %v15056_v44, %v4262_v49  ;;  %v9167_v5 = vor.u32 %v10828_v30, %v9164_v34  ;;  %v10856_v49 = vld [vmem:[%s16541_s3 + $0x184] sm:$0xf] }
 0x363   :  { %6082 = vmatmul.bf16.vlgmr.msra.gmra.mxu3 %v15014_v32 }
 0x364   :  { %6101 = vmatpush.bf16.msrb.mxu1 %v9819_v43  ;;  %v4289_v22 = vpop.f32.mrf.mxu1  ;;  %v10938_v43 = vld [vmem:[%s16541_s3 + $0x40c] sm:$0xf0]  ;;  %v4288_v28 = vadd.f32 %v15067_v42, %v4275_v20  ;;  %v10860_v42 = vld [vmem:[%s16541_s3 + $0x1a4] sm:$0xf] }
 0x365   :  { %v9595_v1 = vor.u32 %v10938_v43, %v9594_v10  ;;  %v9420_v22 = vld [vmem:[%s16541_s3 + $0x2b0] sm:$0xf0]  ;;  %v10042_v10 = vld [vmem:[%s16541_s3 + $0x780] sm:$0xf]  ;;  %v11050_v43 = vld [vmem:[%s16541_s3 + $0x78c] sm:$0xf0] }
 0x366   :  { %6114 = vmatpush.bf16.msrb.mxu2 %v9947_v46  ;;  %6089 = vmatpush.bf16.msrb.mxu0 %v9675_v54  ;;  %v9722_v46 = vld [vmem:[%s16541_s3 + $0x500] sm:$0xf]  ;;  %v4315_v54 = vpop.f32.mrf.mxu3  ;;  %v4301_v37 = vadd.f32 %v15093_v26, %v4288_v28  ;;  %v9148_v26 = vld [vmem:[%s16541_s3 + $0x90] sm:$0xf0]  ;;  %v10043_v51 = vor.u32 %v11050_v43, %v10042_v10  ;;  %v10812_v28 = vld [vmem:[%s16541_s3 + $0x24] sm:$0xf] }
 0x367   :  { %v9723_v8 = vor.u32 %v10970_v50, %v9722_v46  ;;  %v9423_v46 = vor.u32 %v10892_v57, %v9420_v22  ;;  %v9404_v50 = vld [vmem:[%s16541_s3 + $0x290] sm:$0xf0]  ;;  %v10844_v22 = vld [vmem:[%s16541_s3 + $0x124] sm:$0xf] }
 0x368   :  { %6102 = vmatpush.bf16.msrb.mxu1 %v9803_v55  ;;  %v10090_v55 = vld [vmem:[%s16541_s3 + $0x7e0] sm:$0xf]  ;;  %v4314_v52 = vadd.f32 %v15104_v29, %v4301_v37  ;;  %v4326_v53 = vpop.f32.mrf.mxu0  ;;  %v10876_v37 = vld [vmem:[%s16541_s3 + $0x224] sm:$0xf]  ;;  %v9084_v43 = vld [vmem:[%s16541_s3 + $0x10] sm:$0xf0] }
 0x369   :  { %v10808_v10 = vld [vmem:[%s16541_s3 + $0x4] sm:$0xf] }
 0x36a   :  { %6115 = vmatpush.bf16.msrb.mxu2 %v9931_v56  ;;  %6090 = vmatpush.bf16.msrb.mxu0 %v9659_v2  ;;  %v11062_v56 = vld [vmem:[%s16541_s3 + $0x7ec] sm:$0xf0]  ;;  %v10900_v2 = vld [vmem:[%s16541_s3 + $0x2e4] sm:$0xf]  ;;  %v4327_v29 = vadd.f32 %v4326_v53, %v4314_v52  ;;  %v9340_v53 = vld [vmem:[%s16541_s3 + $0x210] sm:$0xf0] }
 0x36b   :  { %v10091_v63 = vor.u32 %v11062_v56, %v10090_v55  ;;  %v10820_v56 = vld [vmem:[%s16541_s3 + $0x64] sm:$0xf] }
 0x36c   :  { %6103 = vmatpush.bf16.msrb.mxu1 %v9787_v3  ;;  %v9452_v3 = vld [vmem:[%s16541_s3 + $0x2f0] sm:$0xf0]  ;;  %v4339_v55 = vpop.f32.mrf.mxu1  ;;  %v9135_v20 = vor.u32 %v10820_v56, %v9132_v24  ;;  %v10996_v24 = vld [vmem:[%s16541_s3 + $0x5e4] sm:$0xf] }
 0x36d   :  { %6126 = vmatpush.bf16.msrb.mxu3 %v10091_v63  ;;  %v9455_v44 = vor.u32 %v10900_v2, %v9452_v3  ;;  %v9260_v63 = vld [vmem:[%s16541_s3 + $0x170] sm:$0xf0]  ;;  %v10884_v2 = vld [vmem:[%s16541_s3 + $0x264] sm:$0xf]  ;;  %v4340_v21 = vadd.f32 %v4339_v55, %v4327_v29 }
 0x36e   :  { %6116 = vmatpush.bf16.msrb.mxu2 %v9915_v7  ;;  %6091 = vmatpush.bf16.msrb.mxu0 %v9643_v41  ;;  %v4478_v7 = vmax.f32 %v4236_v31, 0.0  ;;  %v9308_v41 = vld [vmem:[%s16541_s3 + $0x1d0] sm:$0xf0]  ;;  %v10964_v55 = vld [vmem:[%s16541_s3 + $0x4e4] sm:$0xf] }
 0x36f   :  { %v9388_v3 = vld [vmem:[%s16541_s3 + $0x270] sm:$0xf0] }
 0x370   :  { %6104 = vmatpush.bf16.msrb.mxu1 %v9771_v18  ;;  %v10074_v18 = vld [vmem:[%s16541_s3 + $0x7c0] sm:$0xf]  ;;  %v15200_v6 = vpack.c.bf16 %v4478_v7, %v4478_v7  ;;  %v9391_v11 = vor.u32 %v10884_v2, %v9388_v3  ;;  %v9708_v56 = vld [vmem:[%s16541_s3 + $0x4f0] sm:$0xf0]  ;;  %v9087_v3 = vor.u32 %v10808_v10, %v9084_v43  ;;  %v10984_v10 = vld [vmem:[%s16541_s3 + $0x584] sm:$0xf] }
 0x371   :  { %v10920_v43 = vld [vmem:[%s16541_s3 + $0x384] sm:$0xf] }
 0x372   :  { %6117 = vmatpush.bf16.msrb.mxu2 %v9899_v14  ;;  %6092 = vmatpush.bf16.msrb.mxu0 %v9627_v45  ;;  %v11058_v14 = vld [vmem:[%s16541_s3 + $0x7cc] sm:$0xf0]  ;;  %v9311_v45 = vor.u32 %v10864_v13, %v9308_v41  ;;  %v9116_v13 = vld [vmem:[%s16541_s3 + $0x50] sm:$0xf0] }
 0x373   :  { %v10075_v25 = vor.u32 %v11058_v14, %v10074_v18  ;;  %v9244_v41 = vld [vmem:[%s16541_s3 + $0x150] sm:$0xf0]  ;;  %v4352_v18 = vpop.f32.mrf.mxu2  ;;  %v10880_v14 = vld [vmem:[%s16541_s3 + $0x244] sm:$0xf] }
 0x374   :  { %6105 = vmatpush.bf16.msrb.mxu1 %v9755_v33  ;;  %v9439_v33 = vor.u32 %v10896_v16, %v9436_v23  ;;  %v9372_v16 = vld [vmem:[%s16541_s3 + $0x250] sm:$0xf0] }
 0x375   :  { %6127 = vmatpush.bf16.msrb.mxu3 %v10075_v25  ;;  %v4353_v25 = vadd.f32 %v4352_v18, %v4340_v21  ;;  %v9375_v57 = vor.u32 %v10880_v14, %v9372_v16  ;;  %v11024_v18 = vld [vmem:[%s16541_s3 + $0x6c4] sm:$0xf]  ;;  %v9948_v14 = vld [vmem:[%s16541_s3 + $0x6d0] sm:$0xf0] }
 0x376   :  { %6118 = vmatpush.bf16.msrb.mxu2 %v9883_v35  ;;  %6093 = vmatpush.bf16.msrb.mxu0 %v9611_v36  ;;  %v9292_v35 = vld [vmem:[%s16541_s3 + $0x1b0] sm:$0xf0]  ;;  %v10824_v36 = vld [vmem:[%s16541_s3 + $0x84] sm:$0xf] }
 0x377   :  { %v9295_v31 = vor.u32 %v10860_v42, %v9292_v35  ;;  %v9151_v47 = vor.u32 %v10824_v36, %v9148_v26  ;;  %v9100_v42 = vld [vmem:[%s16541_s3 + $0x30] sm:$0xf0]  ;;  %v9994_v35 = vld [vmem:[%s16541_s3 + $0x720] sm:$0xf]  ;;  %v4479_v27 = vmax.f32 %v4353_v25, 0.0 }
 0x378   :  { %6106 = vmatpush.bf16.msrb.mxu1 %v9739_v9  ;;  %v9276_v9 = vld [vmem:[%s16541_s3 + $0x190] sm:$0xf0]  ;;  %v10956_v25 = vld [vmem:[%s16541_s3 + $0x4a4] sm:$0xf] }
 0x379   :  { %6128 = vmatpush.bf16.msrb.mxu3 %v10059_v4  ;;  %v9279_v54 = vor.u32 %v10856_v49, %v9276_v9  ;;  %v9228_v4 = vld [vmem:[%s16541_s3 + $0x130] sm:$0xf0]  ;;  %v15328_v36 = vpack.c.bf16 %v4479_v27, %v4479_v27  ;;  %v9103_v49 = vor.u32 %v10812_v28, %v9100_v42 }
 0x37a   :  { %6119 = vmatpush.bf16.msrb.mxu2 %v9867_v15  ;;  %6094 = vmatpush.bf16.msrb.mxu0 %v9595_v1  ;;  %v10888_v15 = vld [vmem:[%s16541_s3 + $0x284] sm:$0xf]  ;;  %v11046_v1 = vld [vmem:[%s16541_s3 + $0x76c] sm:$0xf0]  ;;  %v9212_v26 = vld [vmem:[%s16541_s3 + $0x110] sm:$0xf0]  ;;  %v9231_v9 = vor.u32 %v10844_v22, %v9228_v4 }
 0x37b   :  { %v9407_v59 = vor.u32 %v10888_v15, %v9404_v50  ;;  %v10027_v7 = vor.u32 %v11046_v1, %v10026_v0  ;;  %v10872_v15 = vld [vmem:[%s16541_s3 + $0x204] sm:$0xf]  ;;  %v9978_v50 = vld [vmem:[%s16541_s3 + $0x700] sm:$0xf]  ;;  %v9964_v0 = vld [vmem:[%s16541_s3 + $0x6f0] sm:$0xf0] }
 0x37c   :  { %6107 = vmatpush.bf16.msrb.mxu1 %v9723_v8  ;;  %v9263_v8 = vor.u32 %v10852_v58, %v9260_v63  ;;  %v4354_v58 = vpop.f32.mrf.mxu2  ;;  %v11028_v63 = vld [vmem:[%s16541_s3 + $0x6e4] sm:$0xf]  ;;  %v9676_v28 = vld [vmem:[%s16541_s3 + $0x4b0] sm:$0xf0] }
 0x37d   :  { %6095 = vmatmul.bf16.vlgmr.msrb.gmra.mxu0 %v15197_v62  ;;  %6129 = vmatpush.bf16.msrb.mxu3 %v10043_v51  ;;  %v11034_v51 = vld [vmem:[%s16541_s3 + $0x70c] sm:$0xf0]  ;;  %v9967_v21 = vor.u32 %v11028_v63, %v9964_v0  ;;  %v9804_v42 = vld [vmem:[%s16541_s3 + $0x5b0] sm:$0xf0]  ;;  %v9679_v22 = vor.u32 %v10956_v25, %v9676_v28  ;;  %v10952_v4 = vld [vmem:[%s16541_s3 + $0x484] sm:$0xf] }
 0x37e   :  { %6120 = vmatpush.bf16.msrb.mxu2 %v9851_v38  ;;  %6139 = vmatpush.bf16.msra.mxu0 %v9199_v19  ;;  %v10816_v38 = vld [vmem:[%s16541_s3 + $0x44] sm:$0xf]  ;;  %v10010_v19 = vld [vmem:[%s16541_s3 + $0x740] sm:$0xf]  ;;  %v9979_v29 = vor.u32 %v11034_v51, %v9978_v50  ;;  %v9548_v27 = vld [vmem:[%s16541_s3 + $0x3b0] sm:$0xf0] }
 0x37f   :  { %6108 = vmatmul.bf16.vlgmr.msrb.gmra.mxu1 %v15200_v6  ;;  %v9119_v30 = vor.u32 %v10816_v38, %v9116_v13  ;;  %v10960_v38 = vld [vmem:[%s16541_s3 + $0x4c4] sm:$0xf]  ;;  %v9900_v58 = vld [vmem:[%s16541_s3 + $0x670] sm:$0xf0] }
 0x380   :  { %6152 = vmatpush.bf16.msra.mxu1 %v9327_v17  ;;  %v11042_v17 = vld [vmem:[%s16541_s3 + $0x74c] sm:$0xf0]  ;;  %v10928_v13 = vld [vmem:[%s16541_s3 + $0x3c4] sm:$0xf]  ;;  %v9516_v63 = vld [vmem:[%s16541_s3 + $0x370] sm:$0xf0] }
 0x381   :  { %6130 = vmatpush.bf16.msrb.mxu3 %v10027_v7  ;;  %v10011_v23 = vor.u32 %v11042_v17, %v10010_v19  ;;  %6121 = vmatmul.bf16.vlgmr.msrb.gmra.mxu2 %v15328_v36  ;;  %v9692_v19 = vld [vmem:[%s16541_s3 + $0x4d0] sm:$0xf0]  ;;  %v10948_v51 = vld [vmem:[%s16541_s3 + $0x464] sm:$0xf] }
 0x382   :  { %6165 = vmatpush.bf16.msra.mxu2 %v9455_v44  ;;  %6140 = vmatpush.bf16.msra.mxu0 %v9183_v48  ;;  %v10848_v44 = vld [vmem:[%s16541_s3 + $0x144] sm:$0xf]  ;;  %v15305_v48 = vpop.f32.mrf.mxu3 }
 0x383   :  { %v9247_v34 = vor.u32 %v10848_v44, %v9244_v41  ;;  %v9564_v44 = vld [vmem:[%s16541_s3 + $0x3d0] sm:$0xf0] }
 0x384   :  { %6153 = vmatpush.bf16.msra.mxu1 %v9311_v45  ;;  %v4328_v45 = vpop.f32.mrf.mxu0  ;;  %v9820_v41 = vld [vmem:[%s16541_s3 + $0x5d0] sm:$0xf0]  ;;  %v9567_v16 = vor.u32 %v10928_v13, %v9564_v44  ;;  %v15506_v13 = vpop.f32.mrf.mxu2 }
 0x385   :  { %6131 = vmatpush.bf16.msrb.mxu3 %v10011_v23  ;;  %v9695_v23 = vor.u32 %v10960_v38, %v9692_v19  ;;  %v10912_v38 = vld [vmem:[%s16541_s3 + $0x344] sm:$0xf]  ;;  %v9500_v19 = vld [vmem:[%s16541_s3 + $0x350] sm:$0xf0] }
 0x386   :  { %6166 = vmatpush.bf16.msra.mxu2 %v9439_v33  ;;  %6141 = vmatpush.bf16.msra.mxu0 %v9167_v5  ;;  %v4341_v33 = vpop.f32.mrf.mxu1  ;;  %v9356_v5 = vld [vmem:[%s16541_s3 + $0x230] sm:$0xf0] }
 0x387   :  { %v9359_v52 = vor.u32 %v10876_v37, %v9356_v5  ;;  %v11020_v33 = vld [vmem:[%s16541_s3 + $0x6a4] sm:$0xf]  ;;  %v9660_v37 = vld [vmem:[%s16541_s3 + $0x490] sm:$0xf0] }
 0x388   :  { %6154 = vmatpush.bf16.msra.mxu1 %v9295_v31  ;;  %v9995_v31 = vor.u32 %v11038_v61, %v9994_v35  ;;  %v9932_v35 = vld [vmem:[%s16541_s3 + $0x6b0] sm:$0xf0]  ;;  %v10924_v61 = vld [vmem:[%s16541_s3 + $0x3a4] sm:$0xf]  ;;  %v9663_v50 = vor.u32 %v10952_v4, %v9660_v37 }
 0x389   :  { %v9596_v4 = vld [vmem:[%s16541_s3 + $0x410] sm:$0xf0]  ;;  %v10968_v37 = vld [vmem:[%s16541_s3 + $0x504] sm:$0xf] }
 0x38a   :  { %6167 = vmatpush.bf16.msra.mxu2 %v9423_v46  ;;  %6142 = vmatpush.bf16.msra.mxu0 %v9151_v47  ;;  %v10840_v46 = vld [vmem:[%s16541_s3 + $0x104] sm:$0xf]  ;;  %v4367_v1 = vpop.f32.mrf.mxu3 }
 0x38b   :  { %v10932_v47 = vld [vmem:[%s16541_s3 + $0x3e4] sm:$0xf]  ;;  %6132 = vmatpush.bf16.msrb.mxu3 %v9995_v31  ;;  %v9215_v7 = vor.u32 %v10840_v46, %v9212_v26  ;;  %v9935_v31 = vor.u32 %v11020_v33, %v9932_v35  ;;  %v9532_v46 = vld [vmem:[%s16541_s3 + $0x390] sm:$0xf0] }
 0x38c   :  { %6155 = vmatpush.bf16.msra.mxu1 %v9279_v54  ;;  %v9580_v54 = vld [vmem:[%s16541_s3 + $0x3f0] sm:$0xf0]  ;;  %v10908_v35 = vld [vmem:[%s16541_s3 + $0x324] sm:$0xf] }
 0x38d   :  { %v9583_v2 = vor.u32 %v10932_v47, %v9580_v54  ;;  %v9788_v26 = vld [vmem:[%s16541_s3 + $0x590] sm:$0xf0]  ;;  %v10980_v54 = vld [vmem:[%s16541_s3 + $0x564] sm:$0xf] }
 0x38e   :  { %6168 = vmatpush.bf16.msra.mxu2 %v9407_v59  ;;  %6143 = vmatpush.bf16.msra.mxu0 %v9135_v20  ;;  %v9836_v59 = vld [vmem:[%s16541_s3 + $0x5f0] sm:$0xf0]  ;;  %v9343_v20 = vor.u32 %v10872_v15, %v9340_v53  ;;  %v9535_v15 = vor.u32 %v10920_v43, %v9532_v46  ;;  %v9791_v53 = vor.u32 %v10984_v10, %v9788_v26  ;;  %v11000_v43 = vld [vmem:[%s16541_s3 + $0x604] sm:$0xf] }
 0x38f   :  { %v9839_v17 = vor.u32 %v10996_v24, %v9836_v59  ;;  %6133 = vmatpush.bf16.msrb.mxu3 %v9979_v29  ;;  %v15468_v24 = vpop.f32.mrf.mxu0  ;;  %v15474_v29 = vpop.f32.mrf.mxu1  ;;  %v10916_v59 = vld [vmem:[%s16541_s3 + $0x364] sm:$0xf]  ;;  %v9724_v10 = vld [vmem:[%s16541_s3 + $0x510] sm:$0xf0] }
 0x390   :  { %6156 = vmatpush.bf16.msra.mxu1 %v9263_v8  ;;  %v9711_v8 = vor.u32 %v10964_v55, %v9708_v56  ;;  %v9772_v55 = vld [vmem:[%s16541_s3 + $0x570] sm:$0xf0]  ;;  %v11012_v56 = vld [vmem:[%s16541_s3 + $0x664] sm:$0xf]  ;;  %v9519_v0 = vor.u32 %v10916_v59, %v9516_v63 }
 0x391   :  { %v9852_v46 = vld [vmem:[%s16541_s3 + $0x610] sm:$0xf0] }
 0x392   :  { %6169 = vmatpush.bf16.msra.mxu2 %v9391_v11  ;;  %6144 = vmatpush.bf16.msra.mxu0 %v9119_v30  ;;  %v10992_v11 = vld [vmem:[%s16541_s3 + $0x5c4] sm:$0xf]  ;;  %v9951_v30 = vor.u32 %v11024_v18, %v9948_v14  ;;  %v15508_v44 = vpop.f32.mrf.mxu3  ;;  %v616_v18 = vperm.slane %v15081_v12, 7  ;;  %v9740_v12 = vld [vmem:[%s16541_s3 + $0x530] sm:$0xf0]  ;;  %v9855_v59 = vor.u32 %v11000_v43, %v9852_v46 }
 0x393   :  { %6178 = vmatpush.bf16.msra.mxu3 %v9583_v2  ;;  %v9823_v45 = vor.u32 %v10992_v11, %v9820_v41  ;;  %v10944_v2 = vld [vmem:[%s16541_s3 + $0x444] sm:$0xf]  ;;  %v9884_v11 = vld [vmem:[%s16541_s3 + $0x650] sm:$0xf0]  ;;  %v9503_v41 = vor.u32 %v10912_v38, %v9500_v19  ;;  %v10899_v38 = vld [vmem:[%s16541_s3 + $0x2d4] sm:$0xf0] }
 0x394   :  { %6157 = vmatpush.bf16.msra.mxu1 %v9247_v34  ;;  %v10988_v34 = vld [vmem:[%s16541_s3 + $0x5a4] sm:$0xf]  ;;  %v4366_v26 = vadd.f32 %v15305_v48, %v616_v18  ;;  %v9330_v48 = vld [vmem:[%s16541_s3 + $0x1e8] sm:$0xf]  ;;  %v10831_v18 = vld [vmem:[%s16541_s3 + $0xb4] sm:$0xf0] }
 0x395   :  { %v9807_v5 = vor.u32 %v10988_v34, %v9804_v42  ;;  %v9868_v42 = vld [vmem:[%s16541_s3 + $0x630] sm:$0xf0]  ;;  %v9394_v46 = vld [vmem:[%s16541_s3 + $0x268] sm:$0xf] }
 0x396   :  { %6170 = vmatpush.bf16.msra.mxu2 %v9375_v57  ;;  %6145 = vmatpush.bf16.msra.mxu0 %v9103_v49  ;;  %v9551_v57 = vor.u32 %v10924_v61, %v9548_v27  ;;  %v11016_v49 = vld [vmem:[%s16541_s3 + $0x684] sm:$0xf]  ;;  %v9484_v61 = vld [vmem:[%s16541_s3 + $0x330] sm:$0xf0]  ;;  %v4379_v63 = vadd.f32 %v15468_v24, %v4366_v26  ;;  %v9442_v24 = vld [vmem:[%s16541_s3 + $0x2c8] sm:$0xf] }
 0x397   :  { %6179 = vmatpush.bf16.msra.mxu3 %v9567_v16  ;;  %v10940_v16 = vld [vmem:[%s16541_s3 + $0x424] sm:$0xf]  ;;  %v4380_v34 = vpop.f32.mrf.mxu0  ;;  %v4393_v33 = vpop.f32.mrf.mxu1  ;;  %v9487_v27 = vor.u32 %v10908_v35, %v9484_v61  ;;  %v10891_v35 = vld [vmem:[%s16541_s3 + $0x294] sm:$0xf0] }
 0x398   :  { %6158 = vmatpush.bf16.msra.mxu1 %v9231_v9  ;;  %v9916_v9 = vld [vmem:[%s16541_s3 + $0x690] sm:$0xf0]  ;;  %v4392_v19 = vadd.f32 %v15474_v29, %v4379_v63  ;;  %v9298_v29 = vld [vmem:[%s16541_s3 + $0x1a8] sm:$0xf]  ;;  %v10827_v34 = vld [vmem:[%s16541_s3 + $0x94] sm:$0xf0] }
 0x399   :  { %v9919_v47 = vor.u32 %v11016_v49, %v9916_v9  ;;  %v9202_v49 = vld [vmem:[%s16541_s3 + $0xe8] sm:$0xf]  ;;  %v4406_v9 = vpop.f32.mrf.mxu2  ;;  %v10887_v26 = vld [vmem:[%s16541_s3 + $0x274] sm:$0xf0] }
 0x39a   :  { %6171 = vmatpush.bf16.msra.mxu2 %v9359_v52  ;;  %6146 = vmatpush.bf16.msra.mxu0 %v9087_v3  ;;  %v9644_v52 = vld [vmem:[%s16541_s3 + $0x470] sm:$0xf0]  ;;  %v9410_v33 = vld [vmem:[%s16541_s3 + $0x288] sm:$0xf] }
 0x39b   :  { %6180 = vmatpush.bf16.msra.mxu3 %v9551_v57  ;;  %v9647_v1 = vor.u32 %v10948_v51, %v9644_v52  ;;  %v9628_v3 = vld [vmem:[%s16541_s3 + $0x450] sm:$0xf0]  ;;  %v10839_v51 = vld [vmem:[%s16541_s3 + $0xf4] sm:$0xf0] }
 0x39c   :  { %6159 = vmatpush.bf16.msra.mxu1 %v9215_v7  ;;  %v9775_v7 = vor.u32 %v10980_v54, %v9772_v55  ;;  %v9631_v14 = vor.u32 %v10944_v2, %v9628_v3  ;;  %v10871_v52 = vld [vmem:[%s16541_s3 + $0x1f4] sm:$0xf0]  ;;  %v9458_v55 = vld [vmem:[%s16541_s3 + $0x2e8] sm:$0xf] }
 0x39d   :  { %6147 = vmatmul.bf16.vlgmr.msra.gmra.mxu0 %v15008_v60  ;;  %v9186_v2 = vld [vmem:[%s16541_s3 + $0xc8] sm:$0xf] }
 0x39e   :  { %6172 = vmatpush.bf16.msra.mxu2 %v9343_v20  ;;  %6191 = vmatpush.bf16.msrb.mxu0 %v9711_v8  ;;  %v9903_v20 = vor.u32 %v11012_v56, %v9900_v58  ;;  %v10976_v8 = vld [vmem:[%s16541_s3 + $0x544] sm:$0xf]  ;;  %v10903_v56 = vld [vmem:[%s16541_s3 + $0x2f4] sm:$0xf0]  ;;  %v9727_v58 = vor.u32 %v10968_v37, %v9724_v10 }
 0x39f   :  { %6160 = vmatmul.bf16.vlgmr.msra.gmra.mxu1 %v15010_v39  ;;  %6181 = vmatpush.bf16.msra.mxu3 %v9535_v15  ;;  %v10904_v15 = vld [vmem:[%s16541_s3 + $0x304] sm:$0xf]  ;;  %v9459_v3 = vor.u32 %v10903_v56, %v9458_v55  ;;  %v10855_v10 = vld [vmem:[%s16541_s3 + $0x174] sm:$0xf0] }
 0x3a0   :  { %6204 = vmatpush.bf16.msrb.mxu1 %v9839_v17  ;;  %v9756_v17 = vld [vmem:[%s16541_s3 + $0x550] sm:$0xf0] }
 0x3a1   :  { %6173 = vmatmul.bf16.vlgmr.msra.gmra.mxu2 %v15012_v40  ;;  %v9759_v25 = vor.u32 %v10976_v8, %v9756_v17  ;;  %v10867_v8 = vld [vmem:[%s16541_s3 + $0x1d4] sm:$0xf0] }
 0x3a2   :  { %6217 = vmatpush.bf16.msrb.mxu2 %v9967_v21  ;;  %6192 = vmatpush.bf16.msrb.mxu0 %v9695_v23  ;;  %v11008_v21 = vld [vmem:[%s16541_s3 + $0x644] sm:$0xf]  ;;  %v9612_v23 = vld [vmem:[%s16541_s3 + $0x430] sm:$0xf0] }
 0x3a3   :  { %6182 = vmatpush.bf16.msra.mxu3 %v9519_v0  ;;  %v9887_v28 = vor.u32 %v11008_v21, %v9884_v11  ;;  %v9615_v57 = vor.u32 %v10940_v16, %v9612_v23  ;;  %v9203_v0 = vor.u32 %v10839_v51, %v9202_v49  ;;  %v9170_v11 = vld [vmem:[%s16541_s3 + $0xa8] sm:$0xf]  ;;  %v10895_v23 = vld [vmem:[%s16541_s3 + $0x2b4] sm:$0xf0] }
 0x3a4   :  { %6205 = vmatpush.bf16.msrb.mxu1 %v9823_v45  ;;  %v10972_v45 = vld [vmem:[%s16541_s3 + $0x524] sm:$0xf]  ;;  %v9426_v16 = vld [vmem:[%s16541_s3 + $0x2a8] sm:$0xf]  ;;  %v10819_v51 = vld [vmem:[%s16541_s3 + $0x54] sm:$0xf0] }
 0x3a6   :  { %6218 = vmatpush.bf16.msrb.mxu2 %v9951_v30  ;;  %6193 = vmatpush.bf16.msrb.mxu0 %v9679_v22  ;;  %v11004_v30 = vld [vmem:[%s16541_s3 + $0x624] sm:$0xf] }
 0x3a7   :  { %6183 = vmatpush.bf16.msra.mxu3 %v9503_v41  ;;  %v10936_v22 = vld [vmem:[%s16541_s3 + $0x404] sm:$0xf]  ;;  %v9443_v41 = vor.u32 %v10899_v38, %v9442_v24  ;;  %v9362_v38 = vld [vmem:[%s16541_s3 + $0x228] sm:$0xf] }
 0x3a8   :  { %6206 = vmatpush.bf16.msrb.mxu1 %v9807_v5  ;;  %v9743_v5 = vor.u32 %v10972_v45, %v9740_v12  ;;  %v9599_v54 = vor.u32 %v10936_v22, %v9596_v4  ;;  %v9154_v12 = vld [vmem:[%s16541_s3 + $0x88] sm:$0xf] }
 0x3a9   :  { %v9138_v4 = vld [vmem:[%s16541_s3 + $0x68] sm:$0xf] }
 0x3aa   :  { %6219 = vmatpush.bf16.msrb.mxu2 %v9935_v31  ;;  %6194 = vmatpush.bf16.msrb.mxu0 %v9663_v50  ;;  %v9871_v31 = vor.u32 %v11004_v30, %v9868_v42  ;;  %v9468_v50 = vld [vmem:[%s16541_s3 + $0x310] sm:$0xf0]  ;;  %v9427_v30 = vor.u32 %v10895_v23, %v9426_v16  ;;  %v9282_v42 = vld [vmem:[%s16541_s3 + $0x188] sm:$0xf] }
 0x3ab   :  { %6184 = vmatpush.bf16.msra.mxu3 %v9487_v27  ;;  %v9218_v16 = vld [vmem:[%s16541_s3 + $0x108] sm:$0xf] }
 0x3ac   :  { %6207 = vmatpush.bf16.msrb.mxu1 %v9791_v53  ;;  %v4419_v53 = vpop.f32.mrf.mxu3 }
 0x3ae   :  { %6220 = vmatpush.bf16.msrb.mxu2 %v9919_v47  ;;  %6195 = vmatpush.bf16.msrb.mxu0 %v9647_v1  ;;  %v9471_v47 = vor.u32 %v10904_v15, %v9468_v50  ;;  %v9331_v1 = vor.u32 %v10871_v52, %v9330_v48  ;;  %v9122_v15 = vld [vmem:[%s16541_s3 + $0x48] sm:$0xf]  ;;  %v9395_v50 = vor.u32 %v10887_v26, %v9394_v46  ;;  %v10851_v52 = vld [vmem:[%s16541_s3 + $0x154] sm:$0xf0] }
 0x3af   :  { %v9250_v48 = vld [vmem:[%s16541_s3 + $0x148] sm:$0xf]  ;;  %v9123_v63 = vor.u32 %v10819_v51, %v9122_v15  ;;  %v10963_v26 = vld [vmem:[%s16541_s3 + $0x4d4] sm:$0xf0] }
 0x3b0   :  { %6208 = vmatpush.bf16.msrb.mxu1 %v9775_v7  ;;  %v10835_v7 = vld [vmem:[%s16541_s3 + $0xd4] sm:$0xf0]  ;;  %6185 = vmatpush.bf16.msra.mxu3 %v9471_v47  ;;  %v9378_v47 = vld [vmem:[%s16541_s3 + $0x248] sm:$0xf] }
 0x3b1   :  { %v9187_v17 = vor.u32 %v10835_v7, %v9186_v2  ;;  %v10815_v7 = vld [vmem:[%s16541_s3 + $0x34] sm:$0xf0]  ;;  %v9698_v46 = vld [vmem:[%s16541_s3 + $0x4c8] sm:$0xf] }
 0x3b2   :  { %6221 = vmatpush.bf16.msrb.mxu2 %v9903_v20  ;;  %6196 = vmatpush.bf16.msrb.mxu0 %v9631_v14  ;;  %v9314_v20 = vld [vmem:[%s16541_s3 + $0x1c8] sm:$0xf]  ;;  %v10863_v14 = vld [vmem:[%s16541_s3 + $0x1b4] sm:$0xf0] }
 0x3b3   :  { %v9315_v21 = vor.u32 %v10867_v8, %v9314_v20  ;;  %v9299_v45 = vor.u32 %v10863_v14, %v9298_v29  ;;  %v9234_v20 = vld [vmem:[%s16541_s3 + $0x128] sm:$0xf]  ;;  %v10847_v8 = vld [vmem:[%s16541_s3 + $0x134] sm:$0xf0] }
 0x3b4   :  { %6209 = vmatpush.bf16.msrb.mxu1 %v9759_v25  ;;  %v4405_v25 = vadd.f32 %v15506_v13, %v4392_v19  ;;  %v10859_v13 = vld [vmem:[%s16541_s3 + $0x194] sm:$0xf0]  ;;  %v9235_v29 = vor.u32 %v10847_v8, %v9234_v20  ;;  %v9666_v8 = vld [vmem:[%s16541_s3 + $0x488] sm:$0xf] }
 0x3b5   :  { %v9283_v22 = vor.u32 %v10859_v13, %v9282_v42  ;;  %v10879_v19 = vld [vmem:[%s16541_s3 + $0x234] sm:$0xf0]  ;;  %v9842_v13 = vld [vmem:[%s16541_s3 + $0x5e8] sm:$0xf] }
 0x3b6   :  { %6222 = vmatpush.bf16.msrb.mxu2 %v9887_v28  ;;  %6197 = vmatpush.bf16.msrb.mxu0 %v9615_v57  ;;  %v9171_v28 = vor.u32 %v10831_v18, %v9170_v11  ;;  %v4418_v61 = vadd.f32 %v15508_v44, %v4405_v25  ;;  %v9155_v57 = vor.u32 %v10827_v34, %v9154_v12  ;;  %v9266_v44 = vld [vmem:[%s16541_s3 + $0x168] sm:$0xf]  ;;  %v10811_v14 = vld [vmem:[%s16541_s3 + $0x14] sm:$0xf0] }
 0x3b7   :  { %v9267_v9 = vor.u32 %v10855_v10, %v9266_v44  ;;  %v9090_v11 = vld [vmem:[%s16541_s3 + $0x8] sm:$0xf]  ;;  %v9363_v23 = vor.u32 %v10879_v19, %v9362_v38  ;;  %v10843_v25 = vld [vmem:[%s16541_s3 + $0x114] sm:$0xf0] }
 0x3b8   :  { %6210 = vmatpush.bf16.msrb.mxu1 %v9743_v5  ;;  %v9411_v5 = vor.u32 %v10891_v35, %v9410_v33  ;;  %v9714_v34 = vld [vmem:[%s16541_s3 + $0x4e8] sm:$0xf]  ;;  %v10967_v42 = vld [vmem:[%s16541_s3 + $0x4f4] sm:$0xf0] }
 0x3b9   :  { %v10999_v35 = vld [vmem:[%s16541_s3 + $0x5f4] sm:$0xf0]  ;;  %v9715_v44 = vor.u32 %v10967_v42, %v9714_v34  ;;  %v9650_v34 = vld [vmem:[%s16541_s3 + $0x468] sm:$0xf] }
 0x3ba   :  { %6223 = vmatpush.bf16.msrb.mxu2 %v9871_v31  ;;  %6198 = vmatpush.bf16.msrb.mxu0 %v9599_v54  ;;  %v4430_v27 = vpop.f32.mrf.mxu0  ;;  %v10823_v31 = vld [vmem:[%s16541_s3 + $0x74] sm:$0xf0]  ;;  %v9843_v10 = vor.u32 %v10999_v35, %v9842_v13  ;;  %v9778_v13 = vld [vmem:[%s16541_s3 + $0x568] sm:$0xf] }
 0x3bb   :  { %v4431_v43 = vadd.f32 %v4430_v27, %v4418_v61  ;;  %v9139_v49 = vor.u32 %v10823_v31, %v9138_v4  ;;  %v10883_v54 = vld [vmem:[%s16541_s3 + $0x254] sm:$0xf0]  ;;  %v9970_v61 = vld [vmem:[%s16541_s3 + $0x6e8] sm:$0xf]  ;;  %v9219_v4 = vor.u32 %v10843_v25, %v9218_v16  ;;  %v10028_v16 = vld [vmem:[%s16541_s3 + $0x770] sm:$0xf0] }
 0x3bc   :  { %6211 = vmatpush.bf16.msrb.mxu1 %v9727_v58  ;;  %v4443_v37 = vpop.f32.mrf.mxu1  ;;  %v11031_v27 = vld [vmem:[%s16541_s3 + $0x6f4] sm:$0xf0] }
 0x3bd   :  { %6199 = vmatmul.bf16.vlgmr.msrb.gmra.mxu0 %v15197_v62  ;;  %v4444_v53 = vadd.f32 %v4443_v37, %v4431_v43  ;;  %v11056_v37 = vld [vmem:[%s16541_s3 + $0x7c4] sm:$0xf]  ;;  %v9971_v43 = vor.u32 %v11031_v27, %v9970_v61  ;;  %v10995_v15 = vld [vmem:[%s16541_s3 + $0x5d4] sm:$0xf0]  ;;  %v9906_v27 = vld [vmem:[%s16541_s3 + $0x668] sm:$0xf] }
 0x3be   :  { %6224 = vmatpush.bf16.msrb.mxu2 %v9855_v59  ;;  %6243 = vmatpush.bf16.msra.mxu0 %v9203_v0  ;;  %v9251_v0 = vor.u32 %v10851_v52, %v9250_v48  ;;  %v11027_v51 = vld [vmem:[%s16541_s3 + $0x6d4] sm:$0xf0]  ;;  %v11052_v48 = vld [vmem:[%s16541_s3 + $0x7a4] sm:$0xf]  ;;  %v10060_v52 = vld [vmem:[%s16541_s3 + $0x7b0] sm:$0xf0] }
 0x3bf   :  { %6212 = vmatmul.bf16.vlgmr.msrb.gmra.mxu1 %v15200_v6  ;;  %v10951_v42 = vld [vmem:[%s16541_s3 + $0x474] sm:$0xf0] }
 0x3c0   :  { %6256 = vmatpush.bf16.msra.mxu1 %v9331_v1  ;;  %v9106_v1 = vld [vmem:[%s16541_s3 + $0x28] sm:$0xf]  ;;  %v10983_v61 = vld [vmem:[%s16541_s3 + $0x574] sm:$0xf0] }
 0x3c1   :  { %6225 = vmatmul.bf16.vlgmr.msrb.gmra.mxu2 %v15328_v36  ;;  %v9107_v18 = vor.u32 %v10815_v7, %v9106_v1  ;;  %v11023_v1 = vld [vmem:[%s16541_s3 + $0x6b4] sm:$0xf0]  ;;  %v10044_v7 = vld [vmem:[%s16541_s3 + $0x790] sm:$0xf0] }
 0x3c2   :  { %6269 = vmatpush.bf16.msra.mxu2 %v9459_v3  ;;  %6244 = vmatpush.bf16.msra.mxu0 %v9187_v17  ;;  %v4432_v59 = vpop.f32.mrf.mxu0  ;;  %v9379_v3 = vor.u32 %v10883_v54, %v9378_v47  ;;  %v11060_v17 = vld [vmem:[%s16541_s3 + $0x7e4] sm:$0xf]  ;;  %v9682_v47 = vld [vmem:[%s16541_s3 + $0x4a8] sm:$0xf] }
 0x3c3   :  { %v10991_v59 = vld [vmem:[%s16541_s3 + $0x5b4] sm:$0xf0] }
 0x3c4   :  { %6257 = vmatpush.bf16.msra.mxu1 %v9315_v21  ;;  %v4456_v55 = vpop.f32.mrf.mxu2  ;;  %v4445_v2 = vpop.f32.mrf.mxu1  ;;  %v10092_v21 = vld [vmem:[%s16541_s3 + $0x7f0] sm:$0xf0] }
 0x3c5   :  { %v4457_v56 = vadd.f32 %v4456_v55, %v4444_v53  ;;  %v9699_v53 = vor.u32 %v10963_v26, %v9698_v46  ;;  %v15790_v2 = vld [vmem:[%s16542_s4] sm:$0xf]  ;;  %v9762_v46 = vld [vmem:[%s16541_s3 + $0x548] sm:$0xf] }
 0x3c6   :  { %6270 = vmatpush.bf16.msra.mxu2 %v9443_v41  ;;  %6245 = vmatpush.bf16.msra.mxu0 %v9171_v28  ;;  %v4469_v58 = vpop.f32.mrf.mxu3  ;;  %v9346_v28 = vld [vmem:[%s16541_s3 + $0x208] sm:$0xf]  ;;  %v4747_v19 = vperm.slane %v15790_v2, 0 }
 0x3c7   :  { %v4470_v24 = vadd.f32 %v4469_v58, %v4457_v56  ;;  %v10959_v56 = vld [vmem:[%s16541_s3 + $0x4b4] sm:$0xf0]  ;;  %v9810_v58 = vld [vmem:[%s16541_s3 + $0x5a8] sm:$0xf] }
 0x3c8   :  { %6258 = vmatpush.bf16.msra.mxu1 %v9299_v45  ;;  %v10875_v45 = vld [vmem:[%s16541_s3 + $0x214] sm:$0xf0]  ;;  %v9683_v20 = vor.u32 %v10959_v56, %v9682_v47 }
 0x3c9   :  { %v4480_v41 = vmax.f32 %v4470_v24, 0.0  ;;  %v9347_v31 = vor.u32 %v10875_v45, %v9346_v28  ;;  %v9811_v24 = vor.u32 %v10991_v59, %v9810_v58  ;;  %v9618_v59 = vld [vmem:[%s16541_s3 + $0x428] sm:$0xf] }
 0x3ca   :  { %6271 = vmatpush.bf16.msra.mxu2 %v9427_v30  ;;  %6246 = vmatpush.bf16.msra.mxu0 %v9155_v57  ;;  %v10095_v30 = vor.u32 %v11060_v17, %v10092_v21  ;;  %v10955_v17 = vld [vmem:[%s16541_s3 + $0x494] sm:$0xf0]  ;;  %v9794_v21 = vld [vmem:[%s16541_s3 + $0x588] sm:$0xf] }
 0x3cb   :  { %v15717_v12 = vpack.c.bf16 %v4480_v41, %v4480_v41  ;;  %v10987_v41 = vld [vmem:[%s16541_s3 + $0x594] sm:$0xf0] }
 0x3cc   :  { %6259 = vmatpush.bf16.msra.mxu1 %v9283_v22  ;;  %v4458_v33 = vpop.f32.mrf.mxu2  ;;  %v9091_v22 = vor.u32 %v10811_v14, %v9090_v11  ;;  %v11044_v14 = vld [vmem:[%s16541_s3 + $0x764] sm:$0xf]  ;;  %v9795_v45 = vor.u32 %v10987_v41, %v9794_v21  ;;  %v10935_v21 = vld [vmem:[%s16541_s3 + $0x3f4] sm:$0xf0] }
 0x3cd   :  { %6134 = vmatmul.bf16.vlgmr.msrb.gmra.mxu3 %v15717_v12  ;;  %v10031_v35 = vor.u32 %v11044_v14, %v10028_v16  ;;  %v9730_v14 = vld [vmem:[%s16541_s3 + $0x508] sm:$0xf] }
 0x3ce   :  { %6272 = vmatpush.bf16.msra.mxu2 %v9411_v5  ;;  %6247 = vmatpush.bf16.msra.mxu0 %v9139_v49  ;;  %v4471_v57 = vpop.f32.mrf.mxu3  ;;  %v10076_v5 = vld [vmem:[%s16541_s3 + $0x7d0] sm:$0xf0]  ;;  %v9826_v49 = vld [vmem:[%s16541_s3 + $0x5c8] sm:$0xf] }
 0x3cf   :  { %6230 = vmatpush.bf16.msrb.mxu3 %v10095_v30  ;;  %v9827_v54 = vor.u32 %v10995_v15, %v9826_v49  ;;  %v11015_v57 = vld [vmem:[%s16541_s3 + $0x674] sm:$0xf0] }
 0x3d0   :  { %6260 = vmatpush.bf16.msra.mxu1 %v9267_v9  ;;  %v10079_v9 = vor.u32 %v11056_v37, %v10076_v5  ;;  %v9651_v5 = vor.u32 %v10951_v42, %v9650_v34  ;;  %v10979_v49 = vld [vmem:[%s16541_s3 + $0x554] sm:$0xf0]  ;;  %v9204_v34 = vld [vmem:[%s16541_s3 + $0xf8] sm:$0xf0]  ;;  %v10869_v42 = vld [vmem:[%s16541_s3 + $0x1ec] sm:$0xf] }
 0x3d1   :  { %v11011_v15 = vld [vmem:[%s16541_s3 + $0x654] sm:$0xf0]  ;;  %v9763_v56 = vor.u32 %v10979_v49, %v9762_v46  ;;  %v9188_v46 = vld [vmem:[%s16541_s3 + $0xd8] sm:$0xf0] }
 0x3d2   :  { %6273 = vmatpush.bf16.msra.mxu2 %v9395_v50  ;;  %6248 = vmatpush.bf16.msra.mxu0 %v9123_v63  ;;  %v9954_v50 = vld [vmem:[%s16541_s3 + $0x6c8] sm:$0xf]  ;;  %v10063_v63 = vor.u32 %v11052_v48, %v10060_v52 }
 0x3d3   :  { %v9955_v55 = vor.u32 %v11027_v51, %v9954_v50  ;;  %6231 = vmatpush.bf16.msrb.mxu3 %v10079_v9  ;;  %v9890_v9 = vld [vmem:[%s16541_s3 + $0x648] sm:$0xf]  ;;  %v11036_v50 = vld [vmem:[%s16541_s3 + $0x724] sm:$0xf]  ;;  %v9996_v51 = vld [vmem:[%s16541_s3 + $0x730] sm:$0xf0] }
 0x3d4   :  { %6261 = vmatpush.bf16.msra.mxu1 %v9251_v0  ;;  %v9938_v0 = vld [vmem:[%s16541_s3 + $0x6a8] sm:$0xf]  ;;  %v9891_v58 = vor.u32 %v11011_v15, %v9890_v9  ;;  %v9316_v9 = vld [vmem:[%s16541_s3 + $0x1d8] sm:$0xf0]  ;;  %v10897_v15 = vld [vmem:[%s16541_s3 + $0x2cc] sm:$0xf] }
 0x3d5   :  { %v9939_v38 = vor.u32 %v11023_v1, %v9938_v0  ;;  %v9746_v0 = vld [vmem:[%s16541_s3 + $0x528] sm:$0xf]  ;;  %v9999_v1 = vor.u32 %v11036_v50, %v9996_v51  ;;  %v9444_v50 = vld [vmem:[%s16541_s3 + $0x2d8] sm:$0xf0] }
 0x3d6   :  { %6274 = vmatpush.bf16.msra.mxu2 %v9379_v3  ;;  %6249 = vmatpush.bf16.msra.mxu0 %v9107_v18  ;;  %v11048_v3 = vld [vmem:[%s16541_s3 + $0x784] sm:$0xf]  ;;  %v9922_v18 = vld [vmem:[%s16541_s3 + $0x688] sm:$0xf] }
 0x3d7   :  { %6232 = vmatpush.bf16.msrb.mxu3 %v10063_v63  ;;  %v10047_v11 = vor.u32 %v11048_v3, %v10044_v7  ;;  %v10943_v63 = vld [vmem:[%s16541_s3 + $0x434] sm:$0xf0]  ;;  %v9874_v7 = vld [vmem:[%s16541_s3 + $0x628] sm:$0xf] }
 0x3d8   :  { %6262 = vmatpush.bf16.msra.mxu1 %v9235_v29  ;;  %v11019_v29 = vld [vmem:[%s16541_s3 + $0x694] sm:$0xf0]  ;;  %v9554_v51 = vld [vmem:[%s16541_s3 + $0x3a8] sm:$0xf] }
 0x3d9   :  { %v9923_v30 = vor.u32 %v11019_v29, %v9922_v18  ;;  %v10975_v3 = vld [vmem:[%s16541_s3 + $0x534] sm:$0xf0]  ;;  %v9602_v18 = vld [vmem:[%s16541_s3 + $0x408] sm:$0xf] }
 0x3da   :  { %6275 = vmatpush.bf16.msra.mxu2 %v9363_v23  ;;  %6250 = vmatpush.bf16.msra.mxu0 %v9091_v22  ;;  %v9667_v23 = vor.u32 %v10955_v17, %v9666_v8  ;;  %v6044_v25 = vpop.f32.mrf.mxu0  ;;  %v11040_v22 = vld [vmem:[%s16541_s3 + $0x744] sm:$0xf]  ;;  %v9586_v17 = vld [vmem:[%s16541_s3 + $0x3e8] sm:$0xf]  ;;  %v10939_v29 = vld [vmem:[%s16541_s3 + $0x414] sm:$0xf0] }
 0x3db   :  { %6233 = vmatpush.bf16.msrb.mxu3 %v10047_v11  ;;  %v6045_v33 = vadd.f32 %v6044_v25, %v4747_v19  ;;  %v9619_v19 = vor.u32 %v10943_v63, %v9618_v59  ;;  %v9747_v11 = vor.u32 %v10975_v3, %v9746_v0  ;;  %v9858_v25 = vld [vmem:[%s16541_s3 + $0x608] sm:$0xf]  ;;  %v9300_v59 = vld [vmem:[%s16541_s3 + $0x1b8] sm:$0xf0]  ;;  %v10893_v63 = vld [vmem:[%s16541_s3 + $0x2ac] sm:$0xf] }
 0x3dc   :  { %6263 = vmatpush.bf16.msra.mxu1 %v9219_v4  ;;  %v6057_v28 = vpop.f32.mrf.mxu1  ;;  %v10012_v4 = vld [vmem:[%s16541_s3 + $0x750] sm:$0xf0]  ;;  %v9428_v0 = vld [vmem:[%s16541_s3 + $0x2b8] sm:$0xf0]  ;;  %v10923_v3 = vld [vmem:[%s16541_s3 + $0x394] sm:$0xf0] }
 0x3dd   :  { %6251 = vmatmul.bf16.vlgmr.msra.gmra.mxu0 %v15008_v60  ;;  %v6058_v37 = vadd.f32 %v6057_v28, %v6045_v33  ;;  %6186 = vmatmul.bf16.vlgmr.msra.gmra.mxu3 %v15014_v32  ;;  %v10015_v26 = vor.u32 %v11040_v22, %v10012_v4  ;;  %v11003_v28 = vld [vmem:[%s16541_s3 + $0x614] sm:$0xf0] }
 0x3de   :  { %6276 = vmatpush.bf16.msra.mxu2 %v9347_v31  ;;  %6295 = vmatpush.bf16.msrb.mxu0 %v9715_v44  ;;  %v9779_v31 = vor.u32 %v10983_v61, %v9778_v13  ;;  %v9907_v44 = vor.u32 %v11015_v57, %v9906_v27  ;;  %v9332_v61 = vld [vmem:[%s16541_s3 + $0x1f8] sm:$0xf0]  ;;  %v10901_v27 = vld [vmem:[%s16541_s3 + $0x2ec] sm:$0xf]  ;;  %v9859_v4 = vor.u32 %v11003_v28, %v9858_v25 }
 0x3df   :  { %6264 = vmatmul.bf16.vlgmr.msra.gmra.mxu1 %v15010_v39  ;;  %6234 = vmatpush.bf16.msrb.mxu3 %v10031_v35  ;;  %v9603_v35 = vor.u32 %v10939_v29, %v9602_v18  ;;  %v9460_v57 = vld [vmem:[%s16541_s3 + $0x2f8] sm:$0xf0]  ;;  %v9522_v29 = vld [vmem:[%s16541_s3 + $0x368] sm:$0xf] }
 0x3e0   :  { %6308 = vmatpush.bf16.msrb.mxu1 %v9843_v10  ;;  %v9634_v10 = vld [vmem:[%s16541_s3 + $0x448] sm:$0xf]  ;;  %v9412_v18 = vld [vmem:[%s16541_s3 + $0x298] sm:$0xf0] }
 0x3e1   :  { %6277 = vmatmul.bf16.vlgmr.msra.gmra.mxu2 %v15012_v40 }
 0x3e2   :  { %6321 = vmatpush.bf16.msrb.mxu2 %v9971_v43  ;;  %6296 = vmatpush.bf16.msrb.mxu0 %v9699_v53  ;;  %v10947_v43 = vld [vmem:[%s16541_s3 + $0x454] sm:$0xf0] }
 0x3e3   :  { %v9635_v53 = vor.u32 %v10947_v43, %v9634_v10  ;;  %6235 = vmatpush.bf16.msrb.mxu3 %v10015_v26  ;;  %v9463_v10 = vor.u32 %v10901_v27, %v9460_v57  ;;  %v10833_v43 = vld [vmem:[%s16541_s3 + $0xcc] sm:$0xf]  ;;  %v9506_v57 = vld [vmem:[%s16541_s3 + $0x348] sm:$0xf] }
 0x3e4   :  { %6309 = vmatpush.bf16.msrb.mxu1 %v9827_v54  ;;  %v6070_v48 = vpop.f32.mrf.mxu2  ;;  %v6046_v54 = vpop.f32.mrf.mxu0  ;;  %v10865_v26 = vld [vmem:[%s16541_s3 + $0x1cc] sm:$0xf] }
 0x3e5   :  { %v6071_v47 = vadd.f32 %v6070_v48, %v6058_v37  ;;  %v9570_v37 = vld [vmem:[%s16541_s3 + $0x3c8] sm:$0xf]  ;;  %v10927_v48 = vld [vmem:[%s16541_s3 + $0x3b4] sm:$0xf0]  ;;  %v10829_v54 = vld [vmem:[%s16541_s3 + $0xac] sm:$0xf] }
 0x3e6   :  { %6322 = vmatpush.bf16.msrb.mxu2 %v9955_v55  ;;  %6297 = vmatpush.bf16.msrb.mxu0 %v9683_v20  ;;  %v6083_v52 = vpop.f32.mrf.mxu3  ;;  %v6059_v55 = vpop.f32.mrf.mxu1  ;;  %v11007_v20 = vld [vmem:[%s16541_s3 + $0x634] sm:$0xf0] }
 0x3e7   :  { %v15892_v8 = vadd.f32 %v6083_v52, %v6071_v47  ;;  %v9875_v41 = vor.u32 %v11007_v20, %v9874_v7  ;;  %6236 = vmatpush.bf16.msrb.mxu3 %v9999_v1  ;;  %v9191_v52 = vor.u32 %v10833_v43, %v9188_v46  ;;  %v9447_v47 = vor.u32 %v10897_v15, %v9444_v50  ;;  %v9172_v55 = vld [vmem:[%s16541_s3 + $0xb8] sm:$0xf0]  ;;  %v9538_v1 = vld [vmem:[%s16541_s3 + $0x388] sm:$0xf]  ;;  %v10911_v15 = vld [vmem:[%s16541_s3 + $0x334] sm:$0xf0] }
 0x3e8   :  { %6310 = vmatpush.bf16.msrb.mxu1 %v9811_v24  ;;  %v11032_v24 = vld [vmem:[%s16541_s3 + $0x704] sm:$0xf]  ;;  %v9175_v7 = vor.u32 %v10829_v54, %v9172_v55  ;;  %v9252_v46 = vld [vmem:[%s16541_s3 + $0x158] sm:$0xf0]  ;;  %v10845_v55 = vld [vmem:[%s16541_s3 + $0x12c] sm:$0xf] }
 0x3e9   :  { %v9108_v54 = vld [vmem:[%s16541_s3 + $0x38] sm:$0xf0] }
 0x3ea   :  { %6323 = vmatpush.bf16.msrb.mxu2 %v9939_v38  ;;  %6298 = vmatpush.bf16.msrb.mxu0 %v9667_v23  ;;  %v9980_v38 = vld [vmem:[%s16541_s3 + $0x710] sm:$0xf0]  ;;  %v10971_v23 = vld [vmem:[%s16541_s3 + $0x514] sm:$0xf0] }
 0x3eb   :  { %v9983_v16 = vor.u32 %v11032_v24, %v9980_v38  ;;  %v9731_v22 = vor.u32 %v10971_v23, %v9730_v14  ;;  %v9431_v24 = vor.u32 %v10893_v63, %v9428_v0  ;;  %v10825_v38 = vld [vmem:[%s16541_s3 + $0x8c] sm:$0xf]  ;;  %v10919_v14 = vld [vmem:[%s16541_s3 + $0x374] sm:$0xf0]  ;;  %v9364_v63 = vld [vmem:[%s16541_s3 + $0x238] sm:$0xf0] }
 0x3ec   :  { %6311 = vmatpush.bf16.msrb.mxu1 %v9795_v45  ;;  %v9587_v45 = vor.u32 %v10935_v21, %v9586_v17  ;;  %v6072_v13 = vpop.f32.mrf.mxu2  ;;  %v10857_v17 = vld [vmem:[%s16541_s3 + $0x18c] sm:$0xf]  ;;  %v9539_v21 = vor.u32 %v10923_v3, %v9538_v1  ;;  %v9474_v0 = vld [vmem:[%s16541_s3 + $0x308] sm:$0xf]  ;;  %v10907_v1 = vld [vmem:[%s16541_s3 + $0x314] sm:$0xf0] }
 0x3ed   :  { %6237 = vmatpush.bf16.msrb.mxu3 %v9983_v16  ;;  %v10853_v13 = vld [vmem:[%s16541_s3 + $0x16c] sm:$0xf] }
 0x3ee   :  { %6324 = vmatpush.bf16.msrb.mxu2 %v9923_v30  ;;  %6299 = vmatpush.bf16.msrb.mxu0 %v9651_v5  ;;  %v10837_v30 = vld [vmem:[%s16541_s3 + $0xec] sm:$0xf]  ;;  %v6085_v33 = vpop.f32.mrf.mxu3  ;;  %v10931_v5 = vld [vmem:[%s16541_s3 + $0x3d4] sm:$0xf0] }
 0x3ef   :  { %v9571_v49 = vor.u32 %v10931_v5, %v9570_v37  ;;  %v9523_v33 = vor.u32 %v10919_v14, %v9522_v29  ;;  %v9348_v29 = vld [vmem:[%s16541_s3 + $0x218] sm:$0xf0] }
 0x3f0   :  { %6312 = vmatpush.bf16.msrb.mxu1 %v9779_v31  ;;  %v9207_v31 = vor.u32 %v10837_v30, %v9204_v34  ;;  %6238 = vmatmul.bf16.vlgmr.msrb.gmra.mxu3 %v15717_v12  ;;  %v10821_v34 = vld [vmem:[%s16541_s3 + $0x6c] sm:$0xf] }
 0x3f1   :  { %6282 = vmatpush.bf16.msra.mxu3 %v9587_v45 }
 0x3f2   :  { %6325 = vmatpush.bf16.msrb.mxu2 %v9907_v44  ;;  %6300 = vmatpush.bf16.msrb.mxu0 %v9635_v53  ;;  %v9335_v44 = vor.u32 %v10869_v42, %v9332_v61  ;;  %v9319_v53 = vor.u32 %v10865_v26, %v9316_v9  ;;  %v9140_v42 = vld [vmem:[%s16541_s3 + $0x78] sm:$0xf0]  ;;  %v10881_v26 = vld [vmem:[%s16541_s3 + $0x24c] sm:$0xf]  ;;  %v9490_v9 = vld [vmem:[%s16541_s3 + $0x328] sm:$0xf] }
 0x3f3   :  { %v9396_v61 = vld [vmem:[%s16541_s3 + $0x278] sm:$0xf0] }
 0x3f4   :  { %6313 = vmatpush.bf16.msrb.mxu1 %v9763_v56  ;;  %v10861_v56 = vld [vmem:[%s16541_s3 + $0x1ac] sm:$0xf] }
 0x3f5   :  { %6283 = vmatpush.bf16.msra.mxu3 %v9571_v49  ;;  %v9303_v20 = vor.u32 %v10861_v56, %v9300_v59  ;;  %v9380_v49 = vld [vmem:[%s16541_s3 + $0x258] sm:$0xf0]  ;;  %v9491_v56 = vor.u32 %v10911_v15, %v9490_v9  ;;  %v10877_v59 = vld [vmem:[%s16541_s3 + $0x22c] sm:$0xf] }
 0x3f6   :  { %6326 = vmatpush.bf16.msrb.mxu2 %v9891_v58  ;;  %6301 = vmatpush.bf16.msrb.mxu0 %v9619_v19  ;;  %v9555_v58 = vor.u32 %v10927_v48, %v9554_v51  ;;  %v9156_v19 = vld [vmem:[%s16541_s3 + $0x98] sm:$0xf0]  ;;  %v10957_v15 = vld [vmem:[%s16541_s3 + $0x4ac] sm:$0xf] }
 0x3f7   :  { %v9159_v23 = vor.u32 %v10825_v38, %v9156_v19  ;;  %v9367_v38 = vor.u32 %v10877_v59, %v9364_v63  ;;  %v10809_v19 = vld [vmem:[%s16541_s3 + $0xc] sm:$0xf] }
 0x3f8   :  { %6314 = vmatpush.bf16.msrb.mxu1 %v9747_v11  ;;  %v9284_v11 = vld [vmem:[%s16541_s3 + $0x198] sm:$0xf0] }
 0x3f9   :  { %6284 = vmatpush.bf16.msra.mxu3 %v9555_v58  ;;  %v9287_v45 = vor.u32 %v10857_v17, %v9284_v11  ;;  %v9236_v58 = vld [vmem:[%s16541_s3 + $0x138] sm:$0xf0]  ;;  %v9475_v11 = vor.u32 %v10907_v1, %v9474_v0  ;;  %v10985_v0 = vld [vmem:[%s16541_s3 + $0x58c] sm:$0xf] }
 0x3fa   :  { %6327 = vmatpush.bf16.msrb.mxu2 %v9875_v41  ;;  %6302 = vmatpush.bf16.msrb.mxu0 %v9603_v35  ;;  %v10889_v41 = vld [vmem:[%s16541_s3 + $0x28c] sm:$0xf]  ;;  %v6096_v16 = vpop.f32.mrf.mxu0  ;;  %v9092_v17 = vld [vmem:[%s16541_s3 + $0x18] sm:$0xf0] }
 0x3fb   :  { %v6097_v25 = vadd.f32 %v6096_v16, %v15892_v8  ;;  %v9415_v30 = vor.u32 %v10889_v41, %v9412_v18  ;;  %v9268_v8 = vld [vmem:[%s16541_s3 + $0x178] sm:$0xf0]  ;;  %v10885_v35 = vld [vmem:[%s16541_s3 + $0x26c] sm:$0xf] }
 0x3fc   :  { %6315 = vmatpush.bf16.msrb.mxu1 %v9731_v22  ;;  %v6109_v28 = vpop.f32.mrf.mxu1  ;;  %v10915_v22 = vld [vmem:[%s16541_s3 + $0x354] sm:$0xf0]  ;;  %v9271_v37 = vor.u32 %v10853_v13, %v9268_v8  ;;  %v9399_v5 = vor.u32 %v10885_v35, %v9396_v61  ;;  %v9220_v41 = vld [vmem:[%s16541_s3 + $0x118] sm:$0xf0]  ;;  %v10873_v18 = vld [vmem:[%s16541_s3 + $0x20c] sm:$0xf] }
 0x3fd   :  { %6303 = vmatmul.bf16.vlgmr.msrb.gmra.mxu0 %v15197_v62  ;;  %6285 = vmatpush.bf16.msra.mxu3 %v9539_v21  ;;  %v16043_v27 = vadd.f32 %v6109_v28, %v6097_v25  ;;  %v9507_v43 = vor.u32 %v10915_v22, %v9506_v57  ;;  %v10841_v21 = vld [vmem:[%s16541_s3 + $0x10c] sm:$0xf]  ;;  %v9095_v28 = vor.u32 %v10809_v19, %v9092_v17  ;;  %v10082_v13 = vld [vmem:[%s16541_s3 + $0x7c8] sm:$0xf] }
 0x3fe   :  { %6328 = vmatpush.bf16.msrb.mxu2 %v9859_v4  ;;  %6347 = vmatpush.bf16.msra.mxu0 %v9207_v31  ;;  %v9143_v4 = vor.u32 %v10821_v34, %v9140_v42  ;;  %v10817_v31 = vld [vmem:[%s16541_s3 + $0x4c] sm:$0xf]  ;;  %v9972_v34 = vld [vmem:[%s16541_s3 + $0x6f8] sm:$0xf0]  ;;  %v9223_v42 = vor.u32 %v10841_v21, %v9220_v41  ;;  %v9351_v8 = vor.u32 %v10873_v18, %v9348_v29 }
 0x3ff   :  { %6316 = vmatmul.bf16.vlgmr.msrb.gmra.mxu1 %v15200_v6  ;;  %v10965_v16 = vld [vmem:[%s16541_s3 + $0x4ec] sm:$0xf] }
 0x400   :  { %6360 = vmatpush.bf16.msra.mxu1 %v9335_v44  ;;  %v9124_v44 = vld [vmem:[%s16541_s3 + $0x58] sm:$0xf0]  ;;  %v10997_v25 = vld [vmem:[%s16541_s3 + $0x5ec] sm:$0xf] }
 0x401   :  { %6329 = vmatmul.bf16.vlgmr.msrb.gmra.mxu2 %v15328_v36  ;;  %6286 = vmatpush.bf16.msra.mxu3 %v9523_v33  ;;  %v9127_v51 = vor.u32 %v10817_v31, %v9124_v44  ;;  %v11059_v33 = vld [vmem:[%s16541_s3 + $0x7d4] sm:$0xf0]  ;;  %v10961_v22 = vld [vmem:[%s16541_s3 + $0x4cc] sm:$0xf]  ;;  %v9828_v31 = vld [vmem:[%s16541_s3 + $0x5d8] sm:$0xf0] }
 0x402   :  { %6373 = vmatpush.bf16.msra.mxu2 %v9463_v10  ;;  %6348 = vmatpush.bf16.msra.mxu0 %v9191_v52  ;;  %v10849_v10 = vld [vmem:[%s16541_s3 + $0x14c] sm:$0xf]  ;;  %v6098_v50 = vpop.f32.mrf.mxu0 }
 0x403   :  { %v9255_v52 = vor.u32 %v10849_v10, %v9252_v46  ;;  %v11025_v44 = vld [vmem:[%s16541_s3 + $0x6cc] sm:$0xf]  ;;  %v9956_v10 = vld [vmem:[%s16541_s3 + $0x6d8] sm:$0xf0]  ;;  %v11055_v46 = vld [vmem:[%s16541_s3 + $0x7b4] sm:$0xf0] }
 0x404   :  { %6361 = vmatpush.bf16.msra.mxu1 %v9319_v53  ;;  %v6111_v48 = vpop.f32.mrf.mxu1  ;;  %v9383_v53 = vor.u32 %v10881_v26, %v9380_v49  ;;  %v9959_v9 = vor.u32 %v11025_v44, %v9956_v10  ;;  %v9684_v50 = vld [vmem:[%s16541_s3 + $0x4b8] sm:$0xf0]  ;;  %v16200_v63 = vpop.f32.mrf.mxu2  ;;  %v10949_v29 = vld [vmem:[%s16541_s3 + $0x46c] sm:$0xf]  ;;  %v10002_v44 = vld [vmem:[%s16541_s3 + $0x728] sm:$0xf] }
 0x405   :  { %6287 = vmatpush.bf16.msra.mxu3 %v9507_v43  ;;  %v10066_v43 = vld [vmem:[%s16541_s3 + $0x7a8] sm:$0xf]  ;;  %v11039_v10 = vld [vmem:[%s16541_s3 + $0x734] sm:$0xf0] }
 0x406   :  { %6374 = vmatpush.bf16.msra.mxu2 %v9447_v47  ;;  %6349 = vmatpush.bf16.msra.mxu0 %v9175_v7  ;;  %v10813_v47 = vld [vmem:[%s16541_s3 + $0x2c] sm:$0xf]  ;;  %v10098_v7 = vld [vmem:[%s16541_s3 + $0x7e8] sm:$0xf]  ;;  %v10067_v48 = vor.u32 %v11055_v46, %v10066_v43 }
 0x407   :  { %v9111_v3 = vor.u32 %v10813_v47, %v9108_v54  ;;  %v9940_v47 = vld [vmem:[%s16541_s3 + $0x6b8] sm:$0xf0]  ;;  %v11051_v54 = vld [vmem:[%s16541_s3 + $0x794] sm:$0xf0] }
 0x408   :  { %6362 = vmatpush.bf16.msra.mxu1 %v9303_v20  ;;  %v11063_v20 = vld [vmem:[%s16541_s3 + $0x7f4] sm:$0xf0] }
 0x409   :  { %6288 = vmatpush.bf16.msra.mxu3 %v9491_v56  ;;  %v10099_v14 = vor.u32 %v11063_v20, %v10098_v7  ;;  %v4748_v56 = vperm.slane %v15790_v2, 1  ;;  %v11017_v7 = vld [vmem:[%s16541_s3 + $0x68c] sm:$0xf]  ;;  %v9924_v20 = vld [vmem:[%s16541_s3 + $0x698] sm:$0xf0] }
 0x40a   :  { %6375 = vmatpush.bf16.msra.mxu2 %v9431_v24  ;;  %6350 = vmatpush.bf16.msra.mxu0 %v9159_v23  ;;  %v9239_v24 = vor.u32 %v10845_v55, %v9236_v58  ;;  %v9716_v23 = vld [vmem:[%s16541_s3 + $0x4f8] sm:$0xf0]  ;;  %v9687_v55 = vor.u32 %v10957_v15, %v9684_v50  ;;  %v9927_v18 = vor.u32 %v11017_v7, %v9924_v20  ;;  %v10941_v15 = vld [vmem:[%s16541_s3 + $0x42c] sm:$0xf] }
 0x40b   :  { %v9719_v35 = vor.u32 %v10965_v16, %v9716_v23  ;;  %v10981_v16 = vld [vmem:[%s16541_s3 + $0x56c] sm:$0xf]  ;;  %v9620_v50 = vld [vmem:[%s16541_s3 + $0x438] sm:$0xf0] }
 0x40c   :  { %6363 = vmatpush.bf16.msra.mxu1 %v9287_v45  ;;  %v9844_v45 = vld [vmem:[%s16541_s3 + $0x5f8] sm:$0xf0]  ;;  %v10969_v7 = vld [vmem:[%s16541_s3 + $0x50c] sm:$0xf] }
 0x40d   :  { %6289 = vmatpush.bf16.msra.mxu3 %v9475_v11  ;;  %v9847_v61 = vor.u32 %v10997_v25, %v9844_v45  ;;  %v9780_v25 = vld [vmem:[%s16541_s3 + $0x578] sm:$0xf0] }
 0x40e   :  { %6376 = vmatpush.bf16.msra.mxu2 %v9415_v30  ;;  %6351 = vmatpush.bf16.msra.mxu0 %v9143_v4  ;;  %v11029_v30 = vld [vmem:[%s16541_s3 + $0x6ec] sm:$0xf]  ;;  %v9700_v4 = vld [vmem:[%s16541_s3 + $0x4d8] sm:$0xf0] }
 0x40f   :  { %v9975_v57 = vor.u32 %v11029_v30, %v9972_v34  ;;  %v9703_v26 = vor.u32 %v10961_v22, %v9700_v4  ;;  %v9908_v45 = vld [vmem:[%s16541_s3 + $0x678] sm:$0xf0]  ;;  %v10018_v34 = vld [vmem:[%s16541_s3 + $0x748] sm:$0xf]  ;;  %v10977_v22 = vld [vmem:[%s16541_s3 + $0x54c] sm:$0xf] }
 0x410   :  { %6364 = vmatpush.bf16.msra.mxu1 %v9271_v37  ;;  %v10993_v37 = vld [vmem:[%s16541_s3 + $0x5cc] sm:$0xf]  ;;  %6290 = vmatmul.bf16.vlgmr.msra.gmra.mxu3 %v15014_v32  ;;  %v9732_v20 = vld [vmem:[%s16541_s3 + $0x518] sm:$0xf0] }
 0x411   :  { %6334 = vmatpush.bf16.msrb.mxu3 %v10099_v14  ;;  %v9831_v49 = vor.u32 %v10993_v37, %v9828_v31  ;;  %v9652_v14 = vld [vmem:[%s16541_s3 + $0x478] sm:$0xf0] }
 0x412   :  { %6377 = vmatpush.bf16.msra.mxu2 %v9399_v5  ;;  %6352 = vmatpush.bf16.msra.mxu0 %v9127_v51  ;;  %v10083_v5 = vor.u32 %v11059_v33, %v10082_v13  ;;  %v10989_v51 = vld [vmem:[%s16541_s3 + $0x5ac] sm:$0xf]  ;;  %v9655_v13 = vor.u32 %v10949_v29, %v9652_v14  ;;  %v9783_v33 = vor.u32 %v10981_v16, %v9780_v25  ;;  %v9764_v37 = vld [vmem:[%s16541_s3 + $0x558] sm:$0xf0] }
 0x413   :  { %v9892_v31 = vld [vmem:[%s16541_s3 + $0x658] sm:$0xf0] }
 0x414   :  { %6365 = vmatpush.bf16.msra.mxu1 %v9255_v52  ;;  %v9812_v52 = vld [vmem:[%s16541_s3 + $0x5b8] sm:$0xf0] }
 0x415   :  { %6335 = vmatpush.bf16.msrb.mxu3 %v10083_v5  ;;  %v9815_v58 = vor.u32 %v10989_v51, %v9812_v52  ;;  %v11009_v5 = vld [vmem:[%s16541_s3 + $0x64c] sm:$0xf]  ;;  %v9748_v52 = vld [vmem:[%s16541_s3 + $0x538] sm:$0xf0] }
 0x416   :  { %6378 = vmatpush.bf16.msra.mxu2 %v9383_v53  ;;  %6353 = vmatpush.bf16.msra.mxu0 %v9111_v3  ;;  %v11021_v53 = vld [vmem:[%s16541_s3 + $0x6ac] sm:$0xf]  ;;  %v9796_v3 = vld [vmem:[%s16541_s3 + $0x598] sm:$0xf0] }
 0x417   :  { %v9943_v59 = vor.u32 %v11021_v53, %v9940_v47  ;;  %v9799_v41 = vor.u32 %v10985_v0, %v9796_v3  ;;  %v10973_v51 = vld [vmem:[%s16541_s3 + $0x52c] sm:$0xf]  ;;  %v9876_v47 = vld [vmem:[%s16541_s3 + $0x638] sm:$0xf0] }
 0x418   :  { %6366 = vmatpush.bf16.msra.mxu1 %v9239_v24  ;;  %v10034_v24 = vld [vmem:[%s16541_s3 + $0x768] sm:$0xf]  ;;  %v11005_v53 = vld [vmem:[%s16541_s3 + $0x62c] sm:$0xf]  ;;  %v9604_v0 = vld [vmem:[%s16541_s3 + $0x418] sm:$0xf0] }
 0x419   :  { %6336 = vmatpush.bf16.msrb.mxu3 %v10067_v48  ;;  %v10003_v48 = vor.u32 %v11039_v10, %v10002_v44  ;;  %v11071_v14 = vld [vmem:[%s16543_s5 + $0x38] sm:$0xff] }
 0x41a   :  { %6379 = vmatpush.bf16.msra.mxu2 %v9367_v38  ;;  %6354 = vmatpush.bf16.msra.mxu0 %v9095_v28  ;;  %v11047_v38 = vld [vmem:[%s16541_s3 + $0x774] sm:$0xf0]  ;;  %v6148_v19 = vpop.f32.mrf.mxu0  ;;  %v11013_v28 = vld [vmem:[%s16541_s3 + $0x66c] sm:$0xf]  ;;  %v9556_v25 = vld [vmem:[%s16541_s3 + $0x3b8] sm:$0xf0] }
 0x41b   :  { %v6149_v11 = vadd.f32 %v6148_v19, %v4748_v56  ;;  %v10035_v23 = vor.u32 %v11047_v38, %v10034_v24  ;;  %v10933_v56 = vld [vmem:[%s16541_s3 + $0x3ec] sm:$0xf]  ;;  %v9492_v44 = vld [vmem:[%s16541_s3 + $0x338] sm:$0xf0] }
 0x41c   :  { %6367 = vmatpush.bf16.msra.mxu1 %v9223_v42  ;;  %v6161_v17 = vpop.f32.mrf.mxu1  ;;  %v11043_v42 = vld [vmem:[%s16541_s3 + $0x754] sm:$0xf0]  ;;  %v11001_v19 = vld [vmem:[%s16541_s3 + $0x60c] sm:$0xf] }
 0x41d   :  { %6355 = vmatmul.bf16.vlgmr.msra.gmra.mxu0 %v15008_v60  ;;  %v10050_v60 = vld [vmem:[%s16541_s3 + $0x788] sm:$0xf]  ;;  %v6162_v30 = vadd.f32 %v6161_v17, %v6149_v11  ;;  %v10019_v4 = vor.u32 %v11043_v42, %v10018_v34  ;;  %v9860_v17 = vld [vmem:[%s16541_s3 + $0x618] sm:$0xf0]  ;;  %v10929_v11 = vld [vmem:[%s16541_s3 + $0x3cc] sm:$0xf] }
 0x41e   :  { %6380 = vmatpush.bf16.msra.mxu2 %v9351_v8  ;;  %6399 = vmatpush.bf16.msrb.mxu0 %v9719_v35  ;;  %v10051_v1 = vor.u32 %v11051_v54, %v10050_v60  ;;  %v9911_v8 = vor.u32 %v11013_v28, %v9908_v45  ;;  %v6124_v35 = vpop.f32.mrf.mxu2  ;;  %v9986_v60 = vld [vmem:[%s16541_s3 + $0x708] sm:$0xf]  ;;  %v11035_v54 = vld [vmem:[%s16541_s3 + $0x714] sm:$0xf0]  ;;  %v9863_v29 = vor.u32 %v11001_v19, %v9860_v17  ;;  %v11070_v45 = vld [vmem:[%s16543_s5 + $0x30] sm:$0xff] }
 0x41f   :  { %6368 = vmatmul.bf16.vlgmr.msra.gmra.mxu1 %v15010_v39  ;;  %v10953_v39 = vld [vmem:[%s16541_s3 + $0x48c] sm:$0xf]  ;;  %v9540_v42 = vld [vmem:[%s16541_s3 + $0x398] sm:$0xf0] }
 0x420   :  { %6412 = vmatpush.bf16.msrb.mxu1 %v9847_v61  ;;  %6337 = vmatpush.bf16.msrb.mxu3 %v10051_v1  ;;  %v10945_v61 = vld [vmem:[%s16541_s3 + $0x44c] sm:$0xf]  ;;  %v9987_v1 = vor.u32 %v11035_v54, %v9986_v60  ;;  %v11079_v10 = vld [vmem:[%s16543_s5 + $0x78] sm:$0xff] }
 0x421   :  { %6381 = vmatmul.bf16.vlgmr.msra.gmra.mxu2 %v15012_v40  ;;  %v9668_v40 = vld [vmem:[%s16541_s3 + $0x498] sm:$0xf0]  ;;  %v10921_v34 = vld [vmem:[%s16541_s3 + $0x38c] sm:$0xf] }
 0x422   :  { %6425 = vmatpush.bf16.msrb.mxu2 %v9975_v57  ;;  %6400 = vmatpush.bf16.msrb.mxu0 %v9703_v26  ;;  %v9671_v21 = vor.u32 %v10953_v39, %v9668_v40  ;;  %v9636_v57 = vld [vmem:[%s16541_s3 + $0x458] sm:$0xf0]  ;;  %v6150_v43 = vpop.f32.mrf.mxu0  ;;  %v9879_v39 = vor.u32 %v11005_v53, %v9876_v47  ;;  %v10937_v40 = vld [vmem:[%s16541_s3 + $0x40c] sm:$0xf] }
 0x423   :  { %v9639_v26 = vor.u32 %v10945_v61, %v9636_v57  ;;  %v10913_v57 = vld [vmem:[%s16541_s3 + $0x34c] sm:$0xf]  ;;  %v10036_v17 = vld [vmem:[%s16541_s3 + $0x778] sm:$0xf0] }
 0x424   :  { %6413 = vmatpush.bf16.msrb.mxu1 %v9831_v49  ;;  %6338 = vmatpush.bf16.msrb.mxu3 %v10035_v23  ;;  %v6163_v46 = vpop.f32.mrf.mxu1  ;;  %v9767_v49 = vor.u32 %v10977_v22, %v9764_v37  ;;  %v10925_v23 = vld [vmem:[%s16541_s3 + $0x3ac] sm:$0xf]  ;;  %v9508_v22 = vld [vmem:[%s16541_s3 + $0x358] sm:$0xf0] }
 0x425   :  { %v9511_v37 = vor.u32 %v10913_v57, %v9508_v22  ;;  %v11057_v54 = vld [vmem:[%s16541_s3 + $0x7cc] sm:$0xf] }
 0x426   :  { %6426 = vmatpush.bf16.msrb.mxu2 %v9959_v9  ;;  %6401 = vmatpush.bf16.msrb.mxu0 %v9687_v55  ;;  %v9895_v9 = vor.u32 %v11009_v5, %v9892_v31  ;;  %v9623_v55 = vor.u32 %v10941_v15, %v9620_v50  ;;  %v6174_v3 = vpop.f32.mrf.mxu2  ;;  %v10909_v31 = vld [vmem:[%s16541_s3 + $0x32c] sm:$0xf]  ;;  %v9476_v15 = vld [vmem:[%s16541_s3 + $0x318] sm:$0xf0]  ;;  %v11078_v50 = vld [vmem:[%s16543_s5 + $0x70] sm:$0xff] }
 0x427   :  { %v16316_v24 = vadd.f32 %v6174_v3, %v6162_v30  ;;  %v9559_v30 = vor.u32 %v10925_v23, %v9556_v25  ;;  %v11075_v3 = vld [vmem:[%s16543_s5 + $0x58] sm:$0xff]  ;;  %v11045_v19 = vld [vmem:[%s16541_s3 + $0x76c] sm:$0xf] }
 0x428   :  { %6414 = vmatpush.bf16.msrb.mxu1 %v9815_v58  ;;  %6339 = vmatpush.bf16.msrb.mxu3 %v10019_v4  ;;  %v9588_v58 = vld [vmem:[%s16541_s3 + $0x3f8] sm:$0xf0]  ;;  %v11041_v23 = vld [vmem:[%s16541_s3 + $0x74c] sm:$0xf] }
 0x429   :  { %v9591_v38 = vor.u32 %v10933_v56, %v9588_v58  ;;  %v11067_v4 = vld [vmem:[%s16543_s5 + $0x18] sm:$0xff]  ;;  %v11064_v56 = vld [vmem:[%s16543_s5] sm:$0xff]  ;;  %v11077_v58 = vld [vmem:[%s16543_s5 + $0x68] sm:$0xff] }
 0x42a   :  { %6427 = vmatpush.bf16.msrb.mxu2 %v9943_v59  ;;  %6402 = vmatpush.bf16.msrb.mxu0 %v9671_v21  ;;  %v9751_v59 = vor.u32 %v10973_v51, %v9748_v52  ;;  %v9607_v21 = vor.u32 %v10937_v40, %v9604_v0  ;;  %v11061_v51 = vld [vmem:[%s16541_s3 + $0x7ec] sm:$0xf]  ;;  %v10068_v0 = vld [vmem:[%s16541_s3 + $0x7b8] sm:$0xf0] }
 0x42b   :  { %v11065_v52 = vld [vmem:[%s16543_s5 + $0x8] sm:$0xff] }
 0x42c   :  { %6415 = vmatpush.bf16.msrb.mxu1 %v9799_v41  ;;  %6340 = vmatpush.bf16.msrb.mxu3 %v10003_v48  ;;  %v9572_v41 = vld [vmem:[%s16541_s3 + $0x3d8] sm:$0xf0]  ;;  %v11053_v40 = vld [vmem:[%s16541_s3 + $0x7ac] sm:$0xf] }
 0x42d   :  { %v9575_v16 = vor.u32 %v10929_v11, %v9572_v41  ;;  %v10100_v48 = vld [vmem:[%s16541_s3 + $0x7f8] sm:$0xf0]  ;;  %v11074_v11 = vld [vmem:[%s16543_s5 + $0x50] sm:$0xff]  ;;  %v11033_v22 = vld [vmem:[%s16541_s3 + $0x70c] sm:$0xf] }
 0x42e   :  { %6428 = vmatpush.bf16.msrb.mxu2 %v9927_v18  ;;  %6403 = vmatpush.bf16.msrb.mxu0 %v9655_v13  ;;  %v9735_v18 = vor.u32 %v10969_v7, %v9732_v20  ;;  %v6176_v28 = vpop.f32.mrf.mxu2  ;;  %v11069_v13 = vld [vmem:[%s16543_s5 + $0x28] sm:$0xff]  ;;  %v10103_v60 = vor.u32 %v11061_v51, %v10100_v48  ;;  %v10052_v20 = vld [vmem:[%s16541_s3 + $0x798] sm:$0xf0] }
 0x42f   :  { %v11049_v7 = vld [vmem:[%s16541_s3 + $0x78c] sm:$0xf]  ;;  %v11087_v48 = vld [vmem:[%s16543_s5 + $0xb8] sm:$0xff] }
 0x430   :  { %6416 = vmatpush.bf16.msrb.mxu1 %v9783_v33  ;;  %6341 = vmatpush.bf16.msrb.mxu3 %v9987_v1  ;;  %v9524_v33 = vld [vmem:[%s16541_s3 + $0x378] sm:$0xf0]  ;;  %v10071_v1 = vor.u32 %v11053_v40, %v10068_v0  ;;  %v11073_v28 = vld [vmem:[%s16543_s5 + $0x48] sm:$0xff] }
 0x431   :  { %v11081_v40 = vld [vmem:[%s16543_s5 + $0x88] sm:$0xff] }
 0x432   :  { %6429 = vmatpush.bf16.msrb.mxu2 %v9911_v8  ;;  %6404 = vmatpush.bf16.msrb.mxu0 %v9639_v26  ;;  %v11066_v26 = vld [vmem:[%s16543_s5 + $0x10] sm:$0xff] }
 0x433   :  { %6342 = vmatmul.bf16.vlgmr.msrb.gmra.mxu3 %v15717_v12 }
 0x434   :  { %6417 = vmatpush.bf16.msrb.mxu1 %v9767_v49  ;;  %6386 = vmatpush.bf16.msra.mxu3 %v9591_v38  ;;  %v9495_v49 = vor.u32 %v10909_v31, %v9492_v44  ;;  %v10055_v38 = vor.u32 %v11049_v7, %v10052_v20  ;;  %v11080_v20 = vld [vmem:[%s16543_s5 + $0x80] sm:$0xff] }
 0x436   :  { %6430 = vmatpush.bf16.msrb.mxu2 %v9895_v9  ;;  %6405 = vmatpush.bf16.msrb.mxu0 %v9623_v55  ;;  %v10905_v9 = vld [vmem:[%s16541_s3 + $0x30c] sm:$0xf]  ;;  %v10084_v55 = vld [vmem:[%s16541_s3 + $0x7d8] sm:$0xf0] }
 0x437   :  { %v9479_v53 = vor.u32 %v10905_v9, %v9476_v15 }
 0x438   :  { %6418 = vmatpush.bf16.msrb.mxu1 %v9751_v59  ;;  %6387 = vmatpush.bf16.msra.mxu3 %v9575_v16  ;;  %v10087_v59 = vor.u32 %v11057_v54, %v10084_v55  ;;  %v10039_v16 = vor.u32 %v11045_v19, %v10036_v17  ;;  %v11084_v54 = vld [vmem:[%s16543_s5 + $0xa0] sm:$0xff]  ;;  %v11083_v55 = vld [vmem:[%s16543_s5 + $0x98] sm:$0xff] }
 0x43a   :  { %6431 = vmatpush.bf16.msrb.mxu2 %v9879_v39  ;;  %6406 = vmatpush.bf16.msrb.mxu0 %v9607_v21  ;;  %v16361_v8 = vpop.f32.mrf.mxu0  ;;  %v11076_v39 = vld [vmem:[%s16543_s5 + $0x60] sm:$0xff]  ;;  %v6123_v21 = vadd.f32 %v16200_v63, %v16043_v27  ;;  %v10020_v27 = vld [vmem:[%s16541_s3 + $0x758] sm:$0xf0] }
 0x43c   :  { %6419 = vmatpush.bf16.msrb.mxu1 %v9735_v18  ;;  %6388 = vmatpush.bf16.msra.mxu3 %v9559_v30  ;;  %v16363_v35 = vpop.f32.mrf.mxu1  ;;  %v10023_v30 = vor.u32 %v11041_v23, %v10020_v27  ;;  %v11095_v27 = vld [vmem:[%s16543_s5 + $0xf8] sm:$0xff] }
 0x43d   :  { %6407 = vmatmul.bf16.vlgmr.msrb.gmra.mxu0 %v15197_v62  ;;  %v9543_v62 = vor.u32 %v10921_v34, %v9540_v42  ;;  %v11037_v34 = vld [vmem:[%s16541_s3 + $0x72c] sm:$0xf]  ;;  %v10004_v42 = vld [vmem:[%s16541_s3 + $0x738] sm:$0xf0] }
 0x43e   :  { %6432 = vmatpush.bf16.msrb.mxu2 %v9863_v29  ;;  %6719 = vmatpush.bf16.msra.mxu0 %v11071_v14  ;;  %v10007_v57 = vor.u32 %v11037_v34, %v10004_v42  ;;  %v11094_v42 = vld [vmem:[%s16543_s5 + $0xf0] sm:$0xff] }
 0x43f   :  { %6420 = vmatmul.bf16.vlgmr.msrb.gmra.mxu1 %v15200_v6  ;;  %v10917_v6 = vld [vmem:[%s16541_s3 + $0x36c] sm:$0xf] }
 0x440   :  { %6389 = vmatpush.bf16.msra.mxu3 %v9543_v62  ;;  %v9527_v61 = vor.u32 %v10917_v6, %v9524_v33  ;;  %6732 = vmatpush.bf16.msra.mxu1 %v11079_v10  ;;  %v11072_v62 = vld [vmem:[%s16543_s5 + $0x40] sm:$0xff] }
 0x441   :  { %6433 = vmatmul.bf16.vlgmr.msrb.gmra.mxu2 %v15328_v36  ;;  %v11068_v36 = vld [vmem:[%s16543_s5 + $0x20] sm:$0xff] }
 0x442   :  { %6720 = vmatpush.bf16.msra.mxu0 %v11070_v45  ;;  %v6202_v43 = vpop.f32.mrf.mxu0  ;;  %6745 = vmatpush.bf16.msra.mxu2 %v11087_v48  ;;  %v11096_v48 = vld [vmem:[%s16544_s6] ss:$0 sm:$0xff] }
 0x444   :  { %6390 = vmatpush.bf16.msra.mxu3 %v9527_v61  ;;  %v16377_v5 = vpop.f32.mrf.mxu2  ;;  %v6215_v46 = vpop.f32.mrf.mxu1  ;;  %6733 = vmatpush.bf16.msra.mxu1 %v11078_v50 }
 0x446   :  { %6721 = vmatpush.bf16.msra.mxu0 %v11069_v13 }
 0x448   :  { %6391 = vmatpush.bf16.msra.mxu3 %v9511_v37  ;;  %6734 = vmatpush.bf16.msra.mxu1 %v11077_v58  ;;  %v11100_v58 = vld [vmem:[%s16542_s4] sm:$0xf] }
 0x44a   :  { %6722 = vmatpush.bf16.msra.mxu0 %v11068_v36 }
 0x44c   :  { %6392 = vmatpush.bf16.msra.mxu3 %v9495_v49  ;;  %v6228_v47 = vpop.f32.mrf.mxu2  ;;  %6735 = vmatpush.bf16.msra.mxu1 %v11076_v39 }
 0x44e   :  { %6723 = vmatpush.bf16.msra.mxu0 %v11067_v4  ;;  %v9988_v4 = vld [vmem:[%s16541_s3 + $0x718] sm:$0xf0] }
 0x44f   :  { %v9991_v37 = vor.u32 %v11033_v22, %v9988_v4  ;;  %v11088_v4 = vld [vmem:[%s16543_s5 + $0xc0] sm:$0xff] }
 0x450   :  { %6393 = vmatpush.bf16.msra.mxu3 %v9479_v53  ;;  %6736 = vmatpush.bf16.msra.mxu1 %v11075_v3  ;;  %v6135_v18 = vpop.f32.mrf.mxu3 }
 0x451   :  { %v6136_v14 = vadd.f32 %v6135_v18, %v6123_v21 }
 0x452   :  { %6724 = vmatpush.bf16.msra.mxu0 %v11066_v26 }
 0x453   :  { %6394 = vmatmul.bf16.vlgmr.msra.gmra.mxu3 %v15014_v32  ;;  %v4749_v32 = vperm.slane %v15790_v2, 2  ;;  %v6451_v25 = vmax.f32 %v6136_v14, 0.0 }
 0x454   :  { %6438 = vmatpush.bf16.msrb.mxu3 %v10103_v60  ;;  %6737 = vmatpush.bf16.msra.mxu1 %v11074_v11 }
 0x455   :  { %v6455_v45 = vpack.c.bf16 %v6451_v25, %v6451_v25 }
 0x456   :  { %6725 = vmatpush.bf16.msra.mxu0 %v11065_v52 }
 0x458   :  { %6439 = vmatpush.bf16.msrb.mxu3 %v10087_v59  ;;  %6738 = vmatpush.bf16.msra.mxu1 %v11073_v28  ;;  %v6137_v36 = vpop.f32.mrf.mxu3  ;;  %v4750_v59 = vperm.slane %v11100_v58, 3 }
 0x459   :  { %v11091_v36 = vld [vmem:[%s16543_s5 + $0xd8] sm:$0xff] }
 0x45a   :  { %6726 = vmatpush.bf16.msra.mxu0 %v11064_v56  ;;  %v6252_v41 = vpop.f32.mrf.mxu0  ;;  %v11082_v56 = vld [vmem:[%s16543_s5 + $0x90] sm:$0xff] }
 0x45b   :  { %v6253_v2 = vadd.f32 %v6252_v41, %v4749_v32 }
 0x45c   :  { %6440 = vmatpush.bf16.msrb.mxu3 %v10071_v1  ;;  %v6265_v29 = vpop.f32.mrf.mxu1  ;;  %6739 = vmatpush.bf16.msra.mxu1 %v11072_v62 }
 0x45d   :  { %v6266_v63 = vadd.f32 %v6265_v29, %v6253_v2  ;;  %6727 = vmatmul.bf16.vlgmr.msra.gmra.mxu0 %v6455_v45 }
 0x460   :  { %6441 = vmatpush.bf16.msrb.mxu3 %v10055_v38  ;;  %v6187_v44 = vpop.f32.mrf.mxu3 }
 0x461   :  { %v6188_v10 = vadd.f32 %v6187_v44, %v16316_v24 }
 0x462   :  { %v6254_v33 = vpop.f32.mrf.mxu0 }
 0x463   :  { %v6201_v46 = vadd.f32 %v16361_v8, %v6188_v10  ;;  %v11086_v8 = vld [vmem:[%s16543_s5 + $0xb0] sm:$0xff] }
 0x464   :  { %6442 = vmatpush.bf16.msrb.mxu3 %v10039_v16  ;;  %v6278_v13 = vpop.f32.mrf.mxu2  ;;  %v6267_v61 = vpop.f32.mrf.mxu1  ;;  %6746 = vmatpush.bf16.msra.mxu2 %v11086_v8 }
 0x465   :  { %v6279_v6 = vadd.f32 %v6278_v13, %v6266_v63  ;;  %v6214_v26 = vadd.f32 %v16363_v35, %v6201_v46  ;;  %v11093_v13 = vld [vmem:[%s16543_s5 + $0xe8] sm:$0xff]  ;;  %v11090_v61 = vld [vmem:[%s16543_s5 + $0xd0] sm:$0xff] }
 0x467   :  { %v6227_v15 = vadd.f32 %v16377_v5, %v6214_v26  ;;  %v11085_v5 = vld [vmem:[%s16543_s5 + $0xa8] sm:$0xff] }
 0x468   :  { %6443 = vmatpush.bf16.msrb.mxu3 %v10023_v30  ;;  %v6189_v43 = vpop.f32.mrf.mxu3  ;;  %6747 = vmatpush.bf16.msra.mxu2 %v11085_v5 }
 0x46c   :  { %6444 = vmatpush.bf16.msrb.mxu3 %v10007_v57  ;;  %v6280_v31 = vpop.f32.mrf.mxu2  ;;  %6748 = vmatpush.bf16.msra.mxu2 %v11084_v54  ;;  %v11089_v57 = vld [vmem:[%s16543_s5 + $0xc8] sm:$0xff] }
 0x470   :  { %6445 = vmatpush.bf16.msrb.mxu3 %v9991_v37  ;;  %6749 = vmatpush.bf16.msra.mxu2 %v11083_v55 }
 0x473   :  { %6446 = vmatmul.bf16.vlgmr.msrb.gmra.mxu3 %v15717_v12  ;;  %v6239_v50 = vpop.f32.mrf.mxu3 }
 0x474   :  { %v6240_v51 = vadd.f32 %v6239_v50, %v6227_v15  ;;  %6750 = vmatpush.bf16.msra.mxu2 %v11082_v56  ;;  %6758 = vmatpush.bf16.msra.mxu3 %v11095_v27 }
 0x476   :  { %v6452_v52 = vmax.f32 %v6240_v51, 0.0 }
 0x478   :  { %v6456_v24 = vpack.c.bf16 %v6452_v52, %v6452_v52  ;;  %6751 = vmatpush.bf16.msra.mxu2 %v11081_v40  ;;  %6759 = vmatpush.bf16.msra.mxu3 %v11094_v42 }
 0x47a   :  { %v6304_v49 = vpop.f32.mrf.mxu0  ;;  %6740 = vmatmul.bf16.vlgmr.msra.gmra.mxu1 %v6456_v24 }
 0x47b   :  { %v6241_v35 = vpop.f32.mrf.mxu3 }
 0x47c   :  { %v6317_v9 = vpop.f32.mrf.mxu1  ;;  %6752 = vmatpush.bf16.msra.mxu2 %v11080_v20  ;;  %6760 = vmatpush.bf16.msra.mxu3 %v11093_v13 }
 0x482   :  { %v6306_v12 = vpop.f32.mrf.mxu0 }
 0x484   :  { %v6330_v53 = vpop.f32.mrf.mxu2  ;;  %v6319_v47 = vpop.f32.mrf.mxu1 }
 0x48c   :  { %v6332_v60 = vpop.f32.mrf.mxu2 }
 0x493   :  { %v6291_v7 = vpop.f32.mrf.mxu3 }
 0x494   :  { %v6292_v41 = vadd.f32 %v6291_v7, %v6279_v6  ;;  %v11092_v6 = vld [vmem:[%s16543_s5 + $0xe0] sm:$0xff] }
 0x495   :  { %6761 = vmatpush.bf16.msra.mxu3 %v11092_v6 }
 0x496   :  { %v6305_v18 = vadd.f32 %v6304_v49, %v6292_v41 }
 0x498   :  { %v6318_v2 = vadd.f32 %v6317_v9, %v6305_v18 }
 0x499   :  { %6762 = vmatpush.bf16.msra.mxu3 %v11091_v36 }
 0x49a   :  { %v6356_v39 = vpop.f32.mrf.mxu0  ;;  %v6331_v16 = vadd.f32 %v6330_v53, %v6318_v2 }
 0x49b   :  { %v6357_v0 = vadd.f32 %v6356_v39, %v4750_v59  ;;  %v6293_v21 = vpop.f32.mrf.mxu3 }
 0x49c   :  { %v6369_v1 = vpop.f32.mrf.mxu1 }
 0x49d   :  { %v6370_v3 = vadd.f32 %v6369_v1, %v6357_v0  ;;  %6763 = vmatpush.bf16.msra.mxu3 %v11090_v61 }
 0x4a1   :  { %6764 = vmatpush.bf16.msra.mxu3 %v11089_v57 }
 0x4a2   :  { %v6358_v19 = vpop.f32.mrf.mxu0 }
 0x4a4   :  { %v6382_v38 = vpop.f32.mrf.mxu2  ;;  %v6371_v17 = vpop.f32.mrf.mxu1 }
 0x4a5   :  { %v6383_v32 = vadd.f32 %v6382_v38, %v6370_v3  ;;  %6765 = vmatpush.bf16.msra.mxu3 %v11088_v4 }
 0x4ac   :  { %v6384_v11 = vpop.f32.mrf.mxu2 }
 0x4b6   :  { %v6343_v23 = vpop.f32.mrf.mxu3 }
 0x4b7   :  { %v6344_v63 = vadd.f32 %v6343_v23, %v6331_v16 }
 0x4b9   :  { %v6453_v25 = vmax.f32 %v6344_v63, 0.0 }
 0x4ba   :  { %v6408_v29 = vpop.f32.mrf.mxu0 }
 0x4bb   :  { %v6457_v30 = vpack.c.bf16 %v6453_v25, %v6453_v25 }
 0x4bc   :  { %v6421_v14 = vpop.f32.mrf.mxu1 }
 0x4bd   :  { %6753 = vmatmul.bf16.vlgmr.msra.gmra.mxu2 %v6457_v30 }
 0x4be   :  { %v6345_v62 = vpop.f32.mrf.mxu3 }
 0x4c2   :  { %v6410_v45 = vpop.f32.mrf.mxu0 }
 0x4c4   :  { %v6434_v28 = vpop.f32.mrf.mxu2  ;;  %v6423_v34 = vpop.f32.mrf.mxu1 }
 0x4cc   :  { %v6436_v33 = vpop.f32.mrf.mxu2 }
 0x4d6   :  { %v6395_v22 = vpop.f32.mrf.mxu3 }
 0x4d7   :  { %v6396_v44 = vadd.f32 %v6395_v22, %v6383_v32 }
 0x4d9   :  { %v6409_v43 = vadd.f32 %v6408_v29, %v6396_v44 }
 0x4da   :  { %v6728_v31 = vpop.f32.mrf.mxu0 }
 0x4db   :  { %v6422_v46 = vadd.f32 %v6421_v14, %v6409_v43  ;;  %v6729_v52 = vadd.f32 %v11096_v48, %v6728_v31 }
 0x4dd   :  { %v6435_v26 = vadd.f32 %v6434_v28, %v6422_v46 }
 0x4de   :  { %v6397_v37 = vpop.f32.mrf.mxu3 }
 0x4e2   :  { %v6730_v10 = vpop.f32.mrf.mxu0 }
 0x4f6   :  { %v6447_v49 = vpop.f32.mrf.mxu3 }
 0x4f7   :  { %v6448_v9 = vadd.f32 %v6447_v49, %v6435_v26  ;;  %v6741_v53 = vpop.f32.mrf.mxu1 }
 0x4f8   :  { %v6742_v12 = vadd.f32 %v6741_v53, %v6729_v52 }
 0x4f9   :  { %v6454_v15 = vmax.f32 %v6448_v9, 0.0 }
 0x4fb   :  { %v6458_v50 = vpack.c.bf16 %v6454_v15, %v6454_v15 }
 0x4fd   :  { %6766 = vmatmul.bf16.vlgmr.msra.gmra.mxu3 %v6458_v50 }
 0x4fe   :  { %v6449_v51 = vpop.f32.mrf.mxu3 }
 0x4ff   :  { %v6743_v24 = vpop.f32.mrf.mxu1 }
 0x540   :  { %v6754_v47 = vpop.f32.mrf.mxu2 }
 0x541   :  { %v6755_v35 = vadd.f32 %v6754_v47, %v6742_v12 }
 0x548   :  { %v6756_v8 = vpop.f32.mrf.mxu2 }
 0x580   :  { %v6767_v5 = vpop.f32.mrf.mxu3 }
 0x581   :  { %v6768_v60 = vadd.f32 %v6767_v5, %v6755_v35 }
 0x583   :  { %6771 = vst [vmem:[%s16545_s7] sm:$0xff] %v6768_v60 }
 0x588   :  { %v6769_v54 = vpop.f32.mrf.mxu3 }

</bundles_post_ra>
